<compile_context>
chip_gen: v7x
topology: tpu7x:2x2x1
jax: 0.10.0
libtpu: 0.0.40
codegen_flags: <defaults>
</compile_context>

<pallas_src>
import functools

import numpy as np

import jax
import jax.numpy as jnp
from jax import lax
from jax.experimental import pallas as pl
from jax.experimental.pallas import tpu as pltpu


Z_DIM = 10
NC = 1


# ----------------------------------------------------------------------------
# Pallas kernels
# ----------------------------------------------------------------------------
def _mm_bias_kernel(x_ref, w_ref, b_ref, o_ref, *, relu):
    # f32 accumulate on the MXU, bias + ReLU epilogue rides free VPU slots,
    # single cast to the (bf16/f32) output dtype at the end.
    acc = jnp.dot(x_ref[...], w_ref[...], preferred_element_type=jnp.float32)
    acc = acc + b_ref[...]                       # (1, N) broadcast over rows
    if relu:
        acc = jnp.maximum(acc, 0.0)
    o_ref[...] = acc.astype(o_ref.dtype)


def _pick_tile_m(M):
    """Big tiles amortize per-step overhead; for M >= 256 cap the tile at
    ceil(M/2) (rounded to 8) so the 'parallel' grid axis has >= 2 steps and can
    shard across both v7x TensorCores.  Prefer exact divisors."""
    if M < 256:
        return M
    half = (((M + 1) // 2) + 7) // 8 * 8
    for tm in (1024, 512, 256, 128):
        if tm <= half and M % tm == 0:
            return tm
    return min(half, 512)   # remainder block handled by pl.cdiv / masked stores


def matmul_bias(x, w, b, *, relu, out_dtype=jnp.bfloat16):
    """y = relu?(x @ w + b).  x:(M,K), w:(K,N); bf16 on the MXU, f32 accumulate."""
    M, K = x.shape
    K2, N = w.shape
    assert K == K2
    xb = x if x.dtype == jnp.bfloat16 else x.astype(jnp.bfloat16)
    wb = w if w.dtype == jnp.bfloat16 else w.astype(jnp.bfloat16)
    bb = b.astype(jnp.float32).reshape(1, N)
    tm = _pick_tile_m(M)
    grid = (pl.cdiv(M, tm),)
    return pl.pallas_call(
        functools.partial(_mm_bias_kernel, relu=relu),
        out_shape=jax.ShapeDtypeStruct((M, N), out_dtype),
        grid=grid,
        in_specs=[
            pl.BlockSpec((tm, K), lambda i: (i, 0)),
            pl.BlockSpec((K, N), lambda i: (0, 0)),
            pl.BlockSpec((1, N), lambda i: (0, 0)),
        ],
        out_specs=pl.BlockSpec((tm, N), lambda i: (i, 0)),
        compiler_params=pltpu.CompilerParams(dimension_semantics=("parallel",)),
    )(xb, wb, bb)


def _mlp_reparam_kernel(h_ref, eps_ref,
                        ew0_ref, eb0_ref, ew1_ref, eb1_ref,
                        ewm_ref, ebm_ref, ewv_ref, ebv_ref,
                        dw0_ref, db0_ref, dw1_ref, db1_ref, dw2_ref, db2_ref,
                        dec_ref, mu_ref, logvar_ref):
    """Fused encoder-MLP -> reparametrize -> decoder-MLP; all weights in VMEM,
    bf16 matmuls with f32 accumulation, f32 mu/logvar/exp math."""
    def ff(a, w_ref, b_ref, relu=True):
        y = jnp.dot(a.astype(jnp.bfloat16), w_ref[...],
                    preferred_element_type=jnp.float32) + b_ref[...]
        return jnp.maximum(y, 0.0) if relu else y

    h = h_ref[...]
    h = ff(h, ew0_ref, eb0_ref)
    h = ff(h, ew1_ref, eb1_ref)
    mu = ff(h, ewm_ref, ebm_ref, relu=False)
    logvar = ff(h, ewv_ref, ebv_ref, relu=False)
    z = mu + jnp.exp(logvar * 0.5) * eps_ref[...]
    d = ff(z, dw0_ref, db0_ref)
    d = ff(d, dw1_ref, db1_ref)
    d = ff(d, dw2_ref, db2_ref)
    dec_ref[...] = d.astype(dec_ref.dtype)
    mu_ref[...] = mu
    logvar_ref[...] = logvar


def fused_mlp_reparam(h, eps, prep):
    B = h.shape[0]
    z_dim = prep["e_l2m_w"].shape[1]

    def b2(v):
        return v.reshape(1, -1).astype(jnp.float32)

    args = [
        h, eps.astype(jnp.float32),
        prep["e_l0_w"], b2(prep["e_l0_b"]),
        prep["e_l1_w"], b2(prep["e_l1_b"]),
        prep["e_l2m_w"], b2(prep["e_l2m_b"]),
        prep["e_l2v_w"], b2(prep["e_l2v_b"]),
        prep["d_l0_w"], b2(prep["d_l0_b"]),
        prep["d_l1_w"], b2(prep["d_l1_b"]),
        prep["d_l2_w"], b2(prep["d_l2_b"]),
    ]
    out_shape = (jax.ShapeDtypeStruct((B, 512), jnp.bfloat16),
                 jax.ShapeDtypeStruct((B, z_dim), jnp.float32),
                 jax.ShapeDtypeStruct((B, z_dim), jnp.float32))
    # No grid: every operand is a whole-array VMEM block (total < 1 MiB).
    return pl.pallas_call(_mlp_reparam_kernel, out_shape=out_shape)(*args)


# ----------------------------------------------------------------------------
# Conv / ConvTranspose lowered to NHWC bf16 im2col + Pallas matmul
# ----------------------------------------------------------------------------
def conv2d_nhwc(x, wmat, b, *, ksize, stride, pad, relu, out_dtype=jnp.bfloat16):
    """x: (B,H,W,C) NHWC bf16; wmat: (KH*KW*C, O) bf16 matmul-form weight."""
    B, H, W, C = x.shape
    KH = KW = ksize
    O = wmat.shape[1]
    Ho = (H + 2 * pad - KH) // stride + 1
    Wo = (W + 2 * pad - KW) // stride + 1
    xp = jnp.pad(x, ((0, 0), (pad, pad), (pad, pad), (0, 0)))
    cols = []
    for u in range(KH):
        for v in range(KW):
            cols.append(xp[:, u:u + stride * Ho:stride, v:v + stride * Wo:stride, :])
    patches = jnp.concatenate(cols, axis=-1).reshape(B * Ho * Wo, KH * KW * C)
    y = matmul_bias(patches, wmat, b, relu=relu, out_dtype=out_dtype)
    return y.reshape(B, Ho, Wo, O)


def conv_transpose2d_nhwc(x, wmat, b4, *, relu, out_dtype=jnp.bfloat16):
    """ConvTranspose2d(C,O,4,stride=2,pad=1) via sub-pixel decomposition.
    wmat: (9*C, 4*O) (rows (r,s,c), cols (di,dj,o)); N = 4*O = 128 is lane-dense
    for the interior decoder layers (O = 32)."""
    B, H, W, C = x.shape
    O = wmat.shape[1] // 4
    xp = jnp.pad(x, ((0, 0), (1, 1), (1, 1), (0, 0)))
    cols = []
    for r in range(3):
        for s in range(3):
            cols.append(xp[:, r:r + H, s:s + W, :])
    patches = jnp.concatenate(cols, axis=-1).reshape(B * H * W, 9 * C)
    y = matmul_bias(patches, wmat, b4, relu=relu, out_dtype=out_dtype)
    y = y.reshape(B, H, W, 2, 2, O).transpose(0, 1, 3, 2, 4, 5)
    return y.reshape(B, 2 * H, 2 * W, O)


def conv_transpose2d_rowdense(x, wrow, brow, *, relu, out_dtype=jnp.float32):
    """Last ConvTranspose2d(k=4,s=2,p=1): one lane-dense matmul.  Each M-row is
    a (3-input-row, full-width) band; each output row holds the two output
    image rows it produces (N = 2*2W*O = 128 for W=32, O=nc=1)."""
    B, H, W, C = x.shape
    O = wrow.shape[1] // (2 * 2 * W)
    xp = jnp.pad(x, ((0, 0), (1, 1), (0, 0), (0, 0)))               # pad rows only
    rows = jnp.stack([xp[:, r:r + H] for r in range(3)], axis=2)    # (B,H,3,W,C)
    patches = rows.reshape(B * H, 3 * W * C)
    y = matmul_bias(patches, wrow, brow, relu=relu, out_dtype=out_dtype)
    return y.reshape(B, H, 2, 2 * W, O).reshape(B, 2 * H, 2 * W, O)


# ----------------------------------------------------------------------------
# Weight preparation (one-time, numpy)
# ----------------------------------------------------------------------------
def _conv_weight_mat(w):
    """PyTorch Conv2d weight (O,C,KH,KW) -> (KH*KW*C, O) matmul form."""
    w = np.asarray(w, np.float32)
    O, C, KH, KW = w.shape
    return np.transpose(w, (2, 3, 1, 0)).reshape(KH * KW * C, O)


def _convT_subpixel_weight(w):
    """PyTorch ConvTranspose2d weight (C,O,4,4), stride 2, pad 1 -> (9*C, 4*O).
    Output pixel (2i+di, 2j+dj) reads the 3x3 input window anchored at (i-1,j-1)
    with kernel taps kh = di - 2r + 3, kw = dj - 2s + 3 (when in [0,4))."""
    w = np.asarray(w, np.float32)
    C, O = w.shape[0], w.shape[1]
    wc = np.zeros((3, 3, C, 2, 2, O), np.float32)
    for di in range(2):
        for r in range(3):
            kh = di - 2 * r + 3
            if not 0 <= kh < 4:
                continue
            for dj in range(2):
                for s in range(3):
                    kw = dj - 2 * s + 3
                    if not 0 <= kw < 4:
                        continue
                    wc[r, s, :, di, dj, :] = w[:, :, kh, kw]
    return wc.reshape(9 * C, 4 * O)


def _convT_row_toeplitz_weight(w, W_in):
    """PyTorch ConvTranspose2d weight (C,O,4,4), stride 2, pad 1 -> block-Toeplitz
    (3*W_in*C, 2*(2*W_in)*O): rows ordered (r, w_in, c), cols (di, ow, o)."""
    w = np.asarray(w, np.float32)
    C, O = w.shape[0], w.shape[1]
    Wout = 2 * W_in
    T = np.zeros((3, W_in, C, 2, Wout, O), np.float32)
    for di in range(2):
        for r in range(3):
            kh = di - 2 * r + 3
            if not 0 <= kh < 4:
                continue
            for ow in range(Wout):
                dj, jb = ow % 2, ow // 2
                for s in range(3):
                    wi = jb - 1 + s
                    kw = dj - 2 * s + 3
                    if not (0 <= wi < W_in and 0 <= kw < 4):
                        continue
                    T[r, wi, :, di, ow, :] = w[:, :, kh, kw]
    return T.reshape(3 * W_in * C, 2 * Wout * O)


def _kaiming(key, shape, fan_in):
    return jax.random.normal(key, shape, jnp.float32) * jnp.sqrt(2.0 / fan_in)


def init_params(key, z_dim=Z_DIM, nc=NC):
    keys = jax.random.split(key, 16)
    p = {}
    enc_conv_shapes = [(32, nc, 4, 4), (32, 32, 4, 4), (32, 32, 4, 4), (32, 32, 4, 4)]
    for i, s in enumerate(enc_conv_shapes):
        p[f"e_c{i}_w"] = _kaiming(keys[i], s, s[1] * s[2] * s[3])
        p[f"e_c{i}_b"] = jnp.zeros((s[0],), jnp.float32)
    enc_lin = [(512, 256), (256, 256), (256, 2 * z_dim)]
    for i, (fin, fout) in enumerate(enc_lin):
        p[f"e_l{i}_w"] = _kaiming(keys[4 + i], (fin, fout), fin)
        p[f"e_l{i}_b"] = jnp.zeros((fout,), jnp.float32)
    dec_lin = [(z_dim, 256), (256, 256), (256, 512)]
    for i, (fin, fout) in enumerate(dec_lin):
        p[f"d_l{i}_w"] = _kaiming(keys[7 + i], (fin, fout), fin)
        p[f"d_l{i}_b"] = jnp.zeros((fout,), jnp.float32)
    dec_ct_shapes = [(32, 32, 4, 4), (32, 32, 4, 4), (32, 32, 4, 4), (32, nc, 4, 4)]
    for i, s in enumerate(dec_ct_shapes):
        p[f"d_ct{i}_w"] = _kaiming(keys[10 + i], s, s[0] * s[2] * s[3])
        p[f"d_ct{i}_b"] = jnp.zeros((s[1],), jnp.float32)
    return p


def prepare_params(p, z_dim=Z_DIM):
    """One-time transform to matmul-form / bf16 weights."""
    q = {}
    for i in range(4):
        q[f"e_c{i}_w"] = jnp.asarray(_conv_weight_mat(p[f"e_c{i}_w"]), jnp.bfloat16)
        q[f"e_c{i}_b"] = p[f"e_c{i}_b"]
    # (h,w,c) -> (c,h,w) flat-index permutation for the 4x4x32 View boundaries:
    # folded into e_l0 rows / d_l2 columns so no activation transpose is needed.
    idx = np.arange(32 * 4 * 4)
    hh, ww, cc = idx // 128, (idx // 32) % 4, idx % 32
    perm = cc * 16 + hh * 4 + ww
    q["e_l0_w"] = jnp.asarray(np.asarray(p["e_l0_w"], np.float32)[perm, :], jnp.bfloat16)
    q["e_l0_b"] = p["e_l0_b"]
    q["e_l1_w"] = p["e_l1_w"].astype(jnp.bfloat16)
    q["e_l1_b"] = p["e_l1_b"]
    q["e_l2m_w"] = p["e_l2_w"][:, :z_dim].astype(jnp.bfloat16)
    q["e_l2m_b"] = p["e_l2_b"][:z_dim]
    q["e_l2v_w"] = p["e_l2_w"][:, z_dim:].astype(jnp.bfloat16)
    q["e_l2v_b"] = p["e_l2_b"][z_dim:]
    q["d_l0_w"] = p["d_l0_w"].astype(jnp.bfloat16)
    q["d_l0_b"] = p["d_l0_b"]
    q["d_l1_w"] = p["d_l1_w"].astype(jnp.bfloat16)
    q["d_l1_b"] = p["d_l1_b"]
    q["d_l2_w"] = jnp.asarray(np.asarray(p["d_l2_w"], np.float32)[:, perm], jnp.bfloat16)
    q["d_l2_b"] = jnp.asarray(np.asarray(p["d_l2_b"], np.float32)[perm])
    for i in range(3):
        q[f"d_ct{i}_w"] = jnp.asarray(_convT_subpixel_weight(p[f"d_ct{i}_w"]), jnp.bfloat16)
        q[f"d_ct{i}_b"] = jnp.tile(p[f"d_ct{i}_b"], 4)          # (4*O,), o innermost
    # Final deconv (O = nc): lane-dense block-Toeplitz form over 32-pixel rows.
    q["d_ct3_w"] = jnp.asarray(_convT_row_toeplitz_weight(p["d_ct3_w"], W_in=32),
                               jnp.bfloat16)
    q["d_ct3_b"] = jnp.tile(p["d_ct3_b"], 2 * 64)               # cols (di, ow, o)
    return q


# ----------------------------------------------------------------------------
# Forward pass (matches BetaVAE_B.forward; eps is the reparametrization draw)
# ----------------------------------------------------------------------------
def beta_vae_b_forward(prep, x, eps):
    B = x.shape[0]
    # ---- encoder (NHWC, bf16) ----
    h = jnp.transpose(x, (0, 2, 3, 1)).astype(jnp.bfloat16)
    for i in range(4):
        h = conv2d_nhwc(h, prep[f"e_c{i}_w"], prep[f"e_c{i}_b"],
                        ksize=4, stride=2, pad=1, relu=True)
    h = h.reshape(B, 32 * 4 * 4)          # (h,w,c) flatten; e_l0_w rows permuted to match
    # ---- fused MLP + reparametrize + MLP ----
    dec, mu, logvar = fused_mlp_reparam(h, eps, prep)
    d = dec.reshape(B, 4, 4, 32)          # (h,w,c); d_l2_w cols permuted to match
    # ---- decoder conv-transposes ----
    for i in range(3):
        d = conv_transpose2d_nhwc(d, prep[f"d_ct{i}_w"], prep[f"d_ct{i}_b"], relu=True)
    d = conv_transpose2d_rowdense(d, prep["d_ct3_w"], prep["d_ct3_b"], relu=False)
    x_recon = jnp.transpose(d, (0, 3, 1, 2)).reshape(x.shape)
    return x_recon, mu, logvar


# ----------------------------------------------------------------------------
# Pure-JAX f32 reference of the PyTorch module (for the runtime numeric check)
# ----------------------------------------------------------------------------
def reference_forward(p, x, eps, z_dim=Z_DIM):
    dn = ("NCHW", "OIHW", "NCHW")
    h = x
    for i in range(4):
        h = lax.conv_general_dilated(h, p[f"e_c{i}_w"], (2, 2), ((1, 1), (1, 1)),
                                     dimension_numbers=dn)
        h = jnp.maximum(h + p[f"e_c{i}_b"].reshape(1, -1, 1, 1), 0.0)
    B = x.shape[0]
    h = h.reshape(B, 512)
    h = jnp.maximum(h @ p["e_l0_w"] + p["e_l0_b"], 0.0)
    h = jnp.maximum(h @ p["e_l1_w"] + p["e_l1_b"], 0.0)
    dist = h @ p["e_l2_w"] + p["e_l2_b"]
    mu, logvar = dist[:, :z_dim], dist[:, z_dim:]
    z = mu + jnp.exp(logvar * 0.5) * eps
    d = jnp.maximum(z @ p["d_l0_w"] + p["d_l0_b"], 0.0)
    d = jnp.maximum(d @ p["d_l1_w"] + p["d_l1_b"], 0.0)
    d = jnp.maximum(d @ p["d_l2_w"] + p["d_l2_b"], 0.0)
    d = d.reshape(B, 32, 4, 4)
    for i in range(4):
        w = p[f"d_ct{i}_w"]                                       # (Cin, Cout, 4, 4)
        wf = jnp.flip(w, (2, 3)).transpose(1, 0, 2, 3)            # flipped, OIHW
        d = lax.conv_general_dilated(d, wf, (1, 1), ((2, 2), (2, 2)),
                                     lhs_dilation=(2, 2), dimension_numbers=dn)
        d = d + p[f"d_ct{i}_b"].reshape(1, -1, 1, 1)
        if i < 3:
            d = jnp.maximum(d, 0.0)
    return d.reshape(x.shape), mu, logvar


# ----------------------------------------------------------------------------
if __name__ == "__main__":
    z_dim, nc = Z_DIM, NC
    key = jax.random.PRNGKey(0)
    k_param, k_x, k_eps = jax.random.split(key, 3)

    # Four stride-2 convs -> 4x4 before View((-1,512)): input must be 64x64.
    x = jax.random.normal(k_x, (2, nc, 64, 64), jnp.float32)
    eps = jax.random.normal(k_eps, (2, z_dim), jnp.float32)

    params = init_params(k_param, z_dim=z_dim, nc=nc)
    prep = prepare_params(params, z_dim)

    fwd = jax.jit(beta_vae_b_forward)
    x_recon, mu, logvar = fwd(prep, x, eps)
    jax.block_until_ready((x_recon, mu, logvar))

    assert x_recon.shape == x.shape
    assert mu.shape == (2, z_dim) and logvar.shape == (2, z_dim)
    assert bool(jnp.all(jnp.isfinite(x_recon)))
    assert bool(jnp.all(jnp.isfinite(mu))) and bool(jnp.all(jnp.isfinite(logvar)))

    # Numeric check of the bf16 Pallas pipeline vs the f32 PyTorch-equivalent.
    r_recon, r_mu, r_logvar = jax.jit(reference_forward)(params, x, eps)
    jax.block_until_ready((r_recon, r_mu, r_logvar))
    tol_r = 0.05 + 0.08 * float(jnp.max(jnp.abs(r_recon)))
    tol_m = 0.05 + 0.08 * float(jnp.max(jnp.abs(r_mu)))
    tol_v = 0.05 + 0.08 * float(jnp.max(jnp.abs(r_logvar)))
    assert float(jnp.max(jnp.abs(x_recon - r_recon))) < tol_r
    assert float(jnp.max(jnp.abs(mu - r_mu))) < tol_m
    assert float(jnp.max(jnp.abs(logvar - r_logvar))) < tol_v

    print("KERNEL_OK")
</pallas_src>

<mosaic_0001>
module attributes {stable_mosaic.version = 11 : i64} {
  func.func @_mm_bias_kernel(%arg0: i32, %arg1: memref<1024x16xbf16, #tpu.memory_space<vmem>>, %arg2: memref<16x32xbf16, #tpu.memory_space<vmem>>, %arg3: memref<1x32xf32, #tpu.memory_space<vmem>>, %arg4: memref<1024x32xbf16, #tpu.memory_space<vmem>>) attributes {dimension_semantics = [#tpu.dimension_semantics<parallel>], iteration_bounds = array<i64: 2>, scalar_prefetch = 0 : i64, scratch_operands = 0 : i64, tpu.core_type = #tpu.core_type<tc>, window_params = [{transform_indices = @transform_0, window_bounds = array<i64: 1024, 16>}, {pipeline_mode = #tpu.pipeline_mode<synchronous>, transform_indices = @transform_1, window_bounds = array<i64: 16, 32>}, {pipeline_mode = #tpu.pipeline_mode<synchronous>, transform_indices = @transform_2, window_bounds = array<i64: 1, 32>}, {transform_indices = @transform_3, window_bounds = array<i64: 1024, 32>}]} {
    %c0 = arith.constant 0 : index
    %c0_0 = arith.constant 0 : index
    %0 = vector.load %arg1[%c0, %c0_0] : memref<1024x16xbf16, #tpu.memory_space<vmem>>, vector<1024x16xbf16>
    %c0_1 = arith.constant 0 : index
    %c0_2 = arith.constant 0 : index
    %1 = vector.load %arg2[%c0_1, %c0_2] : memref<16x32xbf16, #tpu.memory_space<vmem>>, vector<16x32xbf16>
    %cst = arith.constant dense<0.000000e+00> : vector<1024x32xf32>
    %2 = tpu.matmul %0, %1, %cst {dimension_numbers = #tpu.dot_dimension_numbers<[1], [0], [0], [1], [0, 0, 1, 1], [], []>} : vector<1024x16xbf16>, vector<16x32xbf16>, vector<1024x32xf32> -> vector<1024x32xf32>
    %c0_3 = arith.constant 0 : index
    %c0_4 = arith.constant 0 : index
    %3 = vector.load %arg3[%c0_3, %c0_4] : memref<1x32xf32, #tpu.memory_space<vmem>>, vector<1x32xf32>
    %4 = vector.broadcast %3 : vector<1x32xf32> to vector<1024x32xf32>
    %5 = arith.addf %2, %4 : vector<1024x32xf32>
    %cst_5 = arith.constant 0.000000e+00 : f32
    %6 = vector.broadcast %cst_5 : f32 to vector<1024x32xf32>
    %7 = arith.maximumf %5, %6 : vector<1024x32xf32>
    %8 = arith.truncf %7 : vector<1024x32xf32> to vector<1024x32xbf16>
    %c0_6 = arith.constant 0 : index
    %c0_7 = arith.constant 0 : index
    %9 = vector.load %arg4[%c0_6, %c0_7] : memref<1024x32xbf16, #tpu.memory_space<vmem>>, vector<1024x32xbf16>
    tpu.vector_store %arg4[%c0_6, %c0_7], %8 {strides = array<i32>} : memref<1024x32xbf16, #tpu.memory_space<vmem>>, vector<1024x32xbf16>,
    return
  }
  func.func @transform_0(%arg0: i32) -> (i32, i32) {
    %c0_i32 = arith.constant 0 : i32
    %c0_i32_0 = arith.constant 0 : i32
    return %arg0, %c0_i32 : i32, i32
  }
  func.func @transform_1(%arg0: i32) -> (i32, i32) {
    %c0_i32 = arith.constant 0 : i32
    %c0_i32_0 = arith.constant 0 : i32
    %c0_i32_1 = arith.constant 0 : i32
    return %c0_i32, %c0_i32_0 : i32, i32
  }
  func.func @transform_2(%arg0: i32) -> (i32, i32) {
    %c0_i32 = arith.constant 0 : i32
    %c0_i32_0 = arith.constant 0 : i32
    %c0_i32_1 = arith.constant 0 : i32
    return %c0_i32, %c0_i32_0 : i32, i32
  }
  func.func @transform_3(%arg0: i32) -> (i32, i32) {
    %c0_i32 = arith.constant 0 : i32
    %c0_i32_0 = arith.constant 0 : i32
    return %arg0, %c0_i32 : i32, i32
  }
}

module attributes {stable_mosaic.version = 11 : i64} {
  func.func @_mm_bias_kernel(%arg0: i32, %arg1: memref<256x512xbf16, #tpu.memory_space<vmem>>, %arg2: memref<512x32xbf16, #tpu.memory_space<vmem>>, %arg3: memref<1x32xf32, #tpu.memory_space<vmem>>, %arg4: memref<256x32xbf16, #tpu.memory_space<vmem>>) attributes {dimension_semantics = [#tpu.dimension_semantics<parallel>], iteration_bounds = array<i64: 2>, scalar_prefetch = 0 : i64, scratch_operands = 0 : i64, tpu.core_type = #tpu.core_type<tc>, window_params = [{transform_indices = @transform_0, window_bounds = array<i64: 256, 512>}, {pipeline_mode = #tpu.pipeline_mode<synchronous>, transform_indices = @transform_1, window_bounds = array<i64: 512, 32>}, {pipeline_mode = #tpu.pipeline_mode<synchronous>, transform_indices = @transform_2, window_bounds = array<i64: 1, 32>}, {transform_indices = @transform_3, window_bounds = array<i64: 256, 32>}]} {
    %c0 = arith.constant 0 : index
    %c0_0 = arith.constant 0 : index
    %0 = vector.load %arg1[%c0, %c0_0] : memref<256x512xbf16, #tpu.memory_space<vmem>>, vector<256x512xbf16>
    %c0_1 = arith.constant 0 : index
    %c0_2 = arith.constant 0 : index
    %1 = vector.load %arg2[%c0_1, %c0_2] : memref<512x32xbf16, #tpu.memory_space<vmem>>, vector<512x32xbf16>
    %cst = arith.constant dense<0.000000e+00> : vector<256x32xf32>
    %2 = tpu.matmul %0, %1, %cst {dimension_numbers = #tpu.dot_dimension_numbers<[1], [0], [0], [1], [0, 0, 1, 1], [], []>} : vector<256x512xbf16>, vector<512x32xbf16>, vector<256x32xf32> -> vector<256x32xf32>
    %c0_3 = arith.constant 0 : index
    %c0_4 = arith.constant 0 : index
    %3 = vector.load %arg3[%c0_3, %c0_4] : memref<1x32xf32, #tpu.memory_space<vmem>>, vector<1x32xf32>
    %4 = vector.broadcast %3 : vector<1x32xf32> to vector<256x32xf32>
    %5 = arith.addf %2, %4 : vector<256x32xf32>
    %cst_5 = arith.constant 0.000000e+00 : f32
    %6 = vector.broadcast %cst_5 : f32 to vector<256x32xf32>
    %7 = arith.maximumf %5, %6 : vector<256x32xf32>
    %8 = arith.truncf %7 : vector<256x32xf32> to vector<256x32xbf16>
    %c0_6 = arith.constant 0 : index
    %c0_7 = arith.constant 0 : index
    %9 = vector.load %arg4[%c0_6, %c0_7] : memref<256x32xbf16, #tpu.memory_space<vmem>>, vector<256x32xbf16>
    tpu.vector_store %arg4[%c0_6, %c0_7], %8 {strides = array<i32>} : memref<256x32xbf16, #tpu.memory_space<vmem>>, vector<256x32xbf16>,
    return
  }
  func.func @transform_0(%arg0: i32) -> (i32, i32) {
    %c0_i32 = arith.constant 0 : i32
    %c0_i32_0 = arith.constant 0 : i32
    return %arg0, %c0_i32 : i32, i32
  }
  func.func @transform_1(%arg0: i32) -> (i32, i32) {
    %c0_i32 = arith.constant 0 : i32
    %c0_i32_0 = arith.constant 0 : i32
    %c0_i32_1 = arith.constant 0 : i32
    return %c0_i32, %c0_i32_0 : i32, i32
  }
  func.func @transform_2(%arg0: i32) -> (i32, i32) {
    %c0_i32 = arith.constant 0 : i32
    %c0_i32_0 = arith.constant 0 : i32
    %c0_i32_1 = arith.constant 0 : i32
    return %c0_i32, %c0_i32_0 : i32, i32
  }
  func.func @transform_3(%arg0: i32) -> (i32, i32) {
    %c0_i32 = arith.constant 0 : i32
    %c0_i32_0 = arith.constant 0 : i32
    return %arg0, %c0_i32 : i32, i32
  }
}

module attributes {stable_mosaic.version = 11 : i64} {
  func.func @_mm_bias_kernel(%arg0: i32, %arg1: memref<128x512xbf16, #tpu.memory_space<vmem>>, %arg2: memref<512x32xbf16, #tpu.memory_space<vmem>>, %arg3: memref<1x32xf32, #tpu.memory_space<vmem>>, %arg4: memref<128x32xbf16, #tpu.memory_space<vmem>>) attributes {dimension_semantics = [#tpu.dimension_semantics<parallel>], iteration_bounds = array<i64: 1>, scalar_prefetch = 0 : i64, scratch_operands = 0 : i64, tpu.core_type = #tpu.core_type<tc>, window_params = [{transform_indices = @transform_0, window_bounds = array<i64: 128, 512>}, {pipeline_mode = #tpu.pipeline_mode<synchronous>, transform_indices = @transform_1, window_bounds = array<i64: 512, 32>}, {pipeline_mode = #tpu.pipeline_mode<synchronous>, transform_indices = @transform_2, window_bounds = array<i64: 1, 32>}, {transform_indices = @transform_3, window_bounds = array<i64: 128, 32>}]} {
    %c0 = arith.constant 0 : index
    %c0_0 = arith.constant 0 : index
    %0 = vector.load %arg1[%c0, %c0_0] : memref<128x512xbf16, #tpu.memory_space<vmem>>, vector<128x512xbf16>
    %c0_1 = arith.constant 0 : index
    %c0_2 = arith.constant 0 : index
    %1 = vector.load %arg2[%c0_1, %c0_2] : memref<512x32xbf16, #tpu.memory_space<vmem>>, vector<512x32xbf16>
    %cst = arith.constant dense<0.000000e+00> : vector<128x32xf32>
    %2 = tpu.matmul %0, %1, %cst {dimension_numbers = #tpu.dot_dimension_numbers<[1], [0], [0], [1], [0, 0, 1, 1], [], []>} : vector<128x512xbf16>, vector<512x32xbf16>, vector<128x32xf32> -> vector<128x32xf32>
    %c0_3 = arith.constant 0 : index
    %c0_4 = arith.constant 0 : index
    %3 = vector.load %arg3[%c0_3, %c0_4] : memref<1x32xf32, #tpu.memory_space<vmem>>, vector<1x32xf32>
    %4 = vector.broadcast %3 : vector<1x32xf32> to vector<128x32xf32>
    %5 = arith.addf %2, %4 : vector<128x32xf32>
    %cst_5 = arith.constant 0.000000e+00 : f32
    %6 = vector.broadcast %cst_5 : f32 to vector<128x32xf32>
    %7 = arith.maximumf %5, %6 : vector<128x32xf32>
    %8 = arith.truncf %7 : vector<128x32xf32> to vector<128x32xbf16>
    %c0_6 = arith.constant 0 : index
    %c0_7 = arith.constant 0 : index
    %9 = vector.load %arg4[%c0_6, %c0_7] : memref<128x32xbf16, #tpu.memory_space<vmem>>, vector<128x32xbf16>
    tpu.vector_store %arg4[%c0_6, %c0_7], %8 {strides = array<i32>} : memref<128x32xbf16, #tpu.memory_space<vmem>>, vector<128x32xbf16>,
    return
  }
  func.func @transform_0(%arg0: i32) -> (i32, i32) {
    %c0_i32 = arith.constant 0 : i32
    %c0_i32_0 = arith.constant 0 : i32
    return %arg0, %c0_i32 : i32, i32
  }
  func.func @transform_1(%arg0: i32) -> (i32, i32) {
    %c0_i32 = arith.constant 0 : i32
    %c0_i32_0 = arith.constant 0 : i32
    %c0_i32_1 = arith.constant 0 : i32
    return %c0_i32, %c0_i32_0 : i32, i32
  }
  func.func @transform_2(%arg0: i32) -> (i32, i32) {
    %c0_i32 = arith.constant 0 : i32
    %c0_i32_0 = arith.constant 0 : i32
    %c0_i32_1 = arith.constant 0 : i32
    return %c0_i32, %c0_i32_0 : i32, i32
  }
  func.func @transform_3(%arg0: i32) -> (i32, i32) {
    %c0_i32 = arith.constant 0 : i32
    %c0_i32_0 = arith.constant 0 : i32
    return %arg0, %c0_i32 : i32, i32
  }
}

module attributes {stable_mosaic.version = 11 : i64} {
  func.func @_mm_bias_kernel(%arg0: i32, %arg1: memref<32x512xbf16, #tpu.memory_space<vmem>>, %arg2: memref<512x32xbf16, #tpu.memory_space<vmem>>, %arg3: memref<1x32xf32, #tpu.memory_space<vmem>>, %arg4: memref<32x32xbf16, #tpu.memory_space<vmem>>) attributes {dimension_semantics = [#tpu.dimension_semantics<parallel>], iteration_bounds = array<i64: 1>, scalar_prefetch = 0 : i64, scratch_operands = 0 : i64, tpu.core_type = #tpu.core_type<tc>, window_params = [{transform_indices = @transform_0, window_bounds = array<i64: 32, 512>}, {pipeline_mode = #tpu.pipeline_mode<synchronous>, transform_indices = @transform_1, window_bounds = array<i64: 512, 32>}, {pipeline_mode = #tpu.pipeline_mode<synchronous>, transform_indices = @transform_2, window_bounds = array<i64: 1, 32>}, {transform_indices = @transform_3, window_bounds = array<i64: 32, 32>}]} {
    %c0 = arith.constant 0 : index
    %c0_0 = arith.constant 0 : index
    %0 = vector.load %arg1[%c0, %c0_0] : memref<32x512xbf16, #tpu.memory_space<vmem>>, vector<32x512xbf16>
    %c0_1 = arith.constant 0 : index
    %c0_2 = arith.constant 0 : index
    %1 = vector.load %arg2[%c0_1, %c0_2] : memref<512x32xbf16, #tpu.memory_space<vmem>>, vector<512x32xbf16>
    %cst = arith.constant dense<0.000000e+00> : vector<32x32xf32>
    %2 = tpu.matmul %0, %1, %cst {dimension_numbers = #tpu.dot_dimension_numbers<[1], [0], [0], [1], [0, 0, 1, 1], [], []>} : vector<32x512xbf16>, vector<512x32xbf16>, vector<32x32xf32> -> vector<32x32xf32>
    %c0_3 = arith.constant 0 : index
    %c0_4 = arith.constant 0 : index
    %3 = vector.load %arg3[%c0_3, %c0_4] : memref<1x32xf32, #tpu.memory_space<vmem>>, vector<1x32xf32>
    %4 = vector.broadcast %3 : vector<1x32xf32> to vector<32x32xf32>
    %5 = arith.addf %2, %4 : vector<32x32xf32>
    %cst_5 = arith.constant 0.000000e+00 : f32
    %6 = vector.broadcast %cst_5 : f32 to vector<32x32xf32>
    %7 = arith.maximumf %5, %6 : vector<32x32xf32>
    %8 = arith.truncf %7 : vector<32x32xf32> to vector<32x32xbf16>
    %c0_6 = arith.constant 0 : index
    %c0_7 = arith.constant 0 : index
    %9 = vector.load %arg4[%c0_6, %c0_7] : memref<32x32xbf16, #tpu.memory_space<vmem>>, vector<32x32xbf16>
    tpu.vector_store %arg4[%c0_6, %c0_7], %8 {strides = array<i32>} : memref<32x32xbf16, #tpu.memory_space<vmem>>, vector<32x32xbf16>,
    return
  }
  func.func @transform_0(%arg0: i32) -> (i32, i32) {
    %c0_i32 = arith.constant 0 : i32
    %c0_i32_0 = arith.constant 0 : i32
    return %arg0, %c0_i32 : i32, i32
  }
  func.func @transform_1(%arg0: i32) -> (i32, i32) {
    %c0_i32 = arith.constant 0 : i32
    %c0_i32_0 = arith.constant 0 : i32
    %c0_i32_1 = arith.constant 0 : i32
    return %c0_i32, %c0_i32_0 : i32, i32
  }
  func.func @transform_2(%arg0: i32) -> (i32, i32) {
    %c0_i32 = arith.constant 0 : i32
    %c0_i32_0 = arith.constant 0 : i32
    %c0_i32_1 = arith.constant 0 : i32
    return %c0_i32, %c0_i32_0 : i32, i32
  }
  func.func @transform_3(%arg0: i32) -> (i32, i32) {
    %c0_i32 = arith.constant 0 : i32
    %c0_i32_0 = arith.constant 0 : i32
    return %arg0, %c0_i32 : i32, i32
  }
}

module attributes {stable_mosaic.version = 11 : i64} {
  func.func @_mlp_reparam_kernel(%arg0: memref<2x512xbf16, #tpu.memory_space<vmem>>, %arg1: memref<2x10xf32, #tpu.memory_space<vmem>>, %arg2: memref<512x256xbf16, #tpu.memory_space<vmem>>, %arg3: memref<1x256xf32, #tpu.memory_space<vmem>>, %arg4: memref<256x256xbf16, #tpu.memory_space<vmem>>, %arg5: memref<1x256xf32, #tpu.memory_space<vmem>>, %arg6: memref<256x10xbf16, #tpu.memory_space<vmem>>, %arg7: memref<1x10xf32, #tpu.memory_space<vmem>>, %arg8: memref<256x10xbf16, #tpu.memory_space<vmem>>, %arg9: memref<1x10xf32, #tpu.memory_space<vmem>>, %arg10: memref<10x256xbf16, #tpu.memory_space<vmem>>, %arg11: memref<1x256xf32, #tpu.memory_space<vmem>>, %arg12: memref<256x256xbf16, #tpu.memory_space<vmem>>, %arg13: memref<1x256xf32, #tpu.memory_space<vmem>>, %arg14: memref<256x512xbf16, #tpu.memory_space<vmem>>, %arg15: memref<1x512xf32, #tpu.memory_space<vmem>>, %arg16: memref<2x512xbf16, #tpu.memory_space<vmem>>, %arg17: memref<2x10xf32, #tpu.memory_space<vmem>>, %arg18: memref<2x10xf32, #tpu.memory_space<vmem>>) attributes {dimension_semantics = [], scalar_prefetch = 0 : i64, scratch_operands = 0 : i64, tpu.core_type = #tpu.core_type<tc>} {
    %c0 = arith.constant 0 : index
    %c0_0 = arith.constant 0 : index
    %0 = vector.load %arg0[%c0, %c0_0] : memref<2x512xbf16, #tpu.memory_space<vmem>>, vector<2x512xbf16>
    %c0_1 = arith.constant 0 : index
    %c0_2 = arith.constant 0 : index
    %1 = vector.load %arg2[%c0_1, %c0_2] : memref<512x256xbf16, #tpu.memory_space<vmem>>, vector<512x256xbf16>
    %cst = arith.constant dense<0.000000e+00> : vector<2x256xf32>
    %2 = tpu.matmul %0, %1, %cst {dimension_numbers = #tpu.dot_dimension_numbers<[1], [0], [0], [1], [0, 0, 1, 1], [], []>} : vector<2x512xbf16>, vector<512x256xbf16>, vector<2x256xf32> -> vector<2x256xf32>
    %c0_3 = arith.constant 0 : index
    %c0_4 = arith.constant 0 : index
    %3 = vector.load %arg3[%c0_3, %c0_4] : memref<1x256xf32, #tpu.memory_space<vmem>>, vector<1x256xf32>
    %4 = vector.broadcast %3 : vector<1x256xf32> to vector<2x256xf32>
    %5 = arith.addf %2, %4 : vector<2x256xf32>
    %cst_5 = arith.constant 0.000000e+00 : f32
    %6 = vector.broadcast %cst_5 : f32 to vector<2x256xf32>
    %7 = arith.maximumf %5, %6 : vector<2x256xf32>
    %8 = arith.truncf %7 : vector<2x256xf32> to vector<2x256xbf16>
    %c0_6 = arith.constant 0 : index
    %c0_7 = arith.constant 0 : index
    %9 = vector.load %arg4[%c0_6, %c0_7] : memref<256x256xbf16, #tpu.memory_space<vmem>>, vector<256x256xbf16>
    %cst_8 = arith.constant dense<0.000000e+00> : vector<2x256xf32>
    %10 = tpu.matmul %8, %9, %cst_8 {dimension_numbers = #tpu.dot_dimension_numbers<[1], [0], [0], [1], [0, 0, 1, 1], [], []>} : vector<2x256xbf16>, vector<256x256xbf16>, vector<2x256xf32> -> vector<2x256xf32>
    %c0_9 = arith.constant 0 : index
    %c0_10 = arith.constant 0 : index
    %11 = vector.load %arg5[%c0_9, %c0_10] : memref<1x256xf32, #tpu.memory_space<vmem>>, vector<1x256xf32>
    %12 = vector.broadcast %11 : vector<1x256xf32> to vector<2x256xf32>
    %13 = arith.addf %10, %12 : vector<2x256xf32>
    %cst_11 = arith.constant 0.000000e+00 : f32
    %14 = vector.broadcast %cst_11 : f32 to vector<2x256xf32>
    %15 = arith.maximumf %13, %14 : vector<2x256xf32>
    %16 = arith.truncf %15 : vector<2x256xf32> to vector<2x256xbf16>
    %c0_12 = arith.constant 0 : index
    %c0_13 = arith.constant 0 : index
    %17 = vector.load %arg6[%c0_12, %c0_13] : memref<256x10xbf16, #tpu.memory_space<vmem>>, vector<256x10xbf16>
    %cst_14 = arith.constant dense<0.000000e+00> : vector<2x10xf32>
    %18 = tpu.matmul %16, %17, %cst_14 {dimension_numbers = #tpu.dot_dimension_numbers<[1], [0], [0], [1], [0, 0, 1, 1], [], []>} : vector<2x256xbf16>, vector<256x10xbf16>, vector<2x10xf32> -> vector<2x10xf32>
    %c0_15 = arith.constant 0 : index
    %c0_16 = arith.constant 0 : index
    %19 = vector.load %arg7[%c0_15, %c0_16] : memref<1x10xf32, #tpu.memory_space<vmem>>, vector<1x10xf32>
    %20 = vector.broadcast %19 : vector<1x10xf32> to vector<2x10xf32>
    %21 = arith.addf %18, %20 : vector<2x10xf32>
    %22 = arith.truncf %15 : vector<2x256xf32> to vector<2x256xbf16>
    %c0_17 = arith.constant 0 : index
    %c0_18 = arith.constant 0 : index
    %23 = vector.load %arg8[%c0_17, %c0_18] : memref<256x10xbf16, #tpu.memory_space<vmem>>, vector<256x10xbf16>
    %cst_19 = arith.constant dense<0.000000e+00> : vector<2x10xf32>
    %24 = tpu.matmul %22, %23, %cst_19 {dimension_numbers = #tpu.dot_dimension_numbers<[1], [0], [0], [1], [0, 0, 1, 1], [], []>} : vector<2x256xbf16>, vector<256x10xbf16>, vector<2x10xf32> -> vector<2x10xf32>
    %c0_20 = arith.constant 0 : index
    %c0_21 = arith.constant 0 : index
    %25 = vector.load %arg9[%c0_20, %c0_21] : memref<1x10xf32, #tpu.memory_space<vmem>>, vector<1x10xf32>
    %26 = vector.broadcast %25 : vector<1x10xf32> to vector<2x10xf32>
    %27 = arith.addf %24, %26 : vector<2x10xf32>
    %cst_22 = arith.constant 5.000000e-01 : f32
    %28 = vector.broadcast %cst_22 : f32 to vector<2x10xf32>
    %29 = arith.mulf %27, %28 : vector<2x10xf32>
    %30 = math.exp %29 : vector<2x10xf32>
    %c0_23 = arith.constant 0 : index
    %c0_24 = arith.constant 0 : index
    %31 = vector.load %arg1[%c0_23, %c0_24] : memref<2x10xf32, #tpu.memory_space<vmem>>, vector<2x10xf32>
    %32 = arith.mulf %30, %31 : vector<2x10xf32>
    %33 = arith.addf %21, %32 : vector<2x10xf32>
    %34 = arith.truncf %33 : vector<2x10xf32> to vector<2x10xbf16>
    %c0_25 = arith.constant 0 : index
    %c0_26 = arith.constant 0 : index
    %35 = vector.load %arg10[%c0_25, %c0_26] : memref<10x256xbf16, #tpu.memory_space<vmem>>, vector<10x256xbf16>
    %cst_27 = arith.constant dense<0.000000e+00> : vector<2x256xf32>
    %36 = tpu.matmul %34, %35, %cst_27 {dimension_numbers = #tpu.dot_dimension_numbers<[1], [0], [0], [1], [0, 0, 1, 1], [], []>} : vector<2x10xbf16>, vector<10x256xbf16>, vector<2x256xf32> -> vector<2x256xf32>
    %c0_28 = arith.constant 0 : index
    %c0_29 = arith.constant 0 : index
    %37 = vector.load %arg11[%c0_28, %c0_29] : memref<1x256xf32, #tpu.memory_space<vmem>>, vector<1x256xf32>
    %38 = vector.broadcast %37 : vector<1x256xf32> to vector<2x256xf32>
    %39 = arith.addf %36, %38 : vector<2x256xf32>
    %cst_30 = arith.constant 0.000000e+00 : f32
    %40 = vector.broadcast %cst_30 : f32 to vector<2x256xf32>
    %41 = arith.maximumf %39, %40 : vector<2x256xf32>
    %42 = arith.truncf %41 : vector<2x256xf32> to vector<2x256xbf16>
    %c0_31 = arith.constant 0 : index
    %c0_32 = arith.constant 0 : index
    %43 = vector.load %arg12[%c0_31, %c0_32] : memref<256x256xbf16, #tpu.memory_space<vmem>>, vector<256x256xbf16>
    %cst_33 = arith.constant dense<0.000000e+00> : vector<2x256xf32>
    %44 = tpu.matmul %42, %43, %cst_33 {dimension_numbers = #tpu.dot_dimension_numbers<[1], [0], [0], [1], [0, 0, 1, 1], [], []>} : vector<2x256xbf16>, vector<256x256xbf16>, vector<2x256xf32> -> vector<2x256xf32>
    %c0_34 = arith.constant 0 : index
    %c0_35 = arith.constant 0 : index
    %45 = vector.load %arg13[%c0_34, %c0_35] : memref<1x256xf32, #tpu.memory_space<vmem>>, vector<1x256xf32>
    %46 = vector.broadcast %45 : vector<1x256xf32> to vector<2x256xf32>
    %47 = arith.addf %44, %46 : vector<2x256xf32>
    %cst_36 = arith.constant 0.000000e+00 : f32
    %48 = vector.broadcast %cst_36 : f32 to vector<2x256xf32>
    %49 = arith.maximumf %47, %48 : vector<2x256xf32>
    %50 = arith.truncf %49 : vector<2x256xf32> to vector<2x256xbf16>
    %c0_37 = arith.constant 0 : index
    %c0_38 = arith.constant 0 : index
    %51 = vector.load %arg14[%c0_37, %c0_38] : memref<256x512xbf16, #tpu.memory_space<vmem>>, vector<256x512xbf16>
    %cst_39 = arith.constant dense<0.000000e+00> : vector<2x512xf32>
    %52 = tpu.matmul %50, %51, %cst_39 {dimension_numbers = #tpu.dot_dimension_numbers<[1], [0], [0], [1], [0, 0, 1, 1], [], []>} : vector<2x256xbf16>, vector<256x512xbf16>, vector<2x512xf32> -> vector<2x512xf32>
    %c0_40 = arith.constant 0 : index
    %c0_41 = arith.constant 0 : index
    %53 = vector.load %arg15[%c0_40, %c0_41] : memref<1x512xf32, #tpu.memory_space<vmem>>, vector<1x512xf32>
    %54 = vector.broadcast %53 : vector<1x512xf32> to vector<2x512xf32>
    %55 = arith.addf %52, %54 : vector<2x512xf32>
    %cst_42 = arith.constant 0.000000e+00 : f32
    %56 = vector.broadcast %cst_42 : f32 to vector<2x512xf32>
    %57 = arith.maximumf %55, %56 : vector<2x512xf32>
    %58 = arith.truncf %57 : vector<2x512xf32> to vector<2x512xbf16>
    %c0_43 = arith.constant 0 : index
    %c0_44 = arith.constant 0 : index
    %59 = vector.load %arg16[%c0_43, %c0_44] : memref<2x512xbf16, #tpu.memory_space<vmem>>, vector<2x512xbf16>
    tpu.vector_store %arg16[%c0_43, %c0_44], %58 {strides = array<i32>} : memref<2x512xbf16, #tpu.memory_space<vmem>>, vector<2x512xbf16>,
    %c0_45 = arith.constant 0 : index
    %c0_46 = arith.constant 0 : index
    %60 = vector.load %arg17[%c0_45, %c0_46] : memref<2x10xf32, #tpu.memory_space<vmem>>, vector<2x10xf32>
    tpu.vector_store %arg17[%c0_45, %c0_46], %21 {strides = array<i32>} : memref<2x10xf32, #tpu.memory_space<vmem>>, vector<2x10xf32>,
    %c0_47 = arith.constant 0 : index
    %c0_48 = arith.constant 0 : index
    %61 = vector.load %arg18[%c0_47, %c0_48] : memref<2x10xf32, #tpu.memory_space<vmem>>, vector<2x10xf32>
    tpu.vector_store %arg18[%c0_47, %c0_48], %27 {strides = array<i32>} : memref<2x10xf32, #tpu.memory_space<vmem>>, vector<2x10xf32>,
    return
  }
}

module attributes {stable_mosaic.version = 11 : i64} {
  func.func @_mm_bias_kernel(%arg0: i32, %arg1: memref<32x288xbf16, #tpu.memory_space<vmem>>, %arg2: memref<288x128xbf16, #tpu.memory_space<vmem>>, %arg3: memref<1x128xf32, #tpu.memory_space<vmem>>, %arg4: memref<32x128xbf16, #tpu.memory_space<vmem>>) attributes {dimension_semantics = [#tpu.dimension_semantics<parallel>], iteration_bounds = array<i64: 1>, scalar_prefetch = 0 : i64, scratch_operands = 0 : i64, tpu.core_type = #tpu.core_type<tc>, window_params = [{transform_indices = @transform_0, window_bounds = array<i64: 32, 288>}, {pipeline_mode = #tpu.pipeline_mode<synchronous>, transform_indices = @transform_1, window_bounds = array<i64: 288, 128>}, {pipeline_mode = #tpu.pipeline_mode<synchronous>, transform_indices = @transform_2, window_bounds = array<i64: 1, 128>}, {transform_indices = @transform_3, window_bounds = array<i64: 32, 128>}]} {
    %c0 = arith.constant 0 : index
    %c0_0 = arith.constant 0 : index
    %0 = vector.load %arg1[%c0, %c0_0] : memref<32x288xbf16, #tpu.memory_space<vmem>>, vector<32x288xbf16>
    %c0_1 = arith.constant 0 : index
    %c0_2 = arith.constant 0 : index
    %1 = vector.load %arg2[%c0_1, %c0_2] : memref<288x128xbf16, #tpu.memory_space<vmem>>, vector<288x128xbf16>
    %cst = arith.constant dense<0.000000e+00> : vector<32x128xf32>
    %2 = tpu.matmul %0, %1, %cst {dimension_numbers = #tpu.dot_dimension_numbers<[1], [0], [0], [1], [0, 0, 1, 1], [], []>} : vector<32x288xbf16>, vector<288x128xbf16>, vector<32x128xf32> -> vector<32x128xf32>
    %c0_3 = arith.constant 0 : index
    %c0_4 = arith.constant 0 : index
    %3 = vector.load %arg3[%c0_3, %c0_4] : memref<1x128xf32, #tpu.memory_space<vmem>>, vector<1x128xf32>
    %4 = vector.broadcast %3 : vector<1x128xf32> to vector<32x128xf32>
    %5 = arith.addf %2, %4 : vector<32x128xf32>
    %cst_5 = arith.constant 0.000000e+00 : f32
    %6 = vector.broadcast %cst_5 : f32 to vector<32x128xf32>
    %7 = arith.maximumf %5, %6 : vector<32x128xf32>
    %8 = arith.truncf %7 : vector<32x128xf32> to vector<32x128xbf16>
    %c0_6 = arith.constant 0 : index
    %c0_7 = arith.constant 0 : index
    %9 = vector.load %arg4[%c0_6, %c0_7] : memref<32x128xbf16, #tpu.memory_space<vmem>>, vector<32x128xbf16>
    tpu.vector_store %arg4[%c0_6, %c0_7], %8 {strides = array<i32>} : memref<32x128xbf16, #tpu.memory_space<vmem>>, vector<32x128xbf16>,
    return
  }
  func.func @transform_0(%arg0: i32) -> (i32, i32) {
    %c0_i32 = arith.constant 0 : i32
    %c0_i32_0 = arith.constant 0 : i32
    return %arg0, %c0_i32 : i32, i32
  }
  func.func @transform_1(%arg0: i32) -> (i32, i32) {
    %c0_i32 = arith.constant 0 : i32
    %c0_i32_0 = arith.constant 0 : i32
    %c0_i32_1 = arith.constant 0 : i32
    return %c0_i32, %c0_i32_0 : i32, i32
  }
  func.func @transform_2(%arg0: i32) -> (i32, i32) {
    %c0_i32 = arith.constant 0 : i32
    %c0_i32_0 = arith.constant 0 : i32
    %c0_i32_1 = arith.constant 0 : i32
    return %c0_i32, %c0_i32_0 : i32, i32
  }
  func.func @transform_3(%arg0: i32) -> (i32, i32) {
    %c0_i32 = arith.constant 0 : i32
    %c0_i32_0 = arith.constant 0 : i32
    return %arg0, %c0_i32 : i32, i32
  }
}

module attributes {stable_mosaic.version = 11 : i64} {
  func.func @_mm_bias_kernel(%arg0: i32, %arg1: memref<128x288xbf16, #tpu.memory_space<vmem>>, %arg2: memref<288x128xbf16, #tpu.memory_space<vmem>>, %arg3: memref<1x128xf32, #tpu.memory_space<vmem>>, %arg4: memref<128x128xbf16, #tpu.memory_space<vmem>>) attributes {dimension_semantics = [#tpu.dimension_semantics<parallel>], iteration_bounds = array<i64: 1>, scalar_prefetch = 0 : i64, scratch_operands = 0 : i64, tpu.core_type = #tpu.core_type<tc>, window_params = [{transform_indices = @transform_0, window_bounds = array<i64: 128, 288>}, {pipeline_mode = #tpu.pipeline_mode<synchronous>, transform_indices = @transform_1, window_bounds = array<i64: 288, 128>}, {pipeline_mode = #tpu.pipeline_mode<synchronous>, transform_indices = @transform_2, window_bounds = array<i64: 1, 128>}, {transform_indices = @transform_3, window_bounds = array<i64: 128, 128>}]} {
    %c0 = arith.constant 0 : index
    %c0_0 = arith.constant 0 : index
    %0 = vector.load %arg1[%c0, %c0_0] : memref<128x288xbf16, #tpu.memory_space<vmem>>, vector<128x288xbf16>
    %c0_1 = arith.constant 0 : index
    %c0_2 = arith.constant 0 : index
    %1 = vector.load %arg2[%c0_1, %c0_2] : memref<288x128xbf16, #tpu.memory_space<vmem>>, vector<288x128xbf16>
    %cst = arith.constant dense<0.000000e+00> : vector<128x128xf32>
    %2 = tpu.matmul %0, %1, %cst {dimension_numbers = #tpu.dot_dimension_numbers<[1], [0], [0], [1], [0, 0, 1, 1], [], []>} : vector<128x288xbf16>, vector<288x128xbf16>, vector<128x128xf32> -> vector<128x128xf32>
    %c0_3 = arith.constant 0 : index
    %c0_4 = arith.constant 0 : index
    %3 = vector.load %arg3[%c0_3, %c0_4] : memref<1x128xf32, #tpu.memory_space<vmem>>, vector<1x128xf32>
    %4 = vector.broadcast %3 : vector<1x128xf32> to vector<128x128xf32>
    %5 = arith.addf %2, %4 : vector<128x128xf32>
    %cst_5 = arith.constant 0.000000e+00 : f32
    %6 = vector.broadcast %cst_5 : f32 to vector<128x128xf32>
    %7 = arith.maximumf %5, %6 : vector<128x128xf32>
    %8 = arith.truncf %7 : vector<128x128xf32> to vector<128x128xbf16>
    %c0_6 = arith.constant 0 : index
    %c0_7 = arith.constant 0 : index
    %9 = vector.load %arg4[%c0_6, %c0_7] : memref<128x128xbf16, #tpu.memory_space<vmem>>, vector<128x128xbf16>
    tpu.vector_store %arg4[%c0_6, %c0_7], %8 {strides = array<i32>} : memref<128x128xbf16, #tpu.memory_space<vmem>>, vector<128x128xbf16>,
    return
  }
  func.func @transform_0(%arg0: i32) -> (i32, i32) {
    %c0_i32 = arith.constant 0 : i32
    %c0_i32_0 = arith.constant 0 : i32
    return %arg0, %c0_i32 : i32, i32
  }
  func.func @transform_1(%arg0: i32) -> (i32, i32) {
    %c0_i32 = arith.constant 0 : i32
    %c0_i32_0 = arith.constant 0 : i32
    %c0_i32_1 = arith.constant 0 : i32
    return %c0_i32, %c0_i32_0 : i32, i32
  }
  func.func @transform_2(%arg0: i32) -> (i32, i32) {
    %c0_i32 = arith.constant 0 : i32
    %c0_i32_0 = arith.constant 0 : i32
    %c0_i32_1 = arith.constant 0 : i32
    return %c0_i32, %c0_i32_0 : i32, i32
  }
  func.func @transform_3(%arg0: i32) -> (i32, i32) {
    %c0_i32 = arith.constant 0 : i32
    %c0_i32_0 = arith.constant 0 : i32
    return %arg0, %c0_i32 : i32, i32
  }
}

module attributes {stable_mosaic.version = 11 : i64} {
  func.func @_mm_bias_kernel(%arg0: i32, %arg1: memref<256x288xbf16, #tpu.memory_space<vmem>>, %arg2: memref<288x128xbf16, #tpu.memory_space<vmem>>, %arg3: memref<1x128xf32, #tpu.memory_space<vmem>>, %arg4: memref<256x128xbf16, #tpu.memory_space<vmem>>) attributes {dimension_semantics = [#tpu.dimension_semantics<parallel>], iteration_bounds = array<i64: 2>, scalar_prefetch = 0 : i64, scratch_operands = 0 : i64, tpu.core_type = #tpu.core_type<tc>, window_params = [{transform_indices = @transform_0, window_bounds = array<i64: 256, 288>}, {pipeline_mode = #tpu.pipeline_mode<synchronous>, transform_indices = @transform_1, window_bounds = array<i64: 288, 128>}, {pipeline_mode = #tpu.pipeline_mode<synchronous>, transform_indices = @transform_2, window_bounds = array<i64: 1, 128>}, {transform_indices = @transform_3, window_bounds = array<i64: 256, 128>}]} {
    %c0 = arith.constant 0 : index
    %c0_0 = arith.constant 0 : index
    %0 = vector.load %arg1[%c0, %c0_0] : memref<256x288xbf16, #tpu.memory_space<vmem>>, vector<256x288xbf16>
    %c0_1 = arith.constant 0 : index
    %c0_2 = arith.constant 0 : index
    %1 = vector.load %arg2[%c0_1, %c0_2] : memref<288x128xbf16, #tpu.memory_space<vmem>>, vector<288x128xbf16>
    %cst = arith.constant dense<0.000000e+00> : vector<256x128xf32>
    %2 = tpu.matmul %0, %1, %cst {dimension_numbers = #tpu.dot_dimension_numbers<[1], [0], [0], [1], [0, 0, 1, 1], [], []>} : vector<256x288xbf16>, vector<288x128xbf16>, vector<256x128xf32> -> vector<256x128xf32>
    %c0_3 = arith.constant 0 : index
    %c0_4 = arith.constant 0 : index
    %3 = vector.load %arg3[%c0_3, %c0_4] : memref<1x128xf32, #tpu.memory_space<vmem>>, vector<1x128xf32>
    %4 = vector.broadcast %3 : vector<1x128xf32> to vector<256x128xf32>
    %5 = arith.addf %2, %4 : vector<256x128xf32>
    %cst_5 = arith.constant 0.000000e+00 : f32
    %6 = vector.broadcast %cst_5 : f32 to vector<256x128xf32>
    %7 = arith.maximumf %5, %6 : vector<256x128xf32>
    %8 = arith.truncf %7 : vector<256x128xf32> to vector<256x128xbf16>
    %c0_6 = arith.constant 0 : index
    %c0_7 = arith.constant 0 : index
    %9 = vector.load %arg4[%c0_6, %c0_7] : memref<256x128xbf16, #tpu.memory_space<vmem>>, vector<256x128xbf16>
    tpu.vector_store %arg4[%c0_6, %c0_7], %8 {strides = array<i32>} : memref<256x128xbf16, #tpu.memory_space<vmem>>, vector<256x128xbf16>,
    return
  }
  func.func @transform_0(%arg0: i32) -> (i32, i32) {
    %c0_i32 = arith.constant 0 : i32
    %c0_i32_0 = arith.constant 0 : i32
    return %arg0, %c0_i32 : i32, i32
  }
  func.func @transform_1(%arg0: i32) -> (i32, i32) {
    %c0_i32 = arith.constant 0 : i32
    %c0_i32_0 = arith.constant 0 : i32
    %c0_i32_1 = arith.constant 0 : i32
    return %c0_i32, %c0_i32_0 : i32, i32
  }
  func.func @transform_2(%arg0: i32) -> (i32, i32) {
    %c0_i32 = arith.constant 0 : i32
    %c0_i32_0 = arith.constant 0 : i32
    %c0_i32_1 = arith.constant 0 : i32
    return %c0_i32, %c0_i32_0 : i32, i32
  }
  func.func @transform_3(%arg0: i32) -> (i32, i32) {
    %c0_i32 = arith.constant 0 : i32
    %c0_i32_0 = arith.constant 0 : i32
    return %arg0, %c0_i32 : i32, i32
  }
}

module attributes {stable_mosaic.version = 11 : i64} {
  func.func @_mm_bias_kernel(%arg0: i32, %arg1: memref<64x3072xbf16, #tpu.memory_space<vmem>>, %arg2: memref<3072x128xbf16, #tpu.memory_space<vmem>>, %arg3: memref<1x128xf32, #tpu.memory_space<vmem>>, %arg4: memref<64x128xf32, #tpu.memory_space<vmem>>) attributes {dimension_semantics = [#tpu.dimension_semantics<parallel>], iteration_bounds = array<i64: 1>, scalar_prefetch = 0 : i64, scratch_operands = 0 : i64, tpu.core_type = #tpu.core_type<tc>, window_params = [{transform_indices = @transform_0, window_bounds = array<i64: 64, 3072>}, {pipeline_mode = #tpu.pipeline_mode<synchronous>, transform_indices = @transform_1, window_bounds = array<i64: 3072, 128>}, {pipeline_mode = #tpu.pipeline_mode<synchronous>, transform_indices = @transform_2, window_bounds = array<i64: 1, 128>}, {transform_indices = @transform_3, window_bounds = array<i64: 64, 128>}]} {
    %c0 = arith.constant 0 : index
    %c0_0 = arith.constant 0 : index
    %0 = vector.load %arg1[%c0, %c0_0] : memref<64x3072xbf16, #tpu.memory_space<vmem>>, vector<64x3072xbf16>
    %c0_1 = arith.constant 0 : index
    %c0_2 = arith.constant 0 : index
    %1 = vector.load %arg2[%c0_1, %c0_2] : memref<3072x128xbf16, #tpu.memory_space<vmem>>, vector<3072x128xbf16>
    %cst = arith.constant dense<0.000000e+00> : vector<64x128xf32>
    %2 = tpu.matmul %0, %1, %cst {dimension_numbers = #tpu.dot_dimension_numbers<[1], [0], [0], [1], [0, 0, 1, 1], [], []>} : vector<64x3072xbf16>, vector<3072x128xbf16>, vector<64x128xf32> -> vector<64x128xf32>
    %c0_3 = arith.constant 0 : index
    %c0_4 = arith.constant 0 : index
    %3 = vector.load %arg3[%c0_3, %c0_4] : memref<1x128xf32, #tpu.memory_space<vmem>>, vector<1x128xf32>
    %4 = vector.broadcast %3 : vector<1x128xf32> to vector<64x128xf32>
    %5 = arith.addf %2, %4 : vector<64x128xf32>
    %c0_5 = arith.constant 0 : index
    %c0_6 = arith.constant 0 : index
    %6 = vector.load %arg4[%c0_5, %c0_6] : memref<64x128xf32, #tpu.memory_space<vmem>>, vector<64x128xf32>
    tpu.vector_store %arg4[%c0_5, %c0_6], %5 {strides = array<i32>} : memref<64x128xf32, #tpu.memory_space<vmem>>, vector<64x128xf32>,
    return
  }
  func.func @transform_0(%arg0: i32) -> (i32, i32) {
    %c0_i32 = arith.constant 0 : i32
    %c0_i32_0 = arith.constant 0 : i32
    return %arg0, %c0_i32 : i32, i32
  }
  func.func @transform_1(%arg0: i32) -> (i32, i32) {
    %c0_i32 = arith.constant 0 : i32
    %c0_i32_0 = arith.constant 0 : i32
    %c0_i32_1 = arith.constant 0 : i32
    return %c0_i32, %c0_i32_0 : i32, i32
  }
  func.func @transform_2(%arg0: i32) -> (i32, i32) {
    %c0_i32 = arith.constant 0 : i32
    %c0_i32_0 = arith.constant 0 : i32
    %c0_i32_1 = arith.constant 0 : i32
    return %c0_i32, %c0_i32_0 : i32, i32
  }
  func.func @transform_3(%arg0: i32) -> (i32, i32) {
    %c0_i32 = arith.constant 0 : i32
    %c0_i32_0 = arith.constant 0 : i32
    return %arg0, %c0_i32 : i32, i32
  }
}

</mosaic_0001>

<bundles_post_ra>
// kernel: beta_vae_b_forward.9
= control target key start
LH: loop header
LB: loop body
LE: loop exit
PB: predicated region body
PF: predicated region fallthrough
CT: control target
= control target key end

     0   :  { %s2897_s12 = smov 0   ;;  %s3450_s0 = inlined_call_operand.vmem [shape: bf16[2048,16], index: 0, kind: input, shape index: {}]   ;;  %s3451_s1 = inlined_call_operand.vmem [shape: bf16[16,32], index: 1, kind: input, shape index: {}]   ;;  %s3452_s2 = inlined_call_operand.vmem [shape: f32[1,32], index: 2, kind: input, shape index: {}]   ;;  %s3453_s3 = inlined_call_operand.vmem [shape: bf16[2048,32], index: 3, kind: output, shape index: {}]  }
   0x1 LB: > { %s2201_s13 = sadd.s32 4294967295, %s2875_s12   ;;  %p2205_p0 = scmp.ge.s32.totalorder %s2875_s12, 1  ;;  %s2875_s12 = sphi %s2897_s12, %s13_s12  }
   0x2   : > { %p138_p1 = scmp.lt.s32.totalorder %s2875_s12, 3 }
   0x4   : > { %p139_p2 = pnand %p2205_p0, %p138_p1 }
   0x5   : > { %v2803_v0 = vld [vmem:[%s3451_s1] sm:$0xff] (!%p139_p2)   ;;  %s2206_s16 = sshll.u32 (!%p139_p2), %s2201_s13, 7  ;;  %vm638_vm0 = vcmask (!%p139_p2), 130048   ;;  %vm2016_vm1 = vcmask (!%p139_p2), 257024  }
   0x6   : > { %142 = sbr.rel (%p139_p2) target bundleno = 361 (0x169), region = 32  ;;  %p163_p3 = scmp.lt.s32.totalorder (!%p139_p2), %s2206_s16, 255  ;;  %2663 = vmatprep.subr.bf16.mxu0 (!%p139_p2), %v2803_v0  ;;  %2793 = vmatprep.subr.bf16.mxu1 (!%p139_p2), %v2803_v0 }
   0x7   : > { %2664 = vmatpush3.bf16.msra.mxu0 (!%p139_p2), %v2803_v0  ;;  %2794 = vmatpush3.bf16.msra.mxu1 (!%p139_p2), %v2803_v0 }
   0xd   : > { %s3455_s16 = smov (!%p163_p3, %s2206_s16), 255 }
   0xe   : > { %s2207_s17 = sshll.u32 %s3455_s16, 2 }
   0xf   : > { %s2916_s20 = scalar_lea.vmem %s3450_s0, %s2207_s17  ;;  %s3061_s25 = scalar_lea.vmem %s3453_s3, %s2207_s17 }
  0x10   : > { %v2804_v1 = vld [vmem:[%s2916_s20] sm:$0xff]   ;;  %v2806_v3 = vld [vmem:[%s2916_s20 + $0x8] sm:$0xff]   ;;  %v2808_v5 = vld [vmem:[%s2916_s20 + $0x10] sm:$0xff]  }
  0x11   : > { %v2805_v2 = vld [vmem:[%s2916_s20 + $0x100] sm:$0xff]   ;;  %2665 = vmatprep.mubr.msk.bf16.mxu0 %vm638_vm0, %v2804_v1  ;;  %v2807_v4 = vld [vmem:[%s2916_s20 + $0x108] sm:$0xff]   ;;  %v2809_v6 = vld [vmem:[%s2916_s20 + $0x110] sm:$0xff]  }
  0x12   : > { %2729 = vmatprep.mubr.msk.bf16.mxu1 %vm638_vm0, %v2805_v2  ;;  %2666 = vmatmul.mubr.msk.bf16.vlgmr.msra.gmra.mrb[0].mxu0 %vm638_vm0, %v2806_v3  ;;  %v2810_v7 = vld [vmem:[%s2916_s20 + $0x18] sm:$0xff]   ;;  %v2812_v9 = vld [vmem:[%s2916_s20 + $0x20] sm:$0xff]   ;;  %v2814_v11 = vld [vmem:[%s2916_s20 + $0x28] sm:$0xff]  }
  0x13   : > { %2730 = vmatmul.mubr.msk.bf16.vlgmr.msra.gmra.mrb[0].mxu1 %vm638_vm0, %v2807_v4  ;;  %2669 = vmatprep.mubr.msk.bf16.mxu0 %vm638_vm0, %v2808_v5  ;;  %v2811_v8 = vld [vmem:[%s2916_s20 + $0x118] sm:$0xff]   ;;  %v2813_v10 = vld [vmem:[%s2916_s20 + $0x120] sm:$0xff]   ;;  %v2815_v12 = vld [vmem:[%s2916_s20 + $0x128] sm:$0xff]  }
  0x14   : > { %2733 = vmatprep.mubr.msk.bf16.mxu1 %vm638_vm0, %v2809_v6  ;;  %v2816_v13 = vld [vmem:[%s2916_s20 + $0x30] sm:$0xff]   ;;  %v2818_v15 = vld [vmem:[%s2916_s20 + $0x38] sm:$0xff]   ;;  %v2820_v17 = vld [vmem:[%s2916_s20 + $0x40] sm:$0xff]  }
  0x15   : > { %v2817_v14 = vld [vmem:[%s2916_s20 + $0x130] sm:$0xff]   ;;  %v2819_v16 = vld [vmem:[%s2916_s20 + $0x138] sm:$0xff]   ;;  %v2821_v18 = vld [vmem:[%s2916_s20 + $0x140] sm:$0xff]  }
  0x16   : > { %v2822_v19 = vld [vmem:[%s2916_s20 + $0x48] sm:$0xff]   ;;  %v2824_v21 = vld [vmem:[%s2916_s20 + $0x50] sm:$0xff]   ;;  %v2826_v23 = vld [vmem:[%s2916_s20 + $0x58] sm:$0xff]  }
  0x17   : > { %v2823_v20 = vld [vmem:[%s2916_s20 + $0x148] sm:$0xff]   ;;  %v2825_v22 = vld [vmem:[%s2916_s20 + $0x150] sm:$0xff]   ;;  %v2827_v24 = vld [vmem:[%s2916_s20 + $0x158] sm:$0xff]  }
  0x18   : > { %v2828_v25 = vld [vmem:[%s2916_s20 + $0x60] sm:$0xff]   ;;  %v2830_v27 = vld [vmem:[%s2916_s20 + $0x68] sm:$0xff]   ;;  %v2832_v29 = vld [vmem:[%s2916_s20 + $0x70] sm:$0xff]  }
  0x19   : > { %v2829_v26 = vld [vmem:[%s2916_s20 + $0x160] sm:$0xff]   ;;  %v2831_v28 = vld [vmem:[%s2916_s20 + $0x168] sm:$0xff]   ;;  %v2833_v30 = vld [vmem:[%s2916_s20 + $0x170] sm:$0xff]  }
  0x1a   : > { %2670 = vmatmul.mubr.msk.bf16.gmra.mrb[4].mxu0 %vm638_vm0, %v2810_v7  ;;  %v2834_v31 = vld [vmem:[%s2916_s20 + $0x78] sm:$0xff]   ;;  %v2836_v33 = vld [vmem:[%s2916_s20 + $0x80] sm:$0xff]   ;;  %v2838_v35 = vld [vmem:[%s2916_s20 + $0x88] sm:$0xff]  }
  0x1b   : > { %2734 = vmatmul.mubr.msk.bf16.gmra.mrb[4].mxu1 %vm638_vm0, %v2811_v8  ;;  %2673 = vmatprep.mubr.msk.bf16.mxu0 %vm638_vm0, %v2812_v9  ;;  %v2835_v32 = vld [vmem:[%s2916_s20 + $0x178] sm:$0xff]   ;;  %v2837_v34 = vld [vmem:[%s2916_s20 + $0x180] sm:$0xff]   ;;  %v2839_v36 = vld [vmem:[%s2916_s20 + $0x188] sm:$0xff]  }
  0x1c   : > { %2737 = vmatprep.mubr.msk.bf16.mxu1 %vm638_vm0, %v2813_v10  ;;  %v2840_v37 = vld [vmem:[%s2916_s20 + $0x90] sm:$0xff]   ;;  %v2842_v39 = vld [vmem:[%s2916_s20 + $0x98] sm:$0xff]   ;;  %v2844_v41 = vld [vmem:[%s2916_s20 + $0xa0] sm:$0xff]  }
  0x1d   : > { %v2841_v38 = vld [vmem:[%s2916_s20 + $0x190] sm:$0xff]   ;;  %v2843_v40 = vld [vmem:[%s2916_s20 + $0x198] sm:$0xff]   ;;  %v2845_v42 = vld [vmem:[%s2916_s20 + $0x1a0] sm:$0xff]  }
  0x1e   : > { %v2846_v43 = vld [vmem:[%s2916_s20 + $0xa8] sm:$0xff]   ;;  %v2848_v45 = vld [vmem:[%s2916_s20 + $0xb0] sm:$0xff]   ;;  %v2850_v47 = vld [vmem:[%s2916_s20 + $0xb8] sm:$0xff]  }
  0x1f   : > { %v2847_v44 = vld [vmem:[%s2916_s20 + $0x1a8] sm:$0xff]   ;;  %v2849_v46 = vld [vmem:[%s2916_s20 + $0x1b0] sm:$0xff]   ;;  %v2851_v48 = vld [vmem:[%s2916_s20 + $0x1b8] sm:$0xff]  }
  0x20   : > { %v2852_v49 = vld [vmem:[%s2916_s20 + $0xc0] sm:$0xff]   ;;  %v2854_v51 = vld [vmem:[%s2916_s20 + $0xc8] sm:$0xff]   ;;  %v2856_v53 = vld [vmem:[%s2916_s20 + $0xd0] sm:$0xff]  }
  0x21   : > { %v2853_v50 = vld [vmem:[%s2916_s20 + $0x1c0] sm:$0xff]   ;;  %v2855_v52 = vld [vmem:[%s2916_s20 + $0x1c8] sm:$0xff]   ;;  %v2857_v54 = vld [vmem:[%s2916_s20 + $0x1d0] sm:$0xff]  }
  0x22   : > { %2674 = vmatmul.mubr.msk.bf16.gmra.mrb[8].mxu0 %vm638_vm0, %v2814_v11  ;;  %v2858_v55 = vld [vmem:[%s2916_s20 + $0xd8] sm:$0xff]   ;;  %v2860_v57 = vld [vmem:[%s2916_s20 + $0xe0] sm:$0xff]   ;;  %v2862_v59 = vld [vmem:[%s2916_s20 + $0xe8] sm:$0xff]  }
  0x23   : > { %2738 = vmatmul.mubr.msk.bf16.gmra.mrb[8].mxu1 %vm638_vm0, %v2815_v12  ;;  %2677 = vmatprep.mubr.msk.bf16.mxu0 %vm638_vm0, %v2816_v13  ;;  %v2859_v56 = vld [vmem:[%s2916_s20 + $0x1d8] sm:$0xff]   ;;  %v2861_v58 = vld [vmem:[%s2916_s20 + $0x1e0] sm:$0xff]   ;;  %v2863_v60 = vld [vmem:[%s2916_s20 + $0x1e8] sm:$0xff]  }
  0x24   : > { %2741 = vmatprep.mubr.msk.bf16.mxu1 %vm638_vm0, %v2817_v14  ;;  %v2864_v61 = vld [vmem:[%s2916_s20 + $0xf0] sm:$0xff]   ;;  %v2866_v63 = vld [vmem:[%s2916_s20 + $0xf8] sm:$0xff]   ;;  %v3049_v1 = vld [vmem:[%s3452_s2] ss:$0 sm:$0xff] }
  0x25   : > { %v2865_v62 = vld [vmem:[%s2916_s20 + $0x1f0] sm:$0xff]   ;;  %v2867_v0 = vld [vmem:[%s2916_s20 + $0x1f8] sm:$0xff]  }
  0x2a   : > { %2678 = vmatmul.mubr.msk.bf16.gmra.mrb[12].mxu0 %vm638_vm0, %v2818_v15 }
  0x2b   : > { %2742 = vmatmul.mubr.msk.bf16.gmra.mrb[12].mxu1 %vm638_vm0, %v2819_v16  ;;  %2681 = vmatprep.mubr.msk.bf16.mxu0 %vm638_vm0, %v2820_v17 }
  0x2c   : > { %2745 = vmatprep.mubr.msk.bf16.mxu1 %vm638_vm0, %v2821_v18 }
  0x32   : > { %2682 = vmatmul.mubr.msk.bf16.gmra.mrb[16].mxu0 %vm638_vm0, %v2822_v19 }
  0x33   : > { %2746 = vmatmul.mubr.msk.bf16.gmra.mrb[16].mxu1 %vm638_vm0, %v2823_v20  ;;  %2685 = vmatprep.mubr.msk.bf16.mxu0 %vm638_vm0, %v2824_v21 }
  0x34   : > { %2749 = vmatprep.mubr.msk.bf16.mxu1 %vm638_vm0, %v2825_v22 }
  0x3a   : > { %2686 = vmatmul.mubr.msk.bf16.gmra.mrb[20].mxu0 %vm638_vm0, %v2826_v23 }
  0x3b   : > { %2750 = vmatmul.mubr.msk.bf16.gmra.mrb[20].mxu1 %vm638_vm0, %v2827_v24  ;;  %2689 = vmatprep.mubr.msk.bf16.mxu0 %vm638_vm0, %v2828_v25 }
  0x3c   : > { %2753 = vmatprep.mubr.msk.bf16.mxu1 %vm638_vm0, %v2829_v26 }
  0x42   : > { %2690 = vmatmul.mubr.msk.bf16.gmra.mrb[24].mxu0 %vm638_vm0, %v2830_v27 }
  0x43   : > { %2754 = vmatmul.mubr.msk.bf16.gmra.mrb[24].mxu1 %vm638_vm0, %v2831_v28  ;;  %2693 = vmatprep.mubr.msk.bf16.mxu0 %vm638_vm0, %v2832_v29 }
  0x44   : > { %2757 = vmatprep.mubr.msk.bf16.mxu1 %vm638_vm0, %v2833_v30 }
  0x4a   : > { %2694 = vmatmul.mubr.msk.bf16.gmra.mrb[28].mxu0 %vm638_vm0, %v2834_v31 }
  0x4b   : > { %2758 = vmatmul.mubr.msk.bf16.gmra.mrb[28].mxu1 %vm638_vm0, %v2835_v32  ;;  %2697 = vmatprep.mubr.msk.bf16.mxu0 %vm638_vm0, %v2836_v33 }
  0x4c   : > { %2761 = vmatprep.mubr.msk.bf16.mxu1 %vm638_vm0, %v2837_v34 }
  0x52   : > { %2698 = vmatmul.mubr.msk.bf16.gmra.mrb[32].mxu0 %vm638_vm0, %v2838_v35 }
  0x53   : > { %2762 = vmatmul.mubr.msk.bf16.gmra.mrb[32].mxu1 %vm638_vm0, %v2839_v36  ;;  %2701 = vmatprep.mubr.msk.bf16.mxu0 %vm638_vm0, %v2840_v37 }
  0x54   : > { %2765 = vmatprep.mubr.msk.bf16.mxu1 %vm638_vm0, %v2841_v38 }
  0x5a   : > { %2702 = vmatmul.mubr.msk.bf16.gmra.mrb[36].mxu0 %vm638_vm0, %v2842_v39 }
  0x5b   : > { %2766 = vmatmul.mubr.msk.bf16.gmra.mrb[36].mxu1 %vm638_vm0, %v2843_v40  ;;  %2705 = vmatprep.mubr.msk.bf16.mxu0 %vm638_vm0, %v2844_v41 }
  0x5c   : > { %2769 = vmatprep.mubr.msk.bf16.mxu1 %vm638_vm0, %v2845_v42 }
  0x62   : > { %2706 = vmatmul.mubr.msk.bf16.gmra.mrb[40].mxu0 %vm638_vm0, %v2846_v43 }
  0x63   : > { %2770 = vmatmul.mubr.msk.bf16.gmra.mrb[40].mxu1 %vm638_vm0, %v2847_v44  ;;  %2709 = vmatprep.mubr.msk.bf16.mxu0 %vm638_vm0, %v2848_v45 }
  0x64   : > { %2773 = vmatprep.mubr.msk.bf16.mxu1 %vm638_vm0, %v2849_v46 }
  0x6a   : > { %2710 = vmatmul.mubr.msk.bf16.gmra.mrb[44].mxu0 %vm638_vm0, %v2850_v47 }
  0x6b   : > { %2774 = vmatmul.mubr.msk.bf16.gmra.mrb[44].mxu1 %vm638_vm0, %v2851_v48  ;;  %2713 = vmatprep.mubr.msk.bf16.mxu0 %vm638_vm0, %v2852_v49 }
  0x6c   : > { %2777 = vmatprep.mubr.msk.bf16.mxu1 %vm638_vm0, %v2853_v50 }
  0x72   : > { %2714 = vmatmul.mubr.msk.bf16.gmra.mrb[48].mxu0 %vm638_vm0, %v2854_v51 }
  0x73   : > { %2778 = vmatmul.mubr.msk.bf16.gmra.mrb[48].mxu1 %vm638_vm0, %v2855_v52  ;;  %2717 = vmatprep.mubr.msk.bf16.mxu0 %vm638_vm0, %v2856_v53 }
  0x74   : > { %2781 = vmatprep.mubr.msk.bf16.mxu1 %vm638_vm0, %v2857_v54 }
  0x7a   : > { %2718 = vmatmul.mubr.msk.bf16.gmra.mrb[52].mxu0 %vm638_vm0, %v2858_v55 }
  0x7b   : > { %2782 = vmatmul.mubr.msk.bf16.gmra.mrb[52].mxu1 %vm638_vm0, %v2859_v56  ;;  %2721 = vmatprep.mubr.msk.bf16.mxu0 %vm638_vm0, %v2860_v57 }
  0x7c   : > { %2785 = vmatprep.mubr.msk.bf16.mxu1 %vm638_vm0, %v2861_v58 }
  0x82   : > { %2722 = vmatmul.mubr.msk.bf16.gmra.mrb[56].mxu0 %vm638_vm0, %v2862_v59 }
  0x83   : > { %2786 = vmatmul.mubr.msk.bf16.gmra.mrb[56].mxu1 %vm638_vm0, %v2863_v60  ;;  %2725 = vmatprep.mubr.msk.bf16.mxu0 %vm638_vm0, %v2864_v61 }
  0x84   : > { %2789 = vmatprep.mubr.msk.bf16.mxu1 %vm638_vm0, %v2865_v62 }
  0x8a   : > { %2726 = vmatmul.mubr.msk.bf16.gmra.mrb[60].mxu0 %vm638_vm0, %v2866_v63 }
  0x8b   : > { %2790 = vmatmul.mubr.msk.bf16.gmra.mrb[60].mxu1 %vm638_vm0, %v2867_v0 }
  0xe5   : > { %v2667_v2 = vpop.f32.mrb[0].mxu0 }
  0xe6   : > { %v874_v3 = vadd.f32 %v2667_v2, %v3049_v1  ;;  %v2731_v4 = vpop.f32.mrb[0].mxu1  ;;  %v865_v5 = vpop.f32.mrb[1].mxu0 }
  0xe7   : > { %v1130_v6 = vadd.f32 %v2731_v4, %v3049_v1  ;;  %v866_v7 = vadd.f32 %v3049_v1, %v865_v5  ;;  %v1121_v8 = vpop.f32.mrb[1].mxu1  ;;  %v2668_v9 = vpop.f32.mrb[2].mxu0 }
  0xe8   : > { %v1378_v10 = vmax.f32 %v874_v3, 0.0  ;;  %v1122_v11 = vadd.f32 %v3049_v1, %v1121_v8  ;;  %v877_v12 = vadd.f32 %v2668_v9, %v3049_v1  ;;  %v2732_v13 = vpop.f32.mrb[2].mxu1  ;;  %v868_v14 = vpop.f32.mrb[3].mxu0 }
  0xe9   : > { %v1442_v15 = vmax.f32 %v1130_v6, 0.0  ;;  %v1376_v16 = vmax.f32 %v866_v7, 0.0  ;;  %v1133_v17 = vadd.f32 %v2732_v13, %v3049_v1  ;;  %v869_v18 = vadd.f32 %v3049_v1, %v868_v14  ;;  %v1124_v19 = vpop.f32.mrb[3].mxu1 }
  0xea   : > { %v2472_v20 = vpack.c.bf16 %v1378_v10, %v1378_v10  ;;  %v1440_v21 = vmax.f32 %v1122_v11, 0.0  ;;  %v1379_v22 = vmax.f32 %v877_v12, 0.0  ;;  %v1125_v23 = vadd.f32 %v3049_v1, %v1124_v19 }
  0xeb   : > { %v2536_v24 = vpack.c.bf16 %v1442_v15, %v1442_v15  ;;  %v2470_v25 = vpack.c.bf16 %v1376_v16, %v1376_v16  ;;  %v1443_v26 = vmax.f32 %v1133_v17, 0.0  ;;  %v1377_v27 = vmax.f32 %v869_v18, 0.0 }
  0xec   : > { %2019 = vst.msk [vmem:[%s3061_s25 + $0x8] sm:$0xf] %vm2016_vm1, %v2472_v20  ;;  %v2534_v28 = vpack.c.bf16 %v1440_v21, %v1440_v21  ;;  %v2473_v29 = vpack.c.bf16 %v1379_v22, %v1379_v22  ;;  %v1441_v30 = vmax.f32 %v1125_v23, 0.0 }
  0xed   : > { %2083 = vst.msk [vmem:[%s3061_s25 + $0x108] sm:$0xf] %vm2016_vm1, %v2536_v24  ;;  %2017 = vst.msk [vmem:[%s3061_s25] sm:$0xf] %vm2016_vm1, %v2470_v25  ;;  %v2537_v31 = vpack.c.bf16 %v1443_v26, %v1443_v26  ;;  %v2471_v32 = vpack.c.bf16 %v1377_v27, %v1377_v27  ;;  %v2671_v33 = vpop.f32.mrb[4].mxu0 }
  0xee   : > { %2081 = vst.msk [vmem:[%s3061_s25 + $0x100] sm:$0xf] %vm2016_vm1, %v2534_v28  ;;  %2020 = vst.msk [vmem:[%s3061_s25 + $0xc] sm:$0xf] %vm2016_vm1, %v2473_v29  ;;  %v2535_v34 = vpack.c.bf16 %v1441_v30, %v1441_v30  ;;  %v890_v35 = vadd.f32 %v2671_v33, %v3049_v1  ;;  %v2735_v36 = vpop.f32.mrb[4].mxu1  ;;  %v881_v37 = vpop.f32.mrb[5].mxu0 }
  0xef   : > { %2084 = vst.msk [vmem:[%s3061_s25 + $0x10c] sm:$0xf] %vm2016_vm1, %v2537_v31  ;;  %2018 = vst.msk [vmem:[%s3061_s25 + $0x4] sm:$0xf] %vm2016_vm1, %v2471_v32  ;;  %v1146_v38 = vadd.f32 %v2735_v36, %v3049_v1  ;;  %v882_v39 = vadd.f32 %v3049_v1, %v881_v37  ;;  %v1137_v40 = vpop.f32.mrb[5].mxu1  ;;  %v2672_v41 = vpop.f32.mrb[6].mxu0 }
  0xf0   : > { %2082 = vst.msk [vmem:[%s3061_s25 + $0x104] sm:$0xf] %vm2016_vm1, %v2535_v34  ;;  %v1382_v42 = vmax.f32 %v890_v35, 0.0  ;;  %v1138_v43 = vadd.f32 %v3049_v1, %v1137_v40  ;;  %v893_v44 = vadd.f32 %v2672_v41, %v3049_v1  ;;  %v2736_v45 = vpop.f32.mrb[6].mxu1  ;;  %v884_v46 = vpop.f32.mrb[7].mxu0 }
  0xf1   : > { %v1446_v47 = vmax.f32 %v1146_v38, 0.0  ;;  %v1380_v48 = vmax.f32 %v882_v39, 0.0  ;;  %v1149_v49 = vadd.f32 %v2736_v45, %v3049_v1  ;;  %v885_v50 = vadd.f32 %v3049_v1, %v884_v46  ;;  %v1140_v51 = vpop.f32.mrb[7].mxu1 }
  0xf2   : > { %v2476_v52 = vpack.c.bf16 %v1382_v42, %v1382_v42  ;;  %v1444_v53 = vmax.f32 %v1138_v43, 0.0  ;;  %v1383_v54 = vmax.f32 %v893_v44, 0.0  ;;  %v1141_v55 = vadd.f32 %v3049_v1, %v1140_v51 }
  0xf3   : > { %v2540_v56 = vpack.c.bf16 %v1446_v47, %v1446_v47  ;;  %v2474_v57 = vpack.c.bf16 %v1380_v48, %v1380_v48  ;;  %v1447_v58 = vmax.f32 %v1149_v49, 0.0  ;;  %v1381_v59 = vmax.f32 %v885_v50, 0.0 }
  0xf4   : > { %2023 = vst.msk [vmem:[%s3061_s25 + $0x18] sm:$0xf] %vm2016_vm1, %v2476_v52  ;;  %v2538_v60 = vpack.c.bf16 %v1444_v53, %v1444_v53  ;;  %v2477_v61 = vpack.c.bf16 %v1383_v54, %v1383_v54  ;;  %v1445_v62 = vmax.f32 %v1141_v55, 0.0 }
  0xf5   : > { %2087 = vst.msk [vmem:[%s3061_s25 + $0x118] sm:$0xf] %vm2016_vm1, %v2540_v56  ;;  %2021 = vst.msk [vmem:[%s3061_s25 + $0x10] sm:$0xf] %vm2016_vm1, %v2474_v57  ;;  %v2541_v63 = vpack.c.bf16 %v1447_v58, %v1447_v58  ;;  %v2475_v0 = vpack.c.bf16 %v1381_v59, %v1381_v59  ;;  %v2675_v2 = vpop.f32.mrb[8].mxu0 }
  0xf6   : > { %2085 = vst.msk [vmem:[%s3061_s25 + $0x110] sm:$0xf] %vm2016_vm1, %v2538_v60  ;;  %2024 = vst.msk [vmem:[%s3061_s25 + $0x1c] sm:$0xf] %vm2016_vm1, %v2477_v61  ;;  %v2539_v3 = vpack.c.bf16 %v1445_v62, %v1445_v62  ;;  %v906_v4 = vadd.f32 %v2675_v2, %v3049_v1  ;;  %v2739_v5 = vpop.f32.mrb[8].mxu1  ;;  %v897_v6 = vpop.f32.mrb[9].mxu0 }
  0xf7   : > { %2088 = vst.msk [vmem:[%s3061_s25 + $0x11c] sm:$0xf] %vm2016_vm1, %v2541_v63  ;;  %2022 = vst.msk [vmem:[%s3061_s25 + $0x14] sm:$0xf] %vm2016_vm1, %v2475_v0  ;;  %v1162_v7 = vadd.f32 %v2739_v5, %v3049_v1  ;;  %v898_v8 = vadd.f32 %v3049_v1, %v897_v6  ;;  %v1153_v9 = vpop.f32.mrb[9].mxu1  ;;  %v2676_v10 = vpop.f32.mrb[10].mxu0 }
  0xf8   : > { %2086 = vst.msk [vmem:[%s3061_s25 + $0x114] sm:$0xf] %vm2016_vm1, %v2539_v3  ;;  %v1386_v11 = vmax.f32 %v906_v4, 0.0  ;;  %v1154_v12 = vadd.f32 %v3049_v1, %v1153_v9  ;;  %v909_v13 = vadd.f32 %v2676_v10, %v3049_v1  ;;  %v2740_v14 = vpop.f32.mrb[10].mxu1  ;;  %v900_v15 = vpop.f32.mrb[11].mxu0 }
  0xf9   : > { %v1450_v16 = vmax.f32 %v1162_v7, 0.0  ;;  %v1384_v17 = vmax.f32 %v898_v8, 0.0  ;;  %v1165_v18 = vadd.f32 %v2740_v14, %v3049_v1  ;;  %v901_v19 = vadd.f32 %v3049_v1, %v900_v15  ;;  %v1156_v20 = vpop.f32.mrb[11].mxu1 }
  0xfa   : > { %v2480_v21 = vpack.c.bf16 %v1386_v11, %v1386_v11  ;;  %v1448_v22 = vmax.f32 %v1154_v12, 0.0  ;;  %v1387_v23 = vmax.f32 %v909_v13, 0.0  ;;  %v1157_v24 = vadd.f32 %v3049_v1, %v1156_v20 }
  0xfb   : > { %v2544_v25 = vpack.c.bf16 %v1450_v16, %v1450_v16  ;;  %v2478_v26 = vpack.c.bf16 %v1384_v17, %v1384_v17  ;;  %v1451_v27 = vmax.f32 %v1165_v18, 0.0  ;;  %v1385_v28 = vmax.f32 %v901_v19, 0.0 }
  0xfc   : > { %2027 = vst.msk [vmem:[%s3061_s25 + $0x28] sm:$0xf] %vm2016_vm1, %v2480_v21  ;;  %v2542_v29 = vpack.c.bf16 %v1448_v22, %v1448_v22  ;;  %v2481_v30 = vpack.c.bf16 %v1387_v23, %v1387_v23  ;;  %v1449_v31 = vmax.f32 %v1157_v24, 0.0 }
  0xfd   : > { %2091 = vst.msk [vmem:[%s3061_s25 + $0x128] sm:$0xf] %vm2016_vm1, %v2544_v25  ;;  %2025 = vst.msk [vmem:[%s3061_s25 + $0x20] sm:$0xf] %vm2016_vm1, %v2478_v26  ;;  %v2545_v32 = vpack.c.bf16 %v1451_v27, %v1451_v27  ;;  %v2479_v33 = vpack.c.bf16 %v1385_v28, %v1385_v28  ;;  %v2679_v34 = vpop.f32.mrb[12].mxu0 }
  0xfe   : > { %2089 = vst.msk [vmem:[%s3061_s25 + $0x120] sm:$0xf] %vm2016_vm1, %v2542_v29  ;;  %2028 = vst.msk [vmem:[%s3061_s25 + $0x2c] sm:$0xf] %vm2016_vm1, %v2481_v30  ;;  %v2543_v35 = vpack.c.bf16 %v1449_v31, %v1449_v31  ;;  %v922_v36 = vadd.f32 %v2679_v34, %v3049_v1  ;;  %v2743_v37 = vpop.f32.mrb[12].mxu1  ;;  %v913_v38 = vpop.f32.mrb[13].mxu0 }
  0xff   : > { %2092 = vst.msk [vmem:[%s3061_s25 + $0x12c] sm:$0xf] %vm2016_vm1, %v2545_v32  ;;  %2026 = vst.msk [vmem:[%s3061_s25 + $0x24] sm:$0xf] %vm2016_vm1, %v2479_v33  ;;  %v1178_v39 = vadd.f32 %v2743_v37, %v3049_v1  ;;  %v914_v40 = vadd.f32 %v3049_v1, %v913_v38  ;;  %v1169_v41 = vpop.f32.mrb[13].mxu1  ;;  %v2680_v42 = vpop.f32.mrb[14].mxu0 }
 0x100   : > { %2090 = vst.msk [vmem:[%s3061_s25 + $0x124] sm:$0xf] %vm2016_vm1, %v2543_v35  ;;  %v1390_v43 = vmax.f32 %v922_v36, 0.0  ;;  %v1170_v44 = vadd.f32 %v3049_v1, %v1169_v41  ;;  %v925_v45 = vadd.f32 %v2680_v42, %v3049_v1  ;;  %v2744_v46 = vpop.f32.mrb[14].mxu1  ;;  %v916_v47 = vpop.f32.mrb[15].mxu0 }
 0x101   : > { %v1454_v48 = vmax.f32 %v1178_v39, 0.0  ;;  %v1388_v49 = vmax.f32 %v914_v40, 0.0  ;;  %v1181_v50 = vadd.f32 %v2744_v46, %v3049_v1  ;;  %v917_v51 = vadd.f32 %v3049_v1, %v916_v47  ;;  %v1172_v52 = vpop.f32.mrb[15].mxu1 }
 0x102   : > { %v2484_v53 = vpack.c.bf16 %v1390_v43, %v1390_v43  ;;  %v1452_v54 = vmax.f32 %v1170_v44, 0.0  ;;  %v1391_v55 = vmax.f32 %v925_v45, 0.0  ;;  %v1173_v56 = vadd.f32 %v3049_v1, %v1172_v52 }
 0x103   : > { %v2548_v57 = vpack.c.bf16 %v1454_v48, %v1454_v48  ;;  %v2482_v58 = vpack.c.bf16 %v1388_v49, %v1388_v49  ;;  %v1455_v59 = vmax.f32 %v1181_v50, 0.0  ;;  %v1389_v60 = vmax.f32 %v917_v51, 0.0 }
 0x104   : > { %2031 = vst.msk [vmem:[%s3061_s25 + $0x38] sm:$0xf] %vm2016_vm1, %v2484_v53  ;;  %v2546_v61 = vpack.c.bf16 %v1452_v54, %v1452_v54  ;;  %v2485_v62 = vpack.c.bf16 %v1391_v55, %v1391_v55  ;;  %v1453_v63 = vmax.f32 %v1173_v56, 0.0 }
 0x105   : > { %2095 = vst.msk [vmem:[%s3061_s25 + $0x138] sm:$0xf] %vm2016_vm1, %v2548_v57  ;;  %2029 = vst.msk [vmem:[%s3061_s25 + $0x30] sm:$0xf] %vm2016_vm1, %v2482_v58  ;;  %v2549_v0 = vpack.c.bf16 %v1455_v59, %v1455_v59  ;;  %v2483_v2 = vpack.c.bf16 %v1389_v60, %v1389_v60  ;;  %v2683_v3 = vpop.f32.mrb[16].mxu0 }
 0x106   : > { %2093 = vst.msk [vmem:[%s3061_s25 + $0x130] sm:$0xf] %vm2016_vm1, %v2546_v61  ;;  %2032 = vst.msk [vmem:[%s3061_s25 + $0x3c] sm:$0xf] %vm2016_vm1, %v2485_v62  ;;  %v2547_v4 = vpack.c.bf16 %v1453_v63, %v1453_v63  ;;  %v938_v5 = vadd.f32 %v2683_v3, %v3049_v1  ;;  %v2747_v6 = vpop.f32.mrb[16].mxu1  ;;  %v929_v7 = vpop.f32.mrb[17].mxu0 }
 0x107   : > { %2096 = vst.msk [vmem:[%s3061_s25 + $0x13c] sm:$0xf] %vm2016_vm1, %v2549_v0  ;;  %2030 = vst.msk [vmem:[%s3061_s25 + $0x34] sm:$0xf] %vm2016_vm1, %v2483_v2  ;;  %v1194_v8 = vadd.f32 %v2747_v6, %v3049_v1  ;;  %v930_v9 = vadd.f32 %v3049_v1, %v929_v7  ;;  %v1185_v10 = vpop.f32.mrb[17].mxu1  ;;  %v2684_v11 = vpop.f32.mrb[18].mxu0 }
 0x108   : > { %2094 = vst.msk [vmem:[%s3061_s25 + $0x134] sm:$0xf] %vm2016_vm1, %v2547_v4  ;;  %v1394_v12 = vmax.f32 %v938_v5, 0.0  ;;  %v1186_v13 = vadd.f32 %v3049_v1, %v1185_v10  ;;  %v941_v14 = vadd.f32 %v2684_v11, %v3049_v1  ;;  %v2748_v15 = vpop.f32.mrb[18].mxu1  ;;  %v932_v16 = vpop.f32.mrb[19].mxu0 }
 0x109   : > { %v1458_v17 = vmax.f32 %v1194_v8, 0.0  ;;  %v1392_v18 = vmax.f32 %v930_v9, 0.0  ;;  %v1197_v19 = vadd.f32 %v2748_v15, %v3049_v1  ;;  %v933_v20 = vadd.f32 %v3049_v1, %v932_v16  ;;  %v1188_v21 = vpop.f32.mrb[19].mxu1 }
 0x10a   : > { %v2488_v22 = vpack.c.bf16 %v1394_v12, %v1394_v12  ;;  %v1456_v23 = vmax.f32 %v1186_v13, 0.0  ;;  %v1395_v24 = vmax.f32 %v941_v14, 0.0  ;;  %v1189_v25 = vadd.f32 %v3049_v1, %v1188_v21 }
 0x10b   : > { %v2552_v26 = vpack.c.bf16 %v1458_v17, %v1458_v17  ;;  %v2486_v27 = vpack.c.bf16 %v1392_v18, %v1392_v18  ;;  %v1459_v28 = vmax.f32 %v1197_v19, 0.0  ;;  %v1393_v29 = vmax.f32 %v933_v20, 0.0 }
 0x10c   : > { %2035 = vst.msk [vmem:[%s3061_s25 + $0x48] sm:$0xf] %vm2016_vm1, %v2488_v22  ;;  %v2550_v30 = vpack.c.bf16 %v1456_v23, %v1456_v23  ;;  %v2489_v31 = vpack.c.bf16 %v1395_v24, %v1395_v24  ;;  %v1457_v32 = vmax.f32 %v1189_v25, 0.0 }
 0x10d   : > { %2099 = vst.msk [vmem:[%s3061_s25 + $0x148] sm:$0xf] %vm2016_vm1, %v2552_v26  ;;  %2033 = vst.msk [vmem:[%s3061_s25 + $0x40] sm:$0xf] %vm2016_vm1, %v2486_v27  ;;  %v2553_v33 = vpack.c.bf16 %v1459_v28, %v1459_v28  ;;  %v2487_v34 = vpack.c.bf16 %v1393_v29, %v1393_v29  ;;  %v2687_v35 = vpop.f32.mrb[20].mxu0 }
 0x10e   : > { %2097 = vst.msk [vmem:[%s3061_s25 + $0x140] sm:$0xf] %vm2016_vm1, %v2550_v30  ;;  %2036 = vst.msk [vmem:[%s3061_s25 + $0x4c] sm:$0xf] %vm2016_vm1, %v2489_v31  ;;  %v2551_v36 = vpack.c.bf16 %v1457_v32, %v1457_v32  ;;  %v954_v37 = vadd.f32 %v2687_v35, %v3049_v1  ;;  %v2751_v38 = vpop.f32.mrb[20].mxu1  ;;  %v945_v39 = vpop.f32.mrb[21].mxu0 }
 0x10f   : > { %2100 = vst.msk [vmem:[%s3061_s25 + $0x14c] sm:$0xf] %vm2016_vm1, %v2553_v33  ;;  %2034 = vst.msk [vmem:[%s3061_s25 + $0x44] sm:$0xf] %vm2016_vm1, %v2487_v34  ;;  %v1210_v40 = vadd.f32 %v2751_v38, %v3049_v1  ;;  %v946_v41 = vadd.f32 %v3049_v1, %v945_v39  ;;  %v1201_v42 = vpop.f32.mrb[21].mxu1  ;;  %v2688_v43 = vpop.f32.mrb[22].mxu0 }
 0x110   : > { %2098 = vst.msk [vmem:[%s3061_s25 + $0x144] sm:$0xf] %vm2016_vm1, %v2551_v36  ;;  %v1398_v44 = vmax.f32 %v954_v37, 0.0  ;;  %v1202_v45 = vadd.f32 %v3049_v1, %v1201_v42  ;;  %v957_v46 = vadd.f32 %v2688_v43, %v3049_v1  ;;  %v2752_v47 = vpop.f32.mrb[22].mxu1  ;;  %v948_v48 = vpop.f32.mrb[23].mxu0 }
 0x111   : > { %v1462_v49 = vmax.f32 %v1210_v40, 0.0  ;;  %v1396_v50 = vmax.f32 %v946_v41, 0.0  ;;  %v1213_v51 = vadd.f32 %v2752_v47, %v3049_v1  ;;  %v949_v52 = vadd.f32 %v3049_v1, %v948_v48  ;;  %v1204_v53 = vpop.f32.mrb[23].mxu1 }
 0x112   : > { %v2492_v54 = vpack.c.bf16 %v1398_v44, %v1398_v44  ;;  %v1460_v55 = vmax.f32 %v1202_v45, 0.0  ;;  %v1399_v56 = vmax.f32 %v957_v46, 0.0  ;;  %v1205_v57 = vadd.f32 %v3049_v1, %v1204_v53 }
 0x113   : > { %v2556_v58 = vpack.c.bf16 %v1462_v49, %v1462_v49  ;;  %v2490_v59 = vpack.c.bf16 %v1396_v50, %v1396_v50  ;;  %v1463_v60 = vmax.f32 %v1213_v51, 0.0  ;;  %v1397_v61 = vmax.f32 %v949_v52, 0.0 }
 0x114   : > { %2039 = vst.msk [vmem:[%s3061_s25 + $0x58] sm:$0xf] %vm2016_vm1, %v2492_v54  ;;  %v2554_v62 = vpack.c.bf16 %v1460_v55, %v1460_v55  ;;  %v2493_v63 = vpack.c.bf16 %v1399_v56, %v1399_v56  ;;  %v1461_v0 = vmax.f32 %v1205_v57, 0.0 }
 0x115   : > { %2103 = vst.msk [vmem:[%s3061_s25 + $0x158] sm:$0xf] %vm2016_vm1, %v2556_v58  ;;  %2037 = vst.msk [vmem:[%s3061_s25 + $0x50] sm:$0xf] %vm2016_vm1, %v2490_v59  ;;  %v2557_v2 = vpack.c.bf16 %v1463_v60, %v1463_v60  ;;  %v2491_v3 = vpack.c.bf16 %v1397_v61, %v1397_v61  ;;  %v2691_v4 = vpop.f32.mrb[24].mxu0 }
 0x116   : > { %2101 = vst.msk [vmem:[%s3061_s25 + $0x150] sm:$0xf] %vm2016_vm1, %v2554_v62  ;;  %2040 = vst.msk [vmem:[%s3061_s25 + $0x5c] sm:$0xf] %vm2016_vm1, %v2493_v63  ;;  %v2555_v5 = vpack.c.bf16 %v1461_v0, %v1461_v0  ;;  %v970_v6 = vadd.f32 %v2691_v4, %v3049_v1  ;;  %v2755_v7 = vpop.f32.mrb[24].mxu1  ;;  %v961_v8 = vpop.f32.mrb[25].mxu0 }
 0x117   : > { %2104 = vst.msk [vmem:[%s3061_s25 + $0x15c] sm:$0xf] %vm2016_vm1, %v2557_v2  ;;  %2038 = vst.msk [vmem:[%s3061_s25 + $0x54] sm:$0xf] %vm2016_vm1, %v2491_v3  ;;  %v1226_v9 = vadd.f32 %v2755_v7, %v3049_v1  ;;  %v962_v10 = vadd.f32 %v3049_v1, %v961_v8  ;;  %v1217_v11 = vpop.f32.mrb[25].mxu1  ;;  %v2692_v12 = vpop.f32.mrb[26].mxu0 }
 0x118   : > { %2102 = vst.msk [vmem:[%s3061_s25 + $0x154] sm:$0xf] %vm2016_vm1, %v2555_v5  ;;  %v1402_v13 = vmax.f32 %v970_v6, 0.0  ;;  %v1218_v14 = vadd.f32 %v3049_v1, %v1217_v11  ;;  %v973_v15 = vadd.f32 %v2692_v12, %v3049_v1  ;;  %v2756_v16 = vpop.f32.mrb[26].mxu1  ;;  %v964_v17 = vpop.f32.mrb[27].mxu0 }
 0x119   : > { %v1466_v18 = vmax.f32 %v1226_v9, 0.0  ;;  %v1400_v19 = vmax.f32 %v962_v10, 0.0  ;;  %v1229_v20 = vadd.f32 %v2756_v16, %v3049_v1  ;;  %v965_v21 = vadd.f32 %v3049_v1, %v964_v17  ;;  %v1220_v22 = vpop.f32.mrb[27].mxu1 }
 0x11a   : > { %v2496_v23 = vpack.c.bf16 %v1402_v13, %v1402_v13  ;;  %v1464_v24 = vmax.f32 %v1218_v14, 0.0  ;;  %v1403_v25 = vmax.f32 %v973_v15, 0.0  ;;  %v1221_v26 = vadd.f32 %v3049_v1, %v1220_v22 }
 0x11b   : > { %v2560_v27 = vpack.c.bf16 %v1466_v18, %v1466_v18  ;;  %v2494_v28 = vpack.c.bf16 %v1400_v19, %v1400_v19  ;;  %v1467_v29 = vmax.f32 %v1229_v20, 0.0  ;;  %v1401_v30 = vmax.f32 %v965_v21, 0.0 }
 0x11c   : > { %2043 = vst.msk [vmem:[%s3061_s25 + $0x68] sm:$0xf] %vm2016_vm1, %v2496_v23  ;;  %v2558_v31 = vpack.c.bf16 %v1464_v24, %v1464_v24  ;;  %v2497_v32 = vpack.c.bf16 %v1403_v25, %v1403_v25  ;;  %v1465_v33 = vmax.f32 %v1221_v26, 0.0 }
 0x11d   : > { %2107 = vst.msk [vmem:[%s3061_s25 + $0x168] sm:$0xf] %vm2016_vm1, %v2560_v27  ;;  %2041 = vst.msk [vmem:[%s3061_s25 + $0x60] sm:$0xf] %vm2016_vm1, %v2494_v28  ;;  %v2561_v34 = vpack.c.bf16 %v1467_v29, %v1467_v29  ;;  %v2495_v35 = vpack.c.bf16 %v1401_v30, %v1401_v30  ;;  %v2695_v36 = vpop.f32.mrb[28].mxu0 }
 0x11e   : > { %2105 = vst.msk [vmem:[%s3061_s25 + $0x160] sm:$0xf] %vm2016_vm1, %v2558_v31  ;;  %2044 = vst.msk [vmem:[%s3061_s25 + $0x6c] sm:$0xf] %vm2016_vm1, %v2497_v32  ;;  %v2559_v37 = vpack.c.bf16 %v1465_v33, %v1465_v33  ;;  %v986_v38 = vadd.f32 %v2695_v36, %v3049_v1  ;;  %v2759_v39 = vpop.f32.mrb[28].mxu1  ;;  %v977_v40 = vpop.f32.mrb[29].mxu0 }
 0x11f   : > { %2108 = vst.msk [vmem:[%s3061_s25 + $0x16c] sm:$0xf] %vm2016_vm1, %v2561_v34  ;;  %2042 = vst.msk [vmem:[%s3061_s25 + $0x64] sm:$0xf] %vm2016_vm1, %v2495_v35  ;;  %v1242_v41 = vadd.f32 %v2759_v39, %v3049_v1  ;;  %v978_v42 = vadd.f32 %v3049_v1, %v977_v40  ;;  %v1233_v43 = vpop.f32.mrb[29].mxu1  ;;  %v2696_v44 = vpop.f32.mrb[30].mxu0 }
 0x120   : > { %2106 = vst.msk [vmem:[%s3061_s25 + $0x164] sm:$0xf] %vm2016_vm1, %v2559_v37  ;;  %v1406_v45 = vmax.f32 %v986_v38, 0.0  ;;  %v1234_v46 = vadd.f32 %v3049_v1, %v1233_v43  ;;  %v989_v47 = vadd.f32 %v2696_v44, %v3049_v1  ;;  %v2760_v48 = vpop.f32.mrb[30].mxu1  ;;  %v980_v49 = vpop.f32.mrb[31].mxu0 }
 0x121   : > { %v1470_v50 = vmax.f32 %v1242_v41, 0.0  ;;  %v1404_v51 = vmax.f32 %v978_v42, 0.0  ;;  %v1245_v52 = vadd.f32 %v2760_v48, %v3049_v1  ;;  %v981_v53 = vadd.f32 %v3049_v1, %v980_v49  ;;  %v1236_v54 = vpop.f32.mrb[31].mxu1 }
 0x122   : > { %v2500_v55 = vpack.c.bf16 %v1406_v45, %v1406_v45  ;;  %v1468_v56 = vmax.f32 %v1234_v46, 0.0  ;;  %v1407_v57 = vmax.f32 %v989_v47, 0.0  ;;  %v1237_v58 = vadd.f32 %v3049_v1, %v1236_v54 }
 0x123   : > { %v2564_v59 = vpack.c.bf16 %v1470_v50, %v1470_v50  ;;  %v2498_v60 = vpack.c.bf16 %v1404_v51, %v1404_v51  ;;  %v1471_v61 = vmax.f32 %v1245_v52, 0.0  ;;  %v1405_v62 = vmax.f32 %v981_v53, 0.0 }
 0x124   : > { %2047 = vst.msk [vmem:[%s3061_s25 + $0x78] sm:$0xf] %vm2016_vm1, %v2500_v55  ;;  %v2562_v63 = vpack.c.bf16 %v1468_v56, %v1468_v56  ;;  %v2501_v0 = vpack.c.bf16 %v1407_v57, %v1407_v57  ;;  %v1469_v2 = vmax.f32 %v1237_v58, 0.0 }
 0x125   : > { %2111 = vst.msk [vmem:[%s3061_s25 + $0x178] sm:$0xf] %vm2016_vm1, %v2564_v59  ;;  %2045 = vst.msk [vmem:[%s3061_s25 + $0x70] sm:$0xf] %vm2016_vm1, %v2498_v60  ;;  %v2565_v3 = vpack.c.bf16 %v1471_v61, %v1471_v61  ;;  %v2499_v4 = vpack.c.bf16 %v1405_v62, %v1405_v62  ;;  %v2699_v5 = vpop.f32.mrb[32].mxu0 }
 0x126   : > { %2109 = vst.msk [vmem:[%s3061_s25 + $0x170] sm:$0xf] %vm2016_vm1, %v2562_v63  ;;  %2048 = vst.msk [vmem:[%s3061_s25 + $0x7c] sm:$0xf] %vm2016_vm1, %v2501_v0  ;;  %v2563_v6 = vpack.c.bf16 %v1469_v2, %v1469_v2  ;;  %v1002_v7 = vadd.f32 %v2699_v5, %v3049_v1  ;;  %v2763_v8 = vpop.f32.mrb[32].mxu1  ;;  %v993_v9 = vpop.f32.mrb[33].mxu0 }
 0x127   : > { %2112 = vst.msk [vmem:[%s3061_s25 + $0x17c] sm:$0xf] %vm2016_vm1, %v2565_v3  ;;  %2046 = vst.msk [vmem:[%s3061_s25 + $0x74] sm:$0xf] %vm2016_vm1, %v2499_v4  ;;  %v1258_v10 = vadd.f32 %v2763_v8, %v3049_v1  ;;  %v994_v11 = vadd.f32 %v3049_v1, %v993_v9  ;;  %v1249_v12 = vpop.f32.mrb[33].mxu1  ;;  %v2700_v13 = vpop.f32.mrb[34].mxu0 }
 0x128   : > { %2110 = vst.msk [vmem:[%s3061_s25 + $0x174] sm:$0xf] %vm2016_vm1, %v2563_v6  ;;  %v1410_v14 = vmax.f32 %v1002_v7, 0.0  ;;  %v1250_v15 = vadd.f32 %v3049_v1, %v1249_v12  ;;  %v1005_v16 = vadd.f32 %v2700_v13, %v3049_v1  ;;  %v2764_v17 = vpop.f32.mrb[34].mxu1  ;;  %v996_v18 = vpop.f32.mrb[35].mxu0 }
 0x129   : > { %v1474_v19 = vmax.f32 %v1258_v10, 0.0  ;;  %v1408_v20 = vmax.f32 %v994_v11, 0.0  ;;  %v1261_v21 = vadd.f32 %v2764_v17, %v3049_v1  ;;  %v997_v22 = vadd.f32 %v3049_v1, %v996_v18  ;;  %v1252_v23 = vpop.f32.mrb[35].mxu1 }
 0x12a   : > { %v2504_v24 = vpack.c.bf16 %v1410_v14, %v1410_v14  ;;  %v1472_v25 = vmax.f32 %v1250_v15, 0.0  ;;  %v1411_v26 = vmax.f32 %v1005_v16, 0.0  ;;  %v1253_v27 = vadd.f32 %v3049_v1, %v1252_v23 }
 0x12b   : > { %v2568_v28 = vpack.c.bf16 %v1474_v19, %v1474_v19  ;;  %v2502_v29 = vpack.c.bf16 %v1408_v20, %v1408_v20  ;;  %v1475_v30 = vmax.f32 %v1261_v21, 0.0  ;;  %v1409_v31 = vmax.f32 %v997_v22, 0.0 }
 0x12c   : > { %2051 = vst.msk [vmem:[%s3061_s25 + $0x88] sm:$0xf] %vm2016_vm1, %v2504_v24  ;;  %v2566_v32 = vpack.c.bf16 %v1472_v25, %v1472_v25  ;;  %v2505_v33 = vpack.c.bf16 %v1411_v26, %v1411_v26  ;;  %v1473_v34 = vmax.f32 %v1253_v27, 0.0 }
 0x12d   : > { %2115 = vst.msk [vmem:[%s3061_s25 + $0x188] sm:$0xf] %vm2016_vm1, %v2568_v28  ;;  %2049 = vst.msk [vmem:[%s3061_s25 + $0x80] sm:$0xf] %vm2016_vm1, %v2502_v29  ;;  %v2569_v35 = vpack.c.bf16 %v1475_v30, %v1475_v30  ;;  %v2503_v36 = vpack.c.bf16 %v1409_v31, %v1409_v31  ;;  %v2703_v37 = vpop.f32.mrb[36].mxu0 }
 0x12e   : > { %2113 = vst.msk [vmem:[%s3061_s25 + $0x180] sm:$0xf] %vm2016_vm1, %v2566_v32  ;;  %2052 = vst.msk [vmem:[%s3061_s25 + $0x8c] sm:$0xf] %vm2016_vm1, %v2505_v33  ;;  %v2567_v38 = vpack.c.bf16 %v1473_v34, %v1473_v34  ;;  %v1018_v39 = vadd.f32 %v2703_v37, %v3049_v1  ;;  %v2767_v40 = vpop.f32.mrb[36].mxu1  ;;  %v1009_v41 = vpop.f32.mrb[37].mxu0 }
 0x12f   : > { %2116 = vst.msk [vmem:[%s3061_s25 + $0x18c] sm:$0xf] %vm2016_vm1, %v2569_v35  ;;  %2050 = vst.msk [vmem:[%s3061_s25 + $0x84] sm:$0xf] %vm2016_vm1, %v2503_v36  ;;  %v1274_v42 = vadd.f32 %v2767_v40, %v3049_v1  ;;  %v1010_v43 = vadd.f32 %v3049_v1, %v1009_v41  ;;  %v1265_v44 = vpop.f32.mrb[37].mxu1  ;;  %v2704_v45 = vpop.f32.mrb[38].mxu0 }
 0x130   : > { %2114 = vst.msk [vmem:[%s3061_s25 + $0x184] sm:$0xf] %vm2016_vm1, %v2567_v38  ;;  %v1414_v46 = vmax.f32 %v1018_v39, 0.0  ;;  %v1266_v47 = vadd.f32 %v3049_v1, %v1265_v44  ;;  %v1021_v48 = vadd.f32 %v2704_v45, %v3049_v1  ;;  %v2768_v49 = vpop.f32.mrb[38].mxu1  ;;  %v1012_v50 = vpop.f32.mrb[39].mxu0 }
 0x131   : > { %v1478_v51 = vmax.f32 %v1274_v42, 0.0  ;;  %v1412_v52 = vmax.f32 %v1010_v43, 0.0  ;;  %v1277_v53 = vadd.f32 %v2768_v49, %v3049_v1  ;;  %v1013_v54 = vadd.f32 %v3049_v1, %v1012_v50  ;;  %v1268_v55 = vpop.f32.mrb[39].mxu1 }
 0x132   : > { %v2508_v56 = vpack.c.bf16 %v1414_v46, %v1414_v46  ;;  %v1476_v57 = vmax.f32 %v1266_v47, 0.0  ;;  %v1415_v58 = vmax.f32 %v1021_v48, 0.0  ;;  %v1269_v59 = vadd.f32 %v3049_v1, %v1268_v55 }
 0x133   : > { %v2572_v60 = vpack.c.bf16 %v1478_v51, %v1478_v51  ;;  %v2506_v61 = vpack.c.bf16 %v1412_v52, %v1412_v52  ;;  %v1479_v62 = vmax.f32 %v1277_v53, 0.0  ;;  %v1413_v63 = vmax.f32 %v1013_v54, 0.0 }
 0x134   : > { %2055 = vst.msk [vmem:[%s3061_s25 + $0x98] sm:$0xf] %vm2016_vm1, %v2508_v56  ;;  %v2570_v0 = vpack.c.bf16 %v1476_v57, %v1476_v57  ;;  %v2509_v2 = vpack.c.bf16 %v1415_v58, %v1415_v58  ;;  %v1477_v3 = vmax.f32 %v1269_v59, 0.0 }
 0x135   : > { %2119 = vst.msk [vmem:[%s3061_s25 + $0x198] sm:$0xf] %vm2016_vm1, %v2572_v60  ;;  %2053 = vst.msk [vmem:[%s3061_s25 + $0x90] sm:$0xf] %vm2016_vm1, %v2506_v61  ;;  %v2573_v4 = vpack.c.bf16 %v1479_v62, %v1479_v62  ;;  %v2507_v5 = vpack.c.bf16 %v1413_v63, %v1413_v63  ;;  %v2707_v6 = vpop.f32.mrb[40].mxu0 }
 0x136   : > { %2117 = vst.msk [vmem:[%s3061_s25 + $0x190] sm:$0xf] %vm2016_vm1, %v2570_v0  ;;  %2056 = vst.msk [vmem:[%s3061_s25 + $0x9c] sm:$0xf] %vm2016_vm1, %v2509_v2  ;;  %v2571_v7 = vpack.c.bf16 %v1477_v3, %v1477_v3  ;;  %v1034_v8 = vadd.f32 %v2707_v6, %v3049_v1  ;;  %v2771_v9 = vpop.f32.mrb[40].mxu1  ;;  %v1025_v10 = vpop.f32.mrb[41].mxu0 }
 0x137   : > { %2120 = vst.msk [vmem:[%s3061_s25 + $0x19c] sm:$0xf] %vm2016_vm1, %v2573_v4  ;;  %2054 = vst.msk [vmem:[%s3061_s25 + $0x94] sm:$0xf] %vm2016_vm1, %v2507_v5  ;;  %v1290_v11 = vadd.f32 %v2771_v9, %v3049_v1  ;;  %v1026_v12 = vadd.f32 %v3049_v1, %v1025_v10  ;;  %v1281_v13 = vpop.f32.mrb[41].mxu1  ;;  %v2708_v14 = vpop.f32.mrb[42].mxu0 }
 0x138   : > { %2118 = vst.msk [vmem:[%s3061_s25 + $0x194] sm:$0xf] %vm2016_vm1, %v2571_v7  ;;  %v1418_v15 = vmax.f32 %v1034_v8, 0.0  ;;  %v1282_v16 = vadd.f32 %v3049_v1, %v1281_v13  ;;  %v1037_v17 = vadd.f32 %v2708_v14, %v3049_v1  ;;  %v2772_v18 = vpop.f32.mrb[42].mxu1  ;;  %v1028_v19 = vpop.f32.mrb[43].mxu0 }
 0x139   : > { %v1482_v20 = vmax.f32 %v1290_v11, 0.0  ;;  %v1416_v21 = vmax.f32 %v1026_v12, 0.0  ;;  %v1293_v22 = vadd.f32 %v2772_v18, %v3049_v1  ;;  %v1029_v23 = vadd.f32 %v3049_v1, %v1028_v19  ;;  %v1284_v24 = vpop.f32.mrb[43].mxu1 }
 0x13a   : > { %v2512_v25 = vpack.c.bf16 %v1418_v15, %v1418_v15  ;;  %v1480_v26 = vmax.f32 %v1282_v16, 0.0  ;;  %v1419_v27 = vmax.f32 %v1037_v17, 0.0  ;;  %v1285_v28 = vadd.f32 %v3049_v1, %v1284_v24 }
 0x13b   : > { %v2576_v29 = vpack.c.bf16 %v1482_v20, %v1482_v20  ;;  %v2510_v30 = vpack.c.bf16 %v1416_v21, %v1416_v21  ;;  %v1483_v31 = vmax.f32 %v1293_v22, 0.0  ;;  %v1417_v32 = vmax.f32 %v1029_v23, 0.0 }
 0x13c   : > { %2059 = vst.msk [vmem:[%s3061_s25 + $0xa8] sm:$0xf] %vm2016_vm1, %v2512_v25  ;;  %v2574_v33 = vpack.c.bf16 %v1480_v26, %v1480_v26  ;;  %v2513_v34 = vpack.c.bf16 %v1419_v27, %v1419_v27  ;;  %v1481_v35 = vmax.f32 %v1285_v28, 0.0 }
 0x13d   : > { %2123 = vst.msk [vmem:[%s3061_s25 + $0x1a8] sm:$0xf] %vm2016_vm1, %v2576_v29  ;;  %2057 = vst.msk [vmem:[%s3061_s25 + $0xa0] sm:$0xf] %vm2016_vm1, %v2510_v30  ;;  %v2577_v36 = vpack.c.bf16 %v1483_v31, %v1483_v31  ;;  %v2511_v37 = vpack.c.bf16 %v1417_v32, %v1417_v32  ;;  %v2711_v38 = vpop.f32.mrb[44].mxu0 }
 0x13e   : > { %2121 = vst.msk [vmem:[%s3061_s25 + $0x1a0] sm:$0xf] %vm2016_vm1, %v2574_v33  ;;  %2060 = vst.msk [vmem:[%s3061_s25 + $0xac] sm:$0xf] %vm2016_vm1, %v2513_v34  ;;  %v2575_v39 = vpack.c.bf16 %v1481_v35, %v1481_v35  ;;  %v1050_v40 = vadd.f32 %v2711_v38, %v3049_v1  ;;  %v2775_v41 = vpop.f32.mrb[44].mxu1  ;;  %v1041_v42 = vpop.f32.mrb[45].mxu0 }
 0x13f   : > { %2124 = vst.msk [vmem:[%s3061_s25 + $0x1ac] sm:$0xf] %vm2016_vm1, %v2577_v36  ;;  %2058 = vst.msk [vmem:[%s3061_s25 + $0xa4] sm:$0xf] %vm2016_vm1, %v2511_v37  ;;  %v1306_v43 = vadd.f32 %v2775_v41, %v3049_v1  ;;  %v1042_v44 = vadd.f32 %v3049_v1, %v1041_v42  ;;  %v1297_v45 = vpop.f32.mrb[45].mxu1  ;;  %v2712_v46 = vpop.f32.mrb[46].mxu0 }
 0x140   : > { %2122 = vst.msk [vmem:[%s3061_s25 + $0x1a4] sm:$0xf] %vm2016_vm1, %v2575_v39  ;;  %v1422_v47 = vmax.f32 %v1050_v40, 0.0  ;;  %v1298_v48 = vadd.f32 %v3049_v1, %v1297_v45  ;;  %v1053_v49 = vadd.f32 %v2712_v46, %v3049_v1  ;;  %v2776_v50 = vpop.f32.mrb[46].mxu1  ;;  %v1044_v51 = vpop.f32.mrb[47].mxu0 }
 0x141   : > { %v1486_v52 = vmax.f32 %v1306_v43, 0.0  ;;  %v1420_v53 = vmax.f32 %v1042_v44, 0.0  ;;  %v1309_v54 = vadd.f32 %v2776_v50, %v3049_v1  ;;  %v1045_v55 = vadd.f32 %v3049_v1, %v1044_v51  ;;  %v1300_v56 = vpop.f32.mrb[47].mxu1  ;;  %v3367_v40 = vld [vmem:[%s3452_s2] ss:$0 sm:$0xff] }
 0x142   : > { %v2516_v57 = vpack.c.bf16 %v1422_v47, %v1422_v47  ;;  %v1484_v58 = vmax.f32 %v1298_v48, 0.0  ;;  %v1423_v59 = vmax.f32 %v1053_v49, 0.0  ;;  %v1301_v60 = vadd.f32 %v3049_v1, %v1300_v56 }
 0x143   : > { %v2580_v61 = vpack.c.bf16 %v1486_v52, %v1486_v52  ;;  %v2514_v62 = vpack.c.bf16 %v1420_v53, %v1420_v53  ;;  %v1487_v63 = vmax.f32 %v1309_v54, 0.0  ;;  %v1421_v0 = vmax.f32 %v1045_v55, 0.0 }
 0x144   : > { %2063 = vst.msk [vmem:[%s3061_s25 + $0xb8] sm:$0xf] %vm2016_vm1, %v2516_v57  ;;  %v2578_v2 = vpack.c.bf16 %v1484_v58, %v1484_v58  ;;  %v2517_v3 = vpack.c.bf16 %v1423_v59, %v1423_v59  ;;  %v1485_v4 = vmax.f32 %v1301_v60, 0.0 }
 0x145   : > { %2127 = vst.msk [vmem:[%s3061_s25 + $0x1b8] sm:$0xf] %vm2016_vm1, %v2580_v61  ;;  %2061 = vst.msk [vmem:[%s3061_s25 + $0xb0] sm:$0xf] %vm2016_vm1, %v2514_v62  ;;  %v2581_v5 = vpack.c.bf16 %v1487_v63, %v1487_v63  ;;  %v2515_v6 = vpack.c.bf16 %v1421_v0, %v1421_v0  ;;  %v2715_v7 = vpop.f32.mrb[48].mxu0 }
 0x146   : > { %2125 = vst.msk [vmem:[%s3061_s25 + $0x1b0] sm:$0xf] %vm2016_vm1, %v2578_v2  ;;  %2064 = vst.msk [vmem:[%s3061_s25 + $0xbc] sm:$0xf] %vm2016_vm1, %v2517_v3  ;;  %v2579_v8 = vpack.c.bf16 %v1485_v4, %v1485_v4  ;;  %v1066_v9 = vadd.f32 %v2715_v7, %v3049_v1  ;;  %v2779_v10 = vpop.f32.mrb[48].mxu1  ;;  %v1057_v11 = vpop.f32.mrb[49].mxu0 }
 0x147   : > { %2128 = vst.msk [vmem:[%s3061_s25 + $0x1bc] sm:$0xf] %vm2016_vm1, %v2581_v5  ;;  %2062 = vst.msk [vmem:[%s3061_s25 + $0xb4] sm:$0xf] %vm2016_vm1, %v2515_v6  ;;  %v1322_v12 = vadd.f32 %v2779_v10, %v3049_v1  ;;  %v1058_v13 = vadd.f32 %v3049_v1, %v1057_v11  ;;  %v1313_v14 = vpop.f32.mrb[49].mxu1  ;;  %v2716_v15 = vpop.f32.mrb[50].mxu0 }
 0x148   : > { %2126 = vst.msk [vmem:[%s3061_s25 + $0x1b4] sm:$0xf] %vm2016_vm1, %v2579_v8  ;;  %v1426_v16 = vmax.f32 %v1066_v9, 0.0  ;;  %v1314_v17 = vadd.f32 %v3049_v1, %v1313_v14  ;;  %v1069_v18 = vadd.f32 %v2716_v15, %v3049_v1  ;;  %v2780_v19 = vpop.f32.mrb[50].mxu1  ;;  %v1060_v20 = vpop.f32.mrb[51].mxu0 }
 0x149   : > { %v1490_v21 = vmax.f32 %v1322_v12, 0.0  ;;  %v1424_v22 = vmax.f32 %v1058_v13, 0.0  ;;  %v1325_v23 = vadd.f32 %v2780_v19, %v3049_v1  ;;  %v1061_v24 = vadd.f32 %v3049_v1, %v1060_v20  ;;  %v1316_v25 = vpop.f32.mrb[51].mxu1 }
 0x14a   : > { %v2520_v26 = vpack.c.bf16 %v1426_v16, %v1426_v16  ;;  %v1488_v27 = vmax.f32 %v1314_v17, 0.0  ;;  %v1427_v28 = vmax.f32 %v1069_v18, 0.0  ;;  %v1317_v29 = vadd.f32 %v3049_v1, %v1316_v25 }
 0x14b   : > { %v2584_v30 = vpack.c.bf16 %v1490_v21, %v1490_v21  ;;  %v2518_v31 = vpack.c.bf16 %v1424_v22, %v1424_v22  ;;  %v1491_v32 = vmax.f32 %v1325_v23, 0.0  ;;  %v1425_v33 = vmax.f32 %v1061_v24, 0.0 }
 0x14c   : > { %2067 = vst.msk [vmem:[%s3061_s25 + $0xc8] sm:$0xf] %vm2016_vm1, %v2520_v26  ;;  %v2582_v34 = vpack.c.bf16 %v1488_v27, %v1488_v27  ;;  %v2521_v35 = vpack.c.bf16 %v1427_v28, %v1427_v28  ;;  %v1489_v36 = vmax.f32 %v1317_v29, 0.0 }
 0x14d   : > { %2131 = vst.msk [vmem:[%s3061_s25 + $0x1c8] sm:$0xf] %vm2016_vm1, %v2584_v30  ;;  %2065 = vst.msk [vmem:[%s3061_s25 + $0xc0] sm:$0xf] %vm2016_vm1, %v2518_v31  ;;  %v2585_v37 = vpack.c.bf16 %v1491_v32, %v1491_v32  ;;  %v2519_v38 = vpack.c.bf16 %v1425_v33, %v1425_v33  ;;  %v2719_v39 = vpop.f32.mrb[52].mxu0 }
 0x14e   : > { %2129 = vst.msk [vmem:[%s3061_s25 + $0x1c0] sm:$0xf] %vm2016_vm1, %v2582_v34  ;;  %2068 = vst.msk [vmem:[%s3061_s25 + $0xcc] sm:$0xf] %vm2016_vm1, %v2521_v35  ;;  %v2583_v1 = vpack.c.bf16 %v1489_v36, %v1489_v36  ;;  %v1082_v41 = vadd.f32 %v3367_v40, %v2719_v39  ;;  %v2783_v42 = vpop.f32.mrb[52].mxu1  ;;  %v1073_v43 = vpop.f32.mrb[53].mxu0 }
 0x14f   : > { %2132 = vst.msk [vmem:[%s3061_s25 + $0x1cc] sm:$0xf] %vm2016_vm1, %v2585_v37  ;;  %2066 = vst.msk [vmem:[%s3061_s25 + $0xc4] sm:$0xf] %vm2016_vm1, %v2519_v38  ;;  %v1338_v44 = vadd.f32 %v3367_v40, %v2783_v42  ;;  %v1074_v45 = vadd.f32 %v3367_v40, %v1073_v43  ;;  %v1329_v46 = vpop.f32.mrb[53].mxu1  ;;  %v2720_v47 = vpop.f32.mrb[54].mxu0 }
 0x150   : > { %2130 = vst.msk [vmem:[%s3061_s25 + $0x1c4] sm:$0xf] %vm2016_vm1, %v2583_v1  ;;  %v1430_v48 = vmax.f32 %v1082_v41, 0.0  ;;  %v1330_v49 = vadd.f32 %v3367_v40, %v1329_v46  ;;  %v1085_v50 = vadd.f32 %v3367_v40, %v2720_v47  ;;  %v2784_v51 = vpop.f32.mrb[54].mxu1  ;;  %v1076_v52 = vpop.f32.mrb[55].mxu0 }
 0x151   : > { %v1494_v53 = vmax.f32 %v1338_v44, 0.0  ;;  %v1428_v54 = vmax.f32 %v1074_v45, 0.0  ;;  %v1341_v55 = vadd.f32 %v3367_v40, %v2784_v51  ;;  %v1077_v56 = vadd.f32 %v3367_v40, %v1076_v52  ;;  %v1332_v57 = vpop.f32.mrb[55].mxu1 }
 0x152   : > { %v2524_v58 = vpack.c.bf16 %v1430_v48, %v1430_v48  ;;  %v1492_v59 = vmax.f32 %v1330_v49, 0.0  ;;  %v1431_v60 = vmax.f32 %v1085_v50, 0.0  ;;  %v1333_v61 = vadd.f32 %v3367_v40, %v1332_v57 }
 0x153   : > { %v2588_v62 = vpack.c.bf16 %v1494_v53, %v1494_v53  ;;  %v2522_v63 = vpack.c.bf16 %v1428_v54, %v1428_v54  ;;  %v1495_v0 = vmax.f32 %v1341_v55, 0.0  ;;  %v1429_v2 = vmax.f32 %v1077_v56, 0.0 }
 0x154   : > { %2071 = vst.msk [vmem:[%s3061_s25 + $0xd8] sm:$0xf] %vm2016_vm1, %v2524_v58  ;;  %v2586_v3 = vpack.c.bf16 %v1492_v59, %v1492_v59  ;;  %v2525_v4 = vpack.c.bf16 %v1431_v60, %v1431_v60  ;;  %v1493_v5 = vmax.f32 %v1333_v61, 0.0 }
 0x155   : > { %2135 = vst.msk [vmem:[%s3061_s25 + $0x1d8] sm:$0xf] %vm2016_vm1, %v2588_v62  ;;  %2069 = vst.msk [vmem:[%s3061_s25 + $0xd0] sm:$0xf] %vm2016_vm1, %v2522_v63  ;;  %v2589_v6 = vpack.c.bf16 %v1495_v0, %v1495_v0  ;;  %v2523_v7 = vpack.c.bf16 %v1429_v2, %v1429_v2  ;;  %v2723_v8 = vpop.f32.mrb[56].mxu0 }
 0x156   : > { %2133 = vst.msk [vmem:[%s3061_s25 + $0x1d0] sm:$0xf] %vm2016_vm1, %v2586_v3  ;;  %2072 = vst.msk [vmem:[%s3061_s25 + $0xdc] sm:$0xf] %vm2016_vm1, %v2525_v4  ;;  %v2587_v9 = vpack.c.bf16 %v1493_v5, %v1493_v5  ;;  %v1098_v10 = vadd.f32 %v3367_v40, %v2723_v8  ;;  %v2787_v11 = vpop.f32.mrb[56].mxu1  ;;  %v1089_v12 = vpop.f32.mrb[57].mxu0 }
 0x157   : > { %2136 = vst.msk [vmem:[%s3061_s25 + $0x1dc] sm:$0xf] %vm2016_vm1, %v2589_v6  ;;  %2070 = vst.msk [vmem:[%s3061_s25 + $0xd4] sm:$0xf] %vm2016_vm1, %v2523_v7  ;;  %v1354_v13 = vadd.f32 %v3367_v40, %v2787_v11  ;;  %v1090_v14 = vadd.f32 %v3367_v40, %v1089_v12  ;;  %v1345_v15 = vpop.f32.mrb[57].mxu1  ;;  %v2724_v16 = vpop.f32.mrb[58].mxu0 }
 0x158   : > { %2134 = vst.msk [vmem:[%s3061_s25 + $0x1d4] sm:$0xf] %vm2016_vm1, %v2587_v9  ;;  %v1434_v17 = vmax.f32 %v1098_v10, 0.0  ;;  %v1346_v18 = vadd.f32 %v3367_v40, %v1345_v15  ;;  %v1101_v19 = vadd.f32 %v3367_v40, %v2724_v16  ;;  %v2788_v20 = vpop.f32.mrb[58].mxu1  ;;  %v1092_v21 = vpop.f32.mrb[59].mxu0 }
 0x159   : > { %v1498_v22 = vmax.f32 %v1354_v13, 0.0  ;;  %v1432_v23 = vmax.f32 %v1090_v14, 0.0  ;;  %v1357_v24 = vadd.f32 %v3367_v40, %v2788_v20  ;;  %v1093_v25 = vadd.f32 %v3367_v40, %v1092_v21  ;;  %v1348_v26 = vpop.f32.mrb[59].mxu1 }
 0x15a   : > { %v2528_v27 = vpack.c.bf16 %v1434_v17, %v1434_v17  ;;  %v1496_v28 = vmax.f32 %v1346_v18, 0.0  ;;  %v1435_v29 = vmax.f32 %v1101_v19, 0.0  ;;  %v1349_v30 = vadd.f32 %v3367_v40, %v1348_v26 }
 0x15b   : > { %v2592_v31 = vpack.c.bf16 %v1498_v22, %v1498_v22  ;;  %v2526_v32 = vpack.c.bf16 %v1432_v23, %v1432_v23  ;;  %v1499_v33 = vmax.f32 %v1357_v24, 0.0  ;;  %v1433_v34 = vmax.f32 %v1093_v25, 0.0 }
 0x15c   : > { %2075 = vst.msk [vmem:[%s3061_s25 + $0xe8] sm:$0xf] %vm2016_vm1, %v2528_v27  ;;  %v2590_v35 = vpack.c.bf16 %v1496_v28, %v1496_v28  ;;  %v2529_v36 = vpack.c.bf16 %v1435_v29, %v1435_v29  ;;  %v1497_v37 = vmax.f32 %v1349_v30, 0.0 }
 0x15d   : > { %2139 = vst.msk [vmem:[%s3061_s25 + $0x1e8] sm:$0xf] %vm2016_vm1, %v2592_v31  ;;  %2073 = vst.msk [vmem:[%s3061_s25 + $0xe0] sm:$0xf] %vm2016_vm1, %v2526_v32  ;;  %v2593_v38 = vpack.c.bf16 %v1499_v33, %v1499_v33  ;;  %v2527_v39 = vpack.c.bf16 %v1433_v34, %v1433_v34  ;;  %v2727_v1 = vpop.f32.mrb[60].mxu0 }
 0x15e   : > { %2137 = vst.msk [vmem:[%s3061_s25 + $0x1e0] sm:$0xf] %vm2016_vm1, %v2590_v35  ;;  %2076 = vst.msk [vmem:[%s3061_s25 + $0xec] sm:$0xf] %vm2016_vm1, %v2529_v36  ;;  %v2591_v41 = vpack.c.bf16 %v1497_v37, %v1497_v37  ;;  %v1114_v42 = vadd.f32 %v3367_v40, %v2727_v1  ;;  %v2791_v43 = vpop.f32.mrb[60].mxu1  ;;  %v1105_v44 = vpop.f32.mrb[61].mxu0 }
 0x15f   : > { %2140 = vst.msk [vmem:[%s3061_s25 + $0x1ec] sm:$0xf] %vm2016_vm1, %v2593_v38  ;;  %2074 = vst.msk [vmem:[%s3061_s25 + $0xe4] sm:$0xf] %vm2016_vm1, %v2527_v39  ;;  %v1370_v45 = vadd.f32 %v3367_v40, %v2791_v43  ;;  %v1106_v46 = vadd.f32 %v3367_v40, %v1105_v44  ;;  %v1361_v47 = vpop.f32.mrb[61].mxu1  ;;  %v2728_v48 = vpop.f32.mrb[62].mxu0 }
 0x160   : > { %2138 = vst.msk [vmem:[%s3061_s25 + $0x1e4] sm:$0xf] %vm2016_vm1, %v2591_v41  ;;  %v1438_v49 = vmax.f32 %v1114_v42, 0.0  ;;  %v1362_v50 = vadd.f32 %v3367_v40, %v1361_v47  ;;  %v1117_v51 = vadd.f32 %v3367_v40, %v2728_v48  ;;  %v2792_v52 = vpop.f32.mrb[62].mxu1  ;;  %v1108_v53 = vpop.f32.mrb[63].mxu0 }
 0x161   : > { %v1502_v54 = vmax.f32 %v1370_v45, 0.0  ;;  %v1436_v55 = vmax.f32 %v1106_v46, 0.0  ;;  %v1373_v56 = vadd.f32 %v3367_v40, %v2792_v52  ;;  %v1109_v57 = vadd.f32 %v3367_v40, %v1108_v53  ;;  %v1364_v58 = vpop.f32.mrb[63].mxu1 }
 0x162   : > { %v2532_v59 = vpack.c.bf16 %v1438_v49, %v1438_v49  ;;  %v1500_v60 = vmax.f32 %v1362_v50, 0.0  ;;  %v1439_v61 = vmax.f32 %v1117_v51, 0.0  ;;  %v1365_v62 = vadd.f32 %v3367_v40, %v1364_v58 }
 0x163   : > { %v2596_v63 = vpack.c.bf16 %v1502_v54, %v1502_v54  ;;  %v2530_v0 = vpack.c.bf16 %v1436_v55, %v1436_v55  ;;  %v1503_v2 = vmax.f32 %v1373_v56, 0.0  ;;  %v1437_v3 = vmax.f32 %v1109_v57, 0.0 }
 0x164   : > { %2079 = vst.msk [vmem:[%s3061_s25 + $0xf8] sm:$0xf] %vm2016_vm1, %v2532_v59  ;;  %v2594_v4 = vpack.c.bf16 %v1500_v60, %v1500_v60  ;;  %v2533_v5 = vpack.c.bf16 %v1439_v61, %v1439_v61  ;;  %v1501_v6 = vmax.f32 %v1365_v62, 0.0 }
 0x165   : > { %2143 = vst.msk [vmem:[%s3061_s25 + $0x1f8] sm:$0xf] %vm2016_vm1, %v2596_v63  ;;  %2077 = vst.msk [vmem:[%s3061_s25 + $0xf0] sm:$0xf] %vm2016_vm1, %v2530_v0  ;;  %v2597_v7 = vpack.c.bf16 %v1503_v2, %v1503_v2  ;;  %v2531_v8 = vpack.c.bf16 %v1437_v3, %v1437_v3 }
 0x166   : > { %2141 = vst.msk [vmem:[%s3061_s25 + $0x1f0] sm:$0xf] %vm2016_vm1, %v2594_v4  ;;  %2080 = vst.msk [vmem:[%s3061_s25 + $0xfc] sm:$0xf] %vm2016_vm1, %v2533_v5  ;;  %v2595_v40 = vpack.c.bf16 %v1501_v6, %v1501_v6 }
 0x167   : > { %2144 = vst.msk [vmem:[%s3061_s25 + $0x1fc] sm:$0xf] %vm2016_vm1, %v2597_v7  ;;  %2078 = vst.msk [vmem:[%s3061_s25 + $0xf4] sm:$0xf] %vm2016_vm1, %v2531_v8 }
 0x168   : > { %2142 = vst.msk [vmem:[%s3061_s25 + $0x1f4] sm:$0xf] %vm2016_vm1, %v2595_v40 }
 0x169 PF: > { %s13_s12 = sadd.s32 1, %s2875_s12  }
 0x16a   : > { %p10_p4 = scmp.ge.s32.totalorder %s13_s12, 4  }
 0x16c   :  { %12 = sbr.rel (!%p10_p4) target bundleno = 1 (0x1), region = 62 }

// kernel: beta_vae_b_forward.10
= control target key start
LH: loop header
LB: loop body
LE: loop exit
PB: predicated region body
PF: predicated region fallthrough
CT: control target
= control target key end

     0   :  { %s1958_s12 = smov 0   ;;  %s2246_s0 = inlined_call_operand.vmem [shape: bf16[512,512], index: 0, kind: input, shape index: {}]   ;;  %s2247_s1 = inlined_call_operand.vmem [shape: bf16[512,32], index: 1, kind: input, shape index: {}]   ;;  %s2248_s2 = inlined_call_operand.vmem [shape: f32[1,32], index: 2, kind: input, shape index: {}]   ;;  %s2249_s3 = inlined_call_operand.vmem [shape: bf16[512,32], index: 3, kind: output, shape index: {}]  }
   0x1 LB: > { %s1396_s13 = sadd.s32 4294967295, %s1936_s12   ;;  %p1400_p0 = scmp.ge.s32.totalorder %s1936_s12, 1  ;;  %s1936_s12 = sphi %s1958_s12, %s13_s12  }
   0x2   : > { %p139_p1 = scmp.lt.s32.totalorder %s1936_s12, 3 }
   0x4   : > { %p140_p2 = pnand %p1400_p0, %p139_p1 }
   0x5   : > { %v1802_v0 = vld [vmem:[%s2247_s1 + $0x40] sm:$0xff] (!%p140_p2)   ;;  %v1806_v4 = vld [vmem:[%s2247_s1 + $0x48] sm:$0xff] (!%p140_p2)   ;;  %v1810_v8 = vld [vmem:[%s2247_s1 + $0x50] sm:$0xff] (!%p140_p2)   ;;  %s1401_s21 = sshll.u32 (!%p140_p2), %s1396_s13, 5  ;;  %vm1307_vm0 = vcmask (!%p140_p2), 257024  }
   0x6   : > { %143 = sbr.rel (%p140_p2) target bundleno = 385 (0x181), region = 32  ;;  %v1803_v1 = vld [vmem:[%s2247_s1 + $0xc0] sm:$0xff] (!%p140_p2)   ;;  %1570 = vmatprep.subr.bf16.mxu0 (!%p140_p2), %v1802_v0  ;;  %v1807_v5 = vld [vmem:[%s2247_s1 + $0xc8] sm:$0xff] (!%p140_p2)   ;;  %v1811_v9 = vld [vmem:[%s2247_s1 + $0xd0] sm:$0xff] (!%p140_p2)   ;;  %p165_p3 = scmp.lt.s32.totalorder (!%p140_p2), %s1401_s21, 63 }
   0x7   : > { %v1804_v2 = vld [vmem:[%s2247_s1] sm:$0xff] (!%p140_p2)   ;;  %1682 = vmatprep.subr.bf16.mxu1 (!%p140_p2), %v1803_v1  ;;  %v1808_v6 = vld [vmem:[%s2247_s1 + $0x8] sm:$0xff] (!%p140_p2)   ;;  %v1812_v10 = vld [vmem:[%s2247_s1 + $0x10] sm:$0xff] (!%p140_p2)  }
   0x8   : > { %v1805_v3 = vld [vmem:[%s2247_s1 + $0x80] sm:$0xff] (!%p140_p2)   ;;  %1571 = vmatpush3.bf16.msra.mxu0 (!%p140_p2), %v1804_v2  ;;  %v1809_v7 = vld [vmem:[%s2247_s1 + $0x88] sm:$0xff] (!%p140_p2)   ;;  %v1813_v11 = vld [vmem:[%s2247_s1 + $0x90] sm:$0xff] (!%p140_p2)  }
   0x9   : > { %1683 = vmatpush3.bf16.msra.mxu1 (!%p140_p2), %v1805_v3  ;;  %1572 = vmatprep.subr.bf16.mxu0 (!%p140_p2), %v1806_v4  ;;  %v1814_v12 = vld [vmem:[%s2247_s1 + $0x58] sm:$0xff] (!%p140_p2)   ;;  %v1818_v16 = vld [vmem:[%s2247_s1 + $0x60] sm:$0xff] (!%p140_p2)   ;;  %v1822_v20 = vld [vmem:[%s2247_s1 + $0x68] sm:$0xff] (!%p140_p2)  }
   0xa   : > { %1684 = vmatprep.subr.bf16.mxu1 (!%p140_p2), %v1807_v5  ;;  %v1815_v13 = vld [vmem:[%s2247_s1 + $0xd8] sm:$0xff] (!%p140_p2)   ;;  %v1819_v17 = vld [vmem:[%s2247_s1 + $0xe0] sm:$0xff] (!%p140_p2)   ;;  %v1823_v21 = vld [vmem:[%s2247_s1 + $0xe8] sm:$0xff] (!%p140_p2)  }
   0xb   : > { %v1816_v14 = vld [vmem:[%s2247_s1 + $0x18] sm:$0xff] (!%p140_p2)   ;;  %v1820_v18 = vld [vmem:[%s2247_s1 + $0x20] sm:$0xff] (!%p140_p2)   ;;  %v1824_v22 = vld [vmem:[%s2247_s1 + $0x28] sm:$0xff] (!%p140_p2)  }
   0xc   : > { %1573 = vmatpush3.bf16.msra.mxu0 (!%p140_p2), %v1808_v6  ;;  %v1817_v15 = vld [vmem:[%s2247_s1 + $0x98] sm:$0xff] (!%p140_p2)   ;;  %v1821_v19 = vld [vmem:[%s2247_s1 + $0xa0] sm:$0xff] (!%p140_p2)   ;;  %v1825_v23 = vld [vmem:[%s2247_s1 + $0xa8] sm:$0xff] (!%p140_p2)  }
   0xd   : > { %1685 = vmatpush3.bf16.msra.mxu1 %v1809_v7  ;;  %1574 = vmatprep.subr.bf16.mxu0 %v1810_v8  ;;  %s2251_s21 = smov (!%p165_p3, %s1401_s21), 63  ;;  %v1826_v24 = vld [vmem:[%s2247_s1 + $0x70] sm:$0xff]   ;;  %v1830_v28 = vld [vmem:[%s2247_s1 + $0x78] sm:$0xff]  }
   0xe   : > { %1686 = vmatprep.subr.bf16.mxu1 %v1811_v9  ;;  %v1827_v25 = vld [vmem:[%s2247_s1 + $0xf0] sm:$0xff]   ;;  %s1537_s18 = sshll.u32 %s2251_s21, 4  ;;  %v1831_v29 = vld [vmem:[%s2247_s1 + $0xf8] sm:$0xff]   ;;  %s1405_s7 = sshll.u32 %s2251_s21, 2 }
   0xf   : > { %v1828_v26 = vld [vmem:[%s2247_s1 + $0x30] sm:$0xff]   ;;  %s2064_s28 = scalar_lea.vmem %s2246_s0, %s1537_s18  ;;  %v1832_v30 = vld [vmem:[%s2247_s1 + $0x38] sm:$0xff]   ;;  %s2147_s10 = scalar_lea.vmem %s2249_s3, %s1405_s7 }
  0x10   : > { %1575 = vmatpush3.bf16.msra.mxu0 %v1812_v10  ;;  %v1829_v27 = vld [vmem:[%s2247_s1 + $0xb0] sm:$0xff]   ;;  %v1833_v31 = vld [vmem:[%s2247_s1 + $0xb8] sm:$0xff]  }
  0x11   : > { %1687 = vmatpush3.bf16.msra.mxu1 %v1813_v11  ;;  %1576 = vmatprep.subr.bf16.mxu0 %v1814_v12  ;;  %v1834_v32 = vld [vmem:[%s2064_s28] ss:$16 sps:$4 sm:$0xff]   ;;  %v1836_v33 = vld [vmem:[%s2064_s28 + $0x4] ss:$16 sps:$4 sm:$0xff]   ;;  %v1837_v34 = vld [vmem:[%s2064_s28 + $0x8] ss:$16 sps:$4 sm:$0xff]  }
  0x12   : > { %1688 = vmatprep.subr.bf16.mxu1 %v1815_v13  ;;  %v1839_v35 = vld [vmem:[%s2064_s28 + $0xc] ss:$16 sps:$4 sm:$0xff]   ;;  %857 = vmatprep.mubr.bf16.mxu0 %v1836_v33  ;;  %v1840_v36 = vld [vmem:[%s2064_s28 + $0x24] ss:$16 sps:$4 sm:$0xff]   ;;  %v1844_v38 = vld [vmem:[%s2064_s28 + $0x20] ss:$16 sps:$4 sm:$0xff]  }
  0x13   : > { %1018 = vmatprep.mubr.bf16.mxu1 %v1839_v35  ;;  %v1842_v37 = vld [vmem:[%s2064_s28 + $0x2c] ss:$16 sps:$4 sm:$0xff]   ;;  %v1845_v39 = vld [vmem:[%s2064_s28 + $0x28] ss:$16 sps:$4 sm:$0xff]   ;;  %v1846_v40 = vld [vmem:[%s2064_s28 + $0x44] ss:$16 sps:$4 sm:$0xff]  }
  0x14   : > { %1577 = vmatpush3.bf16.msra.mxu0 %v1816_v14  ;;  %v1848_v41 = vld [vmem:[%s2064_s28 + $0x4c] ss:$16 sps:$4 sm:$0xff]   ;;  %v1850_v42 = vld [vmem:[%s2064_s28 + $0x40] ss:$16 sps:$4 sm:$0xff]   ;;  %v1851_v43 = vld [vmem:[%s2064_s28 + $0x48] ss:$16 sps:$4 sm:$0xff]  }
  0x15   : > { %1689 = vmatpush3.bf16.msra.mxu1 %v1817_v15  ;;  %1578 = vmatprep.subr.bf16.mxu0 %v1818_v16  ;;  %v1852_v44 = vld [vmem:[%s2064_s28 + $0x64] ss:$16 sps:$4 sm:$0xff]   ;;  %v1854_v45 = vld [vmem:[%s2064_s28 + $0x6c] ss:$16 sps:$4 sm:$0xff]   ;;  %v1856_v46 = vld [vmem:[%s2064_s28 + $0x60] ss:$16 sps:$4 sm:$0xff]  }
  0x16   : > { %1690 = vmatprep.subr.bf16.mxu1 %v1819_v17  ;;  %v1857_v47 = vld [vmem:[%s2064_s28 + $0x68] ss:$16 sps:$4 sm:$0xff]   ;;  %v1858_v48 = vld [vmem:[%s2064_s28 + $0x84] ss:$16 sps:$4 sm:$0xff]   ;;  %v1860_v49 = vld [vmem:[%s2064_s28 + $0x8c] ss:$16 sps:$4 sm:$0xff]  }
  0x17   : > { %v1862_v50 = vld [vmem:[%s2064_s28 + $0x80] ss:$16 sps:$4 sm:$0xff]   ;;  %v1863_v51 = vld [vmem:[%s2064_s28 + $0x88] ss:$16 sps:$4 sm:$0xff]   ;;  %v1864_v52 = vld [vmem:[%s2064_s28 + $0xa4] ss:$16 sps:$4 sm:$0xff]  }
  0x18   : > { %1579 = vmatpush3.bf16.msra.mxu0 %v1820_v18  ;;  %v1866_v53 = vld [vmem:[%s2064_s28 + $0xac] ss:$16 sps:$4 sm:$0xff]   ;;  %v1868_v54 = vld [vmem:[%s2064_s28 + $0xa0] ss:$16 sps:$4 sm:$0xff]   ;;  %v1869_v55 = vld [vmem:[%s2064_s28 + $0xa8] ss:$16 sps:$4 sm:$0xff]  }
  0x19   : > { %1691 = vmatpush3.bf16.msra.mxu1 %v1821_v19  ;;  %1580 = vmatprep.subr.bf16.mxu0 %v1822_v20  ;;  %v1870_v56 = vld [vmem:[%s2064_s28 + $0xc4] ss:$16 sps:$4 sm:$0xff]   ;;  %v1872_v57 = vld [vmem:[%s2064_s28 + $0xcc] ss:$16 sps:$4 sm:$0xff]   ;;  %v1874_v58 = vld [vmem:[%s2064_s28 + $0xc0] ss:$16 sps:$4 sm:$0xff]  }
  0x1a   : > { %1692 = vmatprep.subr.bf16.mxu1 %v1823_v21  ;;  %v1875_v59 = vld [vmem:[%s2064_s28 + $0xc8] ss:$16 sps:$4 sm:$0xff]   ;;  %v1876_v60 = vld [vmem:[%s2064_s28 + $0xe4] ss:$16 sps:$4 sm:$0xff]   ;;  %v1878_v61 = vld [vmem:[%s2064_s28 + $0xec] ss:$16 sps:$4 sm:$0xff]  }
  0x1b   : > { %v1880_v62 = vld [vmem:[%s2064_s28 + $0xe0] ss:$16 sps:$4 sm:$0xff]   ;;  %v1881_v63 = vld [vmem:[%s2064_s28 + $0xe8] ss:$16 sps:$4 sm:$0xff]   ;;  %v1882_v0 = vld [vmem:[%s2064_s28 + $0x104] ss:$16 sps:$4 sm:$0xff]  }
  0x1c   : > { %1581 = vmatpush3.bf16.msra.mxu0 %v1824_v22  ;;  %v1884_v1 = vld [vmem:[%s2064_s28 + $0x10c] ss:$16 sps:$4 sm:$0xff]   ;;  %v1886_v2 = vld [vmem:[%s2064_s28 + $0x100] ss:$16 sps:$4 sm:$0xff]   ;;  %v1887_v3 = vld [vmem:[%s2064_s28 + $0x108] ss:$16 sps:$4 sm:$0xff]  }
  0x1d   : > { %1693 = vmatpush3.bf16.msra.mxu1 %v1825_v23  ;;  %1582 = vmatprep.subr.bf16.mxu0 %v1826_v24  ;;  %v1888_v4 = vld [vmem:[%s2064_s28 + $0x124] ss:$16 sps:$4 sm:$0xff]   ;;  %v1890_v5 = vld [vmem:[%s2064_s28 + $0x12c] ss:$16 sps:$4 sm:$0xff]   ;;  %v1892_v6 = vld [vmem:[%s2064_s28 + $0x120] ss:$16 sps:$4 sm:$0xff]  }
  0x1e   : > { %1694 = vmatprep.subr.bf16.mxu1 %v1827_v25  ;;  %v1893_v7 = vld [vmem:[%s2064_s28 + $0x128] ss:$16 sps:$4 sm:$0xff]   ;;  %v1894_v8 = vld [vmem:[%s2064_s28 + $0x144] ss:$16 sps:$4 sm:$0xff]   ;;  %v1896_v9 = vld [vmem:[%s2064_s28 + $0x14c] ss:$16 sps:$4 sm:$0xff]  }
  0x1f   : > { %v1898_v10 = vld [vmem:[%s2064_s28 + $0x140] ss:$16 sps:$4 sm:$0xff]   ;;  %v1899_v11 = vld [vmem:[%s2064_s28 + $0x148] ss:$16 sps:$4 sm:$0xff]   ;;  %v1900_v12 = vld [vmem:[%s2064_s28 + $0x164] ss:$16 sps:$4 sm:$0xff]  }
  0x20   : > { %1583 = vmatpush3.bf16.msra.mxu0 %v1828_v26  ;;  %v1902_v13 = vld [vmem:[%s2064_s28 + $0x16c] ss:$16 sps:$4 sm:$0xff]   ;;  %v1904_v14 = vld [vmem:[%s2064_s28 + $0x160] ss:$16 sps:$4 sm:$0xff]   ;;  %v1905_v15 = vld [vmem:[%s2064_s28 + $0x168] ss:$16 sps:$4 sm:$0xff]  }
  0x21   : > { %1695 = vmatpush3.bf16.msra.mxu1 %v1829_v27  ;;  %1584 = vmatprep.subr.bf16.mxu0 %v1830_v28  ;;  %v1906_v16 = vld [vmem:[%s2064_s28 + $0x184] ss:$16 sps:$4 sm:$0xff]   ;;  %v1908_v17 = vld [vmem:[%s2064_s28 + $0x18c] ss:$16 sps:$4 sm:$0xff]   ;;  %v1910_v18 = vld [vmem:[%s2064_s28 + $0x180] ss:$16 sps:$4 sm:$0xff]  }
  0x22   : > { %1696 = vmatprep.subr.bf16.mxu1 %v1831_v29  ;;  %v1911_v19 = vld [vmem:[%s2064_s28 + $0x188] ss:$16 sps:$4 sm:$0xff]   ;;  %v1912_v20 = vld [vmem:[%s2064_s28 + $0x1a4] ss:$16 sps:$4 sm:$0xff]   ;;  %v1914_v21 = vld [vmem:[%s2064_s28 + $0x1ac] ss:$16 sps:$4 sm:$0xff]  }
  0x23   : > { %v1916_v22 = vld [vmem:[%s2064_s28 + $0x1a0] ss:$16 sps:$4 sm:$0xff]   ;;  %v1917_v23 = vld [vmem:[%s2064_s28 + $0x1a8] ss:$16 sps:$4 sm:$0xff]   ;;  %v1918_v24 = vld [vmem:[%s2064_s28 + $0x1c4] ss:$16 sps:$4 sm:$0xff]  }
  0x24   : > { %1585 = vmatpush3.bf16.msra.mxu0 %v1832_v30  ;;  %v1920_v25 = vld [vmem:[%s2064_s28 + $0x1cc] ss:$16 sps:$4 sm:$0xff]   ;;  %v1922_v26 = vld [vmem:[%s2064_s28 + $0x1c0] ss:$16 sps:$4 sm:$0xff]   ;;  %v1923_v27 = vld [vmem:[%s2064_s28 + $0x1c8] ss:$16 sps:$4 sm:$0xff]  }
  0x25   : > { %1697 = vmatpush3.bf16.msra.mxu1 %v1833_v31  ;;  %v1924_v28 = vld [vmem:[%s2064_s28 + $0x1e4] ss:$16 sps:$4 sm:$0xff]   ;;  %v1926_v29 = vld [vmem:[%s2064_s28 + $0x1ec] ss:$16 sps:$4 sm:$0xff]   ;;  %v1928_v30 = vld [vmem:[%s2064_s28 + $0x1e0] ss:$16 sps:$4 sm:$0xff]  }
  0x26   : > { %v1929_v31 = vld [vmem:[%s2064_s28 + $0x1e8] ss:$16 sps:$4 sm:$0xff]  }
  0x27   : > { %858 = vmatmul.mubr.bf16.vlgmr.msra.gmra.mrb[0].mxu0 %v1834_v32 }
  0x28   : > { %1019 = vmatmul.mubr.bf16.vlgmr.msra.gmra.mrb[0].mxu1 %v1837_v34  ;;  %865 = vmatprep.mubr.bf16.mxu0 %v1840_v36  ;;  %v2139_v34 = vld [vmem:[%s2248_s2] ss:$0 sm:$0xff] }
  0x29   : > { %1026 = vmatprep.mubr.bf16.mxu1 %v1842_v37 }
  0x2f   : > { %866 = vmatmul.mubr.bf16.gmra.mrb[4].mxu0 %v1844_v38 }
  0x30   : > { %1027 = vmatmul.mubr.bf16.gmra.mrb[4].mxu1 %v1845_v39  ;;  %873 = vmatprep.mubr.bf16.mxu0 %v1846_v40 }
  0x31   : > { %1034 = vmatprep.mubr.bf16.mxu1 %v1848_v41 }
  0x37   : > { %874 = vmatmul.mubr.bf16.gmra.mrb[8].mxu0 %v1850_v42 }
  0x38   : > { %1035 = vmatmul.mubr.bf16.gmra.mrb[8].mxu1 %v1851_v43  ;;  %881 = vmatprep.mubr.bf16.mxu0 %v1852_v44 }
  0x39   : > { %1042 = vmatprep.mubr.bf16.mxu1 %v1854_v45 }
  0x3f   : > { %882 = vmatmul.mubr.bf16.gmra.mrb[12].mxu0 %v1856_v46 }
  0x40   : > { %1043 = vmatmul.mubr.bf16.gmra.mrb[12].mxu1 %v1857_v47  ;;  %889 = vmatprep.mubr.bf16.mxu0 %v1858_v48 }
  0x41   : > { %1050 = vmatprep.mubr.bf16.mxu1 %v1860_v49 }
  0x47   : > { %890 = vmatmul.mubr.bf16.gmra.mrb[16].mxu0 %v1862_v50 }
  0x48   : > { %1051 = vmatmul.mubr.bf16.gmra.mrb[16].mxu1 %v1863_v51  ;;  %897 = vmatprep.mubr.bf16.mxu0 %v1864_v52 }
  0x49   : > { %1058 = vmatprep.mubr.bf16.mxu1 %v1866_v53 }
  0x4f   : > { %898 = vmatmul.mubr.bf16.gmra.mrb[20].mxu0 %v1868_v54 }
  0x50   : > { %1059 = vmatmul.mubr.bf16.gmra.mrb[20].mxu1 %v1869_v55  ;;  %905 = vmatprep.mubr.bf16.mxu0 %v1870_v56 }
  0x51   : > { %1066 = vmatprep.mubr.bf16.mxu1 %v1872_v57 }
  0x57   : > { %906 = vmatmul.mubr.bf16.gmra.mrb[24].mxu0 %v1874_v58 }
  0x58   : > { %1067 = vmatmul.mubr.bf16.gmra.mrb[24].mxu1 %v1875_v59  ;;  %913 = vmatprep.mubr.bf16.mxu0 %v1876_v60 }
  0x59   : > { %1074 = vmatprep.mubr.bf16.mxu1 %v1878_v61 }
  0x5f   : > { %914 = vmatmul.mubr.bf16.gmra.mrb[28].mxu0 %v1880_v62 }
  0x60   : > { %1075 = vmatmul.mubr.bf16.gmra.mrb[28].mxu1 %v1881_v63  ;;  %921 = vmatprep.mubr.bf16.mxu0 %v1882_v0 }
  0x61   : > { %1082 = vmatprep.mubr.bf16.mxu1 %v1884_v1 }
  0x67   : > { %922 = vmatmul.mubr.bf16.gmra.mrb[32].mxu0 %v1886_v2 }
  0x68   : > { %1083 = vmatmul.mubr.bf16.gmra.mrb[32].mxu1 %v1887_v3  ;;  %929 = vmatprep.mubr.bf16.mxu0 %v1888_v4 }
  0x69   : > { %1090 = vmatprep.mubr.bf16.mxu1 %v1890_v5 }
  0x6f   : > { %930 = vmatmul.mubr.bf16.gmra.mrb[36].mxu0 %v1892_v6 }
  0x70   : > { %1091 = vmatmul.mubr.bf16.gmra.mrb[36].mxu1 %v1893_v7  ;;  %937 = vmatprep.mubr.bf16.mxu0 %v1894_v8 }
  0x71   : > { %1098 = vmatprep.mubr.bf16.mxu1 %v1896_v9 }
  0x77   : > { %938 = vmatmul.mubr.bf16.gmra.mrb[40].mxu0 %v1898_v10 }
  0x78   : > { %1099 = vmatmul.mubr.bf16.gmra.mrb[40].mxu1 %v1899_v11  ;;  %945 = vmatprep.mubr.bf16.mxu0 %v1900_v12 }
  0x79   : > { %1106 = vmatprep.mubr.bf16.mxu1 %v1902_v13 }
  0x7f   : > { %946 = vmatmul.mubr.bf16.gmra.mrb[44].mxu0 %v1904_v14 }
  0x80   : > { %1107 = vmatmul.mubr.bf16.gmra.mrb[44].mxu1 %v1905_v15  ;;  %953 = vmatprep.mubr.bf16.mxu0 %v1906_v16 }
  0x81   : > { %1114 = vmatprep.mubr.bf16.mxu1 %v1908_v17 }
  0x87   : > { %954 = vmatmul.mubr.bf16.gmra.mrb[48].mxu0 %v1910_v18 }
  0x88   : > { %1115 = vmatmul.mubr.bf16.gmra.mrb[48].mxu1 %v1911_v19  ;;  %961 = vmatprep.mubr.bf16.mxu0 %v1912_v20 }
  0x89   : > { %1122 = vmatprep.mubr.bf16.mxu1 %v1914_v21 }
  0x8f   : > { %962 = vmatmul.mubr.bf16.gmra.mrb[52].mxu0 %v1916_v22 }
  0x90   : > { %1123 = vmatmul.mubr.bf16.gmra.mrb[52].mxu1 %v1917_v23  ;;  %969 = vmatprep.mubr.bf16.mxu0 %v1918_v24 }
  0x91   : > { %1130 = vmatprep.mubr.bf16.mxu1 %v1920_v25 }
  0x97   : > { %970 = vmatmul.mubr.bf16.gmra.mrb[56].mxu0 %v1922_v26 }
  0x98   : > { %1131 = vmatmul.mubr.bf16.gmra.mrb[56].mxu1 %v1923_v27  ;;  %977 = vmatprep.mubr.bf16.mxu0 %v1924_v28 }
  0x99   : > { %1138 = vmatprep.mubr.bf16.mxu1 %v1926_v29 }
  0x9f   : > { %978 = vmatmul.mubr.bf16.gmra.mrb[60].mxu0 %v1928_v30 }
  0xa0   : > { %1139 = vmatmul.mubr.bf16.gmra.mrb[60].mxu1 %v1929_v31 }
  0xfa   : > { %v1586_v32 = vpop.f32.mrb[0].mxu0 }
  0xfb   : > { %v1698_v33 = vpop.f32.mrb[0].mxu1  ;;  %v1587_v35 = vpop.f32.mrb[1].mxu0 }
  0xfc   : > { %v1588_v36 = vadd.f32 %v1587_v35, %v1586_v32  ;;  %v1699_v37 = vpop.f32.mrb[1].mxu1  ;;  %v1589_v38 = vpop.f32.mrb[2].mxu0 }
  0xfd   : > { %v1700_v39 = vadd.f32 %v1699_v37, %v1698_v33  ;;  %v1701_v40 = vpop.f32.mrb[2].mxu1  ;;  %v1590_v41 = vpop.f32.mrb[3].mxu0 }
  0xfe   : > { %v860_v42 = vadd.f32 %v1588_v36, %v2139_v34  ;;  %v1591_v43 = vadd.f32 %v1590_v41, %v1589_v38  ;;  %v1702_v44 = vpop.f32.mrb[3].mxu1 }
  0xff   : > { %v1703_v45 = vadd.f32 %v1702_v44, %v1701_v40 }
 0x100   : > { %v1021_v46 = vadd.f32 %v1700_v39, %v860_v42  ;;  %v863_v47 = vadd.f32 %v1591_v43, %v2139_v34 }
 0x102   : > { %v1147_v48 = vmax.f32 %v1021_v46, 0.0  ;;  %v1024_v49 = vadd.f32 %v1703_v45, %v863_v47  ;;  %v1592_v50 = vpop.f32.mrb[4].mxu0 }
 0x103   : > { %v1704_v51 = vpop.f32.mrb[4].mxu1  ;;  %v1593_v52 = vpop.f32.mrb[5].mxu0 }
 0x104   : > { %v1538_v53 = vpack.c.bf16 %v1147_v48, %v1147_v48  ;;  %v1148_v54 = vmax.f32 %v1024_v49, 0.0  ;;  %v1594_v55 = vadd.f32 %v1593_v52, %v1592_v50  ;;  %v1705_v56 = vpop.f32.mrb[5].mxu1  ;;  %v1595_v57 = vpop.f32.mrb[6].mxu0 }
 0x105   : > { %v1706_v58 = vadd.f32 %v1705_v56, %v1704_v51  ;;  %v1707_v59 = vpop.f32.mrb[6].mxu1  ;;  %v1596_v60 = vpop.f32.mrb[7].mxu0 }
 0x106   : > { %1308 = vst.msk [vmem:[%s2147_s10] sm:$0xf] %vm1307_vm0, %v1538_v53  ;;  %v1539_v61 = vpack.c.bf16 %v1148_v54, %v1148_v54  ;;  %v868_v62 = vadd.f32 %v1594_v55, %v2139_v34  ;;  %v1597_v63 = vadd.f32 %v1596_v60, %v1595_v57  ;;  %v1708_v0 = vpop.f32.mrb[7].mxu1 }
 0x107   : > { %v1709_v1 = vadd.f32 %v1708_v0, %v1707_v59 }
 0x108   : > { %1309 = vst.msk [vmem:[%s2147_s10 + $0x4] sm:$0xf] %vm1307_vm0, %v1539_v61  ;;  %v1029_v2 = vadd.f32 %v1706_v58, %v868_v62  ;;  %v871_v3 = vadd.f32 %v1597_v63, %v2139_v34 }
 0x10a   : > { %v1149_v4 = vmax.f32 %v1029_v2, 0.0  ;;  %v1032_v5 = vadd.f32 %v1709_v1, %v871_v3  ;;  %v1598_v6 = vpop.f32.mrb[8].mxu0 }
 0x10b   : > { %v1710_v7 = vpop.f32.mrb[8].mxu1  ;;  %v1599_v8 = vpop.f32.mrb[9].mxu0 }
 0x10c   : > { %v1540_v9 = vpack.c.bf16 %v1149_v4, %v1149_v4  ;;  %v1150_v10 = vmax.f32 %v1032_v5, 0.0  ;;  %v1600_v11 = vadd.f32 %v1599_v8, %v1598_v6  ;;  %v1711_v12 = vpop.f32.mrb[9].mxu1  ;;  %v1601_v13 = vpop.f32.mrb[10].mxu0 }
 0x10d   : > { %v1712_v14 = vadd.f32 %v1711_v12, %v1710_v7  ;;  %v1713_v15 = vpop.f32.mrb[10].mxu1  ;;  %v1602_v16 = vpop.f32.mrb[11].mxu0 }
 0x10e   : > { %1310 = vst.msk [vmem:[%s2147_s10 + $0x8] sm:$0xf] %vm1307_vm0, %v1540_v9  ;;  %v1541_v17 = vpack.c.bf16 %v1150_v10, %v1150_v10  ;;  %v876_v18 = vadd.f32 %v1600_v11, %v2139_v34  ;;  %v1603_v19 = vadd.f32 %v1602_v16, %v1601_v13  ;;  %v1714_v20 = vpop.f32.mrb[11].mxu1 }
 0x10f   : > { %v1715_v21 = vadd.f32 %v1714_v20, %v1713_v15 }
 0x110   : > { %1311 = vst.msk [vmem:[%s2147_s10 + $0xc] sm:$0xf] %vm1307_vm0, %v1541_v17  ;;  %v1037_v22 = vadd.f32 %v1712_v14, %v876_v18  ;;  %v879_v23 = vadd.f32 %v1603_v19, %v2139_v34 }
 0x112   : > { %v1151_v24 = vmax.f32 %v1037_v22, 0.0  ;;  %v1040_v25 = vadd.f32 %v1715_v21, %v879_v23  ;;  %v1604_v26 = vpop.f32.mrb[12].mxu0 }
 0x113   : > { %v1716_v27 = vpop.f32.mrb[12].mxu1  ;;  %v1605_v28 = vpop.f32.mrb[13].mxu0 }
 0x114   : > { %v1542_v29 = vpack.c.bf16 %v1151_v24, %v1151_v24  ;;  %v1152_v30 = vmax.f32 %v1040_v25, 0.0  ;;  %v1606_v31 = vadd.f32 %v1605_v28, %v1604_v26  ;;  %v1717_v32 = vpop.f32.mrb[13].mxu1  ;;  %v1607_v33 = vpop.f32.mrb[14].mxu0 }
 0x115   : > { %v1718_v35 = vadd.f32 %v1717_v32, %v1716_v27  ;;  %v1719_v36 = vpop.f32.mrb[14].mxu1  ;;  %v1608_v37 = vpop.f32.mrb[15].mxu0 }
 0x116   : > { %1312 = vst.msk [vmem:[%s2147_s10 + $0x10] sm:$0xf] %vm1307_vm0, %v1542_v29  ;;  %v1543_v38 = vpack.c.bf16 %v1152_v30, %v1152_v30  ;;  %v884_v39 = vadd.f32 %v1606_v31, %v2139_v34  ;;  %v1609_v40 = vadd.f32 %v1608_v37, %v1607_v33  ;;  %v1720_v41 = vpop.f32.mrb[15].mxu1 }
 0x117   : > { %v1721_v42 = vadd.f32 %v1720_v41, %v1719_v36 }
 0x118   : > { %1313 = vst.msk [vmem:[%s2147_s10 + $0x14] sm:$0xf] %vm1307_vm0, %v1543_v38  ;;  %v1045_v43 = vadd.f32 %v1718_v35, %v884_v39  ;;  %v887_v44 = vadd.f32 %v1609_v40, %v2139_v34 }
 0x11a   : > { %v1153_v45 = vmax.f32 %v1045_v43, 0.0  ;;  %v1048_v46 = vadd.f32 %v1721_v42, %v887_v44  ;;  %v1610_v47 = vpop.f32.mrb[16].mxu0 }
 0x11b   : > { %v1722_v48 = vpop.f32.mrb[16].mxu1  ;;  %v1611_v49 = vpop.f32.mrb[17].mxu0 }
 0x11c   : > { %v1544_v50 = vpack.c.bf16 %v1153_v45, %v1153_v45  ;;  %v1154_v51 = vmax.f32 %v1048_v46, 0.0  ;;  %v1612_v52 = vadd.f32 %v1611_v49, %v1610_v47  ;;  %v1723_v53 = vpop.f32.mrb[17].mxu1  ;;  %v1613_v54 = vpop.f32.mrb[18].mxu0 }
 0x11d   : > { %v1724_v55 = vadd.f32 %v1723_v53, %v1722_v48  ;;  %v1725_v56 = vpop.f32.mrb[18].mxu1  ;;  %v1614_v57 = vpop.f32.mrb[19].mxu0 }
 0x11e   : > { %1314 = vst.msk [vmem:[%s2147_s10 + $0x18] sm:$0xf] %vm1307_vm0, %v1544_v50  ;;  %v1545_v58 = vpack.c.bf16 %v1154_v51, %v1154_v51  ;;  %v892_v59 = vadd.f32 %v1612_v52, %v2139_v34  ;;  %v1615_v60 = vadd.f32 %v1614_v57, %v1613_v54  ;;  %v1726_v61 = vpop.f32.mrb[19].mxu1 }
 0x11f   : > { %v1727_v62 = vadd.f32 %v1726_v61, %v1725_v56 }
 0x120   : > { %1315 = vst.msk [vmem:[%s2147_s10 + $0x1c] sm:$0xf] %vm1307_vm0, %v1545_v58  ;;  %v1053_v63 = vadd.f32 %v1724_v55, %v892_v59  ;;  %v895_v0 = vadd.f32 %v1615_v60, %v2139_v34 }
 0x122   : > { %v1155_v1 = vmax.f32 %v1053_v63, 0.0  ;;  %v1056_v2 = vadd.f32 %v1727_v62, %v895_v0  ;;  %v1616_v3 = vpop.f32.mrb[20].mxu0 }
 0x123   : > { %v1728_v4 = vpop.f32.mrb[20].mxu1  ;;  %v1617_v5 = vpop.f32.mrb[21].mxu0 }
 0x124   : > { %v1546_v6 = vpack.c.bf16 %v1155_v1, %v1155_v1  ;;  %v1156_v7 = vmax.f32 %v1056_v2, 0.0  ;;  %v1618_v8 = vadd.f32 %v1617_v5, %v1616_v3  ;;  %v1729_v9 = vpop.f32.mrb[21].mxu1  ;;  %v1619_v10 = vpop.f32.mrb[22].mxu0 }
 0x125   : > { %v1730_v11 = vadd.f32 %v1729_v9, %v1728_v4  ;;  %v1731_v12 = vpop.f32.mrb[22].mxu1  ;;  %v1620_v13 = vpop.f32.mrb[23].mxu0 }
 0x126   : > { %1316 = vst.msk [vmem:[%s2147_s10 + $0x20] sm:$0xf] %vm1307_vm0, %v1546_v6  ;;  %v1547_v14 = vpack.c.bf16 %v1156_v7, %v1156_v7  ;;  %v900_v15 = vadd.f32 %v1618_v8, %v2139_v34  ;;  %v1621_v16 = vadd.f32 %v1620_v13, %v1619_v10  ;;  %v1732_v17 = vpop.f32.mrb[23].mxu1 }
 0x127   : > { %v1733_v18 = vadd.f32 %v1732_v17, %v1731_v12 }
 0x128   : > { %1317 = vst.msk [vmem:[%s2147_s10 + $0x24] sm:$0xf] %vm1307_vm0, %v1547_v14  ;;  %v1061_v19 = vadd.f32 %v1730_v11, %v900_v15  ;;  %v903_v20 = vadd.f32 %v1621_v16, %v2139_v34 }
 0x12a   : > { %v1157_v21 = vmax.f32 %v1061_v19, 0.0  ;;  %v1064_v22 = vadd.f32 %v1733_v18, %v903_v20  ;;  %v1622_v23 = vpop.f32.mrb[24].mxu0 }
 0x12b   : > { %v1734_v24 = vpop.f32.mrb[24].mxu1  ;;  %v1623_v25 = vpop.f32.mrb[25].mxu0 }
 0x12c   : > { %v1548_v26 = vpack.c.bf16 %v1157_v21, %v1157_v21  ;;  %v1158_v27 = vmax.f32 %v1064_v22, 0.0  ;;  %v1624_v28 = vadd.f32 %v1623_v25, %v1622_v23  ;;  %v1735_v29 = vpop.f32.mrb[25].mxu1  ;;  %v1625_v30 = vpop.f32.mrb[26].mxu0 }
 0x12d   : > { %v1736_v31 = vadd.f32 %v1735_v29, %v1734_v24  ;;  %v1737_v32 = vpop.f32.mrb[26].mxu1  ;;  %v1626_v33 = vpop.f32.mrb[27].mxu0 }
 0x12e   : > { %1318 = vst.msk [vmem:[%s2147_s10 + $0x28] sm:$0xf] %vm1307_vm0, %v1548_v26  ;;  %v1549_v35 = vpack.c.bf16 %v1158_v27, %v1158_v27  ;;  %v908_v36 = vadd.f32 %v1624_v28, %v2139_v34  ;;  %v1627_v37 = vadd.f32 %v1626_v33, %v1625_v30  ;;  %v1738_v38 = vpop.f32.mrb[27].mxu1 }
 0x12f   : > { %v1739_v39 = vadd.f32 %v1738_v38, %v1737_v32 }
 0x130   : > { %1319 = vst.msk [vmem:[%s2147_s10 + $0x2c] sm:$0xf] %vm1307_vm0, %v1549_v35  ;;  %v1069_v40 = vadd.f32 %v1736_v31, %v908_v36  ;;  %v911_v41 = vadd.f32 %v1627_v37, %v2139_v34 }
 0x132   : > { %v1159_v42 = vmax.f32 %v1069_v40, 0.0  ;;  %v1072_v43 = vadd.f32 %v1739_v39, %v911_v41  ;;  %v1628_v44 = vpop.f32.mrb[28].mxu0 }
 0x133   : > { %v1740_v45 = vpop.f32.mrb[28].mxu1  ;;  %v1629_v46 = vpop.f32.mrb[29].mxu0 }
 0x134   : > { %v1550_v47 = vpack.c.bf16 %v1159_v42, %v1159_v42  ;;  %v1160_v48 = vmax.f32 %v1072_v43, 0.0  ;;  %v1630_v49 = vadd.f32 %v1629_v46, %v1628_v44  ;;  %v1741_v50 = vpop.f32.mrb[29].mxu1  ;;  %v1631_v51 = vpop.f32.mrb[30].mxu0 }
 0x135   : > { %v1742_v52 = vadd.f32 %v1741_v50, %v1740_v45  ;;  %v1743_v53 = vpop.f32.mrb[30].mxu1  ;;  %v1632_v54 = vpop.f32.mrb[31].mxu0 }
 0x136   : > { %1320 = vst.msk [vmem:[%s2147_s10 + $0x30] sm:$0xf] %vm1307_vm0, %v1550_v47  ;;  %v1551_v55 = vpack.c.bf16 %v1160_v48, %v1160_v48  ;;  %v916_v56 = vadd.f32 %v1630_v49, %v2139_v34  ;;  %v1633_v57 = vadd.f32 %v1632_v54, %v1631_v51  ;;  %v1744_v58 = vpop.f32.mrb[31].mxu1 }
 0x137   : > { %v1745_v59 = vadd.f32 %v1744_v58, %v1743_v53 }
 0x138   : > { %1321 = vst.msk [vmem:[%s2147_s10 + $0x34] sm:$0xf] %vm1307_vm0, %v1551_v55  ;;  %v1077_v60 = vadd.f32 %v1742_v52, %v916_v56  ;;  %v919_v61 = vadd.f32 %v1633_v57, %v2139_v34 }
 0x13a   : > { %v1161_v62 = vmax.f32 %v1077_v60, 0.0  ;;  %v1080_v63 = vadd.f32 %v1745_v59, %v919_v61  ;;  %v1634_v0 = vpop.f32.mrb[32].mxu0 }
 0x13b   : > { %v1746_v1 = vpop.f32.mrb[32].mxu1  ;;  %v1635_v2 = vpop.f32.mrb[33].mxu0 }
 0x13c   : > { %v1552_v3 = vpack.c.bf16 %v1161_v62, %v1161_v62  ;;  %v1162_v4 = vmax.f32 %v1080_v63, 0.0  ;;  %v1636_v5 = vadd.f32 %v1635_v2, %v1634_v0  ;;  %v1747_v6 = vpop.f32.mrb[33].mxu1  ;;  %v1637_v7 = vpop.f32.mrb[34].mxu0 }
 0x13d   : > { %v1748_v8 = vadd.f32 %v1747_v6, %v1746_v1  ;;  %v1749_v9 = vpop.f32.mrb[34].mxu1  ;;  %v1638_v10 = vpop.f32.mrb[35].mxu0 }
 0x13e   : > { %1322 = vst.msk [vmem:[%s2147_s10 + $0x38] sm:$0xf] %vm1307_vm0, %v1552_v3  ;;  %v1553_v11 = vpack.c.bf16 %v1162_v4, %v1162_v4  ;;  %v924_v12 = vadd.f32 %v1636_v5, %v2139_v34  ;;  %v1639_v13 = vadd.f32 %v1638_v10, %v1637_v7  ;;  %v1750_v14 = vpop.f32.mrb[35].mxu1 }
 0x13f   : > { %v1751_v15 = vadd.f32 %v1750_v14, %v1749_v9 }
 0x140   : > { %1323 = vst.msk [vmem:[%s2147_s10 + $0x3c] sm:$0xf] %vm1307_vm0, %v1553_v11  ;;  %v1085_v16 = vadd.f32 %v1748_v8, %v924_v12  ;;  %v927_v17 = vadd.f32 %v1639_v13, %v2139_v34 }
 0x142   : > { %v1163_v18 = vmax.f32 %v1085_v16, 0.0  ;;  %v1088_v19 = vadd.f32 %v1751_v15, %v927_v17  ;;  %v1640_v20 = vpop.f32.mrb[36].mxu0 }
 0x143   : > { %v1752_v21 = vpop.f32.mrb[36].mxu1  ;;  %v1641_v22 = vpop.f32.mrb[37].mxu0 }
 0x144   : > { %v1554_v23 = vpack.c.bf16 %v1163_v18, %v1163_v18  ;;  %v1164_v24 = vmax.f32 %v1088_v19, 0.0  ;;  %v1642_v25 = vadd.f32 %v1641_v22, %v1640_v20  ;;  %v1753_v26 = vpop.f32.mrb[37].mxu1  ;;  %v1643_v27 = vpop.f32.mrb[38].mxu0 }
 0x145   : > { %v1754_v28 = vadd.f32 %v1753_v26, %v1752_v21  ;;  %v1755_v29 = vpop.f32.mrb[38].mxu1  ;;  %v1644_v30 = vpop.f32.mrb[39].mxu0 }
 0x146   : > { %1324 = vst.msk [vmem:[%s2147_s10 + $0x40] sm:$0xf] %vm1307_vm0, %v1554_v23  ;;  %v1555_v31 = vpack.c.bf16 %v1164_v24, %v1164_v24  ;;  %v932_v32 = vadd.f32 %v1642_v25, %v2139_v34  ;;  %v1645_v33 = vadd.f32 %v1644_v30, %v1643_v27  ;;  %v1756_v35 = vpop.f32.mrb[39].mxu1 }
 0x147   : > { %v1757_v36 = vadd.f32 %v1756_v35, %v1755_v29 }
 0x148   : > { %1325 = vst.msk [vmem:[%s2147_s10 + $0x44] sm:$0xf] %vm1307_vm0, %v1555_v31  ;;  %v1093_v37 = vadd.f32 %v1754_v28, %v932_v32  ;;  %v935_v38 = vadd.f32 %v1645_v33, %v2139_v34 }
 0x14a   : > { %v1165_v39 = vmax.f32 %v1093_v37, 0.0  ;;  %v1096_v40 = vadd.f32 %v1757_v36, %v935_v38  ;;  %v1646_v41 = vpop.f32.mrb[40].mxu0 }
 0x14b   : > { %v1758_v42 = vpop.f32.mrb[40].mxu1  ;;  %v1647_v43 = vpop.f32.mrb[41].mxu0 }
 0x14c   : > { %v1556_v44 = vpack.c.bf16 %v1165_v39, %v1165_v39  ;;  %v1166_v45 = vmax.f32 %v1096_v40, 0.0  ;;  %v1648_v46 = vadd.f32 %v1647_v43, %v1646_v41  ;;  %v1759_v47 = vpop.f32.mrb[41].mxu1  ;;  %v1649_v48 = vpop.f32.mrb[42].mxu0 }
 0x14d   : > { %v1760_v49 = vadd.f32 %v1759_v47, %v1758_v42  ;;  %v1761_v50 = vpop.f32.mrb[42].mxu1  ;;  %v1650_v51 = vpop.f32.mrb[43].mxu0 }
 0x14e   : > { %1326 = vst.msk [vmem:[%s2147_s10 + $0x48] sm:$0xf] %vm1307_vm0, %v1556_v44  ;;  %v1557_v52 = vpack.c.bf16 %v1166_v45, %v1166_v45  ;;  %v940_v53 = vadd.f32 %v1648_v46, %v2139_v34  ;;  %v1651_v54 = vadd.f32 %v1650_v51, %v1649_v48  ;;  %v1762_v55 = vpop.f32.mrb[43].mxu1 }
 0x14f   : > { %v1763_v56 = vadd.f32 %v1762_v55, %v1761_v50 }
 0x150   : > { %1327 = vst.msk [vmem:[%s2147_s10 + $0x4c] sm:$0xf] %vm1307_vm0, %v1557_v52  ;;  %v1101_v57 = vadd.f32 %v1760_v49, %v940_v53  ;;  %v943_v58 = vadd.f32 %v1651_v54, %v2139_v34 }
 0x152   : > { %v1167_v59 = vmax.f32 %v1101_v57, 0.0  ;;  %v1104_v60 = vadd.f32 %v1763_v56, %v943_v58  ;;  %v1652_v61 = vpop.f32.mrb[44].mxu0 }
 0x153   : > { %v1764_v62 = vpop.f32.mrb[44].mxu1  ;;  %v1653_v63 = vpop.f32.mrb[45].mxu0 }
 0x154   : > { %v1558_v0 = vpack.c.bf16 %v1167_v59, %v1167_v59  ;;  %v1168_v1 = vmax.f32 %v1104_v60, 0.0  ;;  %v1654_v2 = vadd.f32 %v1653_v63, %v1652_v61  ;;  %v1765_v3 = vpop.f32.mrb[45].mxu1  ;;  %v1655_v4 = vpop.f32.mrb[46].mxu0 }
 0x155   : > { %v1766_v5 = vadd.f32 %v1765_v3, %v1764_v62  ;;  %v1767_v6 = vpop.f32.mrb[46].mxu1  ;;  %v1656_v7 = vpop.f32.mrb[47].mxu0 }
 0x156   : > { %1328 = vst.msk [vmem:[%s2147_s10 + $0x50] sm:$0xf] %vm1307_vm0, %v1558_v0  ;;  %v1559_v8 = vpack.c.bf16 %v1168_v1, %v1168_v1  ;;  %v948_v9 = vadd.f32 %v1654_v2, %v2139_v34  ;;  %v1657_v10 = vadd.f32 %v1656_v7, %v1655_v4  ;;  %v1768_v11 = vpop.f32.mrb[47].mxu1 }
 0x157   : > { %v1769_v12 = vadd.f32 %v1768_v11, %v1767_v6 }
 0x158   : > { %1329 = vst.msk [vmem:[%s2147_s10 + $0x54] sm:$0xf] %vm1307_vm0, %v1559_v8  ;;  %v1109_v13 = vadd.f32 %v1766_v5, %v948_v9  ;;  %v951_v14 = vadd.f32 %v1657_v10, %v2139_v34 }
 0x15a   : > { %v1169_v15 = vmax.f32 %v1109_v13, 0.0  ;;  %v1112_v16 = vadd.f32 %v1769_v12, %v951_v14  ;;  %v1658_v17 = vpop.f32.mrb[48].mxu0 }
 0x15b   : > { %v1770_v18 = vpop.f32.mrb[48].mxu1  ;;  %v1659_v19 = vpop.f32.mrb[49].mxu0 }
 0x15c   : > { %v1560_v20 = vpack.c.bf16 %v1169_v15, %v1169_v15  ;;  %v1170_v21 = vmax.f32 %v1112_v16, 0.0  ;;  %v1660_v22 = vadd.f32 %v1659_v19, %v1658_v17  ;;  %v1771_v23 = vpop.f32.mrb[49].mxu1  ;;  %v1661_v24 = vpop.f32.mrb[50].mxu0 }
 0x15d   : > { %v1772_v25 = vadd.f32 %v1771_v23, %v1770_v18  ;;  %v1773_v26 = vpop.f32.mrb[50].mxu1  ;;  %v1662_v27 = vpop.f32.mrb[51].mxu0 }
 0x15e   : > { %1330 = vst.msk [vmem:[%s2147_s10 + $0x58] sm:$0xf] %vm1307_vm0, %v1560_v20  ;;  %v1561_v28 = vpack.c.bf16 %v1170_v21, %v1170_v21  ;;  %v956_v29 = vadd.f32 %v1660_v22, %v2139_v34  ;;  %v1663_v30 = vadd.f32 %v1662_v27, %v1661_v24  ;;  %v1774_v31 = vpop.f32.mrb[51].mxu1 }
 0x15f   : > { %v1775_v32 = vadd.f32 %v1774_v31, %v1773_v26 }
 0x160   : > { %1331 = vst.msk [vmem:[%s2147_s10 + $0x5c] sm:$0xf] %vm1307_vm0, %v1561_v28  ;;  %v1117_v33 = vadd.f32 %v1772_v25, %v956_v29  ;;  %v959_v35 = vadd.f32 %v1663_v30, %v2139_v34 }
 0x162   : > { %v1171_v36 = vmax.f32 %v1117_v33, 0.0  ;;  %v1120_v37 = vadd.f32 %v1775_v32, %v959_v35  ;;  %v1664_v38 = vpop.f32.mrb[52].mxu0 }
 0x163   : > { %v1776_v39 = vpop.f32.mrb[52].mxu1  ;;  %v1665_v40 = vpop.f32.mrb[53].mxu0 }
 0x164   : > { %v1562_v41 = vpack.c.bf16 %v1171_v36, %v1171_v36  ;;  %v1172_v42 = vmax.f32 %v1120_v37, 0.0  ;;  %v1666_v43 = vadd.f32 %v1665_v40, %v1664_v38  ;;  %v1777_v44 = vpop.f32.mrb[53].mxu1  ;;  %v1667_v45 = vpop.f32.mrb[54].mxu0 }
 0x165   : > { %v1778_v46 = vadd.f32 %v1777_v44, %v1776_v39  ;;  %v1779_v47 = vpop.f32.mrb[54].mxu1  ;;  %v1668_v48 = vpop.f32.mrb[55].mxu0 }
 0x166   : > { %1332 = vst.msk [vmem:[%s2147_s10 + $0x60] sm:$0xf] %vm1307_vm0, %v1562_v41  ;;  %v1563_v49 = vpack.c.bf16 %v1172_v42, %v1172_v42  ;;  %v964_v50 = vadd.f32 %v1666_v43, %v2139_v34  ;;  %v1669_v51 = vadd.f32 %v1668_v48, %v1667_v45  ;;  %v1780_v52 = vpop.f32.mrb[55].mxu1 }
 0x167   : > { %v1781_v53 = vadd.f32 %v1780_v52, %v1779_v47 }
 0x168   : > { %1333 = vst.msk [vmem:[%s2147_s10 + $0x64] sm:$0xf] %vm1307_vm0, %v1563_v49  ;;  %v1125_v54 = vadd.f32 %v1778_v46, %v964_v50  ;;  %v967_v55 = vadd.f32 %v1669_v51, %v2139_v34 }
 0x16a   : > { %v1173_v56 = vmax.f32 %v1125_v54, 0.0  ;;  %v1128_v57 = vadd.f32 %v1781_v53, %v967_v55  ;;  %v1670_v58 = vpop.f32.mrb[56].mxu0 }
 0x16b   : > { %v1782_v59 = vpop.f32.mrb[56].mxu1  ;;  %v1671_v60 = vpop.f32.mrb[57].mxu0 }
 0x16c   : > { %v1564_v61 = vpack.c.bf16 %v1173_v56, %v1173_v56  ;;  %v1174_v62 = vmax.f32 %v1128_v57, 0.0  ;;  %v1672_v63 = vadd.f32 %v1671_v60, %v1670_v58  ;;  %v1783_v0 = vpop.f32.mrb[57].mxu1  ;;  %v1673_v1 = vpop.f32.mrb[58].mxu0 }
 0x16d   : > { %v1784_v2 = vadd.f32 %v1783_v0, %v1782_v59  ;;  %v1785_v3 = vpop.f32.mrb[58].mxu1  ;;  %v1674_v4 = vpop.f32.mrb[59].mxu0 }
 0x16e   : > { %1334 = vst.msk [vmem:[%s2147_s10 + $0x68] sm:$0xf] %vm1307_vm0, %v1564_v61  ;;  %v1565_v5 = vpack.c.bf16 %v1174_v62, %v1174_v62  ;;  %v972_v6 = vadd.f32 %v1672_v63, %v2139_v34  ;;  %v1675_v7 = vadd.f32 %v1674_v4, %v1673_v1  ;;  %v1786_v8 = vpop.f32.mrb[59].mxu1 }
 0x16f   : > { %v1787_v9 = vadd.f32 %v1786_v8, %v1785_v3 }
 0x170   : > { %1335 = vst.msk [vmem:[%s2147_s10 + $0x6c] sm:$0xf] %vm1307_vm0, %v1565_v5  ;;  %v1133_v10 = vadd.f32 %v1784_v2, %v972_v6  ;;  %v975_v11 = vadd.f32 %v1675_v7, %v2139_v34 }
 0x172   : > { %v1175_v12 = vmax.f32 %v1133_v10, 0.0  ;;  %v1136_v13 = vadd.f32 %v1787_v9, %v975_v11  ;;  %v1676_v14 = vpop.f32.mrb[60].mxu0 }
 0x173   : > { %v1788_v15 = vpop.f32.mrb[60].mxu1  ;;  %v1677_v16 = vpop.f32.mrb[61].mxu0 }
 0x174   : > { %v1566_v17 = vpack.c.bf16 %v1175_v12, %v1175_v12  ;;  %v1176_v18 = vmax.f32 %v1136_v13, 0.0  ;;  %v1678_v19 = vadd.f32 %v1677_v16, %v1676_v14  ;;  %v1789_v20 = vpop.f32.mrb[61].mxu1  ;;  %v1679_v21 = vpop.f32.mrb[62].mxu0 }
 0x175   : > { %v1790_v22 = vadd.f32 %v1789_v20, %v1788_v15  ;;  %v1791_v23 = vpop.f32.mrb[62].mxu1  ;;  %v1680_v24 = vpop.f32.mrb[63].mxu0 }
 0x176   : > { %1336 = vst.msk [vmem:[%s2147_s10 + $0x70] sm:$0xf] %vm1307_vm0, %v1566_v17  ;;  %v1567_v25 = vpack.c.bf16 %v1176_v18, %v1176_v18  ;;  %v980_v26 = vadd.f32 %v1678_v19, %v2139_v34  ;;  %v1681_v27 = vadd.f32 %v1680_v24, %v1679_v21  ;;  %v1792_v28 = vpop.f32.mrb[63].mxu1 }
 0x177   : > { %v1793_v29 = vadd.f32 %v1792_v28, %v1791_v23 }
 0x178   : > { %1337 = vst.msk [vmem:[%s2147_s10 + $0x74] sm:$0xf] %vm1307_vm0, %v1567_v25  ;;  %v1141_v30 = vadd.f32 %v1790_v22, %v980_v26  ;;  %v983_v31 = vadd.f32 %v1681_v27, %v2139_v34 }
 0x17a   : > { %v1177_v32 = vmax.f32 %v1141_v30, 0.0  ;;  %v1144_v33 = vadd.f32 %v1793_v29, %v983_v31 }
 0x17c   : > { %v1568_v35 = vpack.c.bf16 %v1177_v32, %v1177_v32  ;;  %v1178_v36 = vmax.f32 %v1144_v33, 0.0 }
 0x17e   : > { %1338 = vst.msk [vmem:[%s2147_s10 + $0x78] sm:$0xf] %vm1307_vm0, %v1568_v35  ;;  %v1569_v37 = vpack.c.bf16 %v1178_v36, %v1178_v36 }
 0x180   : > { %1339 = vst.msk [vmem:[%s2147_s10 + $0x7c] sm:$0xf] %vm1307_vm0, %v1569_v37 }
 0x181 PF: > { %s13_s12 = sadd.s32 1, %s1936_s12  }
 0x182   : > { %p10_p4 = scmp.ge.s32.totalorder %s13_s12, 4  }
 0x184   :  { %12 = sbr.rel (!%p10_p4) target bundleno = 1 (0x1), region = 62 }

// kernel: beta_vae_b_forward.11
= control target key start
LH: loop header
LB: loop body
LE: loop exit
PB: predicated region body
PF: predicated region fallthrough
CT: control target
= control target key end

     0   :  { %vm744_vm0 = vcmask 257024   ;;  %s1367_s1 = inlined_call_operand.vmem [shape: bf16[512,32], index: 1, kind: input, shape index: {}]   ;;  %s1368_s0 = inlined_call_operand.vmem [shape: bf16[128,512], index: 0, kind: input, shape index: {}]   ;;  %s1369_s2 = inlined_call_operand.vmem [shape: f32[1,32], index: 2, kind: input, shape index: {}]   ;;  %s1370_s3 = inlined_call_operand.vmem [shape: bf16[128,32], index: 3, kind: output, shape index: {}]  }
   0x1   :  { %v990_v0 = vld [vmem:[%s1367_s1 + $0x40] sm:$0xff]   ;;  %v994_v4 = vld [vmem:[%s1367_s1 + $0x48] sm:$0xff]   ;;  %v998_v8 = vld [vmem:[%s1367_s1 + $0x50] sm:$0xff]  }
   0x2   :  { %v991_v1 = vld [vmem:[%s1367_s1 + $0xc0] sm:$0xff]   ;;  %862 = vmatprep.subr.bf16.mxu0 %v990_v0  ;;  %v995_v5 = vld [vmem:[%s1367_s1 + $0xc8] sm:$0xff]   ;;  %v999_v9 = vld [vmem:[%s1367_s1 + $0xd0] sm:$0xff]  }
   0x3   :  { %v992_v2 = vld [vmem:[%s1367_s1] sm:$0xff]   ;;  %926 = vmatprep.subr.bf16.mxu1 %v991_v1  ;;  %v996_v6 = vld [vmem:[%s1367_s1 + $0x8] sm:$0xff]   ;;  %v1000_v10 = vld [vmem:[%s1367_s1 + $0x10] sm:$0xff]  }
   0x4   :  { %v993_v3 = vld [vmem:[%s1367_s1 + $0x80] sm:$0xff]   ;;  %863 = vmatpush3.bf16.msra.mxu0 %v992_v2  ;;  %v997_v7 = vld [vmem:[%s1367_s1 + $0x88] sm:$0xff]   ;;  %v1001_v11 = vld [vmem:[%s1367_s1 + $0x90] sm:$0xff]  }
   0x5   :  { %927 = vmatpush3.bf16.msra.mxu1 %v993_v3  ;;  %864 = vmatprep.subr.bf16.mxu0 %v994_v4  ;;  %v1002_v12 = vld [vmem:[%s1367_s1 + $0x58] sm:$0xff]   ;;  %v1006_v16 = vld [vmem:[%s1367_s1 + $0x60] sm:$0xff]   ;;  %v1010_v20 = vld [vmem:[%s1367_s1 + $0x68] sm:$0xff]  }
   0x6   :  { %928 = vmatprep.subr.bf16.mxu1 %v995_v5  ;;  %v1003_v13 = vld [vmem:[%s1367_s1 + $0xd8] sm:$0xff]   ;;  %v1007_v17 = vld [vmem:[%s1367_s1 + $0xe0] sm:$0xff]   ;;  %v1011_v21 = vld [vmem:[%s1367_s1 + $0xe8] sm:$0xff]  }
   0x7   :  { %v1004_v14 = vld [vmem:[%s1367_s1 + $0x18] sm:$0xff]   ;;  %v1008_v18 = vld [vmem:[%s1367_s1 + $0x20] sm:$0xff]   ;;  %v1012_v22 = vld [vmem:[%s1367_s1 + $0x28] sm:$0xff]  }
   0x8   :  { %865 = vmatpush3.bf16.msra.mxu0 %v996_v6  ;;  %v1005_v15 = vld [vmem:[%s1367_s1 + $0x98] sm:$0xff]   ;;  %v1009_v19 = vld [vmem:[%s1367_s1 + $0xa0] sm:$0xff]   ;;  %v1013_v23 = vld [vmem:[%s1367_s1 + $0xa8] sm:$0xff]  }
   0x9   :  { %929 = vmatpush3.bf16.msra.mxu1 %v997_v7  ;;  %866 = vmatprep.subr.bf16.mxu0 %v998_v8  ;;  %v1014_v24 = vld [vmem:[%s1367_s1 + $0x70] sm:$0xff]   ;;  %v1018_v28 = vld [vmem:[%s1367_s1 + $0x78] sm:$0xff]   ;;  %v1285_v2 = vld [vmem:[%s1369_s2] ss:$0 sm:$0xff] }
   0xa   :  { %930 = vmatprep.subr.bf16.mxu1 %v999_v9  ;;  %v1015_v25 = vld [vmem:[%s1367_s1 + $0xf0] sm:$0xff]   ;;  %v1019_v29 = vld [vmem:[%s1367_s1 + $0xf8] sm:$0xff]  }
   0xb   :  { %v1016_v26 = vld [vmem:[%s1367_s1 + $0x30] sm:$0xff]   ;;  %v1020_v30 = vld [vmem:[%s1367_s1 + $0x38] sm:$0xff]  }
   0xc   :  { %867 = vmatpush3.bf16.msra.mxu0 %v1000_v10  ;;  %v1017_v27 = vld [vmem:[%s1367_s1 + $0xb0] sm:$0xff]   ;;  %v1021_v31 = vld [vmem:[%s1367_s1 + $0xb8] sm:$0xff]  }
   0xd   :  { %931 = vmatpush3.bf16.msra.mxu1 %v1001_v11  ;;  %868 = vmatprep.subr.bf16.mxu0 %v1002_v12  ;;  %v1022_v32 = vld [vmem:[%s1368_s0] ss:$16 sps:$4 sm:$0xff]   ;;  %v1024_v33 = vld [vmem:[%s1368_s0 + $0x4] ss:$16 sps:$4 sm:$0xff]   ;;  %v1025_v34 = vld [vmem:[%s1368_s0 + $0x8] ss:$16 sps:$4 sm:$0xff]  }
   0xe   :  { %932 = vmatprep.subr.bf16.mxu1 %v1003_v13  ;;  %v1027_v35 = vld [vmem:[%s1368_s0 + $0xc] ss:$16 sps:$4 sm:$0xff]   ;;  %502 = vmatprep.mubr.bf16.mxu0 %v1024_v33  ;;  %v1028_v36 = vld [vmem:[%s1368_s0 + $0x24] ss:$16 sps:$4 sm:$0xff]   ;;  %v1032_v38 = vld [vmem:[%s1368_s0 + $0x20] ss:$16 sps:$4 sm:$0xff]  }
   0xf   :  { %599 = vmatprep.mubr.bf16.mxu1 %v1027_v35  ;;  %v1030_v37 = vld [vmem:[%s1368_s0 + $0x2c] ss:$16 sps:$4 sm:$0xff]   ;;  %v1033_v39 = vld [vmem:[%s1368_s0 + $0x28] ss:$16 sps:$4 sm:$0xff]   ;;  %v1034_v40 = vld [vmem:[%s1368_s0 + $0x44] ss:$16 sps:$4 sm:$0xff]  }
  0x10   :  { %869 = vmatpush3.bf16.msra.mxu0 %v1004_v14  ;;  %v1036_v41 = vld [vmem:[%s1368_s0 + $0x4c] ss:$16 sps:$4 sm:$0xff]   ;;  %v1038_v42 = vld [vmem:[%s1368_s0 + $0x40] ss:$16 sps:$4 sm:$0xff]   ;;  %v1039_v43 = vld [vmem:[%s1368_s0 + $0x48] ss:$16 sps:$4 sm:$0xff]  }
  0x11   :  { %933 = vmatpush3.bf16.msra.mxu1 %v1005_v15  ;;  %870 = vmatprep.subr.bf16.mxu0 %v1006_v16  ;;  %v1040_v44 = vld [vmem:[%s1368_s0 + $0x64] ss:$16 sps:$4 sm:$0xff]   ;;  %v1042_v45 = vld [vmem:[%s1368_s0 + $0x6c] ss:$16 sps:$4 sm:$0xff]   ;;  %v1044_v46 = vld [vmem:[%s1368_s0 + $0x60] ss:$16 sps:$4 sm:$0xff]  }
  0x12   :  { %934 = vmatprep.subr.bf16.mxu1 %v1007_v17  ;;  %v1045_v47 = vld [vmem:[%s1368_s0 + $0x68] ss:$16 sps:$4 sm:$0xff]   ;;  %v1046_v48 = vld [vmem:[%s1368_s0 + $0x84] ss:$16 sps:$4 sm:$0xff]   ;;  %v1048_v49 = vld [vmem:[%s1368_s0 + $0x8c] ss:$16 sps:$4 sm:$0xff]  }
  0x13   :  { %v1050_v50 = vld [vmem:[%s1368_s0 + $0x80] ss:$16 sps:$4 sm:$0xff]   ;;  %v1051_v51 = vld [vmem:[%s1368_s0 + $0x88] ss:$16 sps:$4 sm:$0xff]   ;;  %v1052_v52 = vld [vmem:[%s1368_s0 + $0xa4] ss:$16 sps:$4 sm:$0xff]  }
  0x14   :  { %871 = vmatpush3.bf16.msra.mxu0 %v1008_v18  ;;  %v1054_v53 = vld [vmem:[%s1368_s0 + $0xac] ss:$16 sps:$4 sm:$0xff]   ;;  %v1056_v54 = vld [vmem:[%s1368_s0 + $0xa0] ss:$16 sps:$4 sm:$0xff]   ;;  %v1057_v55 = vld [vmem:[%s1368_s0 + $0xa8] ss:$16 sps:$4 sm:$0xff]  }
  0x15   :  { %935 = vmatpush3.bf16.msra.mxu1 %v1009_v19  ;;  %872 = vmatprep.subr.bf16.mxu0 %v1010_v20  ;;  %v1058_v56 = vld [vmem:[%s1368_s0 + $0xc4] ss:$16 sps:$4 sm:$0xff]   ;;  %v1060_v57 = vld [vmem:[%s1368_s0 + $0xcc] ss:$16 sps:$4 sm:$0xff]   ;;  %v1062_v58 = vld [vmem:[%s1368_s0 + $0xc0] ss:$16 sps:$4 sm:$0xff]  }
  0x16   :  { %936 = vmatprep.subr.bf16.mxu1 %v1011_v21  ;;  %v1063_v59 = vld [vmem:[%s1368_s0 + $0xc8] ss:$16 sps:$4 sm:$0xff]   ;;  %v1064_v60 = vld [vmem:[%s1368_s0 + $0xe4] ss:$16 sps:$4 sm:$0xff]   ;;  %v1066_v61 = vld [vmem:[%s1368_s0 + $0xec] ss:$16 sps:$4 sm:$0xff]  }
  0x17   :  { %v1068_v62 = vld [vmem:[%s1368_s0 + $0xe0] ss:$16 sps:$4 sm:$0xff]   ;;  %v1069_v63 = vld [vmem:[%s1368_s0 + $0xe8] ss:$16 sps:$4 sm:$0xff]  }
  0x18   :  { %873 = vmatpush3.bf16.msra.mxu0 %v1012_v22 }
  0x19   :  { %937 = vmatpush3.bf16.msra.mxu1 %v1013_v23  ;;  %874 = vmatprep.subr.bf16.mxu0 %v1014_v24 }
  0x1a   :  { %938 = vmatprep.subr.bf16.mxu1 %v1015_v25 }
  0x1c   :  { %875 = vmatpush3.bf16.msra.mxu0 %v1016_v26 }
  0x1d   :  { %939 = vmatpush3.bf16.msra.mxu1 %v1017_v27  ;;  %876 = vmatprep.subr.bf16.mxu0 %v1018_v28 }
  0x1e   :  { %940 = vmatprep.subr.bf16.mxu1 %v1019_v29 }
  0x20   :  { %877 = vmatpush3.bf16.msra.mxu0 %v1020_v30 }
  0x21   :  { %941 = vmatpush3.bf16.msra.mxu1 %v1021_v31 }
  0x23   :  { %503 = vmatmul.mubr.bf16.vlgmr.msra.gmra.mrb[0].mxu0 %v1022_v32 }
  0x24   :  { %600 = vmatmul.mubr.bf16.vlgmr.msra.gmra.mrb[0].mxu1 %v1025_v34  ;;  %510 = vmatprep.mubr.bf16.mxu0 %v1028_v36 }
  0x25   :  { %607 = vmatprep.mubr.bf16.mxu1 %v1030_v37 }
  0x2b   :  { %511 = vmatmul.mubr.bf16.gmra.mrb[4].mxu0 %v1032_v38 }
  0x2c   :  { %608 = vmatmul.mubr.bf16.gmra.mrb[4].mxu1 %v1033_v39  ;;  %518 = vmatprep.mubr.bf16.mxu0 %v1034_v40 }
  0x2d   :  { %615 = vmatprep.mubr.bf16.mxu1 %v1036_v41 }
  0x33   :  { %519 = vmatmul.mubr.bf16.gmra.mrb[8].mxu0 %v1038_v42 }
  0x34   :  { %616 = vmatmul.mubr.bf16.gmra.mrb[8].mxu1 %v1039_v43  ;;  %526 = vmatprep.mubr.bf16.mxu0 %v1040_v44 }
  0x35   :  { %623 = vmatprep.mubr.bf16.mxu1 %v1042_v45 }
  0x3b   :  { %527 = vmatmul.mubr.bf16.gmra.mrb[12].mxu0 %v1044_v46 }
  0x3c   :  { %624 = vmatmul.mubr.bf16.gmra.mrb[12].mxu1 %v1045_v47  ;;  %534 = vmatprep.mubr.bf16.mxu0 %v1046_v48 }
  0x3d   :  { %631 = vmatprep.mubr.bf16.mxu1 %v1048_v49 }
  0x43   :  { %535 = vmatmul.mubr.bf16.gmra.mrb[16].mxu0 %v1050_v50 }
  0x44   :  { %632 = vmatmul.mubr.bf16.gmra.mrb[16].mxu1 %v1051_v51  ;;  %542 = vmatprep.mubr.bf16.mxu0 %v1052_v52 }
  0x45   :  { %639 = vmatprep.mubr.bf16.mxu1 %v1054_v53 }
  0x4b   :  { %543 = vmatmul.mubr.bf16.gmra.mrb[20].mxu0 %v1056_v54 }
  0x4c   :  { %640 = vmatmul.mubr.bf16.gmra.mrb[20].mxu1 %v1057_v55  ;;  %550 = vmatprep.mubr.bf16.mxu0 %v1058_v56 }
  0x4d   :  { %647 = vmatprep.mubr.bf16.mxu1 %v1060_v57 }
  0x53   :  { %551 = vmatmul.mubr.bf16.gmra.mrb[24].mxu0 %v1062_v58 }
  0x54   :  { %648 = vmatmul.mubr.bf16.gmra.mrb[24].mxu1 %v1063_v59  ;;  %558 = vmatprep.mubr.bf16.mxu0 %v1064_v60 }
  0x55   :  { %655 = vmatprep.mubr.bf16.mxu1 %v1066_v61 }
  0x5b   :  { %559 = vmatmul.mubr.bf16.gmra.mrb[28].mxu0 %v1068_v62 }
  0x5c   :  { %656 = vmatmul.mubr.bf16.gmra.mrb[28].mxu1 %v1069_v63 }
  0xf6   :  { %v878_v0 = vpop.f32.mrb[0].mxu0 }
  0xf7   :  { %v942_v1 = vpop.f32.mrb[0].mxu1  ;;  %v879_v3 = vpop.f32.mrb[1].mxu0 }
  0xf8   :  { %v880_v4 = vadd.f32 %v879_v3, %v878_v0  ;;  %v943_v5 = vpop.f32.mrb[1].mxu1  ;;  %v881_v6 = vpop.f32.mrb[2].mxu0 }
  0xf9   :  { %v944_v7 = vadd.f32 %v943_v5, %v942_v1  ;;  %v945_v8 = vpop.f32.mrb[2].mxu1  ;;  %v882_v9 = vpop.f32.mrb[3].mxu0 }
  0xfa   :  { %v505_v10 = vadd.f32 %v880_v4, %v1285_v2  ;;  %v883_v11 = vadd.f32 %v882_v9, %v881_v6  ;;  %v946_v12 = vpop.f32.mrb[3].mxu1 }
  0xfb   :  { %v947_v13 = vadd.f32 %v946_v12, %v945_v8 }
  0xfc   :  { %v602_v14 = vadd.f32 %v944_v7, %v505_v10  ;;  %v508_v15 = vadd.f32 %v883_v11, %v1285_v2 }
  0xfe   :  { %v664_v16 = vmax.f32 %v602_v14, 0.0  ;;  %v605_v17 = vadd.f32 %v947_v13, %v508_v15  ;;  %v884_v18 = vpop.f32.mrb[4].mxu0 }
  0xff   :  { %v948_v19 = vpop.f32.mrb[4].mxu1  ;;  %v885_v20 = vpop.f32.mrb[5].mxu0 }
 0x100   :  { %v846_v21 = vpack.c.bf16 %v664_v16, %v664_v16  ;;  %v665_v22 = vmax.f32 %v605_v17, 0.0  ;;  %v886_v23 = vadd.f32 %v885_v20, %v884_v18  ;;  %v949_v24 = vpop.f32.mrb[5].mxu1  ;;  %v887_v25 = vpop.f32.mrb[6].mxu0 }
 0x101   :  { %v950_v26 = vadd.f32 %v949_v24, %v948_v19  ;;  %v951_v27 = vpop.f32.mrb[6].mxu1  ;;  %v888_v28 = vpop.f32.mrb[7].mxu0 }
 0x102   :  { %745 = vst.msk [vmem:[%s1370_s3] sm:$0xf] %vm744_vm0, %v846_v21  ;;  %v847_v29 = vpack.c.bf16 %v665_v22, %v665_v22  ;;  %v513_v30 = vadd.f32 %v886_v23, %v1285_v2  ;;  %v889_v31 = vadd.f32 %v888_v28, %v887_v25  ;;  %v952_v32 = vpop.f32.mrb[7].mxu1 }
 0x103   :  { %v953_v33 = vadd.f32 %v952_v32, %v951_v27 }
 0x104   :  { %746 = vst.msk [vmem:[%s1370_s3 + $0x4] sm:$0xf] %vm744_vm0, %v847_v29  ;;  %v610_v34 = vadd.f32 %v950_v26, %v513_v30  ;;  %v516_v35 = vadd.f32 %v889_v31, %v1285_v2 }
 0x106   :  { %v666_v36 = vmax.f32 %v610_v34, 0.0  ;;  %v613_v37 = vadd.f32 %v953_v33, %v516_v35  ;;  %v890_v38 = vpop.f32.mrb[8].mxu0 }
 0x107   :  { %v954_v39 = vpop.f32.mrb[8].mxu1  ;;  %v891_v40 = vpop.f32.mrb[9].mxu0 }
 0x108   :  { %v848_v41 = vpack.c.bf16 %v666_v36, %v666_v36  ;;  %v667_v42 = vmax.f32 %v613_v37, 0.0  ;;  %v892_v43 = vadd.f32 %v891_v40, %v890_v38  ;;  %v955_v44 = vpop.f32.mrb[9].mxu1  ;;  %v893_v45 = vpop.f32.mrb[10].mxu0 }
 0x109   :  { %v956_v46 = vadd.f32 %v955_v44, %v954_v39  ;;  %v957_v47 = vpop.f32.mrb[10].mxu1  ;;  %v894_v48 = vpop.f32.mrb[11].mxu0 }
 0x10a   :  { %747 = vst.msk [vmem:[%s1370_s3 + $0x8] sm:$0xf] %vm744_vm0, %v848_v41  ;;  %v849_v49 = vpack.c.bf16 %v667_v42, %v667_v42  ;;  %v521_v50 = vadd.f32 %v892_v43, %v1285_v2  ;;  %v895_v51 = vadd.f32 %v894_v48, %v893_v45  ;;  %v958_v52 = vpop.f32.mrb[11].mxu1 }
 0x10b   :  { %v959_v53 = vadd.f32 %v958_v52, %v957_v47 }
 0x10c   :  { %748 = vst.msk [vmem:[%s1370_s3 + $0xc] sm:$0xf] %vm744_vm0, %v849_v49  ;;  %v618_v54 = vadd.f32 %v956_v46, %v521_v50  ;;  %v524_v55 = vadd.f32 %v895_v51, %v1285_v2 }
 0x10e   :  { %v668_v56 = vmax.f32 %v618_v54, 0.0  ;;  %v621_v57 = vadd.f32 %v959_v53, %v524_v55  ;;  %v896_v58 = vpop.f32.mrb[12].mxu0 }
 0x10f   :  { %v960_v59 = vpop.f32.mrb[12].mxu1  ;;  %v897_v60 = vpop.f32.mrb[13].mxu0 }
 0x110   :  { %v850_v61 = vpack.c.bf16 %v668_v56, %v668_v56  ;;  %v669_v62 = vmax.f32 %v621_v57, 0.0  ;;  %v898_v63 = vadd.f32 %v897_v60, %v896_v58  ;;  %v961_v0 = vpop.f32.mrb[13].mxu1  ;;  %v899_v1 = vpop.f32.mrb[14].mxu0 }
 0x111   :  { %v962_v3 = vadd.f32 %v961_v0, %v960_v59  ;;  %v963_v4 = vpop.f32.mrb[14].mxu1  ;;  %v900_v5 = vpop.f32.mrb[15].mxu0 }
 0x112   :  { %749 = vst.msk [vmem:[%s1370_s3 + $0x10] sm:$0xf] %vm744_vm0, %v850_v61  ;;  %v851_v6 = vpack.c.bf16 %v669_v62, %v669_v62  ;;  %v529_v7 = vadd.f32 %v898_v63, %v1285_v2  ;;  %v901_v8 = vadd.f32 %v900_v5, %v899_v1  ;;  %v964_v9 = vpop.f32.mrb[15].mxu1 }
 0x113   :  { %v965_v10 = vadd.f32 %v964_v9, %v963_v4 }
 0x114   :  { %750 = vst.msk [vmem:[%s1370_s3 + $0x14] sm:$0xf] %vm744_vm0, %v851_v6  ;;  %v626_v11 = vadd.f32 %v962_v3, %v529_v7  ;;  %v532_v12 = vadd.f32 %v901_v8, %v1285_v2 }
 0x116   :  { %v670_v13 = vmax.f32 %v626_v11, 0.0  ;;  %v629_v14 = vadd.f32 %v965_v10, %v532_v12  ;;  %v902_v15 = vpop.f32.mrb[16].mxu0 }
 0x117   :  { %v966_v16 = vpop.f32.mrb[16].mxu1  ;;  %v903_v17 = vpop.f32.mrb[17].mxu0 }
 0x118   :  { %v852_v18 = vpack.c.bf16 %v670_v13, %v670_v13  ;;  %v671_v19 = vmax.f32 %v629_v14, 0.0  ;;  %v904_v20 = vadd.f32 %v903_v17, %v902_v15  ;;  %v967_v21 = vpop.f32.mrb[17].mxu1  ;;  %v905_v22 = vpop.f32.mrb[18].mxu0 }
 0x119   :  { %v968_v23 = vadd.f32 %v967_v21, %v966_v16  ;;  %v969_v24 = vpop.f32.mrb[18].mxu1  ;;  %v906_v25 = vpop.f32.mrb[19].mxu0 }
 0x11a   :  { %751 = vst.msk [vmem:[%s1370_s3 + $0x18] sm:$0xf] %vm744_vm0, %v852_v18  ;;  %v853_v26 = vpack.c.bf16 %v671_v19, %v671_v19  ;;  %v537_v27 = vadd.f32 %v904_v20, %v1285_v2  ;;  %v907_v28 = vadd.f32 %v906_v25, %v905_v22  ;;  %v970_v29 = vpop.f32.mrb[19].mxu1 }
 0x11b   :  { %v971_v30 = vadd.f32 %v970_v29, %v969_v24 }
 0x11c   :  { %752 = vst.msk [vmem:[%s1370_s3 + $0x1c] sm:$0xf] %vm744_vm0, %v853_v26  ;;  %v634_v31 = vadd.f32 %v968_v23, %v537_v27  ;;  %v540_v32 = vadd.f32 %v907_v28, %v1285_v2 }
 0x11e   :  { %v672_v33 = vmax.f32 %v634_v31, 0.0  ;;  %v637_v34 = vadd.f32 %v971_v30, %v540_v32  ;;  %v908_v35 = vpop.f32.mrb[20].mxu0 }
 0x11f   :  { %v972_v36 = vpop.f32.mrb[20].mxu1  ;;  %v909_v37 = vpop.f32.mrb[21].mxu0 }
 0x120   :  { %v854_v38 = vpack.c.bf16 %v672_v33, %v672_v33  ;;  %v673_v39 = vmax.f32 %v637_v34, 0.0  ;;  %v910_v40 = vadd.f32 %v909_v37, %v908_v35  ;;  %v973_v41 = vpop.f32.mrb[21].mxu1  ;;  %v911_v42 = vpop.f32.mrb[22].mxu0 }
 0x121   :  { %v974_v43 = vadd.f32 %v973_v41, %v972_v36  ;;  %v975_v44 = vpop.f32.mrb[22].mxu1  ;;  %v912_v45 = vpop.f32.mrb[23].mxu0 }
 0x122   :  { %753 = vst.msk [vmem:[%s1370_s3 + $0x20] sm:$0xf] %vm744_vm0, %v854_v38  ;;  %v855_v46 = vpack.c.bf16 %v673_v39, %v673_v39  ;;  %v545_v47 = vadd.f32 %v910_v40, %v1285_v2  ;;  %v913_v48 = vadd.f32 %v912_v45, %v911_v42  ;;  %v976_v49 = vpop.f32.mrb[23].mxu1 }
 0x123   :  { %v977_v50 = vadd.f32 %v976_v49, %v975_v44 }
 0x124   :  { %754 = vst.msk [vmem:[%s1370_s3 + $0x24] sm:$0xf] %vm744_vm0, %v855_v46  ;;  %v642_v51 = vadd.f32 %v974_v43, %v545_v47  ;;  %v548_v52 = vadd.f32 %v913_v48, %v1285_v2 }
 0x126   :  { %v674_v53 = vmax.f32 %v642_v51, 0.0  ;;  %v645_v54 = vadd.f32 %v977_v50, %v548_v52  ;;  %v914_v55 = vpop.f32.mrb[24].mxu0 }
 0x127   :  { %v978_v56 = vpop.f32.mrb[24].mxu1  ;;  %v915_v57 = vpop.f32.mrb[25].mxu0 }
 0x128   :  { %v856_v58 = vpack.c.bf16 %v674_v53, %v674_v53  ;;  %v675_v59 = vmax.f32 %v645_v54, 0.0  ;;  %v916_v60 = vadd.f32 %v915_v57, %v914_v55  ;;  %v979_v61 = vpop.f32.mrb[25].mxu1  ;;  %v917_v62 = vpop.f32.mrb[26].mxu0 }
 0x129   :  { %v980_v63 = vadd.f32 %v979_v61, %v978_v56  ;;  %v981_v0 = vpop.f32.mrb[26].mxu1  ;;  %v918_v1 = vpop.f32.mrb[27].mxu0 }
 0x12a   :  { %755 = vst.msk [vmem:[%s1370_s3 + $0x28] sm:$0xf] %vm744_vm0, %v856_v58  ;;  %v857_v3 = vpack.c.bf16 %v675_v59, %v675_v59  ;;  %v553_v4 = vadd.f32 %v916_v60, %v1285_v2  ;;  %v919_v5 = vadd.f32 %v918_v1, %v917_v62  ;;  %v982_v6 = vpop.f32.mrb[27].mxu1 }
 0x12b   :  { %v983_v7 = vadd.f32 %v982_v6, %v981_v0 }
 0x12c   :  { %756 = vst.msk [vmem:[%s1370_s3 + $0x2c] sm:$0xf] %vm744_vm0, %v857_v3  ;;  %v650_v8 = vadd.f32 %v980_v63, %v553_v4  ;;  %v556_v9 = vadd.f32 %v919_v5, %v1285_v2 }
 0x12e   :  { %v676_v10 = vmax.f32 %v650_v8, 0.0  ;;  %v653_v11 = vadd.f32 %v983_v7, %v556_v9  ;;  %v920_v12 = vpop.f32.mrb[28].mxu0 }
 0x12f   :  { %v984_v13 = vpop.f32.mrb[28].mxu1  ;;  %v921_v14 = vpop.f32.mrb[29].mxu0 }
 0x130   :  { %v858_v15 = vpack.c.bf16 %v676_v10, %v676_v10  ;;  %v677_v16 = vmax.f32 %v653_v11, 0.0  ;;  %v922_v17 = vadd.f32 %v921_v14, %v920_v12  ;;  %v985_v18 = vpop.f32.mrb[29].mxu1  ;;  %v923_v19 = vpop.f32.mrb[30].mxu0 }
 0x131   :  { %v986_v20 = vadd.f32 %v985_v18, %v984_v13  ;;  %v987_v21 = vpop.f32.mrb[30].mxu1  ;;  %v924_v22 = vpop.f32.mrb[31].mxu0 }
 0x132   :  { %757 = vst.msk [vmem:[%s1370_s3 + $0x30] sm:$0xf] %vm744_vm0, %v858_v15  ;;  %v859_v23 = vpack.c.bf16 %v677_v16, %v677_v16  ;;  %v561_v24 = vadd.f32 %v922_v17, %v1285_v2  ;;  %v925_v25 = vadd.f32 %v924_v22, %v923_v19  ;;  %v988_v26 = vpop.f32.mrb[31].mxu1 }
 0x133   :  { %v989_v27 = vadd.f32 %v988_v26, %v987_v21 }
 0x134   :  { %758 = vst.msk [vmem:[%s1370_s3 + $0x34] sm:$0xf] %vm744_vm0, %v859_v23  ;;  %v658_v28 = vadd.f32 %v986_v20, %v561_v24  ;;  %v564_v29 = vadd.f32 %v925_v25, %v1285_v2 }
 0x136   :  { %v678_v30 = vmax.f32 %v658_v28, 0.0  ;;  %v661_v31 = vadd.f32 %v989_v27, %v564_v29 }
 0x138   :  { %v860_v32 = vpack.c.bf16 %v678_v30, %v678_v30  ;;  %v679_v33 = vmax.f32 %v661_v31, 0.0 }
 0x13a   :  { %759 = vst.msk [vmem:[%s1370_s3 + $0x38] sm:$0xf] %vm744_vm0, %v860_v32  ;;  %v861_v34 = vpack.c.bf16 %v679_v33, %v679_v33 }
 0x13c   :  { %760 = vst.msk [vmem:[%s1370_s3 + $0x3c] sm:$0xf] %vm744_vm0, %v861_v34 }

// kernel: beta_vae_b_forward.12
= control target key start
LH: loop header
LB: loop body
LE: loop exit
PB: predicated region body
PF: predicated region fallthrough
CT: control target
= control target key end

     0   :  { %vm444_vm0 = vcmask 257024   ;;  %s761_s1 = inlined_call_operand.vmem [shape: bf16[512,32], index: 1, kind: input, shape index: {}]   ;;  %s762_s0 = inlined_call_operand.vmem [shape: bf16[32,512], index: 0, kind: input, shape index: {}]   ;;  %s763_s2 = inlined_call_operand.vmem [shape: f32[1,32], index: 2, kind: input, shape index: {}]   ;;  %s764_s3 = inlined_call_operand.vmem [shape: bf16[32,32], index: 3, kind: output, shape index: {}]  }
   0x1   :  { %v558_v0 = vld [vmem:[%s761_s1 + $0x40] sm:$0xff]   ;;  %v562_v4 = vld [vmem:[%s761_s1 + $0x48] sm:$0xff]   ;;  %v566_v8 = vld [vmem:[%s761_s1 + $0x50] sm:$0xff]  }
   0x2   :  { %v559_v1 = vld [vmem:[%s761_s1 + $0xc0] sm:$0xff]   ;;  %502 = vmatprep.subr.bf16.mxu0 %v558_v0  ;;  %v563_v5 = vld [vmem:[%s761_s1 + $0xc8] sm:$0xff]   ;;  %v567_v9 = vld [vmem:[%s761_s1 + $0xd0] sm:$0xff]  }
   0x3   :  { %v560_v2 = vld [vmem:[%s761_s1] sm:$0xff]   ;;  %530 = vmatprep.subr.bf16.mxu1 %v559_v1  ;;  %v564_v6 = vld [vmem:[%s761_s1 + $0x8] sm:$0xff]   ;;  %v568_v10 = vld [vmem:[%s761_s1 + $0x10] sm:$0xff]  }
   0x4   :  { %v561_v3 = vld [vmem:[%s761_s1 + $0x80] sm:$0xff]   ;;  %503 = vmatpush3.bf16.msra.mxu0 %v560_v2  ;;  %v565_v7 = vld [vmem:[%s761_s1 + $0x88] sm:$0xff]   ;;  %v569_v11 = vld [vmem:[%s761_s1 + $0x90] sm:$0xff]  }
   0x5   :  { %531 = vmatpush3.bf16.msra.mxu1 %v561_v3  ;;  %504 = vmatprep.subr.bf16.mxu0 %v562_v4  ;;  %v570_v12 = vld [vmem:[%s761_s1 + $0x58] sm:$0xff]   ;;  %v574_v16 = vld [vmem:[%s761_s1 + $0x60] sm:$0xff]   ;;  %v578_v20 = vld [vmem:[%s761_s1 + $0x68] sm:$0xff]  }
   0x6   :  { %532 = vmatprep.subr.bf16.mxu1 %v563_v5  ;;  %v571_v13 = vld [vmem:[%s761_s1 + $0xd8] sm:$0xff]   ;;  %v575_v17 = vld [vmem:[%s761_s1 + $0xe0] sm:$0xff]   ;;  %v579_v21 = vld [vmem:[%s761_s1 + $0xe8] sm:$0xff]  }
   0x7   :  { %v572_v14 = vld [vmem:[%s761_s1 + $0x18] sm:$0xff]   ;;  %v576_v18 = vld [vmem:[%s761_s1 + $0x20] sm:$0xff]   ;;  %v580_v22 = vld [vmem:[%s761_s1 + $0x28] sm:$0xff]  }
   0x8   :  { %505 = vmatpush3.bf16.msra.mxu0 %v564_v6  ;;  %v573_v15 = vld [vmem:[%s761_s1 + $0x98] sm:$0xff]   ;;  %v577_v19 = vld [vmem:[%s761_s1 + $0xa0] sm:$0xff]   ;;  %v581_v23 = vld [vmem:[%s761_s1 + $0xa8] sm:$0xff]  }
   0x9   :  { %533 = vmatpush3.bf16.msra.mxu1 %v565_v7  ;;  %506 = vmatprep.subr.bf16.mxu0 %v566_v8  ;;  %v582_v24 = vld [vmem:[%s761_s1 + $0x70] sm:$0xff]   ;;  %v586_v28 = vld [vmem:[%s761_s1 + $0x78] sm:$0xff]   ;;  %v453_v42 = vld [vmem:[%s763_s2] ss:$0 sm:$0xff] }
   0xa   :  { %534 = vmatprep.subr.bf16.mxu1 %v567_v9  ;;  %v583_v25 = vld [vmem:[%s761_s1 + $0xf0] sm:$0xff]   ;;  %v587_v29 = vld [vmem:[%s761_s1 + $0xf8] sm:$0xff]  }
   0xb   :  { %v584_v26 = vld [vmem:[%s761_s1 + $0x30] sm:$0xff]   ;;  %v588_v30 = vld [vmem:[%s761_s1 + $0x38] sm:$0xff]  }
   0xc   :  { %507 = vmatpush3.bf16.msra.mxu0 %v568_v10  ;;  %v585_v27 = vld [vmem:[%s761_s1 + $0xb0] sm:$0xff]   ;;  %v589_v31 = vld [vmem:[%s761_s1 + $0xb8] sm:$0xff]  }
   0xd   :  { %535 = vmatpush3.bf16.msra.mxu1 %v569_v11  ;;  %508 = vmatprep.subr.bf16.mxu0 %v570_v12  ;;  %v590_v32 = vld [vmem:[%s762_s0] ss:$16 sps:$4 sm:$0xff]   ;;  %v592_v33 = vld [vmem:[%s762_s0 + $0x4] ss:$16 sps:$4 sm:$0xff]   ;;  %v593_v34 = vld [vmem:[%s762_s0 + $0x8] ss:$16 sps:$4 sm:$0xff]  }
   0xe   :  { %536 = vmatprep.subr.bf16.mxu1 %v571_v13  ;;  %v595_v35 = vld [vmem:[%s762_s0 + $0xc] ss:$16 sps:$4 sm:$0xff]   ;;  %358 = vmatprep.mubr.bf16.mxu0 %v592_v33  ;;  %v596_v36 = vld [vmem:[%s762_s0 + $0x24] ss:$16 sps:$4 sm:$0xff]   ;;  %v600_v38 = vld [vmem:[%s762_s0 + $0x20] ss:$16 sps:$4 sm:$0xff]  }
   0xf   :  { %407 = vmatprep.mubr.bf16.mxu1 %v595_v35  ;;  %v598_v37 = vld [vmem:[%s762_s0 + $0x2c] ss:$16 sps:$4 sm:$0xff]   ;;  %v601_v39 = vld [vmem:[%s762_s0 + $0x28] ss:$16 sps:$4 sm:$0xff]  }
  0x10   :  { %509 = vmatpush3.bf16.msra.mxu0 %v572_v14 }
  0x11   :  { %537 = vmatpush3.bf16.msra.mxu1 %v573_v15  ;;  %510 = vmatprep.subr.bf16.mxu0 %v574_v16 }
  0x12   :  { %538 = vmatprep.subr.bf16.mxu1 %v575_v17 }
  0x14   :  { %511 = vmatpush3.bf16.msra.mxu0 %v576_v18 }
  0x15   :  { %539 = vmatpush3.bf16.msra.mxu1 %v577_v19  ;;  %512 = vmatprep.subr.bf16.mxu0 %v578_v20 }
  0x16   :  { %540 = vmatprep.subr.bf16.mxu1 %v579_v21 }
  0x18   :  { %513 = vmatpush3.bf16.msra.mxu0 %v580_v22 }
  0x19   :  { %541 = vmatpush3.bf16.msra.mxu1 %v581_v23  ;;  %514 = vmatprep.subr.bf16.mxu0 %v582_v24 }
  0x1a   :  { %542 = vmatprep.subr.bf16.mxu1 %v583_v25 }
  0x1c   :  { %515 = vmatpush3.bf16.msra.mxu0 %v584_v26 }
  0x1d   :  { %543 = vmatpush3.bf16.msra.mxu1 %v585_v27  ;;  %516 = vmatprep.subr.bf16.mxu0 %v586_v28 }
  0x1e   :  { %544 = vmatprep.subr.bf16.mxu1 %v587_v29 }
  0x20   :  { %517 = vmatpush3.bf16.msra.mxu0 %v588_v30 }
  0x21   :  { %545 = vmatpush3.bf16.msra.mxu1 %v589_v31 }
  0x23   :  { %359 = vmatmul.mubr.bf16.vlgmr.msra.gmra.mrb[0].mxu0 %v590_v32 }
  0x24   :  { %408 = vmatmul.mubr.bf16.vlgmr.msra.gmra.mrb[0].mxu1 %v593_v34  ;;  %366 = vmatprep.mubr.bf16.mxu0 %v596_v36 }
  0x25   :  { %415 = vmatprep.mubr.bf16.mxu1 %v598_v37 }
  0x2b   :  { %367 = vmatmul.mubr.bf16.gmra.mrb[4].mxu0 %v600_v38 }
  0x2c   :  { %416 = vmatmul.mubr.bf16.gmra.mrb[4].mxu1 %v601_v39 }
  0xf6   :  { %v518_v40 = vpop.f32.mrb[0].mxu0 }
  0xf7   :  { %v546_v41 = vpop.f32.mrb[0].mxu1  ;;  %v519_v43 = vpop.f32.mrb[1].mxu0 }
  0xf8   :  { %v520_v44 = vadd.f32 %v519_v43, %v518_v40  ;;  %v547_v45 = vpop.f32.mrb[1].mxu1  ;;  %v521_v46 = vpop.f32.mrb[2].mxu0 }
  0xf9   :  { %v548_v47 = vadd.f32 %v547_v45, %v546_v41  ;;  %v549_v48 = vpop.f32.mrb[2].mxu1  ;;  %v522_v49 = vpop.f32.mrb[3].mxu0 }
  0xfa   :  { %v361_v50 = vadd.f32 %v520_v44, %v453_v42  ;;  %v523_v51 = vadd.f32 %v522_v49, %v521_v46  ;;  %v550_v52 = vpop.f32.mrb[3].mxu1 }
  0xfb   :  { %v551_v53 = vadd.f32 %v550_v52, %v549_v48 }
  0xfc   :  { %v410_v54 = vadd.f32 %v548_v47, %v361_v50  ;;  %v364_v55 = vadd.f32 %v523_v51, %v453_v42 }
  0xfe   :  { %v424_v56 = vmax.f32 %v410_v54, 0.0  ;;  %v413_v57 = vadd.f32 %v551_v53, %v364_v55  ;;  %v524_v58 = vpop.f32.mrb[4].mxu0 }
  0xff   :  { %v552_v59 = vpop.f32.mrb[4].mxu1  ;;  %v525_v60 = vpop.f32.mrb[5].mxu0 }
 0x100   :  { %v498_v61 = vpack.c.bf16 %v424_v56, %v424_v56  ;;  %v425_v62 = vmax.f32 %v413_v57, 0.0  ;;  %v526_v63 = vadd.f32 %v525_v60, %v524_v58  ;;  %v553_v0 = vpop.f32.mrb[5].mxu1  ;;  %v527_v1 = vpop.f32.mrb[6].mxu0 }
 0x101   :  { %v554_v2 = vadd.f32 %v553_v0, %v552_v59  ;;  %v555_v3 = vpop.f32.mrb[6].mxu1  ;;  %v528_v4 = vpop.f32.mrb[7].mxu0 }
 0x102   :  { %445 = vst.msk [vmem:[%s764_s3] sm:$0xf] %vm444_vm0, %v498_v61  ;;  %v499_v5 = vpack.c.bf16 %v425_v62, %v425_v62  ;;  %v369_v6 = vadd.f32 %v526_v63, %v453_v42  ;;  %v529_v7 = vadd.f32 %v528_v4, %v527_v1  ;;  %v556_v8 = vpop.f32.mrb[7].mxu1 }
 0x103   :  { %v557_v9 = vadd.f32 %v556_v8, %v555_v3 }
 0x104   :  { %446 = vst.msk [vmem:[%s764_s3 + $0x4] sm:$0xf] %vm444_vm0, %v499_v5  ;;  %v418_v10 = vadd.f32 %v554_v2, %v369_v6  ;;  %v372_v11 = vadd.f32 %v529_v7, %v453_v42 }
 0x106   :  { %v426_v12 = vmax.f32 %v418_v10, 0.0  ;;  %v421_v13 = vadd.f32 %v557_v9, %v372_v11 }
 0x108   :  { %v500_v14 = vpack.c.bf16 %v426_v12, %v426_v12  ;;  %v427_v15 = vmax.f32 %v421_v13, 0.0 }
 0x10a   :  { %447 = vst.msk [vmem:[%s764_s3 + $0x8] sm:$0xf] %vm444_vm0, %v500_v14  ;;  %v501_v16 = vpack.c.bf16 %v427_v15, %v427_v15 }
 0x10c   :  { %448 = vst.msk [vmem:[%s764_s3 + $0xc] sm:$0xf] %vm444_vm0, %v501_v16 }

// kernel: beta_vae_b_forward.14
= control target key start
LH: loop header
LB: loop body
LE: loop exit
PB: predicated region body
PF: predicated region fallthrough
CT: control target
= control target key end

     0   :  { %vm204_vm0 = vcmask 261120   ;;  %s550_s1 = inlined_call_operand.vmem [shape: bf16[288,128], index: 1, kind: input, shape index: {}]   ;;  %s551_s0 = inlined_call_operand.vmem [shape: bf16[32,288], index: 0, kind: input, shape index: {}]   ;;  %s552_s2 = inlined_call_operand.vmem [shape: f32[1,128], index: 2, kind: input, shape index: {}]   ;;  %s553_s3 = inlined_call_operand.vmem [shape: bf16[32,128], index: 3, kind: output, shape index: {}]  }
   0x1   :  { %v423_v0 = vld [vmem:[%s550_s1 + $0x40] sm:$0xff]   ;;  %v425_v2 = vld [vmem:[%s550_s1 + $0x48] sm:$0xff]   ;;  %v427_v4 = vld [vmem:[%s550_s1 + $0x50] sm:$0xff]  }
   0x2   :  { %v424_v1 = vld [vmem:[%s550_s1] sm:$0xff]   ;;  %383 = vmatprep.subr.bf16.mxu0 %v423_v0  ;;  %v426_v3 = vld [vmem:[%s550_s1 + $0x8] sm:$0xff]   ;;  %v428_v5 = vld [vmem:[%s550_s1 + $0x10] sm:$0xff]  }
   0x3   :  { %384 = vmatpush3.bf16.msra.mxu0 %v424_v1  ;;  %v429_v6 = vld [vmem:[%s550_s1 + $0x58] sm:$0xff]   ;;  %v431_v8 = vld [vmem:[%s550_s1 + $0x60] sm:$0xff]   ;;  %v433_v11 = vld [vmem:[%s550_s1 + $0x68] sm:$0xff]  }
   0x4   :  { %385 = vmatprep.subr.bf16.mxu0 %v425_v2  ;;  %v430_v7 = vld [vmem:[%s550_s1 + $0x18] sm:$0xff]   ;;  %v432_v9 = vld [vmem:[%s550_s1 + $0x20] sm:$0xff]   ;;  %v434_v12 = vld [vmem:[%s550_s1 + $0x28] sm:$0xff]  }
   0x5   :  { %v438_v10 = vld [vmem:[%s550_s1 + $0x80] sm:$0xff]   ;;  %v435_v13 = vld [vmem:[%s550_s1 + $0x70] sm:$0xff]   ;;  %v443_v15 = vld [vmem:[%s550_s1 + $0x88] sm:$0xff]  }
   0x6   :  { %415 = vmatprep.subr.bf16.mxu1 %v438_v10  ;;  %v442_v14 = vld [vmem:[%s551_s0 + $0x4] ss:$12 sps:$4 sm:$0xff]   ;;  %v444_v16 = vld [vmem:[%s551_s0 + $0x8] ss:$12 sps:$4 sm:$0xff]   ;;  %v445_v17 = vld [vmem:[%s551_s0 + $0x20] ss:$12 sps:$4 sm:$0xff]  }
   0x7   :  { %386 = vmatpush3.bf16.msra.mxu0 %v426_v3  ;;  %416 = vmatpush3.bf16.msra.mxu1 %v438_v10  ;;  %v436_v18 = vld [vmem:[%s550_s1 + $0x30] sm:$0xff]   ;;  %v437_v19 = vld [vmem:[%s550_s1 + $0x78] sm:$0xff]   ;;  %v440_v21 = vld [vmem:[%s551_s0] ss:$12 sps:$4 sm:$0xff]  }
   0x8   :  { %387 = vmatprep.subr.bf16.mxu0 %v427_v4  ;;  %243 = vmatprep.mubr.bf16.mxu0 %v442_v14  ;;  %v439_v20 = vld [vmem:[%s550_s1 + $0x38] sm:$0xff]   ;;  %v337_v30 = vld [vmem:[%s552_s2] ss:$0 sm:$0xff] }
   0x9   :  { %417 = vmatprep.subr.bf16.mxu1 %v443_v15  ;;  %419 = vmatprep.mubr.msk.bf16.mxu1 %vm204_vm0, %v444_v16  ;;  %v446_v22 = vld [vmem:[%s551_s0 + $0x1c] ss:$12 sps:$4 sm:$0xff]   ;;  %v448_v23 = vld [vmem:[%s551_s0 + $0x18] ss:$12 sps:$4 sm:$0xff]  }
   0xb   :  { %388 = vmatpush3.bf16.msra.mxu0 %v428_v5  ;;  %418 = vmatpush3.bf16.msra.mxu1 %v443_v15 }
   0xc   :  { %389 = vmatprep.subr.bf16.mxu0 %v429_v6 }
   0xe   :  { %420 = vmatmul.mubr.msk.bf16.vlgmr.msra.gmra.mrb[0].mxu1 %vm204_vm0, %v445_v17 }
   0xf   :  { %390 = vmatpush3.bf16.msra.mxu0 %v430_v7 }
  0x10   :  { %391 = vmatprep.subr.bf16.mxu0 %v431_v8 }
  0x13   :  { %392 = vmatpush3.bf16.msra.mxu0 %v432_v9 }
  0x14   :  { %393 = vmatprep.subr.bf16.mxu0 %v433_v11 }
  0x17   :  { %394 = vmatpush3.bf16.msra.mxu0 %v434_v12 }
  0x18   :  { %395 = vmatprep.subr.bf16.mxu0 %v435_v13 }
  0x1b   :  { %396 = vmatpush3.bf16.msra.mxu0 %v436_v18 }
  0x1c   :  { %397 = vmatprep.subr.bf16.mxu0 %v437_v19 }
  0x1f   :  { %398 = vmatpush3.bf16.msra.mxu0 %v439_v20 }
  0x22   :  { %244 = vmatmul.mubr.bf16.vlgmr.msra.gmra.mrb[0].mxu0 %v440_v21 }
  0x23   :  { %251 = vmatprep.mubr.bf16.mxu0 %v446_v22 }
  0x2a   :  { %252 = vmatmul.mubr.bf16.gmra.mrb[4].mxu0 %v448_v23 }
  0xe1   :  { %v421_v24 = vpop.f32.mrb[0].mxu1 }
  0xe2   :  { %v294_v25 = vpop.f32.mrb[1].mxu1 }
  0xe3   :  { %v422_v26 = vpop.f32.mrb[2].mxu1 }
  0xe4   :  { %v297_v27 = vpop.f32.mrb[3].mxu1 }
  0xf5   :  { %v399_v28 = vpop.f32.mrb[0].mxu0 }
  0xf6   :  { %v400_v29 = vpop.f32.mrb[1].mxu0 }
  0xf7   :  { %v401_v31 = vadd.f32 %v400_v29, %v399_v28  ;;  %v402_v32 = vpop.f32.mrb[2].mxu0 }
  0xf8   :  { %v403_v33 = vpop.f32.mrb[3].mxu0 }
  0xf9   :  { %v404_v34 = vadd.f32 %v403_v33, %v402_v32  ;;  %v246_v35 = vadd.f32 %v401_v31, %v337_v30 }
  0xfb   :  { %v295_v36 = vadd.f32 %v294_v25, %v246_v35  ;;  %v249_v37 = vadd.f32 %v404_v34, %v337_v30 }
  0xfd   :  { %v298_v38 = vadd.f32 %v297_v27, %v249_v37  ;;  %v405_v39 = vpop.f32.mrb[4].mxu0  ;;  %v309_v41 = vmax.f32 %v295_v36, 0.0 }
  0xfe   :  { %v406_v40 = vpop.f32.mrb[5].mxu0 }
  0xff   :  { %v310_v42 = vmax.f32 %v298_v38, 0.0  ;;  %v407_v43 = vadd.f32 %v406_v40, %v405_v39  ;;  %v408_v44 = vpop.f32.mrb[6].mxu0 }
 0x100   :  { %v409_v45 = vpop.f32.mrb[7].mxu0 }
 0x101   :  { %v375_v46 = vpack.c.bf16 %v310_v42, %v309_v41  ;;  %v254_v47 = vadd.f32 %v407_v43, %v337_v30  ;;  %v410_v48 = vadd.f32 %v409_v45, %v408_v44 }
 0x103   :  { %376 = vst [vmem:[%s553_s3] sm:$0xff] %v375_v46   ;;  %v303_v49 = vadd.f32 %v421_v24, %v254_v47  ;;  %v257_v50 = vadd.f32 %v410_v48, %v337_v30 }
 0x105   :  { %v306_v51 = vadd.f32 %v422_v26, %v257_v50  ;;  %v311_v52 = vmax.f32 %v303_v49, 0.0 }
 0x107   :  { %v312_v53 = vmax.f32 %v306_v51, 0.0 }
 0x109   :  { %v380_v54 = vpack.c.bf16 %v312_v53, %v311_v52 }
 0x10b   :  { %382 = vst [vmem:[%s553_s3 + $0x8] sm:$0xff] %v380_v54  }

// kernel: beta_vae_b_forward.13
= control target key start
LH: loop header
LB: loop body
LE: loop exit
PB: predicated region body
PF: predicated region fallthrough
CT: control target
= control target key end

     0   :  { %s3599_s0 = inlined_call_operand.vmem [shape: bf16[2,512], index: 0, kind: input, shape index: {}]   ;;  %s3600_s1 = inlined_call_operand.vmem [shape: f32[2,10], index: 1, kind: input, shape index: {}]   ;;  %s3601_s2 = inlined_call_operand.vmem [shape: bf16[512,256], index: 2, kind: input, shape index: {}]   ;;  %s3602_s3 = inlined_call_operand.vmem [shape: f32[1,256], index: 3, kind: input, shape index: {}]   ;;  %s3603_s4 = inlined_call_operand.vmem [shape: bf16[256,256], index: 4, kind: input, shape index: {}]   ;;  %s3604_s5 = inlined_call_operand.vmem [shape: f32[1,256], index: 5, kind: input, shape index: {}]   ;;  %s3605_s6 = inlined_call_operand.vmem [shape: bf16[256,10], index: 6, kind: input, shape index: {}]   ;;  %s3606_s7 = inlined_call_operand.vmem [shape: f32[1,10], index: 7, kind: input, shape index: {}]   ;;  %s3607_s8 = inlined_call_operand.vmem [shape: bf16[256,10], index: 8, kind: input, shape index: {}]   ;;  %s3608_s9 = inlined_call_operand.vmem [shape: f32[1,10], index: 9, kind: input, shape index: {}]   ;;  %s3609_s10 = inlined_call_operand.vmem [shape: bf16[10,256], index: 10, kind: input, shape index: {}]   ;;  %s3610_s11 = inlined_call_operand.vmem [shape: f32[1,256], index: 11, kind: input, shape index: {}]   ;;  %s3611_s12 = inlined_call_operand.vmem [shape: bf16[256,256], index: 12, kind: input, shape index: {}]   ;;  %s3612_s13 = inlined_call_operand.vmem [shape: f32[1,256], index: 13, kind: input, shape index: {}]   ;;  %s3613_s14 = inlined_call_operand.vmem [shape: bf16[256,512], index: 14, kind: input, shape index: {}]   ;;  %s3614_s15 = inlined_call_operand.vmem [shape: f32[1,512], index: 15, kind: input, shape index: {}]   ;;  %s3615_s16 = inlined_call_operand.vmem [shape: bf16[2,512], index: 16, kind: output, shape index: {0}]   ;;  %s3616_s17 = inlined_call_operand.hbm [shape: f32[2,10], index: 17, kind: output, shape index: {1}]   ;;  %s3617_s18 = inlined_call_operand.hbm [shape: f32[2,10], index: 18, kind: output, shape index: {2}]  }
   0x1   :  { %3619 = sst [smem:[#allocation8_spill]] %s3599_s0 }
   0x2   :  { %3620 = sst [smem:[#allocation9_spill]] %s3600_s1 }
   0x3   :  { %3621 = sst [smem:[#allocation10_spill]] %s3601_s2 }
   0x4   :  { %24 = vsyncpa [#allocation3], 0  ;;  %s3622_s29 = sld [smem:[#allocation10_spill]]  ;;  %v126_v9 = vlaneseq  ;;  %v2726_v10 = vmov 1966171168   ;;  %s3623_s27 = sld [smem:[#allocation8_spill]] }
   0x5   :  { %v146_v11 = vunpack.c.l.s4 %v2726_v10  ;;  %v2449_v34 = vld [vmem:[%s3603_s4 + $0x4] ss:$8 sps:$4 sm:$0xff]   ;;  %v2451_v35 = vld [vmem:[%s3603_s4] ss:$8 sps:$4 sm:$0xff]   ;;  %v2452_v36 = vld [vmem:[%s3603_s4 + $0x14] ss:$8 sps:$4 sm:$0xff]  }
   0x6   :  { %v2858_v14 = vshrl.u32 %v126_v9, 7  ;;  %775 = vmatprep.subr.bf16.mxu1 %v2449_v34  ;;  %v2454_v38 = vld [vmem:[%s3603_s4 + $0x10] ss:$8 sps:$4 sm:$0xff]   ;;  %v2455_v40 = vld [vmem:[%s3603_s4 + $0x24] ss:$8 sps:$4 sm:$0xff]  }
   0x7   :  { %v147_v15 = vunpack.c.0.s8 %v146_v11  ;;  %776 = vmatpush1.bf16.msra.mxu1 %v2451_v35  ;;  %v2457_v42 = vld [vmem:[%s3603_s4 + $0x20] ss:$8 sps:$4 sm:$0xff]   ;;  %v2458_v44 = vld [vmem:[%s3603_s4 + $0x34] ss:$8 sps:$4 sm:$0xff]   ;;  %v2460_v46 = vld [vmem:[%s3603_s4 + $0x30] ss:$8 sps:$4 sm:$0xff]  }
   0x8   :  { %777 = vmatprep.subr.bf16.mxu1 %v2452_v36  ;;  %v2461_v48 = vld [vmem:[%s3603_s4 + $0x44] ss:$8 sps:$4 sm:$0xff]   ;;  %v2463_v50 = vld [vmem:[%s3603_s4 + $0x40] ss:$8 sps:$4 sm:$0xff]   ;;  %v2464_v52 = vld [vmem:[%s3603_s4 + $0x54] ss:$8 sps:$4 sm:$0xff]  }
   0x9   :  { %v2867_v18 = vsub.s32 %v147_v15, %v2858_v14  ;;  %v2466_v56 = vld [vmem:[%s3603_s4 + $0x50] ss:$8 sps:$4 sm:$0xff]   ;;  %v2467_v58 = vld [vmem:[%s3603_s4 + $0x64] ss:$8 sps:$4 sm:$0xff]   ;;  %v2469_v61 = vld [vmem:[%s3603_s4 + $0x60] ss:$8 sps:$4 sm:$0xff]  }
   0xa   :  { %v2353_v0 = vld [vmem:[%s3622_s29 + $0x4] ss:$8 sps:$4 sm:$0xff]   ;;  %v2355_v1 = vld [vmem:[%s3622_s29] ss:$8 sps:$4 sm:$0xff]   ;;  %v2356_v2 = vld [vmem:[%s3622_s29 + $0x14] ss:$8 sps:$4 sm:$0xff]  }
   0xb   :  { %485 = vmatprep.subr.bf16.mxu0 %v2353_v0  ;;  %v2358_v3 = vld [vmem:[%s3622_s29 + $0x10] ss:$8 sps:$4 sm:$0xff]   ;;  %v2359_v4 = vld [vmem:[%s3622_s29 + $0x24] ss:$8 sps:$4 sm:$0xff]   ;;  %v2361_v5 = vld [vmem:[%s3622_s29 + $0x20] ss:$8 sps:$4 sm:$0xff]   ;;  %778 = vmatpush1.bf16.msra.mxu1 %v2454_v38 }
   0xc   :  { %486 = vmatpush1.bf16.msra.mxu0 %v2355_v1  ;;  %v2362_v6 = vld [vmem:[%s3622_s29 + $0x34] ss:$8 sps:$4 sm:$0xff]   ;;  %v2364_v7 = vld [vmem:[%s3622_s29 + $0x30] ss:$8 sps:$4 sm:$0xff]   ;;  %v2365_v8 = vld [vmem:[%s3622_s29 + $0x44] ss:$8 sps:$4 sm:$0xff]   ;;  %779 = vmatprep.subr.bf16.mxu1 %v2455_v40 }
   0xd   :  { %487 = vmatprep.subr.bf16.mxu0 %v2356_v2  ;;  %v2367_v12 = vld [vmem:[%s3622_s29 + $0x40] ss:$8 sps:$4 sm:$0xff]   ;;  %v2368_v13 = vld [vmem:[%s3622_s29 + $0x54] ss:$8 sps:$4 sm:$0xff]   ;;  %v2370_v16 = vld [vmem:[%s3622_s29 + $0x50] ss:$8 sps:$4 sm:$0xff]  }
   0xe   :  { %v2371_v17 = vld [vmem:[%s3622_s29 + $0x64] ss:$8 sps:$4 sm:$0xff]   ;;  %v2872_v19 = vld.sshfl [vmem:[%s3623_s27] sm:$0x33 pattern:$0x75316420] }
   0xf   :  { %v144_v20 = vcombine.high %v2872_v19, %v2872_v19  ;;  %v2373_v21 = vld [vmem:[%s3622_s29 + $0x60] ss:$8 sps:$4 sm:$0xff]   ;;  %v2374_v22 = vld [vmem:[%s3622_s29 + $0x74] ss:$8 sps:$4 sm:$0xff]   ;;  %v2376_v24 = vld [vmem:[%s3622_s29 + $0x70] ss:$8 sps:$4 sm:$0xff]   ;;  %780 = vmatpush1.bf16.msra.mxu1 %v2457_v42  ;;  %v2978_v54 = vrot.slane %v2872_v19, %v2867_v18 }
  0x10   :  { %488 = vmatpush1.bf16.msra.mxu0 %v2358_v3  ;;  %v2377_v25 = vld [vmem:[%s3622_s29 + $0x84] ss:$8 sps:$4 sm:$0xff]   ;;  %v2379_v26 = vld [vmem:[%s3622_s29 + $0x80] ss:$8 sps:$4 sm:$0xff]   ;;  %v2380_v27 = vld [vmem:[%s3622_s29 + $0x94] ss:$8 sps:$4 sm:$0xff]   ;;  %781 = vmatprep.subr.bf16.mxu1 %v2458_v44 }
  0x11   :  { %489 = vmatprep.subr.bf16.mxu0 %v2359_v4  ;;  %v2883_v23 = vrot.slane %v144_v20, %v2867_v18  ;;  %v2382_v28 = vld [vmem:[%s3622_s29 + $0x90] ss:$8 sps:$4 sm:$0xff]   ;;  %v2383_v29 = vld [vmem:[%s3622_s29 + $0xa4] ss:$8 sps:$4 sm:$0xff]   ;;  %v2385_v30 = vld [vmem:[%s3622_s29 + $0xa0] ss:$8 sps:$4 sm:$0xff]  }
  0x12   :  { %v2386_v31 = vld [vmem:[%s3622_s29 + $0xb4] ss:$8 sps:$4 sm:$0xff]   ;;  %v2388_v32 = vld [vmem:[%s3622_s29 + $0xb0] ss:$8 sps:$4 sm:$0xff]   ;;  %v2389_v33 = vld [vmem:[%s3622_s29 + $0xc4] ss:$8 sps:$4 sm:$0xff]  }
  0x13   :  { %517 = vmatprep.mubr.bf16.mxu0 %v2883_v23  ;;  %v2391_v37 = vld [vmem:[%s3622_s29 + $0xc0] ss:$8 sps:$4 sm:$0xff]   ;;  %v2392_v39 = vld [vmem:[%s3622_s29 + $0xd4] ss:$8 sps:$4 sm:$0xff]   ;;  %v2394_v41 = vld [vmem:[%s3622_s29 + $0xd0] ss:$8 sps:$4 sm:$0xff]   ;;  %782 = vmatpush1.bf16.msra.mxu1 %v2460_v46  ;;  %v160_v57 = vcombine.high %v2883_v23, %v2883_v23 }
  0x14   :  { %490 = vmatpush1.bf16.msra.mxu0 %v2361_v5  ;;  %v2395_v43 = vld [vmem:[%s3622_s29 + $0xe4] ss:$8 sps:$4 sm:$0xff]   ;;  %v2397_v45 = vld [vmem:[%s3622_s29 + $0xe0] ss:$8 sps:$4 sm:$0xff]   ;;  %v2398_v47 = vld [vmem:[%s3622_s29 + $0xf4] ss:$8 sps:$4 sm:$0xff]   ;;  %783 = vmatprep.subr.bf16.mxu1 %v2461_v48 }
  0x15   :  { %491 = vmatprep.subr.bf16.mxu0 %v2362_v6  ;;  %v2400_v49 = vld [vmem:[%s3622_s29 + $0xf0] ss:$8 sps:$4 sm:$0xff]   ;;  %v2403_v51 = vld [vmem:[%s3622_s29 + $0x104] ss:$8 sps:$4 sm:$0xff]   ;;  %v2401_v53 = vld [vmem:[%s3622_s29 + $0x100] ss:$8 sps:$4 sm:$0xff]  }
  0x16   :  { %v2406_v55 = vld [vmem:[%s3622_s29 + $0x114] ss:$8 sps:$4 sm:$0xff]   ;;  %v2404_v59 = vld [vmem:[%s3622_s29 + $0x110] ss:$8 sps:$4 sm:$0xff]   ;;  %v2409_v60 = vld [vmem:[%s3622_s29 + $0x124] ss:$8 sps:$4 sm:$0xff]  }
  0x17   :  { %784 = vmatpush1.bf16.msra.mxu1 %v2463_v50  ;;  %v2470_v62 = vld [vmem:[%s3603_s4 + $0x74] ss:$8 sps:$4 sm:$0xff]   ;;  %v2407_v63 = vld [vmem:[%s3622_s29 + $0x120] ss:$8 sps:$4 sm:$0xff]   ;;  %v2472_v1 = vld [vmem:[%s3603_s4 + $0x70] ss:$8 sps:$4 sm:$0xff]  }
  0x18   :  { %492 = vmatpush1.bf16.msra.mxu0 %v2364_v7  ;;  %785 = vmatprep.subr.bf16.mxu1 %v2464_v52  ;;  %v2412_v0 = vld [vmem:[%s3622_s29 + $0x134] ss:$8 sps:$4 sm:$0xff]   ;;  %v2473_v2 = vld [vmem:[%s3603_s4 + $0x84] ss:$8 sps:$4 sm:$0xff]   ;;  %v2410_v3 = vld [vmem:[%s3622_s29 + $0x130] ss:$8 sps:$4 sm:$0xff]  }
  0x19   :  { %493 = vmatprep.subr.bf16.mxu0 %v2365_v8  ;;  %v2415_v4 = vld [vmem:[%s3622_s29 + $0x144] ss:$8 sps:$4 sm:$0xff]   ;;  %v2475_v5 = vld [vmem:[%s3603_s4 + $0x80] ss:$8 sps:$4 sm:$0xff]   ;;  %v2476_v6 = vld [vmem:[%s3603_s4 + $0x94] ss:$8 sps:$4 sm:$0xff]  }
  0x1a   :  { %v2413_v7 = vld [vmem:[%s3622_s29 + $0x140] ss:$8 sps:$4 sm:$0xff]   ;;  %v2418_v8 = vld [vmem:[%s3622_s29 + $0x154] ss:$8 sps:$4 sm:$0xff]   ;;  %v2478_v9 = vld [vmem:[%s3603_s4 + $0x90] ss:$8 sps:$4 sm:$0xff]  }
  0x1b   :  { %786 = vmatpush1.bf16.msra.mxu1 %v2466_v56  ;;  %v2479_v10 = vld [vmem:[%s3603_s4 + $0xa4] ss:$8 sps:$4 sm:$0xff]   ;;  %v2416_v11 = vld [vmem:[%s3622_s29 + $0x150] ss:$8 sps:$4 sm:$0xff]   ;;  %v2482_v15 = vld [vmem:[%s3603_s4 + $0xb4] ss:$8 sps:$4 sm:$0xff]  }
  0x1c   :  { %494 = vmatpush1.bf16.msra.mxu0 %v2367_v12  ;;  %787 = vmatprep.subr.bf16.mxu1 %v2467_v58  ;;  %v2421_v12 = vld [vmem:[%s3622_s29 + $0x164] ss:$8 sps:$4 sm:$0xff]   ;;  %v2484_v19 = vld [vmem:[%s3603_s4 + $0xb0] ss:$8 sps:$4 sm:$0xff]   ;;  %v2487_v23 = vld [vmem:[%s3603_s4 + $0xc0] ss:$8 sps:$4 sm:$0xff]  }
  0x1d   :  { %495 = vmatprep.subr.bf16.mxu0 %v2368_v13  ;;  %v2481_v13 = vld [vmem:[%s3603_s4 + $0xa0] ss:$8 sps:$4 sm:$0xff]   ;;  %v2485_v20 = vld [vmem:[%s3603_s4 + $0xc4] ss:$8 sps:$4 sm:$0xff]   ;;  %v2442_v35 = vld [vmem:[%s3622_s29 + $0x1d4] ss:$8 sps:$4 sm:$0xff]  }
  0x1e   :  { %v2437_v34 = vld [vmem:[%s3622_s29 + $0x1c0] ss:$8 sps:$4 sm:$0xff]   ;;  %v2440_v36 = vld [vmem:[%s3622_s29 + $0x1d0] ss:$8 sps:$4 sm:$0xff]  }
  0x1f   :  { %788 = vmatpush1.bf16.msra.mxu1 %v2469_v61 }
  0x20   :  { %496 = vmatpush1.bf16.msra.mxu0 %v2370_v16  ;;  %789 = vmatprep.subr.bf16.mxu1 %v2470_v62  ;;  %v2419_v16 = vld [vmem:[%s3622_s29 + $0x160] ss:$8 sps:$4 sm:$0xff]  }
  0x21   :  { %497 = vmatprep.subr.bf16.mxu0 %v2371_v17  ;;  %v2424_v17 = vld [vmem:[%s3622_s29 + $0x174] ss:$8 sps:$4 sm:$0xff]  }
  0x23   :  { %790 = vmatpush1.bf16.msra.mxu1 %v2472_v1 }
  0x24   :  { %498 = vmatpush1.bf16.msra.mxu0 %v2373_v21  ;;  %791 = vmatprep.subr.bf16.mxu1 %v2473_v2  ;;  %v2422_v21 = vld [vmem:[%s3622_s29 + $0x170] ss:$8 sps:$4 sm:$0xff]  }
  0x25   :  { %499 = vmatprep.subr.bf16.mxu0 %v2374_v22  ;;  %v2427_v22 = vld [vmem:[%s3622_s29 + $0x184] ss:$8 sps:$4 sm:$0xff]  }
  0x27   :  { %792 = vmatpush1.bf16.msra.mxu1 %v2475_v5 }
  0x28   :  { %500 = vmatpush1.bf16.msra.mxu0 %v2376_v24  ;;  %793 = vmatprep.subr.bf16.mxu1 %v2476_v6  ;;  %v2488_v24 = vld [vmem:[%s3603_s4 + $0xd4] ss:$8 sps:$4 sm:$0xff]  }
  0x29   :  { %501 = vmatprep.subr.bf16.mxu0 %v2377_v25  ;;  %v2425_v25 = vld [vmem:[%s3622_s29 + $0x180] ss:$8 sps:$4 sm:$0xff]  }
  0x2b   :  { %794 = vmatpush1.bf16.msra.mxu1 %v2478_v9 }
  0x2c   :  { %502 = vmatpush1.bf16.msra.mxu0 %v2379_v26  ;;  %795 = vmatprep.subr.bf16.mxu1 %v2479_v10  ;;  %v2430_v26 = vld [vmem:[%s3622_s29 + $0x194] ss:$8 sps:$4 sm:$0xff]  }
  0x2d   :  { %503 = vmatprep.subr.bf16.mxu0 %v2380_v27  ;;  %v2490_v27 = vld [vmem:[%s3603_s4 + $0xd0] ss:$8 sps:$4 sm:$0xff]  }
  0x2f   :  { %796 = vmatpush1.bf16.msra.mxu1 %v2481_v13 }
  0x30   :  { %504 = vmatpush1.bf16.msra.mxu0 %v2382_v28  ;;  %797 = vmatprep.subr.bf16.mxu1 %v2482_v15  ;;  %v2428_v28 = vld [vmem:[%s3622_s29 + $0x190] ss:$8 sps:$4 sm:$0xff]  }
  0x31   :  { %505 = vmatprep.subr.bf16.mxu0 %v2383_v29  ;;  %v2433_v29 = vld [vmem:[%s3622_s29 + $0x1a4] ss:$8 sps:$4 sm:$0xff]  }
  0x33   :  { %798 = vmatpush1.bf16.msra.mxu1 %v2484_v19 }
  0x34   :  { %506 = vmatpush1.bf16.msra.mxu0 %v2385_v30  ;;  %799 = vmatprep.subr.bf16.mxu1 %v2485_v20  ;;  %v2431_v30 = vld [vmem:[%s3622_s29 + $0x1a0] ss:$8 sps:$4 sm:$0xff]  }
  0x35   :  { %507 = vmatprep.subr.bf16.mxu0 %v2386_v31  ;;  %v2436_v31 = vld [vmem:[%s3622_s29 + $0x1b4] ss:$8 sps:$4 sm:$0xff]  }
  0x37   :  { %800 = vmatpush1.bf16.msra.mxu1 %v2487_v23 }
  0x38   :  { %508 = vmatpush1.bf16.msra.mxu0 %v2388_v32  ;;  %801 = vmatprep.subr.bf16.mxu1 %v2488_v24  ;;  %v2434_v32 = vld [vmem:[%s3622_s29 + $0x1b0] ss:$8 sps:$4 sm:$0xff]  }
  0x39   :  { %509 = vmatprep.subr.bf16.mxu0 %v2389_v33  ;;  %v2439_v33 = vld [vmem:[%s3622_s29 + $0x1c4] ss:$8 sps:$4 sm:$0xff]  }
  0x3b   :  { %802 = vmatpush1.bf16.msra.mxu1 %v2490_v27 }
  0x3c   :  { %510 = vmatpush1.bf16.msra.mxu0 %v2391_v37  ;;  %v2445_v37 = vld [vmem:[%s3622_s29 + $0x1e4] ss:$8 sps:$4 sm:$0xff]  }
  0x3d   :  { %511 = vmatprep.subr.bf16.mxu0 %v2392_v39 }
  0x40   :  { %512 = vmatpush1.bf16.msra.mxu0 %v2394_v41 }
  0x41   :  { %513 = vmatprep.subr.bf16.mxu0 %v2395_v43 }
  0x44   :  { %514 = vmatpush1.bf16.msra.mxu0 %v2397_v45 }
  0x45   :  { %515 = vmatprep.subr.bf16.mxu0 %v2398_v47 }
  0x48   :  { %516 = vmatpush1.bf16.msra.mxu0 %v2400_v49 }
  0x49   :  { %526 = vmatprep.subr.bf16.mxu0 %v2403_v51 }
  0x4b   :  { %518 = vmatmul.mubr.bf16.vlgmr.msra.gmra.mrb[0].mxu0 %v2978_v54 }
  0x4c   :  { %527 = vmatpush1.bf16.msra.mxu0 %v2401_v53  ;;  %558 = vmatprep.mubr.bf16.mxu0 %v160_v57 }
  0x4d   :  { %528 = vmatprep.subr.bf16.mxu0 %v2406_v55 }
  0x50   :  { %529 = vmatpush1.bf16.msra.mxu0 %v2404_v59 }
  0x51   :  { %530 = vmatprep.subr.bf16.mxu0 %v2409_v60 }
  0x54   :  { %531 = vmatpush1.bf16.msra.mxu0 %v2407_v63 }
  0x55   :  { %532 = vmatprep.subr.bf16.mxu0 %v2412_v0 }
  0x58   :  { %533 = vmatpush1.bf16.msra.mxu0 %v2410_v3 }
  0x59   :  { %534 = vmatprep.subr.bf16.mxu0 %v2415_v4 }
  0x5c   :  { %535 = vmatpush1.bf16.msra.mxu0 %v2413_v7 }
  0x5d   :  { %536 = vmatprep.subr.bf16.mxu0 %v2418_v8 }
  0x60   :  { %537 = vmatpush1.bf16.msra.mxu0 %v2416_v11 }
  0x61   :  { %538 = vmatprep.subr.bf16.mxu0 %v2421_v12 }
  0x64   :  { %539 = vmatpush1.bf16.msra.mxu0 %v2419_v16 }
  0x65   :  { %540 = vmatprep.subr.bf16.mxu0 %v2424_v17 }
  0x68   :  { %541 = vmatpush1.bf16.msra.mxu0 %v2422_v21 }
  0x69   :  { %542 = vmatprep.subr.bf16.mxu0 %v2427_v22 }
  0x6c   :  { %543 = vmatpush1.bf16.msra.mxu0 %v2425_v25 }
  0x6d   :  { %544 = vmatprep.subr.bf16.mxu0 %v2430_v26 }
  0x70   :  { %545 = vmatpush1.bf16.msra.mxu0 %v2428_v28 }
  0x71   :  { %546 = vmatprep.subr.bf16.mxu0 %v2433_v29 }
  0x74   :  { %547 = vmatpush1.bf16.msra.mxu0 %v2431_v30 }
  0x75   :  { %548 = vmatprep.subr.bf16.mxu0 %v2436_v31 }
  0x78   :  { %549 = vmatpush1.bf16.msra.mxu0 %v2434_v32 }
  0x79   :  { %550 = vmatprep.subr.bf16.mxu0 %v2439_v33 }
  0x7c   :  { %551 = vmatpush1.bf16.msra.mxu0 %v2437_v34 }
  0x7d   :  { %552 = vmatprep.subr.bf16.mxu0 %v2442_v35 }
  0x7e   :  { %25 = vsyncpa [#allocation5], 0  ;;  %v2443_v38 = vld [vmem:[%s3622_s29 + $0x1e0] ss:$8 sps:$4 sm:$0xff]   ;;  %v2448_v39 = vld [vmem:[%s3622_s29 + $0x1f4] ss:$8 sps:$4 sm:$0xff]   ;;  %v159_v41 = vcombine.high %v2978_v54, %v2978_v54 }
  0x7f   :  { %v2446_v40 = vld [vmem:[%s3622_s29 + $0x1f0] ss:$8 sps:$4 sm:$0xff]   ;;  %v2491_v42 = vld [vmem:[%s3603_s4 + $0xe4] ss:$8 sps:$4 sm:$0xff]   ;;  %v2493_v43 = vld [vmem:[%s3603_s4 + $0xe0] ss:$8 sps:$4 sm:$0xff]  }
  0x80   :  { %553 = vmatpush1.bf16.msra.mxu0 %v2440_v36  ;;  %803 = vmatprep.subr.bf16.mxu1 %v2491_v42  ;;  %v2494_v44 = vld [vmem:[%s3603_s4 + $0xf4] ss:$8 sps:$4 sm:$0xff]   ;;  %v2496_v45 = vld [vmem:[%s3603_s4 + $0xf0] ss:$8 sps:$4 sm:$0xff]   ;;  %v2497_v46 = vld [vmem:[%s3605_s6 + $0x40] sm:$0xff]   ;;  %v3178_v59 = vsub.s32 0, %v2858_v14 }
  0x81   :  { %554 = vmatprep.subr.bf16.mxu0 %v2445_v37  ;;  %804 = vmatpush1.bf16.msra.mxu1 %v2493_v43  ;;  %v2498_v47 = vld [vmem:[%s3607_s8 + $0x40] sm:$0xff]   ;;  %v2501_v49 = vld [vmem:[%s3605_s6 + $0x48] sm:$0xff]   ;;  %v2505_v51 = vld [vmem:[%s3605_s6 + $0x50] sm:$0xff]   ;;  %v3184_v61 = vsub.s32 1, %v2858_v14  ;;  %vm1203_vm0 = vcmask 1044480   ;;  %vm2030_vm1 = vcmask 74752  }
  0x82   :  { %805 = vmatprep.subr.bf16.mxu1 %v2494_v44  ;;  %v2499_v48 = vld [vmem:[%s3605_s6] sm:$0xff]   ;;  %v2503_v50 = vld [vmem:[%s3605_s6 + $0x8] sm:$0xff]   ;;  %v2507_v52 = vld [vmem:[%s3605_s6 + $0x10] sm:$0xff]   ;;  %vm1199_vm2 = vcmask 80896   ;;  %s2729_s29 = smov [#allocation4]  }
  0x83   :  { %v2509_v53 = vld [vmem:[%s3605_s6 + $0x58] sm:$0xff]   ;;  %v2513_v55 = vld [vmem:[%s3605_s6 + $0x60] sm:$0xff]   ;;  %v2517_v57 = vld [vmem:[%s3605_s6 + $0x68] sm:$0xff]   ;;  %s2051_s24 = sshll.u32 %s2729_s29, 4  ;;  %s2052_s24 = int_to_ptr.vmem [resolvable:$true] %s2051_s24 }
  0x84   :  { %555 = vmatpush1.bf16.msra.mxu0 %v2443_v38  ;;  %v2511_v54 = vld [vmem:[%s3605_s6 + $0x18] sm:$0xff]   ;;  %v2515_v56 = vld [vmem:[%s3605_s6 + $0x20] sm:$0xff]   ;;  %v2519_v58 = vld [vmem:[%s3605_s6 + $0x28] sm:$0xff]  }
  0x85   :  { %556 = vmatprep.subr.bf16.mxu0 %v2448_v39  ;;  %806 = vmatpush1.bf16.msra.mxu1 %v2496_v45  ;;  %v124_v60 = vld [vmem:[%s3602_s3] sm:$0x3]  ;;  %v2502_v11 = vld [vmem:[%s3607_s8 + $0x48] sm:$0xff]   ;;  %v2506_v13 = vld [vmem:[%s3607_s8 + $0x50] sm:$0xff]  }
  0x86   :  { %2321 = vmatprep.subr.bf16.mxu1 %v2498_v47  ;;  %v129_v62 = vrot.slane %v124_v60, %v3178_v59  ;;  %v133_v63 = vrot.slane %v124_v60, %v3184_v61  ;;  %v2500_v9 = vld [vmem:[%s3607_s8] sm:$0xff]   ;;  %v2504_v12 = vld [vmem:[%s3607_s8 + $0x8] sm:$0xff]   ;;  %v2508_v15 = vld [vmem:[%s3607_s8 + $0x10] sm:$0xff]  }
  0x87   :  { %v2510_v16 = vld [vmem:[%s3607_s8 + $0x58] sm:$0xff]   ;;  %v2514_v19 = vld [vmem:[%s3607_s8 + $0x60] sm:$0xff]   ;;  %v2518_v21 = vld [vmem:[%s3607_s8 + $0x68] sm:$0xff]  }
  0x88   :  { %557 = vmatpush1.bf16.msra.mxu0 %v2446_v40  ;;  %v2512_v17 = vld [vmem:[%s3607_s8 + $0x18] sm:$0xff]   ;;  %v2516_v20 = vld [vmem:[%s3607_s8 + $0x20] sm:$0xff]   ;;  %v2520_v22 = vld [vmem:[%s3607_s8 + $0x28] sm:$0xff]  }
  0x89   :  { %2299 = vmatprep.subr.bf16.mxu0 %v2497_v46  ;;  %v2521_v23 = vld [vmem:[%s3605_s6 + $0x70] sm:$0xff]   ;;  %v2525_v27 = vld [vmem:[%s3605_s6 + $0x78] sm:$0xff]   ;;  %v603_v31 = vld [vmem:[%s3604_s5] sm:$0x3]  ;;  %v2727_v46 = vmov 0  }
  0x8a   :  { %v2522_v24 = vld [vmem:[%s3607_s8 + $0x70] sm:$0xff]   ;;  %v2526_v28 = vld [vmem:[%s3607_s8 + $0x78] sm:$0xff]   ;;  %v608_v32 = vrot.slane %v603_v31, %v3178_v59  ;;  %v612_v33 = vrot.slane %v603_v31, %v3184_v61  ;;  %v2529_v44 = vld [vmem:[%s3609_s10 + $0x4] ss:$8 sps:$4 sm:$0x1f]  }
  0x8b   :  { %559 = vmatmul.mubr.bf16.vlgmr.msra.gmra.mrb[0].mxu0 %v159_v41  ;;  %v2523_v25 = vld [vmem:[%s3605_s6 + $0x30] sm:$0xff]   ;;  %v2527_v29 = vld [vmem:[%s3605_s6 + $0x38] sm:$0xff]   ;;  %v2531_v45 = vld [vmem:[%s3609_s10] ss:$8 sps:$4 sm:$0x1f]  }
  0x8c   :  { %2300 = vmatpush3.bf16.msra.mxu0 %v2499_v48  ;;  %v2524_v26 = vld [vmem:[%s3607_s8 + $0x30] sm:$0xff]   ;;  %v2528_v30 = vld [vmem:[%s3607_s8 + $0x38] sm:$0xff]   ;;  %v1205_v47 = vsel %vm1203_vm0, %v2531_v45, 0  ;;  %v2532_v48 = vld [vmem:[%s3611_s12] ss:$8 sps:$4 sm:$0xff]   ;;  %s3624_s8 = sld [smem:[#allocation9_spill]] }
  0x8d   :  { %2301 = vmatprep.subr.bf16.mxu0 %v2501_v49  ;;  %v2534_v49 = vld [vmem:[%s3611_s12 + $0x4] ss:$8 sps:$4 sm:$0xff]   ;;  %v2547_v60 = vld [vmem:[%s3611_s12 + $0x50] ss:$8 sps:$4 sm:$0xff]  }
  0x8e   :  { %v2586_v45 = vld [vmem:[%s3613_s14 + $0x20] ss:$16 sps:$4 sm:$0xff]  }
  0x90   :  { %2302 = vmatpush3.bf16.msra.mxu0 %v2503_v50  ;;  %v2537_v50 = vld [vmem:[%s3611_s12 + $0x14] ss:$8 sps:$4 sm:$0xff]  }
  0x91   :  { %2303 = vmatprep.subr.bf16.mxu0 %v2505_v51  ;;  %v2535_v51 = vld [vmem:[%s3611_s12 + $0x10] ss:$8 sps:$4 sm:$0xff]  }
  0x94   :  { %2304 = vmatpush3.bf16.msra.mxu0 %v2507_v52  ;;  %v2540_v52 = vld [vmem:[%s3611_s12 + $0x24] ss:$8 sps:$4 sm:$0xff]  }
  0x95   :  { %2305 = vmatprep.subr.bf16.mxu0 %v2509_v53  ;;  %v2538_v53 = vld [vmem:[%s3611_s12 + $0x20] ss:$8 sps:$4 sm:$0xff]  }
  0x98   :  { %2306 = vmatpush3.bf16.msra.mxu0 %v2511_v54  ;;  %v2543_v54 = vld [vmem:[%s3611_s12 + $0x34] ss:$8 sps:$4 sm:$0xff]  }
  0x99   :  { %2307 = vmatprep.subr.bf16.mxu0 %v2513_v55  ;;  %v2541_v55 = vld [vmem:[%s3611_s12 + $0x30] ss:$8 sps:$4 sm:$0xff]  }
  0x9c   :  { %2308 = vmatpush3.bf16.msra.mxu0 %v2515_v56  ;;  %v2546_v56 = vld [vmem:[%s3611_s12 + $0x44] ss:$8 sps:$4 sm:$0xff]  }
  0x9d   :  { %2309 = vmatprep.subr.bf16.mxu0 %v2517_v57  ;;  %v2544_v57 = vld [vmem:[%s3611_s12 + $0x40] ss:$8 sps:$4 sm:$0xff]  }
  0xa0   :  { %2310 = vmatpush3.bf16.msra.mxu0 %v2519_v58  ;;  %v2549_v58 = vld [vmem:[%s3611_s12 + $0x54] ss:$8 sps:$4 sm:$0xff]  }
  0xa1   :  { %2311 = vmatprep.subr.bf16.mxu0 %v2521_v23 }
  0xa4   :  { %2312 = vmatpush3.bf16.msra.mxu0 %v2523_v25 }
  0xa5   :  { %2313 = vmatprep.subr.bf16.mxu0 %v2525_v27 }
  0xa8   :  { %2314 = vmatpush3.bf16.msra.mxu0 %v2527_v29 }
  0xa9   :  { %2198 = vmatprep.subr.msk.bf16.mxu0 %vm1203_vm0, %v2529_v44  ;;  %v2588_v44 = vld [vmem:[%s3613_s14 + $0x24] ss:$16 sps:$4 sm:$0xff]  }
 0x15e   :  { %v560_v0 = vpop.f32.mrb[0].mxu0 }
 0x15f   :  { %v2343_v1 = vadd.f32 %v560_v0, %v129_v62  ;;  %v562_v2 = vpop.f32.mrb[1].mxu0  ;;  %v2552_v62 = vld [vmem:[%s3611_s12 + $0x64] ss:$8 sps:$4 sm:$0xff]   ;;  %v2555_v0 = vld [vmem:[%s3611_s12 + $0x74] ss:$8 sps:$4 sm:$0xff]  }
 0x160   :  { %v2344_v3 = vadd.f32 %v562_v2, %v133_v63  ;;  %v564_v4 = vpop.f32.mrb[2].mxu0  ;;  %v2550_v63 = vld [vmem:[%s3611_s12 + $0x60] ss:$8 sps:$4 sm:$0xff]   ;;  %v2558_v2 = vld [vmem:[%s3611_s12 + $0x84] ss:$8 sps:$4 sm:$0xff]  }
 0x161   :  { %v567_v5 = vmax.f32 %v2343_v1, 0.0  ;;  %v565_v6 = vpop.f32.mrb[3].mxu0  ;;  %v2553_v1 = vld [vmem:[%s3611_s12 + $0x70] ss:$8 sps:$4 sm:$0xff]   ;;  %v2561_v4 = vld [vmem:[%s3611_s12 + $0x94] ss:$8 sps:$4 sm:$0xff]  }
 0x162   :  { %v568_v7 = vmax.f32 %v2344_v3, 0.0  ;;  %v2556_v3 = vld [vmem:[%s3611_s12 + $0x80] ss:$8 sps:$4 sm:$0xff]   ;;  %v2564_v6 = vld [vmem:[%s3611_s12 + $0xa4] ss:$8 sps:$4 sm:$0xff]  }
 0x163   :  { %v569_v10 = vpack.c.bf16 %v567_v5, %v567_v5  ;;  %v2559_v5 = vld [vmem:[%s3611_s12 + $0x90] ss:$8 sps:$4 sm:$0xff]  }
 0x164   :  { %v570_v8 = vpack.c.bf16 %v568_v7, %v568_v7  ;;  %v2562_v7 = vld [vmem:[%s3611_s12 + $0xa0] ss:$8 sps:$4 sm:$0xff]  }
 0x166   :  { %807 = vmatprep.mubr.bf16.mxu1 %v570_v8  ;;  %v2567_v8 = vld [vmem:[%s3611_s12 + $0xb4] ss:$8 sps:$4 sm:$0xff]  }
 0x167   :  { %808 = vmatmul.mubr.bf16.vlgmr.msra.gmra.mrb[0].mxu1 %v569_v10  ;;  %v2570_v10 = vld [vmem:[%s3611_s12 + $0xc4] ss:$8 sps:$4 sm:$0xff]  }
 0x168   :  { %2322 = vmatpush3.bf16.msra.mxu1 %v2500_v9  ;;  %v2565_v9 = vld [vmem:[%s3611_s12 + $0xb0] ss:$8 sps:$4 sm:$0xff]  }
 0x169   :  { %2323 = vmatprep.subr.bf16.mxu1 %v2502_v11  ;;  %v2568_v11 = vld [vmem:[%s3611_s12 + $0xc0] ss:$8 sps:$4 sm:$0xff]  }
 0x16c   :  { %2324 = vmatpush3.bf16.msra.mxu1 %v2504_v12  ;;  %v2573_v12 = vld [vmem:[%s3611_s12 + $0xd4] ss:$8 sps:$4 sm:$0xff]  }
 0x16d   :  { %2325 = vmatprep.subr.bf16.mxu1 %v2506_v13  ;;  %v2571_v13 = vld [vmem:[%s3611_s12 + $0xd0] ss:$8 sps:$4 sm:$0xff]  }
 0x170   :  { %2326 = vmatpush3.bf16.msra.mxu1 %v2508_v15 }
 0x171   :  { %2327 = vmatprep.subr.bf16.mxu1 %v2510_v16 }
 0x174   :  { %2328 = vmatpush3.bf16.msra.mxu1 %v2512_v17  ;;  %v2162_v17 = vld [vmem:[%s3606_s7] ss:$0 sm:$0xff] }
 0x175   :  { %2329 = vmatprep.subr.bf16.mxu1 %v2514_v19 }
 0x178   :  { %2330 = vmatpush3.bf16.msra.mxu1 %v2516_v20  ;;  %v2179_v20 = vld [vmem:[%s3608_s9] ss:$0 sm:$0xff] }
 0x179   :  { %2331 = vmatprep.subr.bf16.mxu1 %v2518_v21 }
 0x17c   :  { %2332 = vmatpush3.bf16.msra.mxu1 %v2520_v22 }
 0x17d   :  { %2333 = vmatprep.subr.bf16.mxu1 %v2522_v24 }
 0x180   :  { %2334 = vmatpush3.bf16.msra.mxu1 %v2524_v26 }
 0x181   :  { %2335 = vmatprep.subr.bf16.mxu1 %v2526_v28 }
 0x184   :  { %2336 = vmatpush3.bf16.msra.mxu1 %v2528_v30 }
 0x185   :  { %1459 = vmatprep.subr.bf16.mxu1 %v2534_v49  ;;  %v2598_v49 = vld [vmem:[%s3613_s14 + $0x60] ss:$16 sps:$4 sm:$0xff]  }
 0x23a   :  { %v809_v34 = vpop.f32.mrb[0].mxu1 }
 0x23b   :  { %v810_v35 = vadd.f32 %v809_v34, %v608_v32  ;;  %v811_v36 = vpop.f32.mrb[1].mxu1  ;;  %v1173_v32 = vld [vmem:[%s3624_s8] sm:$0x3] }
 0x23c   :  { %v812_v37 = vadd.f32 %v811_v36, %v612_v33  ;;  %v813_v38 = vpop.f32.mrb[2].mxu1 }
 0x23d   :  { %v816_v39 = vmax.f32 %v810_v35, 0.0  ;;  %v814_v40 = vpop.f32.mrb[3].mxu1  ;;  %v2574_v38 = vld [vmem:[%s3611_s12 + $0xe0] ss:$8 sps:$4 sm:$0xff]  }
 0x23e   :  { %v817_v41 = vmax.f32 %v812_v37, 0.0  ;;  %v2576_v37 = vld [vmem:[%s3611_s12 + $0xe4] ss:$8 sps:$4 sm:$0xff]   ;;  %v2577_v40 = vld [vmem:[%s3611_s12 + $0xf0] ss:$8 sps:$4 sm:$0xff]  }
 0x23f   :  { %v818_v43 = vpack.c.bf16 %v816_v39, %v816_v39  ;;  %v2579_v39 = vld [vmem:[%s3611_s12 + $0xf4] ss:$8 sps:$4 sm:$0xff]  }
 0x240   :  { %v819_v42 = vpack.c.bf16 %v817_v41, %v817_v41  ;;  %v2580_v41 = vld [vmem:[%s3613_s14] ss:$16 sps:$4 sm:$0xff]  }
 0x242   :  { %987 = vmatprep.mubr.bf16.mxu0 %v819_v42  ;;  %1162 = vmatprep.mubr.bf16.mxu1 %v819_v42  ;;  %v2582_v42 = vld [vmem:[%s3613_s14 + $0x4] ss:$16 sps:$4 sm:$0xff]  }
 0x243   :  { %988 = vmatmul.mubr.bf16.vlgmr.msra.gmra.mrb[4].mxu0 %v818_v43  ;;  %1163 = vmatmul.mubr.bf16.vlgmr.msra.gmra.mrb[4].mxu1 %v818_v43  ;;  %v2585_v43 = vld [vmem:[%s3613_s14 + $0xc] ss:$16 sps:$4 sm:$0xff]  }
 0x244   :  { %1242 = vmatprep.mubr.bf16.mxu0 %v2727_v46  ;;  %1211 = vmatpush1.bf16.msra.mxu0 %v1205_v47  ;;  %v2594_v46 = vld [vmem:[%s3613_s14 + $0x44] ss:$16 sps:$4 sm:$0xff]   ;;  %v2592_v47 = vld [vmem:[%s3613_s14 + $0x40] ss:$16 sps:$4 sm:$0xff]  }
 0x245   :  { %1460 = vmatpush1.bf16.msra.mxu1 %v2532_v48  ;;  %1910 = vmatprep.subr.bf16.mxu0 %v2582_v42  ;;  %v2600_v48 = vld [vmem:[%s3613_s14 + $0x64] ss:$16 sps:$4 sm:$0xff]   ;;  %v2645_v42 = vld [vmem:[%s3613_s14 + $0x14c] ss:$16 sps:$4 sm:$0xff]  }
 0x246   :  { %1461 = vmatprep.subr.bf16.mxu1 %v2537_v50  ;;  %v2606_v50 = vld [vmem:[%s3613_s14 + $0x84] ss:$16 sps:$4 sm:$0xff]  }
 0x249   :  { %1462 = vmatpush1.bf16.msra.mxu1 %v2535_v51  ;;  %v2604_v51 = vld [vmem:[%s3613_s14 + $0x80] ss:$16 sps:$4 sm:$0xff]  }
 0x24a   :  { %1463 = vmatprep.subr.bf16.mxu1 %v2540_v52  ;;  %v2612_v52 = vld [vmem:[%s3613_s14 + $0xa4] ss:$16 sps:$4 sm:$0xff]  }
 0x24d   :  { %1464 = vmatpush1.bf16.msra.mxu1 %v2538_v53  ;;  %v2610_v53 = vld [vmem:[%s3613_s14 + $0xa0] ss:$16 sps:$4 sm:$0xff]  }
 0x24e   :  { %1465 = vmatprep.subr.bf16.mxu1 %v2543_v54  ;;  %v2618_v54 = vld [vmem:[%s3613_s14 + $0xc4] ss:$16 sps:$4 sm:$0xff]  }
 0x251   :  { %1466 = vmatpush1.bf16.msra.mxu1 %v2541_v55  ;;  %v2616_v55 = vld [vmem:[%s3613_s14 + $0xc0] ss:$16 sps:$4 sm:$0xff]  }
 0x252   :  { %1467 = vmatprep.subr.bf16.mxu1 %v2546_v56  ;;  %v2624_v56 = vld [vmem:[%s3613_s14 + $0xe4] ss:$16 sps:$4 sm:$0xff]  }
 0x255   :  { %1468 = vmatpush1.bf16.msra.mxu1 %v2544_v57  ;;  %v2622_v57 = vld [vmem:[%s3613_s14 + $0xe0] ss:$16 sps:$4 sm:$0xff]  }
 0x256   :  { %1469 = vmatprep.subr.bf16.mxu1 %v2549_v58  ;;  %v2630_v58 = vld [vmem:[%s3613_s14 + $0x104] ss:$16 sps:$4 sm:$0xff]  }
 0x259   :  { %1470 = vmatpush1.bf16.msra.mxu1 %v2547_v60  ;;  %v2628_v60 = vld [vmem:[%s3613_s14 + $0x100] ss:$16 sps:$4 sm:$0xff]  }
 0x25a   :  { %1471 = vmatprep.subr.bf16.mxu1 %v2552_v62  ;;  %v2636_v62 = vld [vmem:[%s3613_s14 + $0x124] ss:$16 sps:$4 sm:$0xff]  }
 0x25d   :  { %1472 = vmatpush1.bf16.msra.mxu1 %v2550_v63  ;;  %v2634_v63 = vld [vmem:[%s3613_s14 + $0x120] ss:$16 sps:$4 sm:$0xff]  }
 0x25e   :  { %1473 = vmatprep.subr.bf16.mxu1 %v2555_v0  ;;  %v2642_v0 = vld [vmem:[%s3613_s14 + $0x144] ss:$16 sps:$4 sm:$0xff]  }
 0x261   :  { %1474 = vmatpush1.bf16.msra.mxu1 %v2553_v1  ;;  %v2640_v1 = vld [vmem:[%s3613_s14 + $0x140] ss:$16 sps:$4 sm:$0xff]  }
 0x262   :  { %1475 = vmatprep.subr.bf16.mxu1 %v2558_v2  ;;  %v2648_v2 = vld [vmem:[%s3613_s14 + $0x164] ss:$16 sps:$4 sm:$0xff]  }
 0x265   :  { %1476 = vmatpush1.bf16.msra.mxu1 %v2556_v3  ;;  %v2646_v3 = vld [vmem:[%s3613_s14 + $0x160] ss:$16 sps:$4 sm:$0xff]  }
 0x266   :  { %1477 = vmatprep.subr.bf16.mxu1 %v2561_v4  ;;  %v2654_v4 = vld [vmem:[%s3613_s14 + $0x184] ss:$16 sps:$4 sm:$0xff]  }
 0x269   :  { %1478 = vmatpush1.bf16.msra.mxu1 %v2559_v5  ;;  %v2652_v5 = vld [vmem:[%s3613_s14 + $0x180] ss:$16 sps:$4 sm:$0xff]  }
 0x26a   :  { %1479 = vmatprep.subr.bf16.mxu1 %v2564_v6  ;;  %v2660_v6 = vld [vmem:[%s3613_s14 + $0x1a4] ss:$16 sps:$4 sm:$0xff]  }
 0x26d   :  { %1480 = vmatpush1.bf16.msra.mxu1 %v2562_v7  ;;  %v2658_v7 = vld [vmem:[%s3613_s14 + $0x1a0] ss:$16 sps:$4 sm:$0xff]  }
 0x26e   :  { %1481 = vmatprep.subr.bf16.mxu1 %v2567_v8  ;;  %v1179_v8 = vld [vmem:[%s3610_s11] sm:$0x3] }
 0x271   :  { %1482 = vmatpush1.bf16.msra.mxu1 %v2565_v9  ;;  %v1184_v9 = vrot.slane %v1179_v8, %v3178_v59 }
 0x272   :  { %1483 = vmatprep.subr.bf16.mxu1 %v2570_v10  ;;  %v1188_v10 = vrot.slane %v1179_v8, %v3184_v61 }
 0x275   :  { %1484 = vmatpush1.bf16.msra.mxu1 %v2568_v11 }
 0x276   :  { %1485 = vmatprep.subr.bf16.mxu1 %v2573_v12 }
 0x279   :  { %1486 = vmatpush1.bf16.msra.mxu1 %v2571_v13 }
 0x27a   :  { %1487 = vmatprep.subr.bf16.mxu1 %v2576_v37  ;;  %v2625_v37 = vld [vmem:[%s3613_s14 + $0xe8] ss:$16 sps:$4 sm:$0xff]  }
 0x27d   :  { %1488 = vmatpush1.bf16.msra.mxu1 %v2574_v38  ;;  %v2633_v38 = vld [vmem:[%s3613_s14 + $0x10c] ss:$16 sps:$4 sm:$0xff]  }
 0x27e   :  { %1489 = vmatprep.subr.bf16.mxu1 %v2579_v39  ;;  %v2631_v39 = vld [vmem:[%s3613_s14 + $0x108] ss:$16 sps:$4 sm:$0xff]  }
 0x281   :  { %1490 = vmatpush1.bf16.msra.mxu1 %v2577_v40  ;;  %v2639_v40 = vld [vmem:[%s3613_s14 + $0x12c] ss:$16 sps:$4 sm:$0xff]  }
 0x282   :  { %1951 = vmatprep.subr.bf16.mxu1 %v2585_v43  ;;  %v2643_v43 = vld [vmem:[%s3613_s14 + $0x148] ss:$16 sps:$4 sm:$0xff]  }
 0x316   :  { %v2315_v15 = vpop.f32.mrb[4].mxu0  ;;  %v2337_v16 = vpop.f32.mrb[4].mxu1 }
 0x317   :  { %v2316_v19 = vpop.f32.mrb[5].mxu0  ;;  %v2338_v21 = vpop.f32.mrb[5].mxu1 }
 0x318   :  { %v2317_v22 = vadd.f32 %v2316_v19, %v2315_v15  ;;  %v2339_v23 = vadd.f32 %v2338_v21, %v2337_v16  ;;  %v2318_v24 = vpop.f32.mrb[6].mxu0  ;;  %v2340_v25 = vpop.f32.mrb[6].mxu1 }
 0x319   :  { %v2319_v26 = vpop.f32.mrb[7].mxu0  ;;  %v2341_v27 = vpop.f32.mrb[7].mxu1  ;;  %v2591_v24 = vld [vmem:[%s3613_s14 + $0x2c] ss:$16 sps:$4 sm:$0xff]   ;;  %v2589_v25 = vld [vmem:[%s3613_s14 + $0x28] ss:$16 sps:$4 sm:$0xff]  }
 0x31a   :  { %v990_v28 = vadd.f32 %v2317_v22, %v2162_v17  ;;  %v1165_v29 = vadd.f32 %v2339_v23, %v2179_v20  ;;  %v2583_v22 = vld [vmem:[%s3613_s14 + $0x8] ss:$16 sps:$4 sm:$0xff]   ;;  %v2597_v26 = vld [vmem:[%s3613_s14 + $0x4c] ss:$16 sps:$4 sm:$0xff]  }
 0x31b   :  { %v2595_v27 = vld [vmem:[%s3613_s14 + $0x48] ss:$16 sps:$4 sm:$0xff]  }
 0x31c   :  { %v1170_v30 = vmul.f32 0.5, %v1165_v29  ;;  %2031 = vst.msk [vmem:[#allocation2] sm:$0x3] %vm2030_vm1, %v990_v28  ;;  %2032 = vst.msk [vmem:[#allocation4] sm:$0x3] %vm2030_vm1, %v1165_v29 }
 0x31d   :  { %v2601_v29 = vld [vmem:[%s3613_s14 + $0x68] ss:$16 sps:$4 sm:$0xff]  }
 0x31e   :  { %v1171_v31 = vmul.f32 1.442695, %v1170_v30  ;;  %v2609_v30 = vld [vmem:[%s3613_s14 + $0x8c] ss:$16 sps:$4 sm:$0xff]  }
 0x320   :  { %2676 = vpow2.f32 %v1171_v31  ;;  %v2607_v31 = vld [vmem:[%s3613_s14 + $0x88] ss:$16 sps:$4 sm:$0xff]  }
 0x32a   :  { %v2677_v33 = vpop.eup %2676 }
 0x32b   :  { %v1174_v34 = vmul.f32 %v2677_v33, %v1173_v32  ;;  %v2615_v32 = vld [vmem:[%s3613_s14 + $0xac] ss:$16 sps:$4 sm:$0xff]   ;;  %v2613_v33 = vld [vmem:[%s3613_s14 + $0xa8] ss:$16 sps:$4 sm:$0xff]  }
 0x32d   :  { %v1175_v35 = vadd.f32 %v1174_v34, %v990_v28  ;;  %v2603_v28 = vld [vmem:[%s3613_s14 + $0x6c] ss:$16 sps:$4 sm:$0xff]  }
 0x32e   :  { %v2621_v34 = vld [vmem:[%s3613_s14 + $0xcc] ss:$16 sps:$4 sm:$0xff]  }
 0x32f   :  { %v1176_v36 = vpack.c.bf16 %v1175_v35, %v1175_v35  ;;  %v2619_v35 = vld [vmem:[%s3613_s14 + $0xc8] ss:$16 sps:$4 sm:$0xff]  }
 0x331   :  { %2199 = vmatmul.mubr.msk.bf16.vlgmr.msra.gmra.mrb[8].mxu0 %vm1199_vm2, %v1176_v36  ;;  %v2627_v36 = vld [vmem:[%s3613_s14 + $0xec] ss:$16 sps:$4 sm:$0xff]  }
 0x332   :  { %1911 = vmatpush1.bf16.msra.mxu0 %v2580_v41  ;;  %v2637_v41 = vld [vmem:[%s3613_s14 + $0x128] ss:$16 sps:$4 sm:$0xff]  }
 0x333   :  { %1912 = vmatprep.subr.bf16.mxu0 %v2588_v44  ;;  %v2651_v44 = vld [vmem:[%s3613_s14 + $0x16c] ss:$16 sps:$4 sm:$0xff]  }
 0x336   :  { %1913 = vmatpush1.bf16.msra.mxu0 %v2586_v45  ;;  %v2649_v45 = vld [vmem:[%s3613_s14 + $0x168] ss:$16 sps:$4 sm:$0xff]  }
 0x337   :  { %1914 = vmatprep.subr.bf16.mxu0 %v2594_v46  ;;  %v2657_v46 = vld [vmem:[%s3613_s14 + $0x18c] ss:$16 sps:$4 sm:$0xff]  }
 0x33a   :  { %1915 = vmatpush1.bf16.msra.mxu0 %v2592_v47  ;;  %v2655_v47 = vld [vmem:[%s3613_s14 + $0x188] ss:$16 sps:$4 sm:$0xff]  }
 0x33b   :  { %1916 = vmatprep.subr.bf16.mxu0 %v2600_v48  ;;  %v2663_v48 = vld [vmem:[%s3613_s14 + $0x1ac] ss:$16 sps:$4 sm:$0xff]  }
 0x33e   :  { %1917 = vmatpush1.bf16.msra.mxu0 %v2598_v49  ;;  %v2661_v49 = vld [vmem:[%s3613_s14 + $0x1a8] ss:$16 sps:$4 sm:$0xff]  }
 0x33f   :  { %1918 = vmatprep.subr.bf16.mxu0 %v2606_v50  ;;  %v2666_v50 = vld [vmem:[%s3613_s14 + $0x1c4] ss:$16 sps:$4 sm:$0xff]  }
 0x342   :  { %1919 = vmatpush1.bf16.msra.mxu0 %v2604_v51  ;;  %v2669_v51 = vld [vmem:[%s3613_s14 + $0x1cc] ss:$16 sps:$4 sm:$0xff]  }
 0x343   :  { %1920 = vmatprep.subr.bf16.mxu0 %v2612_v52  ;;  %v2664_v52 = vld [vmem:[%s3613_s14 + $0x1c0] ss:$16 sps:$4 sm:$0xff]  }
 0x346   :  { %1921 = vmatpush1.bf16.msra.mxu0 %v2610_v53  ;;  %v2667_v53 = vld [vmem:[%s3613_s14 + $0x1c8] ss:$16 sps:$4 sm:$0xff]  }
 0x347   :  { %1922 = vmatprep.subr.bf16.mxu0 %v2618_v54  ;;  %v2672_v54 = vld [vmem:[%s3613_s14 + $0x1e4] ss:$16 sps:$4 sm:$0xff]  }
 0x34a   :  { %1923 = vmatpush1.bf16.msra.mxu0 %v2616_v55  ;;  %v2675_v55 = vld [vmem:[%s3613_s14 + $0x1ec] ss:$16 sps:$4 sm:$0xff]  }
 0x34b   :  { %1924 = vmatprep.subr.bf16.mxu0 %v2624_v56  ;;  %v2670_v56 = vld [vmem:[%s3613_s14 + $0x1e0] ss:$16 sps:$4 sm:$0xff]  }
 0x34e   :  { %1925 = vmatpush1.bf16.msra.mxu0 %v2622_v57  ;;  %v2673_v57 = vld [vmem:[%s3613_s14 + $0x1e8] ss:$16 sps:$4 sm:$0xff]   ;;  %s2728_s14 = smov [#allocation2]  }
 0x34f   :  { %1926 = vmatprep.subr.bf16.mxu0 %v2630_v58  ;;  %v1287_v58 = vld [vmem:[%s3612_s13] sm:$0x3]  ;;  %s2041_s13 = sshll.u32 %s2728_s14, 4  ;;  %s2042_s13 = int_to_ptr.vmem [resolvable:$true] %s2041_s13 }
 0x350   :  { %s2678_s25 = scalar_lea.vmem %s2042_s13, 32  ;;  %p2683_p1 = scmp.lt.s32.totalorder %s2042_s13, %s2042_s13 }
 0x351   :  { %p2679_p0 = scmp.ne.s32.totalorder %s2042_s13, %s2678_s25  ;;  %p2684_p2 = scmp.lt.s32.totalorder %s2678_s25, %s2678_s25 }
 0x352   :  { %1927 = vmatpush1.bf16.msra.mxu0 %v2628_v60  ;;  %v1292_v60 = vrot.slane %v1287_v58, %v3178_v59 }
 0x353   :  { %1928 = vmatprep.subr.bf16.mxu0 %v2636_v62  ;;  %v1296_v62 = vrot.slane %v1287_v58, %v3184_v61  ;;  %p2685_p3 = por %p2684_p2, %p2683_p1 }
 0x355   :  { %p2686_p4 = pnand %p2685_p3, %p2679_p0 }
 0x356   :  { %1929 = vmatpush1.bf16.msra.mxu0 %v2634_v63 }
 0x357   :  { %1930 = vmatprep.subr.bf16.mxu0 %v2642_v0 }
 0x35a   :  { %1931 = vmatpush1.bf16.msra.mxu0 %v2640_v1 }
 0x35b   :  { %1932 = vmatprep.subr.bf16.mxu0 %v2648_v2 }
 0x35e   :  { %1933 = vmatpush1.bf16.msra.mxu0 %v2646_v3 }
 0x35f   :  { %1934 = vmatprep.subr.bf16.mxu0 %v2654_v4 }
 0x362   :  { %1935 = vmatpush1.bf16.msra.mxu0 %v2652_v5 }
 0x363   :  { %1936 = vmatprep.subr.bf16.mxu0 %v2660_v6 }
 0x366   :  { %1937 = vmatpush1.bf16.msra.mxu0 %v2658_v7 }
 0x367   :  { %1938 = vmatprep.subr.bf16.mxu0 %v2666_v50 }
 0x36a   :  { %1939 = vmatpush1.bf16.msra.mxu0 %v2664_v52 }
 0x36b   :  { %1940 = vmatprep.subr.bf16.mxu0 %v2672_v54 }
 0x36e   :  { %1941 = vmatpush1.bf16.msra.mxu0 %v2670_v56 }
 0x404   :  { %v1244_v11 = vpop.f32.mrb[8].mxu0 }
 0x405   :  { %v1245_v12 = vadd.f32 %v1244_v11, %v1184_v9  ;;  %v1246_v13 = vpop.f32.mrb[9].mxu0 }
 0x406   :  { %v1247_v15 = vadd.f32 %v1246_v13, %v1188_v10  ;;  %v1248_v16 = vpop.f32.mrb[10].mxu0 }
 0x407   :  { %v1251_v17 = vmax.f32 %v1245_v12, 0.0  ;;  %v1249_v19 = vpop.f32.mrb[11].mxu0 }
 0x408   :  { %v1252_v20 = vmax.f32 %v1247_v15, 0.0 }
 0x409   :  { %v1253_v23 = vpack.c.bf16 %v1251_v17, %v1251_v17 }
 0x40a   :  { %v1254_v21 = vpack.c.bf16 %v1252_v20, %v1252_v20 }
 0x40c   :  { %1491 = vmatprep.mubr.bf16.mxu1 %v1254_v21 }
 0x40d   :  { %1492 = vmatmul.mubr.bf16.vlgmr.msra.gmra.mrb[8].mxu1 %v1253_v23 }
 0x40e   :  { %1952 = vmatpush1.bf16.msra.mxu1 %v2583_v22 }
 0x40f   :  { %1953 = vmatprep.subr.bf16.mxu1 %v2591_v24 }
 0x412   :  { %1954 = vmatpush1.bf16.msra.mxu1 %v2589_v25 }
 0x413   :  { %1955 = vmatprep.subr.bf16.mxu1 %v2597_v26 }
 0x416   :  { %1956 = vmatpush1.bf16.msra.mxu1 %v2595_v27 }
 0x417   :  { %1957 = vmatprep.subr.bf16.mxu1 %v2603_v28 }
 0x41a   :  { %1958 = vmatpush1.bf16.msra.mxu1 %v2601_v29 }
 0x41b   :  { %1959 = vmatprep.subr.bf16.mxu1 %v2609_v30 }
 0x41e   :  { %1960 = vmatpush1.bf16.msra.mxu1 %v2607_v31 }
 0x41f   :  { %1961 = vmatprep.subr.bf16.mxu1 %v2615_v32 }
 0x422   :  { %1962 = vmatpush1.bf16.msra.mxu1 %v2613_v33 }
 0x423   :  { %1963 = vmatprep.subr.bf16.mxu1 %v2621_v34 }
 0x426   :  { %1964 = vmatpush1.bf16.msra.mxu1 %v2619_v35 }
 0x427   :  { %1965 = vmatprep.subr.bf16.mxu1 %v2627_v36 }
 0x42a   :  { %1966 = vmatpush1.bf16.msra.mxu1 %v2625_v37 }
 0x42b   :  { %1967 = vmatprep.subr.bf16.mxu1 %v2633_v38 }
 0x42e   :  { %1968 = vmatpush1.bf16.msra.mxu1 %v2631_v39 }
 0x42f   :  { %1969 = vmatprep.subr.bf16.mxu1 %v2639_v40 }
 0x432   :  { %1970 = vmatpush1.bf16.msra.mxu1 %v2637_v41 }
 0x433   :  { %1971 = vmatprep.subr.bf16.mxu1 %v2645_v42 }
 0x436   :  { %1972 = vmatpush1.bf16.msra.mxu1 %v2643_v43 }
 0x437   :  { %1973 = vmatprep.subr.bf16.mxu1 %v2651_v44 }
 0x43a   :  { %1974 = vmatpush1.bf16.msra.mxu1 %v2649_v45 }
 0x43b   :  { %1975 = vmatprep.subr.bf16.mxu1 %v2657_v46 }
 0x43e   :  { %1976 = vmatpush1.bf16.msra.mxu1 %v2655_v47 }
 0x43f   :  { %1977 = vmatprep.subr.bf16.mxu1 %v2663_v48 }
 0x442   :  { %1978 = vmatpush1.bf16.msra.mxu1 %v2661_v49 }
 0x443   :  { %1979 = vmatprep.subr.bf16.mxu1 %v2669_v51 }
 0x446   :  { %1980 = vmatpush1.bf16.msra.mxu1 %v2667_v53 }
 0x447   :  { %1981 = vmatprep.subr.bf16.mxu1 %v2675_v55 }
 0x44a   :  { %1982 = vmatpush1.bf16.msra.mxu1 %v2673_v57 }
 0x4e0   :  { %v1493_v63 = vpop.f32.mrb[8].mxu1 }
 0x4e1   :  { %v1494_v0 = vadd.f32 %v1493_v63, %v1292_v60  ;;  %v1495_v1 = vpop.f32.mrb[9].mxu1 }
 0x4e2   :  { %v1496_v2 = vadd.f32 %v1495_v1, %v1296_v62  ;;  %v1497_v3 = vpop.f32.mrb[10].mxu1 }
 0x4e3   :  { %v1500_v4 = vmax.f32 %v1494_v0, 0.0  ;;  %v1498_v5 = vpop.f32.mrb[11].mxu1 }
 0x4e4   :  { %v1501_v6 = vmax.f32 %v1496_v2, 0.0 }
 0x4e5   :  { %v1502_v8 = vpack.c.bf16 %v1500_v4, %v1500_v4 }
 0x4e6   :  { %v1503_v7 = vpack.c.bf16 %v1501_v6, %v1501_v6 }
 0x4e8   :  { %1942 = vmatprep.mubr.bf16.mxu0 %v1503_v7  ;;  %1983 = vmatprep.mubr.bf16.mxu1 %v1503_v7 }
 0x4e9   :  { %1943 = vmatmul.mubr.bf16.vlgmr.msra.gmra.mrb[12].mxu0 %v1502_v8  ;;  %1984 = vmatmul.mubr.bf16.vlgmr.msra.gmra.mrb[12].mxu1 %v1502_v8 }
 0x4ea   :  { %2689 = shalt.err (!%p2686_p4)
}
 0x4eb   :  { %s2690_s5 = scalar_lea.hbm %s3616_s17, 32 }
 0x4ec   :  { %p2691_p5 = scmp.ne.s32.totalorder %s3616_s17, %s2690_s5  ;;  %p2694_p6 = scmp.lt.u32.totalorder %s2690_s5, %s3616_s17 }
 0x4ee   :  { %p2696_p7 = pnand %p2694_p6, %p2691_p5 }
 0x4f0   :  { %2699 = shalt.err (!%p2696_p7)
}
 0x4f1   :  { %2044 = dma.vmem_to_hbm [thread:$0]  %s2042_s13, 32, %s3616_s17, [#allocation3]  }
 0x4f2   :  { %s2700_s30 = scalar_lea.vmem %s2052_s24, 32  ;;  %p2705_p9 = scmp.lt.s32.totalorder %s2052_s24, %s2052_s24 }
 0x4f3   :  { %p2701_p8 = scmp.ne.s32.totalorder %s2052_s24, %s2700_s30  ;;  %p2706_p10 = scmp.lt.s32.totalorder %s2700_s30, %s2700_s30 }
 0x4f5   :  { %p2707_p11 = por %p2706_p10, %p2705_p9 }
 0x4f7   :  { %p2708_p12 = pnand %p2707_p11, %p2701_p8 }
 0x4f9   :  { %2711 = shalt.err (!%p2708_p12)
}
 0x4fa   :  { %s2712_s1 = scalar_lea.hbm %s3617_s18, 32 }
 0x4fb   :  { %p2713_p13 = scmp.ne.s32.totalorder %s3617_s18, %s2712_s1  ;;  %p2716_p0 = scmp.lt.u32.totalorder %s2712_s1, %s3617_s18 }
 0x4fd   :  { %p2718_p1 = pnand %p2716_p0, %p2713_p13 }
 0x4ff   :  { %2721 = shalt.err (!%p2718_p1)
}
 0x500   :  { %2054 = dma.vmem_to_hbm [thread:$0]  %s2052_s24, 32, %s3617_s18, [#allocation5]   ;;  %v1580_v9 = vsub.s32 2, %v2858_v14  ;;  %v1568_v10 = vld [vmem:[%s3614_s15] sm:$0xf]  ;;  %v1584_v11 = vsub.s32 3, %v2858_v14 }
 0x501   :  { %v1573_v12 = vrot.slane %v1568_v10, %v3178_v59  ;;  %v1577_v15 = vrot.slane %v1568_v10, %v3184_v61 }
 0x502   :  { %v1581_v13 = vrot.slane %v1568_v10, %v1580_v9  ;;  %v1585_v16 = vrot.slane %v1568_v10, %v1584_v11 }
 0x5bc   :  { %v1944_v17 = vpop.f32.mrb[12].mxu0  ;;  %v1985_v19 = vpop.f32.mrb[12].mxu1 }
 0x5bd   :  { %v1945_v20 = vadd.f32 %v1944_v17, %v1573_v12  ;;  %v1986_v21 = vadd.f32 %v1985_v19, %v1581_v13  ;;  %v1946_v22 = vpop.f32.mrb[13].mxu0  ;;  %v1987_v23 = vpop.f32.mrb[13].mxu1 }
 0x5be   :  { %v1947_v24 = vadd.f32 %v1946_v22, %v1577_v15  ;;  %v1988_v25 = vadd.f32 %v1987_v23, %v1585_v16  ;;  %v1948_v26 = vpop.f32.mrb[14].mxu0  ;;  %v1989_v27 = vpop.f32.mrb[14].mxu1 }
 0x5bf   :  { %v1992_v28 = vmax.f32 %v1945_v20, 0.0  ;;  %v1994_v29 = vmax.f32 %v1986_v21, 0.0  ;;  %v1949_v30 = vpop.f32.mrb[15].mxu0  ;;  %v1990_v14 = vpop.f32.mrb[15].mxu1 }
 0x5c0   :  { %v1993_v31 = vmax.f32 %v1947_v24, 0.0  ;;  %v1995_v59 = vmax.f32 %v1988_v25, 0.0 }
 0x5c2   :  { %v2296_v32 = vpack.c.bf16 %v1993_v31, %v1992_v28  ;;  %v2297_v33 = vpack.c.bf16 %v1995_v59, %v1994_v29 }
 0x5c4   :  { %v2012_v61 = vrot.slane %v2296_v32, %v2867_v18  ;;  %v2019_v34 = vrot.slane %v2297_v33, %v2867_v18 }
 0x5c6   :  { %v2020_v35 = vcombine.low %v2012_v61, %v2019_v34 }
 0x5c8   :  { %2298 = vst.sshfl [vmem:[%s3615_s16] sm:$0x55 pattern:$0x73625140] %v2020_v35 }
 0x5c9   :  { %2722 = dma.done.wait [#allocation3], 32  }
 0x5ca   :  { %2723 = vsyncadd [#allocation3], 4294967264 }
 0x5cb   :  { %2724 = dma.done.wait [#allocation5], 32  }
 0x5cc   :  { %2725 = vsyncadd [#allocation5], 4294967264 }
 0x5cd   :  { %2063 = vsyncpa [#allocation3], 1 }
 0x5ce   :  { %2064 = vsyncpa [#allocation5], 1 }

// kernel: beta_vae_b_forward.15
= control target key start
LH: loop header
LB: loop body
LE: loop exit
PB: predicated region body
PF: predicated region fallthrough
CT: control target
= control target key end

     0   :  { %vm318_vm0 = vcmask 261120   ;;  %s1138_s1 = inlined_call_operand.vmem [shape: bf16[288,128], index: 1, kind: input, shape index: {}]   ;;  %s1139_s0 = inlined_call_operand.vmem [shape: bf16[128,288], index: 0, kind: input, shape index: {}]   ;;  %s1140_s2 = inlined_call_operand.vmem [shape: f32[1,128], index: 2, kind: input, shape index: {}]   ;;  %s1141_s3 = inlined_call_operand.vmem [shape: bf16[128,128], index: 3, kind: output, shape index: {}]  }
   0x1   :  { %v877_v0 = vld [vmem:[%s1138_s1 + $0x40] sm:$0xff]   ;;  %v879_v2 = vld [vmem:[%s1138_s1 + $0x48] sm:$0xff]   ;;  %v881_v4 = vld [vmem:[%s1138_s1 + $0x50] sm:$0xff]  }
   0x2   :  { %v878_v1 = vld [vmem:[%s1138_s1] sm:$0xff]   ;;  %767 = vmatprep.subr.bf16.mxu0 %v877_v0  ;;  %861 = vmatprep.subr.bf16.mxu1 %v877_v0  ;;  %v880_v3 = vld [vmem:[%s1138_s1 + $0x8] sm:$0xff]   ;;  %v882_v5 = vld [vmem:[%s1138_s1 + $0x10] sm:$0xff]  }
   0x3   :  { %768 = vmatpush3.bf16.msra.mxu0 %v878_v1  ;;  %869 = vmatpush3.bf16.msra.mxu1 %v878_v1  ;;  %v883_v6 = vld [vmem:[%s1138_s1 + $0x58] sm:$0xff]   ;;  %v885_v8 = vld [vmem:[%s1138_s1 + $0x60] sm:$0xff]   ;;  %v887_v10 = vld [vmem:[%s1138_s1 + $0x68] sm:$0xff]  }
   0x4   :  { %769 = vmatprep.subr.bf16.mxu0 %v879_v2  ;;  %862 = vmatprep.subr.bf16.mxu1 %v879_v2  ;;  %v884_v7 = vld [vmem:[%s1138_s1 + $0x18] sm:$0xff]   ;;  %v886_v9 = vld [vmem:[%s1138_s1 + $0x20] sm:$0xff]   ;;  %v888_v13 = vld [vmem:[%s1138_s1 + $0x28] sm:$0xff]  }
   0x5   :  { %v895_v11 = vld [vmem:[%s1139_s0 + $0x4] ss:$12 sps:$4 sm:$0xff]   ;;  %v898_v12 = vld [vmem:[%s1139_s0 + $0x94] ss:$12 sps:$4 sm:$0xff]   ;;  %v891_v16 = vld [vmem:[%s1138_s1 + $0x78] sm:$0xff]  }
   0x6   :  { %v889_v14 = vld [vmem:[%s1138_s1 + $0x70] sm:$0xff]   ;;  %375 = vmatprep.mubr.bf16.mxu0 %v895_v11  ;;  %423 = vmatprep.mubr.bf16.mxu1 %v898_v12  ;;  %v892_v17 = vld [vmem:[%s1138_s1 + $0x38] sm:$0xff]   ;;  %v893_v18 = vld [vmem:[%s1139_s0] ss:$12 sps:$4 sm:$0xff]  }
   0x7   :  { %770 = vmatpush3.bf16.msra.mxu0 %v880_v3  ;;  %870 = vmatpush3.bf16.msra.mxu1 %v880_v3  ;;  %v890_v15 = vld [vmem:[%s1138_s1 + $0x30] sm:$0xff]   ;;  %v899_v19 = vld [vmem:[%s1138_s1 + $0x80] sm:$0xff]   ;;  %v900_v21 = vld [vmem:[%s1139_s0 + $0x1c] ss:$12 sps:$4 sm:$0xff]  }
   0x8   :  { %771 = vmatprep.subr.bf16.mxu0 %v881_v4  ;;  %863 = vmatprep.subr.bf16.mxu1 %v881_v4  ;;  %v896_v20 = vld [vmem:[%s1139_s0 + $0x90] ss:$12 sps:$4 sm:$0xff]   ;;  %v902_v22 = vld [vmem:[%s1139_s0 + $0xac] ss:$12 sps:$4 sm:$0xff]   ;;  %v905_v25 = vld [vmem:[%s1139_s0 + $0xa8] ss:$12 sps:$4 sm:$0xff]  }
   0x9   :  { %v906_v23 = vld [vmem:[%s1138_s1 + $0x88] sm:$0xff]   ;;  %v904_v24 = vld [vmem:[%s1139_s0 + $0x18] ss:$12 sps:$4 sm:$0xff]   ;;  %v907_v26 = vld [vmem:[%s1139_s0 + $0x34] ss:$12 sps:$4 sm:$0xff]  }
   0xa   :  { %v909_v27 = vld [vmem:[%s1139_s0 + $0x8] ss:$12 sps:$4 sm:$0xff]   ;;  %v910_v28 = vld [vmem:[%s1139_s0 + $0x30] ss:$12 sps:$4 sm:$0xff]   ;;  %v911_v29 = vld [vmem:[%s1139_s0 + $0x20] ss:$12 sps:$4 sm:$0xff]  }
   0xb   :  { %772 = vmatpush3.bf16.msra.mxu0 %v882_v5  ;;  %871 = vmatpush3.bf16.msra.mxu1 %v882_v5  ;;  %v912_v30 = vld [vmem:[%s1139_s0 + $0x4c] ss:$12 sps:$4 sm:$0xff]   ;;  %v915_v32 = vld [vmem:[%s1139_s0 + $0x48] ss:$12 sps:$4 sm:$0xff]   ;;  %v916_v33 = vld [vmem:[%s1139_s0 + $0x50] ss:$12 sps:$4 sm:$0xff]  }
   0xc   :  { %773 = vmatprep.subr.bf16.mxu0 %v883_v6  ;;  %864 = vmatprep.subr.bf16.mxu1 %v883_v6  ;;  %v914_v31 = vld [vmem:[%s1139_s0 + $0x38] ss:$12 sps:$4 sm:$0xff]   ;;  %v919_v35 = vld [vmem:[%s1139_s0 + $0x68] ss:$12 sps:$4 sm:$0xff]   ;;  %v920_v36 = vld [vmem:[%s1139_s0 + $0x60] ss:$12 sps:$4 sm:$0xff]  }
   0xd   :  { %v917_v34 = vld [vmem:[%s1139_s0 + $0x64] ss:$12 sps:$4 sm:$0xff]   ;;  %v921_v37 = vld [vmem:[%s1139_s0 + $0x80] ss:$12 sps:$4 sm:$0xff]   ;;  %v922_v38 = vld [vmem:[%s1139_s0 + $0x7c] ss:$12 sps:$4 sm:$0xff]  }
   0xe   :  { %v924_v39 = vld [vmem:[%s1139_s0 + $0x98] ss:$12 sps:$4 sm:$0xff]   ;;  %v926_v41 = vld [vmem:[%s1139_s0 + $0xb0] ss:$12 sps:$4 sm:$0xff]   ;;  %v1092_v2 = vld [vmem:[%s1140_s2] ss:$0 sm:$0xff] }
   0xf   :  { %774 = vmatpush3.bf16.msra.mxu0 %v884_v7  ;;  %872 = vmatpush3.bf16.msra.mxu1 %v884_v7  ;;  %v925_v40 = vld [vmem:[%s1139_s0 + $0x78] ss:$12 sps:$4 sm:$0xff]  }
  0x10   :  { %775 = vmatprep.subr.bf16.mxu0 %v885_v8  ;;  %865 = vmatprep.subr.bf16.mxu1 %v885_v8 }
  0x13   :  { %776 = vmatpush3.bf16.msra.mxu0 %v886_v9  ;;  %873 = vmatpush3.bf16.msra.mxu1 %v886_v9 }
  0x14   :  { %777 = vmatprep.subr.bf16.mxu0 %v887_v10  ;;  %866 = vmatprep.subr.bf16.mxu1 %v887_v10 }
  0x17   :  { %778 = vmatpush3.bf16.msra.mxu0 %v888_v13  ;;  %874 = vmatpush3.bf16.msra.mxu1 %v888_v13 }
  0x18   :  { %779 = vmatprep.subr.bf16.mxu0 %v889_v14  ;;  %867 = vmatprep.subr.bf16.mxu1 %v889_v14 }
  0x1b   :  { %780 = vmatpush3.bf16.msra.mxu0 %v890_v15  ;;  %875 = vmatpush3.bf16.msra.mxu1 %v890_v15 }
  0x1c   :  { %781 = vmatprep.subr.bf16.mxu0 %v891_v16  ;;  %868 = vmatprep.subr.bf16.mxu1 %v891_v16 }
  0x1f   :  { %782 = vmatpush3.bf16.msra.mxu0 %v892_v17  ;;  %876 = vmatpush3.bf16.msra.mxu1 %v892_v17 }
  0x20   :  { %841 = vmatprep.subr.bf16.mxu1 %v899_v19 }
  0x22   :  { %376 = vmatmul.mubr.bf16.vlgmr.msra.gmra.mrb[0].mxu0 %v893_v18  ;;  %424 = vmatmul.mubr.bf16.vlgmr.msra.gmra.mrb[0].mxu1 %v896_v20 }
  0x23   :  { %842 = vmatpush3.bf16.msra.mxu1 %v899_v19  ;;  %383 = vmatprep.mubr.bf16.mxu0 %v900_v21 }
  0x24   :  { %431 = vmatprep.mubr.bf16.mxu1 %v902_v22  ;;  %843 = vmatprep.subr.bf16.mxu1 %v906_v23 }
  0x27   :  { %844 = vmatpush3.bf16.msra.mxu1 %v906_v23 }
  0x2a   :  { %384 = vmatmul.mubr.bf16.gmra.mrb[4].mxu0 %v904_v24  ;;  %432 = vmatmul.mubr.bf16.gmra.mrb[4].mxu1 %v905_v25 }
  0x2b   :  { %391 = vmatprep.mubr.bf16.mxu0 %v907_v26  ;;  %845 = vmatprep.mubr.msk.bf16.mxu1 %vm318_vm0, %v909_v27 }
  0x32   :  { %392 = vmatmul.mubr.bf16.gmra.mrb[8].mxu0 %v910_v28  ;;  %846 = vmatmul.mubr.msk.bf16.vlgmr.msra.gmra.mrb[8].mxu1 %vm318_vm0, %v911_v29 }
  0x33   :  { %399 = vmatprep.mubr.bf16.mxu0 %v912_v30  ;;  %849 = vmatprep.mubr.msk.bf16.mxu1 %vm318_vm0, %v914_v31 }
  0x3a   :  { %400 = vmatmul.mubr.bf16.gmra.mrb[12].mxu0 %v915_v32  ;;  %850 = vmatmul.mubr.msk.bf16.gmra.mrb[12].mxu1 %vm318_vm0, %v916_v33 }
  0x3b   :  { %407 = vmatprep.mubr.bf16.mxu0 %v917_v34  ;;  %853 = vmatprep.mubr.msk.bf16.mxu1 %vm318_vm0, %v919_v35 }
  0x42   :  { %408 = vmatmul.mubr.bf16.gmra.mrb[16].mxu0 %v920_v36  ;;  %854 = vmatmul.mubr.msk.bf16.gmra.mrb[16].mxu1 %vm318_vm0, %v921_v37 }
  0x43   :  { %415 = vmatprep.mubr.bf16.mxu0 %v922_v38  ;;  %857 = vmatprep.mubr.msk.bf16.mxu1 %vm318_vm0, %v924_v39 }
  0x4a   :  { %416 = vmatmul.mubr.bf16.gmra.mrb[20].mxu0 %v925_v40  ;;  %858 = vmatmul.mubr.msk.bf16.gmra.mrb[20].mxu1 %vm318_vm0, %v926_v41 }
  0xf5   :  { %v783_v42 = vpop.f32.mrb[0].mxu0  ;;  %v819_v43 = vpop.f32.mrb[0].mxu1 }
  0xf6   :  { %v784_v44 = vpop.f32.mrb[1].mxu0  ;;  %v820_v45 = vpop.f32.mrb[1].mxu1 }
  0xf7   :  { %v785_v46 = vadd.f32 %v784_v44, %v783_v42  ;;  %v786_v47 = vpop.f32.mrb[2].mxu0  ;;  %v1081_v48 = vadd.f32 %v820_v45, %v819_v43  ;;  %v822_v49 = vpop.f32.mrb[2].mxu1 }
  0xf8   :  { %v787_v50 = vpop.f32.mrb[3].mxu0  ;;  %v823_v51 = vpop.f32.mrb[3].mxu1 }
  0xf9   :  { %v788_v52 = vadd.f32 %v787_v50, %v786_v47  ;;  %v1083_v53 = vadd.f32 %v823_v51, %v822_v49  ;;  %v378_v6 = vadd.f32 %v785_v46, %v1092_v2 }
  0xfb   :  { %v381_v15 = vadd.f32 %v788_v52, %v1092_v2 }
  0xfd   :  { %v789_v54 = vpop.f32.mrb[4].mxu0  ;;  %v825_v55 = vpop.f32.mrb[4].mxu1 }
  0xfe   :  { %v790_v56 = vpop.f32.mrb[5].mxu0  ;;  %v826_v57 = vpop.f32.mrb[5].mxu1 }
  0xff   :  { %v791_v58 = vadd.f32 %v790_v56, %v789_v54  ;;  %v792_v59 = vpop.f32.mrb[6].mxu0  ;;  %v1085_v60 = vadd.f32 %v826_v57, %v825_v55  ;;  %v828_v61 = vpop.f32.mrb[6].mxu1 }
 0x100   :  { %v793_v62 = vpop.f32.mrb[7].mxu0  ;;  %v829_v63 = vpop.f32.mrb[7].mxu1 }
 0x101   :  { %v794_v0 = vadd.f32 %v793_v62, %v792_v59  ;;  %v1087_v1 = vadd.f32 %v829_v63, %v828_v61  ;;  %v386_v3 = vadd.f32 %v791_v58, %v1092_v2 }
 0x103   :  { %v389_v10 = vadd.f32 %v794_v0, %v1092_v2 }
 0x105   :  { %v795_v4 = vpop.f32.mrb[8].mxu0  ;;  %v847_v5 = vpop.f32.mrb[8].mxu1 }
 0x106   :  { %v483_v7 = vadd.f32 %v847_v5, %v386_v3  ;;  %v796_v8 = vpop.f32.mrb[9].mxu0  ;;  %v474_v9 = vpop.f32.mrb[9].mxu1  ;;  %v434_v5 = vadd.f32 %v1085_v60, %v1092_v2 }
 0x107   :  { %v797_v11 = vadd.f32 %v796_v8, %v795_v4  ;;  %v475_v12 = vadd.f32 %v474_v9, %v378_v6  ;;  %v798_v13 = vpop.f32.mrb[10].mxu0  ;;  %v848_v14 = vpop.f32.mrb[10].mxu1  ;;  %v426_v9 = vadd.f32 %v1081_v48, %v1092_v2 }
 0x108   :  { %v486_v16 = vadd.f32 %v848_v14, %v389_v10  ;;  %v799_v17 = vpop.f32.mrb[11].mxu0  ;;  %v477_v18 = vpop.f32.mrb[11].mxu1  ;;  %v539_v21 = vmax.f32 %v483_v7, 0.0 }
 0x109   :  { %v800_v19 = vadd.f32 %v799_v17, %v798_v13  ;;  %v478_v20 = vadd.f32 %v477_v18, %v381_v15  ;;  %v537_v23 = vmax.f32 %v475_v12, 0.0  ;;  %v394_v29 = vadd.f32 %v797_v11, %v1092_v2 }
 0x10a   :  { %v540_v22 = vmax.f32 %v486_v16, 0.0  ;;  %v437_v13 = vadd.f32 %v1087_v1, %v1092_v2 }
 0x10b   :  { %v538_v24 = vmax.f32 %v478_v20, 0.0  ;;  %v397_v36 = vadd.f32 %v800_v19, %v1092_v2 }
 0x10c   :  { %v728_v25 = vpack.c.bf16 %v540_v22, %v539_v21  ;;  %v429_v21 = vadd.f32 %v1083_v53, %v1092_v2 }
 0x10d   :  { %v723_v26 = vpack.c.bf16 %v538_v24, %v537_v23  ;;  %v801_v27 = vpop.f32.mrb[12].mxu0  ;;  %v851_v28 = vpop.f32.mrb[12].mxu1 }
 0x10e   :  { %760 = vst [vmem:[%s1141_s3 + $0x8] sm:$0xff] %v728_v25   ;;  %v802_v30 = vpop.f32.mrb[13].mxu0  ;;  %v490_v31 = vpop.f32.mrb[13].mxu1 }
 0x10f   :  { %724 = vst [vmem:[%s1141_s3] sm:$0xff] %v723_v26   ;;  %v803_v32 = vadd.f32 %v802_v30, %v801_v27  ;;  %v491_v33 = vadd.f32 %v490_v31, %v394_v29  ;;  %v804_v34 = vpop.f32.mrb[14].mxu0  ;;  %v852_v35 = vpop.f32.mrb[14].mxu1 }
 0x110   :  { %v805_v37 = vpop.f32.mrb[15].mxu0  ;;  %v493_v38 = vpop.f32.mrb[15].mxu1 }
 0x111   :  { %v402_v39 = vadd.f32 %v803_v32, %v1092_v2  ;;  %v806_v40 = vadd.f32 %v805_v37, %v804_v34  ;;  %v494_v41 = vadd.f32 %v493_v38, %v397_v36  ;;  %v541_v43 = vmax.f32 %v491_v33, 0.0 }
 0x113   :  { %v499_v42 = vadd.f32 %v851_v28, %v402_v39  ;;  %v405_v44 = vadd.f32 %v806_v40, %v1092_v2  ;;  %v542_v45 = vmax.f32 %v494_v41, 0.0 }
 0x115   :  { %v502_v46 = vadd.f32 %v852_v35, %v405_v44  ;;  %v733_v47 = vpack.c.bf16 %v542_v45, %v541_v43  ;;  %v807_v49 = vpop.f32.mrb[16].mxu0  ;;  %v855_v50 = vpop.f32.mrb[16].mxu1  ;;  %v543_v54 = vmax.f32 %v499_v42, 0.0 }
 0x116   :  { %v808_v51 = vpop.f32.mrb[17].mxu0  ;;  %v506_v52 = vpop.f32.mrb[17].mxu1 }
 0x117   :  { %v544_v55 = vmax.f32 %v502_v46, 0.0  ;;  %761 = vst [vmem:[%s1141_s3 + $0x10] sm:$0xff] %v733_v47   ;;  %v809_v56 = vadd.f32 %v808_v51, %v807_v49  ;;  %v810_v57 = vpop.f32.mrb[18].mxu0  ;;  %v856_v58 = vpop.f32.mrb[18].mxu1 }
 0x118   :  { %v811_v59 = vpop.f32.mrb[19].mxu0  ;;  %v509_v61 = vpop.f32.mrb[19].mxu1 }
 0x119   :  { %v738_v62 = vpack.c.bf16 %v544_v55, %v543_v54  ;;  %v410_v63 = vadd.f32 %v809_v56, %v1092_v2  ;;  %v812_v0 = vadd.f32 %v811_v59, %v810_v57 }
 0x11b   :  { %762 = vst [vmem:[%s1141_s3 + $0x18] sm:$0xff] %v738_v62   ;;  %v507_v3 = vadd.f32 %v506_v52, %v410_v63  ;;  %v413_v4 = vadd.f32 %v812_v0, %v1092_v2 }
 0x11d   :  { %v510_v6 = vadd.f32 %v509_v61, %v413_v4  ;;  %v813_v7 = vpop.f32.mrb[20].mxu0  ;;  %v859_v8 = vpop.f32.mrb[20].mxu1  ;;  %v545_v14 = vmax.f32 %v507_v3, 0.0 }
 0x11e   :  { %v531_v10 = vadd.f32 %v859_v8, %v434_v5  ;;  %v814_v11 = vpop.f32.mrb[21].mxu0  ;;  %v522_v12 = vpop.f32.mrb[21].mxu1 }
 0x11f   :  { %v546_v15 = vmax.f32 %v510_v6, 0.0  ;;  %v815_v16 = vadd.f32 %v814_v11, %v813_v7  ;;  %v523_v17 = vadd.f32 %v522_v12, %v426_v9  ;;  %v816_v18 = vpop.f32.mrb[22].mxu0  ;;  %v860_v19 = vpop.f32.mrb[22].mxu1 }
 0x120   :  { %v534_v20 = vadd.f32 %v860_v19, %v437_v13  ;;  %v817_v60 = vpop.f32.mrb[23].mxu0  ;;  %v525_v22 = vpop.f32.mrb[23].mxu1  ;;  %v551_v25 = vmax.f32 %v531_v10, 0.0 }
 0x121   :  { %v743_v23 = vpack.c.bf16 %v546_v15, %v545_v14  ;;  %v418_v48 = vadd.f32 %v815_v16, %v1092_v2  ;;  %v818_v24 = vadd.f32 %v817_v60, %v816_v18  ;;  %v526_v27 = vadd.f32 %v525_v22, %v429_v21 }
 0x122   :  { %v552_v26 = vmax.f32 %v534_v20, 0.0  ;;  %v549_v29 = vmax.f32 %v523_v17, 0.0 }
 0x123   :  { %763 = vst [vmem:[%s1141_s3 + $0x20] sm:$0xff] %v743_v23   ;;  %v515_v1 = vadd.f32 %v855_v50, %v418_v48  ;;  %v421_v28 = vadd.f32 %v818_v24, %v1092_v2  ;;  %v550_v31 = vmax.f32 %v526_v27, 0.0 }
 0x124   :  { %v758_v30 = vpack.c.bf16 %v552_v26, %v551_v25 }
 0x125   :  { %v518_v32 = vadd.f32 %v856_v58, %v421_v28  ;;  %v753_v53 = vpack.c.bf16 %v550_v31, %v549_v29  ;;  %v547_v33 = vmax.f32 %v515_v1, 0.0 }
 0x126   :  { %766 = vst [vmem:[%s1141_s3 + $0x38] sm:$0xff] %v758_v30  }
 0x127   :  { %v548_v34 = vmax.f32 %v518_v32, 0.0  ;;  %765 = vst [vmem:[%s1141_s3 + $0x30] sm:$0xff] %v753_v53  }
 0x129   :  { %v748_v35 = vpack.c.bf16 %v548_v34, %v547_v33 }
 0x12b   :  { %764 = vst [vmem:[%s1141_s3 + $0x28] sm:$0xff] %v748_v35  }

// kernel: beta_vae_b_forward.16
= control target key start
LH: loop header
LB: loop body
LE: loop exit
PB: predicated region body
PF: predicated region fallthrough
CT: control target
= control target key end

     0   :  { %s1806_s12 = smov 0   ;;  %s2032_s0 = inlined_call_operand.vmem [shape: bf16[512,288], index: 0, kind: input, shape index: {}]   ;;  %s2033_s1 = inlined_call_operand.vmem [shape: bf16[288,128], index: 1, kind: input, shape index: {}]   ;;  %s2034_s2 = inlined_call_operand.vmem [shape: f32[1,128], index: 2, kind: input, shape index: {}]   ;;  %s2035_s3 = inlined_call_operand.vmem [shape: bf16[512,128], index: 3, kind: output, shape index: {}]  }
   0x1 LB: > { %s1252_s13 = sadd.s32 4294967295, %s1784_s12   ;;  %p1256_p0 = scmp.ge.s32.totalorder %s1784_s12, 1  ;;  %s1784_s12 = sphi %s1806_s12, %s13_s12  }
   0x2   : > { %p139_p1 = scmp.lt.s32.totalorder %s1784_s12, 3 }
   0x4   : > { %p140_p2 = pnand %p1256_p0, %p139_p1 }
   0x5   : > { %v1696_v0 = vld [vmem:[%s2033_s1 + $0x40] sm:$0xff] (!%p140_p2)   ;;  %s1257_s16 = sshll.u32 (!%p140_p2), %s1252_s13, 5  ;;  %v1698_v2 = vld [vmem:[%s2033_s1 + $0x48] sm:$0xff] (!%p140_p2)   ;;  %v1700_v4 = vld [vmem:[%s2033_s1 + $0x50] sm:$0xff] (!%p140_p2)   ;;  %vm633_vm0 = vcmask (!%p140_p2), 261120  }
   0x6   : > { %143 = sbr.rel (%p140_p2) target bundleno = 352 (0x160), region = 32  ;;  %v1697_v1 = vld [vmem:[%s2033_s1] sm:$0xff] (!%p140_p2)   ;;  %1505 = vmatprep.subr.bf16.mxu0 (!%p140_p2), %v1696_v0  ;;  %1671 = vmatprep.subr.bf16.mxu1 (!%p140_p2), %v1696_v0  ;;  %p165_p3 = scmp.lt.s32.totalorder (!%p140_p2), %s1257_s16, 63  ;;  %v1699_v3 = vld [vmem:[%s2033_s1 + $0x8] sm:$0xff] (!%p140_p2)   ;;  %v1701_v5 = vld [vmem:[%s2033_s1 + $0x10] sm:$0xff] (!%p140_p2)  }
   0x7   : > { %1506 = vmatpush3.bf16.msra.mxu0 (!%p140_p2), %v1697_v1  ;;  %1679 = vmatpush3.bf16.msra.mxu1 (!%p140_p2), %v1697_v1  ;;  %v1702_v6 = vld [vmem:[%s2033_s1 + $0x58] sm:$0xff] (!%p140_p2)   ;;  %v1704_v8 = vld [vmem:[%s2033_s1 + $0x60] sm:$0xff] (!%p140_p2)   ;;  %v1706_v10 = vld [vmem:[%s2033_s1 + $0x68] sm:$0xff] (!%p140_p2)  }
   0x8   : > { %1507 = vmatprep.subr.bf16.mxu0 (!%p140_p2), %v1698_v2  ;;  %1672 = vmatprep.subr.bf16.mxu1 (!%p140_p2), %v1698_v2  ;;  %v1703_v7 = vld [vmem:[%s2033_s1 + $0x18] sm:$0xff] (!%p140_p2)   ;;  %v1705_v9 = vld [vmem:[%s2033_s1 + $0x20] sm:$0xff] (!%p140_p2)   ;;  %v1707_v13 = vld [vmem:[%s2033_s1 + $0x28] sm:$0xff] (!%p140_p2)  }
   0x9   : > { %v1708_v14 = vld [vmem:[%s2033_s1 + $0x70] sm:$0xff] (!%p140_p2)   ;;  %v1710_v16 = vld [vmem:[%s2033_s1 + $0x78] sm:$0xff] (!%p140_p2)   ;;  %v1718_v18 = vld [vmem:[%s2033_s1 + $0x80] sm:$0xff] (!%p140_p2)  }
   0xa   : > { %v1709_v15 = vld [vmem:[%s2033_s1 + $0x30] sm:$0xff] (!%p140_p2)   ;;  %v1711_v17 = vld [vmem:[%s2033_s1 + $0x38] sm:$0xff] (!%p140_p2)   ;;  %v1731_v23 = vld [vmem:[%s2033_s1 + $0x88] sm:$0xff] (!%p140_p2)  }
   0xb   : > { %1508 = vmatpush3.bf16.msra.mxu0 (!%p140_p2), %v1699_v3  ;;  %1680 = vmatpush3.bf16.msra.mxu1 (!%p140_p2), %v1699_v3 }
   0xc   : > { %1509 = vmatprep.subr.bf16.mxu0 (!%p140_p2), %v1700_v4  ;;  %1673 = vmatprep.subr.bf16.mxu1 (!%p140_p2), %v1700_v4 }
   0xd   : > { %s2037_s16 = smov (!%p165_p3, %s1257_s16), 63 }
   0xe   : > { %s1687_s29 = smul.u32 12, %s2037_s16  ;;  %s1260_s5 = sshll.u32 %s2037_s16, 2 }
   0xf   : > { %1510 = vmatpush3.bf16.msra.mxu0 %v1701_v5  ;;  %1681 = vmatpush3.bf16.msra.mxu1 %v1701_v5  ;;  %s1969_s8 = scalar_lea.vmem %s2035_s3, %s1260_s5 }
  0x10   : > { %1511 = vmatprep.subr.bf16.mxu0 %v1702_v6  ;;  %1674 = vmatprep.subr.bf16.mxu1 %v1702_v6  ;;  %s1847_s9 = scalar_lea.vmem %s2032_s0, %s1687_s29 }
  0x11   : > { %v1714_v11 = vld [vmem:[%s1847_s9 + $0x4] ss:$12 sps:$4 sm:$0xff]   ;;  %v1712_v19 = vld [vmem:[%s1847_s9] ss:$12 sps:$4 sm:$0xff]   ;;  %v1719_v21 = vld [vmem:[%s1847_s9 + $0x1c] ss:$12 sps:$4 sm:$0xff]  }
  0x12   : > { %v1717_v12 = vld [vmem:[%s1847_s9 + $0x124] ss:$12 sps:$4 sm:$0xff]   ;;  %714 = vmatprep.mubr.bf16.mxu0 %v1714_v11  ;;  %v1715_v20 = vld [vmem:[%s1847_s9 + $0x120] ss:$12 sps:$4 sm:$0xff]   ;;  %v1721_v22 = vld [vmem:[%s1847_s9 + $0x13c] ss:$12 sps:$4 sm:$0xff]  }
  0x13   : > { %1512 = vmatpush3.bf16.msra.mxu0 %v1703_v7  ;;  %1682 = vmatpush3.bf16.msra.mxu1 %v1703_v7  ;;  %v1723_v24 = vld [vmem:[%s1847_s9 + $0x18] ss:$12 sps:$4 sm:$0xff]   ;;  %v1725_v26 = vld [vmem:[%s1847_s9 + $0x34] ss:$12 sps:$4 sm:$0xff]   ;;  %v1729_v28 = vld [vmem:[%s1847_s9 + $0x30] ss:$12 sps:$4 sm:$0xff]  }
  0x14   : > { %1513 = vmatprep.subr.bf16.mxu0 %v1704_v8  ;;  %1675 = vmatprep.subr.bf16.mxu1 %v1704_v8  ;;  %v1724_v25 = vld [vmem:[%s1847_s9 + $0x138] ss:$12 sps:$4 sm:$0xff]   ;;  %v1727_v27 = vld [vmem:[%s1847_s9 + $0x154] ss:$12 sps:$4 sm:$0xff]   ;;  %v1730_v29 = vld [vmem:[%s1847_s9 + $0x150] ss:$12 sps:$4 sm:$0xff]  }
  0x15   : > { %810 = vmatprep.mubr.bf16.mxu1 %v1717_v12  ;;  %v1732_v30 = vld [vmem:[%s1847_s9 + $0x4c] ss:$12 sps:$4 sm:$0xff]   ;;  %v1736_v32 = vld [vmem:[%s1847_s9 + $0x48] ss:$12 sps:$4 sm:$0xff]   ;;  %v1738_v34 = vld [vmem:[%s1847_s9 + $0x64] ss:$12 sps:$4 sm:$0xff]  }
  0x16   : > { %v1734_v31 = vld [vmem:[%s1847_s9 + $0x16c] ss:$12 sps:$4 sm:$0xff]   ;;  %v1737_v33 = vld [vmem:[%s1847_s9 + $0x168] ss:$12 sps:$4 sm:$0xff]   ;;  %v1747_v41 = vld [vmem:[%s1847_s9 + $0x50] ss:$12 sps:$4 sm:$0xff]  }
  0x17   : > { %1514 = vmatpush3.bf16.msra.mxu0 %v1705_v9  ;;  %1683 = vmatpush3.bf16.msra.mxu1 %v1705_v9  ;;  %v1740_v35 = vld [vmem:[%s1847_s9 + $0x8] ss:$12 sps:$4 sm:$0xff]   ;;  %v1741_v36 = vld [vmem:[%s1847_s9 + $0x60] ss:$12 sps:$4 sm:$0xff]   ;;  %v1745_v39 = vld [vmem:[%s1847_s9 + $0x38] ss:$12 sps:$4 sm:$0xff]  }
  0x18   : > { %1515 = vmatprep.subr.bf16.mxu0 %v1706_v10  ;;  %1676 = vmatprep.subr.bf16.mxu1 %v1706_v10  ;;  %v1742_v37 = vld [vmem:[%s1847_s9 + $0x20] ss:$12 sps:$4 sm:$0xff]   ;;  %v1743_v38 = vld [vmem:[%s1847_s9 + $0x7c] ss:$12 sps:$4 sm:$0xff]   ;;  %v1746_v40 = vld [vmem:[%s1847_s9 + $0x78] ss:$12 sps:$4 sm:$0xff]  }
  0x19   : > { %v1748_v42 = vld [vmem:[%s1847_s9 + $0x94] ss:$12 sps:$4 sm:$0xff]   ;;  %v1751_v44 = vld [vmem:[%s1847_s9 + $0x90] ss:$12 sps:$4 sm:$0xff]   ;;  %v1753_v46 = vld [vmem:[%s1847_s9 + $0xac] ss:$12 sps:$4 sm:$0xff]  }
  0x1a   : > { %v1750_v43 = vld [vmem:[%s1847_s9 + $0x68] ss:$12 sps:$4 sm:$0xff]   ;;  %v1752_v45 = vld [vmem:[%s1847_s9 + $0x80] ss:$12 sps:$4 sm:$0xff]   ;;  %v1755_v47 = vld [vmem:[%s1847_s9 + $0x98] ss:$12 sps:$4 sm:$0xff]  }
  0x1b   : > { %1516 = vmatpush3.bf16.msra.mxu0 %v1707_v13  ;;  %1684 = vmatpush3.bf16.msra.mxu1 %v1707_v13  ;;  %v1756_v48 = vld [vmem:[%s1847_s9 + $0xa8] ss:$12 sps:$4 sm:$0xff]   ;;  %v1757_v49 = vld [vmem:[%s1847_s9 + $0xb0] ss:$12 sps:$4 sm:$0xff]   ;;  %v1761_v52 = vld [vmem:[%s1847_s9 + $0xc0] ss:$12 sps:$4 sm:$0xff]  }
  0x1c   : > { %1517 = vmatprep.subr.bf16.mxu0 %v1708_v14  ;;  %1677 = vmatprep.subr.bf16.mxu1 %v1708_v14  ;;  %v1758_v50 = vld [vmem:[%s1847_s9 + $0xc4] ss:$12 sps:$4 sm:$0xff]   ;;  %v1760_v51 = vld [vmem:[%s1847_s9 + $0xc8] ss:$12 sps:$4 sm:$0xff]   ;;  %v1762_v53 = vld [vmem:[%s1847_s9 + $0xe0] ss:$12 sps:$4 sm:$0xff]  }
  0x1d   : > { %v1763_v54 = vld [vmem:[%s1847_s9 + $0xdc] ss:$12 sps:$4 sm:$0xff]   ;;  %v1765_v55 = vld [vmem:[%s1847_s9 + $0xf8] ss:$12 sps:$4 sm:$0xff]   ;;  %v1768_v58 = vld [vmem:[%s1847_s9 + $0xf4] ss:$12 sps:$4 sm:$0xff]  }
  0x1e   : > { %v1766_v56 = vld [vmem:[%s1847_s9 + $0xd8] ss:$12 sps:$4 sm:$0xff]   ;;  %v1767_v57 = vld [vmem:[%s1847_s9 + $0x110] ss:$12 sps:$4 sm:$0xff]   ;;  %v1770_v59 = vld [vmem:[%s1847_s9 + $0x128] ss:$12 sps:$4 sm:$0xff]  }
  0x1f   : > { %1518 = vmatpush3.bf16.msra.mxu0 %v1709_v15  ;;  %1685 = vmatpush3.bf16.msra.mxu1 %v1709_v15  ;;  %v1771_v60 = vld [vmem:[%s1847_s9 + $0xf0] ss:$12 sps:$4 sm:$0xff]   ;;  %v1772_v61 = vld [vmem:[%s1847_s9 + $0x140] ss:$12 sps:$4 sm:$0xff]   ;;  %v1775_v63 = vld [vmem:[%s1847_s9 + $0x158] ss:$12 sps:$4 sm:$0xff]  }
  0x20   : > { %1519 = vmatprep.subr.bf16.mxu0 %v1710_v16  ;;  %1678 = vmatprep.subr.bf16.mxu1 %v1710_v16  ;;  %v1773_v62 = vld [vmem:[%s1847_s9 + $0x10c] ss:$12 sps:$4 sm:$0xff]   ;;  %v1776_v0 = vld [vmem:[%s1847_s9 + $0x108] ss:$12 sps:$4 sm:$0xff]   ;;  %v1777_v1 = vld [vmem:[%s1847_s9 + $0x170] ss:$12 sps:$4 sm:$0xff]  }
  0x23   : > { %1520 = vmatpush3.bf16.msra.mxu0 %v1711_v17  ;;  %1686 = vmatpush3.bf16.msra.mxu1 %v1711_v17 }
  0x24   : > { %1635 = vmatprep.subr.bf16.mxu1 %v1718_v18 }
  0x26   : > { %715 = vmatmul.mubr.bf16.vlgmr.msra.gmra.mrb[0].mxu0 %v1712_v19  ;;  %811 = vmatmul.mubr.bf16.vlgmr.msra.gmra.mrb[0].mxu1 %v1715_v20 }
  0x27   : > { %1636 = vmatpush3.bf16.msra.mxu1 %v1718_v18  ;;  %722 = vmatprep.mubr.bf16.mxu0 %v1719_v21 }
  0x28   : > { %818 = vmatprep.mubr.bf16.mxu1 %v1721_v22  ;;  %1637 = vmatprep.subr.bf16.mxu1 %v1731_v23 }
  0x2b   : > { %1638 = vmatpush3.bf16.msra.mxu1 %v1731_v23 }
  0x2e   : > { %723 = vmatmul.mubr.bf16.gmra.mrb[4].mxu0 %v1723_v24  ;;  %819 = vmatmul.mubr.bf16.gmra.mrb[4].mxu1 %v1724_v25 }
  0x2f   : > { %730 = vmatprep.mubr.bf16.mxu0 %v1725_v26  ;;  %826 = vmatprep.mubr.bf16.mxu1 %v1727_v27 }
  0x36   : > { %731 = vmatmul.mubr.bf16.gmra.mrb[8].mxu0 %v1729_v28  ;;  %827 = vmatmul.mubr.bf16.gmra.mrb[8].mxu1 %v1730_v29 }
  0x37   : > { %738 = vmatprep.mubr.bf16.mxu0 %v1732_v30  ;;  %834 = vmatprep.mubr.bf16.mxu1 %v1734_v31 }
  0x3e   : > { %739 = vmatmul.mubr.bf16.gmra.mrb[12].mxu0 %v1736_v32  ;;  %835 = vmatmul.mubr.bf16.gmra.mrb[12].mxu1 %v1737_v33 }
  0x3f   : > { %746 = vmatprep.mubr.bf16.mxu0 %v1738_v34  ;;  %1639 = vmatprep.mubr.msk.bf16.mxu1 %vm633_vm0, %v1740_v35 }
  0x46   : > { %747 = vmatmul.mubr.bf16.gmra.mrb[16].mxu0 %v1741_v36  ;;  %1640 = vmatmul.mubr.msk.bf16.vlgmr.msra.gmra.mrb[16].mxu1 %vm633_vm0, %v1742_v37 }
  0x47   : > { %754 = vmatprep.mubr.bf16.mxu0 %v1743_v38  ;;  %1643 = vmatprep.mubr.msk.bf16.mxu1 %vm633_vm0, %v1745_v39 }
  0x4e   : > { %755 = vmatmul.mubr.bf16.gmra.mrb[20].mxu0 %v1746_v40  ;;  %1644 = vmatmul.mubr.msk.bf16.gmra.mrb[20].mxu1 %vm633_vm0, %v1747_v41 }
  0x4f   : > { %762 = vmatprep.mubr.bf16.mxu0 %v1748_v42  ;;  %1647 = vmatprep.mubr.msk.bf16.mxu1 %vm633_vm0, %v1750_v43 }
  0x56   : > { %763 = vmatmul.mubr.bf16.gmra.mrb[24].mxu0 %v1751_v44  ;;  %1648 = vmatmul.mubr.msk.bf16.gmra.mrb[24].mxu1 %vm633_vm0, %v1752_v45 }
  0x57   : > { %770 = vmatprep.mubr.bf16.mxu0 %v1753_v46  ;;  %1651 = vmatprep.mubr.msk.bf16.mxu1 %vm633_vm0, %v1755_v47 }
  0x5e   : > { %771 = vmatmul.mubr.bf16.gmra.mrb[28].mxu0 %v1756_v48  ;;  %1652 = vmatmul.mubr.msk.bf16.gmra.mrb[28].mxu1 %vm633_vm0, %v1757_v49 }
  0x5f   : > { %778 = vmatprep.mubr.bf16.mxu0 %v1758_v50  ;;  %1655 = vmatprep.mubr.msk.bf16.mxu1 %vm633_vm0, %v1760_v51  ;;  %v1959_v50 = vld [vmem:[%s2034_s2] ss:$0 sm:$0xff] }
  0x66   : > { %779 = vmatmul.mubr.bf16.gmra.mrb[32].mxu0 %v1761_v52  ;;  %1656 = vmatmul.mubr.msk.bf16.gmra.mrb[32].mxu1 %vm633_vm0, %v1762_v53 }
  0x67   : > { %786 = vmatprep.mubr.bf16.mxu0 %v1763_v54  ;;  %1659 = vmatprep.mubr.msk.bf16.mxu1 %vm633_vm0, %v1765_v55 }
  0x6e   : > { %787 = vmatmul.mubr.bf16.gmra.mrb[36].mxu0 %v1766_v56  ;;  %1660 = vmatmul.mubr.msk.bf16.gmra.mrb[36].mxu1 %vm633_vm0, %v1767_v57 }
  0x6f   : > { %794 = vmatprep.mubr.bf16.mxu0 %v1768_v58  ;;  %1663 = vmatprep.mubr.msk.bf16.mxu1 %vm633_vm0, %v1770_v59 }
  0x76   : > { %795 = vmatmul.mubr.bf16.gmra.mrb[40].mxu0 %v1771_v60  ;;  %1664 = vmatmul.mubr.msk.bf16.gmra.mrb[40].mxu1 %vm633_vm0, %v1772_v61 }
  0x77   : > { %802 = vmatprep.mubr.bf16.mxu0 %v1773_v62  ;;  %1667 = vmatprep.mubr.msk.bf16.mxu1 %vm633_vm0, %v1775_v63 }
  0x7e   : > { %803 = vmatmul.mubr.bf16.gmra.mrb[44].mxu0 %v1776_v0  ;;  %1668 = vmatmul.mubr.msk.bf16.gmra.mrb[44].mxu1 %vm633_vm0, %v1777_v1 }
  0xf9   : > { %v1521_v2 = vpop.f32.mrb[0].mxu0  ;;  %v1593_v3 = vpop.f32.mrb[0].mxu1 }
  0xfa   : > { %v1522_v4 = vpop.f32.mrb[1].mxu0  ;;  %v1594_v5 = vpop.f32.mrb[1].mxu1 }
  0xfb   : > { %v1523_v6 = vadd.f32 %v1522_v4, %v1521_v2  ;;  %v1524_v7 = vpop.f32.mrb[2].mxu0  ;;  %v1940_v8 = vadd.f32 %v1594_v5, %v1593_v3  ;;  %v1596_v9 = vpop.f32.mrb[2].mxu1 }
  0xfc   : > { %v1525_v10 = vpop.f32.mrb[3].mxu0  ;;  %v1597_v11 = vpop.f32.mrb[3].mxu1 }
  0xfd   : > { %v1526_v12 = vadd.f32 %v1525_v10, %v1524_v7  ;;  %v1942_v13 = vadd.f32 %v1597_v11, %v1596_v9  ;;  %v717_v54 = vadd.f32 %v1523_v6, %v1959_v50 }
  0xff   : > { %v720_v63 = vadd.f32 %v1526_v12, %v1959_v50 }
 0x101   : > { %v1527_v14 = vpop.f32.mrb[4].mxu0  ;;  %v1599_v15 = vpop.f32.mrb[4].mxu1 }
 0x102   : > { %v1528_v16 = vpop.f32.mrb[5].mxu0  ;;  %v1600_v17 = vpop.f32.mrb[5].mxu1 }
 0x103   : > { %v1529_v18 = vadd.f32 %v1528_v16, %v1527_v14  ;;  %v1530_v19 = vpop.f32.mrb[6].mxu0  ;;  %v1944_v20 = vadd.f32 %v1600_v17, %v1599_v15  ;;  %v1602_v21 = vpop.f32.mrb[6].mxu1 }
 0x104   : > { %v1531_v22 = vpop.f32.mrb[7].mxu0  ;;  %v1603_v23 = vpop.f32.mrb[7].mxu1 }
 0x105   : > { %v1532_v24 = vadd.f32 %v1531_v22, %v1530_v19  ;;  %v1946_v25 = vadd.f32 %v1603_v23, %v1602_v21  ;;  %v725_v51 = vadd.f32 %v1529_v18, %v1959_v50 }
 0x107   : > { %v728_v58 = vadd.f32 %v1532_v24, %v1959_v50 }
 0x109   : > { %v1533_v26 = vpop.f32.mrb[8].mxu0  ;;  %v1605_v27 = vpop.f32.mrb[8].mxu1 }
 0x10a   : > { %v1534_v28 = vpop.f32.mrb[9].mxu0  ;;  %v1606_v29 = vpop.f32.mrb[9].mxu1 }
 0x10b   : > { %v1535_v30 = vadd.f32 %v1534_v28, %v1533_v26  ;;  %v1536_v31 = vpop.f32.mrb[10].mxu0  ;;  %v1948_v32 = vadd.f32 %v1606_v29, %v1605_v27  ;;  %v1608_v33 = vpop.f32.mrb[10].mxu1 }
 0x10c   : > { %v1537_v34 = vpop.f32.mrb[11].mxu0  ;;  %v1609_v35 = vpop.f32.mrb[11].mxu1 }
 0x10d   : > { %v1538_v36 = vadd.f32 %v1537_v34, %v1536_v31  ;;  %v1950_v37 = vadd.f32 %v1609_v35, %v1608_v33  ;;  %v733_v16 = vadd.f32 %v1535_v30, %v1959_v50 }
 0x10f   : > { %v736_v27 = vadd.f32 %v1538_v36, %v1959_v50 }
 0x111   : > { %v1539_v38 = vpop.f32.mrb[12].mxu0  ;;  %v1611_v39 = vpop.f32.mrb[12].mxu1 }
 0x112   : > { %v1540_v40 = vpop.f32.mrb[13].mxu0  ;;  %v1612_v41 = vpop.f32.mrb[13].mxu1 }
 0x113   : > { %v1541_v42 = vadd.f32 %v1540_v40, %v1539_v38  ;;  %v1542_v43 = vpop.f32.mrb[14].mxu0  ;;  %v1952_v44 = vadd.f32 %v1612_v41, %v1611_v39  ;;  %v1614_v45 = vpop.f32.mrb[14].mxu1 }
 0x114   : > { %v1543_v46 = vpop.f32.mrb[15].mxu0  ;;  %v1615_v47 = vpop.f32.mrb[15].mxu1 }
 0x115   : > { %v1544_v48 = vadd.f32 %v1543_v46, %v1542_v43  ;;  %v1954_v49 = vadd.f32 %v1615_v47, %v1614_v45  ;;  %v741_v11 = vadd.f32 %v1541_v42, %v1959_v50 }
 0x117   : > { %v744_v21 = vadd.f32 %v1544_v48, %v1959_v50 }
 0x119   : > { %v1545_v52 = vpop.f32.mrb[16].mxu0  ;;  %v1641_v53 = vpop.f32.mrb[16].mxu1 }
 0x11a   : > { %v886_v55 = vadd.f32 %v1641_v53, %v725_v51  ;;  %v1546_v56 = vpop.f32.mrb[17].mxu0  ;;  %v877_v57 = vpop.f32.mrb[17].mxu1 }
 0x11b   : > { %v1547_v59 = vadd.f32 %v1546_v56, %v1545_v52  ;;  %v878_v60 = vadd.f32 %v877_v57, %v717_v54  ;;  %v1548_v61 = vpop.f32.mrb[18].mxu0  ;;  %v1642_v62 = vpop.f32.mrb[18].mxu1 }
 0x11c   : > { %v889_v0 = vadd.f32 %v1642_v62, %v728_v58  ;;  %v1549_v1 = vpop.f32.mrb[19].mxu0  ;;  %v880_v2 = vpop.f32.mrb[19].mxu1  ;;  %v1006_v5 = vmax.f32 %v886_v55, 0.0 }
 0x11d   : > { %v1550_v3 = vadd.f32 %v1549_v1, %v1548_v61  ;;  %v881_v4 = vadd.f32 %v880_v2, %v720_v63  ;;  %v1004_v6 = vmax.f32 %v878_v60, 0.0  ;;  %v749_v46 = vadd.f32 %v1547_v59, %v1959_v50 }
 0x11e   : > { %v1007_v7 = vmax.f32 %v889_v0, 0.0 }
 0x11f   : > { %v1005_v9 = vmax.f32 %v881_v4, 0.0  ;;  %v752_v56 = vadd.f32 %v1550_v3, %v1959_v50 }
 0x120   : > { %v1418_v10 = vpack.c.bf16 %v1007_v7, %v1006_v5 }
 0x121   : > { %v1413_v12 = vpack.c.bf16 %v1005_v9, %v1004_v6  ;;  %v1551_v14 = vpop.f32.mrb[20].mxu0  ;;  %v1645_v15 = vpop.f32.mrb[20].mxu1 }
 0x122   : > { %1490 = vst [vmem:[%s1969_s8 + $0x8] sm:$0xff] %v1418_v10   ;;  %v902_v17 = vadd.f32 %v1645_v15, %v741_v11  ;;  %v1552_v18 = vpop.f32.mrb[21].mxu0  ;;  %v893_v19 = vpop.f32.mrb[21].mxu1 }
 0x123   : > { %1414 = vst [vmem:[%s1969_s8] sm:$0xff] %v1413_v12   ;;  %v1553_v22 = vadd.f32 %v1552_v18, %v1551_v14  ;;  %v894_v23 = vadd.f32 %v893_v19, %v733_v16  ;;  %v1554_v24 = vpop.f32.mrb[22].mxu0  ;;  %v1646_v26 = vpop.f32.mrb[22].mxu1 }
 0x124   : > { %v905_v28 = vadd.f32 %v1646_v26, %v744_v21  ;;  %v1555_v29 = vpop.f32.mrb[23].mxu0  ;;  %v896_v31 = vpop.f32.mrb[23].mxu1  ;;  %v1010_v30 = vmax.f32 %v902_v17, 0.0 }
 0x125   : > { %v1556_v33 = vadd.f32 %v1555_v29, %v1554_v24  ;;  %v897_v34 = vadd.f32 %v896_v31, %v736_v27  ;;  %v1008_v38 = vmax.f32 %v894_v23, 0.0  ;;  %v757_v41 = vadd.f32 %v1553_v22, %v1959_v50 }
 0x126   : > { %v1011_v35 = vmax.f32 %v905_v28, 0.0 }
 0x127   : > { %v1009_v39 = vmax.f32 %v897_v34, 0.0  ;;  %v760_v51 = vadd.f32 %v1556_v33, %v1959_v50 }
 0x128   : > { %v1428_v40 = vpack.c.bf16 %v1011_v35, %v1010_v30 }
 0x129   : > { %v1423_v42 = vpack.c.bf16 %v1009_v39, %v1008_v38  ;;  %v1557_v43 = vpop.f32.mrb[24].mxu0  ;;  %v1649_v45 = vpop.f32.mrb[24].mxu1 }
 0x12a   : > { %1492 = vst [vmem:[%s1969_s8 + $0x18] sm:$0xff] %v1428_v40   ;;  %v918_v36 = vadd.f32 %v1649_v45, %v757_v41  ;;  %v1558_v47 = vpop.f32.mrb[25].mxu0  ;;  %v909_v48 = vpop.f32.mrb[25].mxu1 }
 0x12b   : > { %1491 = vst [vmem:[%s1969_s8 + $0x10] sm:$0xff] %v1423_v42   ;;  %v1559_v52 = vadd.f32 %v1558_v47, %v1557_v43  ;;  %v910_v53 = vadd.f32 %v909_v48, %v749_v46  ;;  %v1560_v54 = vpop.f32.mrb[26].mxu0  ;;  %v1650_v55 = vpop.f32.mrb[26].mxu1 }
 0x12c   : > { %v921_v57 = vadd.f32 %v1650_v55, %v760_v51  ;;  %v1561_v58 = vpop.f32.mrb[27].mxu0  ;;  %v912_v60 = vpop.f32.mrb[27].mxu1  ;;  %v1014_v62 = vmax.f32 %v918_v36, 0.0 }
 0x12d   : > { %v1562_v61 = vadd.f32 %v1561_v58, %v1560_v54  ;;  %v913_v59 = vadd.f32 %v912_v60, %v752_v56  ;;  %v1012_v0 = vmax.f32 %v910_v53, 0.0  ;;  %v765_v6 = vadd.f32 %v1559_v52, %v1959_v50 }
 0x12e   : > { %v1015_v63 = vmax.f32 %v921_v57, 0.0 }
 0x12f   : > { %v1013_v1 = vmax.f32 %v913_v59, 0.0  ;;  %v768_v15 = vadd.f32 %v1562_v61, %v1959_v50 }
 0x130   : > { %v1438_v2 = vpack.c.bf16 %v1015_v63, %v1014_v62 }
 0x131   : > { %v1433_v4 = vpack.c.bf16 %v1013_v1, %v1012_v0  ;;  %v1563_v5 = vpop.f32.mrb[28].mxu0  ;;  %v1653_v7 = vpop.f32.mrb[28].mxu1 }
 0x132   : > { %1494 = vst [vmem:[%s1969_s8 + $0x28] sm:$0xff] %v1438_v2   ;;  %v1564_v9 = vpop.f32.mrb[29].mxu0  ;;  %v925_v10 = vpop.f32.mrb[29].mxu1 }
 0x133   : > { %1493 = vst [vmem:[%s1969_s8 + $0x20] sm:$0xff] %v1433_v4   ;;  %v1565_v3 = vadd.f32 %v1564_v9, %v1563_v5  ;;  %v926_v11 = vadd.f32 %v925_v10, %v765_v6  ;;  %v1566_v12 = vpop.f32.mrb[30].mxu0  ;;  %v1654_v14 = vpop.f32.mrb[30].mxu1  ;;  %v821_v4 = vadd.f32 %v1944_v20, %v1959_v50  ;;  %v813_v9 = vadd.f32 %v1940_v8, %v1959_v50 }
 0x134   : > { %v1567_v16 = vpop.f32.mrb[31].mxu0  ;;  %v928_v17 = vpop.f32.mrb[31].mxu1 }
 0x135   : > { %v773_v18 = vadd.f32 %v1565_v3, %v1959_v50  ;;  %v1568_v19 = vadd.f32 %v1567_v16, %v1566_v12  ;;  %v929_v21 = vadd.f32 %v928_v17, %v768_v15  ;;  %v1016_v23 = vmax.f32 %v926_v11, 0.0 }
 0x136   : > { %v824_v12 = vadd.f32 %v1946_v25, %v1959_v50 }
 0x137   : > { %v934_v22 = vadd.f32 %v1653_v7, %v773_v18  ;;  %v776_v24 = vadd.f32 %v1568_v19, %v1959_v50  ;;  %v1017_v26 = vmax.f32 %v929_v21, 0.0 }
 0x139   : > { %v937_v27 = vadd.f32 %v1654_v14, %v776_v24  ;;  %v1443_v28 = vpack.c.bf16 %v1017_v26, %v1016_v23  ;;  %v1569_v29 = vpop.f32.mrb[32].mxu0  ;;  %v1657_v31 = vpop.f32.mrb[32].mxu1  ;;  %v1018_v30 = vmax.f32 %v934_v22, 0.0  ;;  %v816_v22 = vadd.f32 %v1942_v13, %v1959_v50 }
 0x13a   : > { %v1570_v33 = vpop.f32.mrb[33].mxu0  ;;  %v941_v34 = vpop.f32.mrb[33].mxu1 }
 0x13b   : > { %v1019_v35 = vmax.f32 %v937_v27, 0.0  ;;  %1495 = vst [vmem:[%s1969_s8 + $0x30] sm:$0xff] %v1443_v28   ;;  %v1571_v38 = vadd.f32 %v1570_v33, %v1569_v29  ;;  %v1572_v39 = vpop.f32.mrb[34].mxu0  ;;  %v1658_v40 = vpop.f32.mrb[34].mxu1 }
 0x13c   : > { %v1573_v41 = vpop.f32.mrb[35].mxu0  ;;  %v944_v42 = vpop.f32.mrb[35].mxu1 }
 0x13d   : > { %v1448_v43 = vpack.c.bf16 %v1019_v35, %v1018_v30  ;;  %v781_v45 = vadd.f32 %v1571_v38, %v1959_v50  ;;  %v1574_v46 = vadd.f32 %v1573_v41, %v1572_v39  ;;  %v837_v35 = vadd.f32 %v1952_v44, %v1959_v50 }
 0x13f   : > { %1496 = vst [vmem:[%s1969_s8 + $0x38] sm:$0xff] %v1448_v43   ;;  %v942_v36 = vadd.f32 %v941_v34, %v781_v45  ;;  %v784_v47 = vadd.f32 %v1574_v46, %v1959_v50  ;;  %v840_v46 = vadd.f32 %v1954_v49, %v1959_v50 }
 0x141   : > { %v945_v48 = vadd.f32 %v944_v42, %v784_v47  ;;  %v1575_v51 = vpop.f32.mrb[36].mxu0  ;;  %v1993_v52 = vpop.f32.mrb[36].mxu1  ;;  %v1020_v55 = vmax.f32 %v942_v36, 0.0 }
 0x142   : > { %v1576_v53 = vpop.f32.mrb[37].mxu0  ;;  %v957_v54 = vpop.f32.mrb[37].mxu1 }
 0x143   : > { %v1021_v56 = vmax.f32 %v945_v48, 0.0  ;;  %v1577_v57 = vadd.f32 %v1576_v53, %v1575_v51  ;;  %v1578_v58 = vpop.f32.mrb[38].mxu0  ;;  %v1995_v60 = vpop.f32.mrb[38].mxu1 }
 0x144   : > { %v1579_v61 = vpop.f32.mrb[39].mxu0  ;;  %v960_v59 = vpop.f32.mrb[39].mxu1 }
 0x145   : > { %v1453_v62 = vpack.c.bf16 %v1021_v56, %v1020_v55  ;;  %v789_v63 = vadd.f32 %v1577_v57, %v1959_v50  ;;  %v1580_v0 = vadd.f32 %v1579_v61, %v1578_v58 }
 0x147   : > { %1497 = vst [vmem:[%s1969_s8 + $0x40] sm:$0xff] %v1453_v62   ;;  %v950_v1 = vadd.f32 %v1657_v31, %v789_v63  ;;  %v792_v2 = vadd.f32 %v1580_v0, %v1959_v50 }
 0x149   : > { %v953_v5 = vadd.f32 %v1658_v40, %v792_v2  ;;  %v1581_v7 = vpop.f32.mrb[40].mxu0  ;;  %v1665_v6 = vpop.f32.mrb[40].mxu1  ;;  %v1022_v14 = vmax.f32 %v950_v1, 0.0  ;;  %v829_v40 = vadd.f32 %v1948_v32, %v1959_v50  ;;  %v832_v32 = vadd.f32 %v1950_v37, %v1959_v50 }
 0x14a   : > { %v982_v10 = vadd.f32 %v1665_v6, %v821_v4  ;;  %v1582_v3 = vpop.f32.mrb[41].mxu0  ;;  %v973_v11 = vpop.f32.mrb[41].mxu1 }
 0x14b   : > { %v1023_v15 = vmax.f32 %v953_v5, 0.0  ;;  %v1583_v16 = vadd.f32 %v1582_v3, %v1581_v7  ;;  %v974_v17 = vadd.f32 %v973_v11, %v813_v9  ;;  %v1584_v18 = vpop.f32.mrb[42].mxu0  ;;  %v1666_v19 = vpop.f32.mrb[42].mxu1 }
 0x14c   : > { %v985_v20 = vadd.f32 %v1666_v19, %v824_v12  ;;  %v1585_v21 = vpop.f32.mrb[43].mxu0  ;;  %v976_v23 = vpop.f32.mrb[43].mxu1  ;;  %v1030_v27 = vmax.f32 %v982_v10, 0.0 }
 0x14d   : > { %v1458_v8 = vpack.c.bf16 %v1023_v15, %v1022_v14  ;;  %v797_v24 = vadd.f32 %v1583_v16, %v1959_v50  ;;  %v1586_v26 = vadd.f32 %v1585_v21, %v1584_v18  ;;  %v977_v28 = vadd.f32 %v976_v23, %v816_v22 }
 0x14e   : > { %v1031_v25 = vmax.f32 %v985_v20, 0.0  ;;  %v1028_v33 = vmax.f32 %v974_v17, 0.0 }
 0x14f   : > { %1498 = vst [vmem:[%s1969_s8 + $0x48] sm:$0xff] %v1458_v8   ;;  %v958_v29 = vadd.f32 %v957_v54, %v797_v24  ;;  %v800_v31 = vadd.f32 %v1586_v26, %v1959_v50  ;;  %v1029_v30 = vmax.f32 %v977_v28, 0.0 }
 0x150   : > { %v1478_v34 = vpack.c.bf16 %v1031_v25, %v1030_v27 }
 0x151   : > { %v961_v13 = vadd.f32 %v960_v59, %v800_v31  ;;  %v1587_v38 = vpop.f32.mrb[44].mxu0  ;;  %v1669_v39 = vpop.f32.mrb[44].mxu1  ;;  %v1473_v41 = vpack.c.bf16 %v1029_v30, %v1028_v33  ;;  %v1024_v36 = vmax.f32 %v958_v29, 0.0 }
 0x152   : > { %1502 = vst [vmem:[%s1969_s8 + $0x68] sm:$0xff] %v1478_v34   ;;  %v998_v42 = vadd.f32 %v1669_v39, %v837_v35  ;;  %v1588_v43 = vpop.f32.mrb[45].mxu0  ;;  %v989_v45 = vpop.f32.mrb[45].mxu1 }
 0x153   : > { %v1025_v47 = vmax.f32 %v961_v13, 0.0  ;;  %v1589_v48 = vadd.f32 %v1588_v43, %v1587_v38  ;;  %v990_v44 = vadd.f32 %v989_v45, %v829_v40  ;;  %v1590_v51 = vpop.f32.mrb[46].mxu0  ;;  %v1670_v53 = vpop.f32.mrb[46].mxu1  ;;  %1501 = vst [vmem:[%s1969_s8 + $0x60] sm:$0xff] %v1473_v41  }
 0x154   : > { %v1001_v54 = vadd.f32 %v1670_v53, %v840_v46  ;;  %v1591_v55 = vpop.f32.mrb[47].mxu0  ;;  %v992_v56 = vpop.f32.mrb[47].mxu1  ;;  %v1034_v61 = vmax.f32 %v998_v42, 0.0 }
 0x155   : > { %v1463_v57 = vpack.c.bf16 %v1025_v47, %v1024_v36  ;;  %v805_v58 = vadd.f32 %v1589_v48, %v1959_v50  ;;  %v1592_v49 = vadd.f32 %v1591_v55, %v1590_v51  ;;  %v993_v62 = vadd.f32 %v992_v56, %v832_v32 }
 0x156   : > { %v1035_v59 = vmax.f32 %v1001_v54, 0.0  ;;  %v1032_v1 = vmax.f32 %v990_v44, 0.0 }
 0x157   : > { %1499 = vst [vmem:[%s1969_s8 + $0x50] sm:$0xff] %v1463_v57   ;;  %v966_v63 = vadd.f32 %v1993_v52, %v805_v58  ;;  %v808_v0 = vadd.f32 %v1592_v49, %v1959_v50  ;;  %v1033_v4 = vmax.f32 %v993_v62, 0.0 }
 0x158   : > { %v1488_v2 = vpack.c.bf16 %v1035_v59, %v1034_v61 }
 0x159   : > { %v969_v37 = vadd.f32 %v1995_v60, %v808_v0  ;;  %v1483_v5 = vpack.c.bf16 %v1033_v4, %v1032_v1  ;;  %v1026_v7 = vmax.f32 %v966_v63, 0.0 }
 0x15a   : > { %1504 = vst [vmem:[%s1969_s8 + $0x78] sm:$0xff] %v1488_v2  }
 0x15b   : > { %v1027_v6 = vmax.f32 %v969_v37, 0.0  ;;  %1503 = vst [vmem:[%s1969_s8 + $0x70] sm:$0xff] %v1483_v5  }
 0x15d   : > { %v1468_v9 = vpack.c.bf16 %v1027_v6, %v1026_v7 }
 0x15f   : > { %1500 = vst [vmem:[%s1969_s8 + $0x58] sm:$0xff] %v1468_v9  }
 0x160 PF: > { %s13_s12 = sadd.s32 1, %s1784_s12  }
 0x161   : > { %p10_p4 = scmp.ge.s32.totalorder %s13_s12, 4  }
 0x163   :  { %12 = sbr.rel (!%p10_p4) target bundleno = 1 (0x1), region = 62 }

// kernel: beta_vae_b_forward.17
= control target key start
LH: loop header
LB: loop body
LE: loop exit
PB: predicated region body
PF: predicated region fallthrough
CT: control target
= control target key end

     0   :  { %s4867_s1 = inlined_call_operand.vmem [shape: bf16[3072,128], index: 1, kind: input, shape index: {}]   ;;  %s4868_s0 = inlined_call_operand.vmem [shape: bf16[64,3072], index: 0, kind: input, shape index: {}]   ;;  %s4869_s2 = inlined_call_operand.vmem [shape: f32[1,128], index: 2, kind: input, shape index: {}]   ;;  %s4870_s3 = inlined_call_operand.vmem [shape: f32[64,128], index: 3, kind: output, shape index: {}]  }
   0x1   :  { %v3695_v0 = vld [vmem:[%s4867_s1 + $0x40] sm:$0xff]   ;;  %v3699_v4 = vld [vmem:[%s4867_s1 + $0x48] sm:$0xff]   ;;  %v3703_v8 = vld [vmem:[%s4867_s1 + $0x50] sm:$0xff]  }
   0x2   :  { %v3696_v1 = vld [vmem:[%s4867_s1 + $0xc0] sm:$0xff]   ;;  %3215 = vmatprep.subr.bf16.mxu0 %v3695_v0  ;;  %v3700_v5 = vld [vmem:[%s4867_s1 + $0xc8] sm:$0xff]   ;;  %v3704_v9 = vld [vmem:[%s4867_s1 + $0xd0] sm:$0xff]  }
   0x3   :  { %v3697_v2 = vld [vmem:[%s4867_s1] sm:$0xff]   ;;  %3255 = vmatprep.subr.bf16.mxu1 %v3696_v1  ;;  %v3701_v6 = vld [vmem:[%s4867_s1 + $0x8] sm:$0xff]   ;;  %v3705_v10 = vld [vmem:[%s4867_s1 + $0x10] sm:$0xff]  }
   0x4   :  { %v3698_v3 = vld [vmem:[%s4867_s1 + $0x80] sm:$0xff]   ;;  %3216 = vmatpush3.bf16.msra.mxu0 %v3697_v2  ;;  %v3702_v7 = vld [vmem:[%s4867_s1 + $0x88] sm:$0xff]   ;;  %v3706_v11 = vld [vmem:[%s4867_s1 + $0x90] sm:$0xff]  }
   0x5   :  { %3256 = vmatpush3.bf16.msra.mxu1 %v3698_v3  ;;  %3217 = vmatprep.subr.bf16.mxu0 %v3699_v4  ;;  %v3707_v12 = vld [vmem:[%s4867_s1 + $0x58] sm:$0xff]   ;;  %v3711_v16 = vld [vmem:[%s4867_s1 + $0x60] sm:$0xff]   ;;  %v3715_v20 = vld [vmem:[%s4867_s1 + $0x68] sm:$0xff]  }
   0x6   :  { %3257 = vmatprep.subr.bf16.mxu1 %v3700_v5  ;;  %v3708_v13 = vld [vmem:[%s4867_s1 + $0xd8] sm:$0xff]   ;;  %v3712_v17 = vld [vmem:[%s4867_s1 + $0xe0] sm:$0xff]   ;;  %v3716_v21 = vld [vmem:[%s4867_s1 + $0xe8] sm:$0xff]  }
   0x7   :  { %v3709_v14 = vld [vmem:[%s4867_s1 + $0x18] sm:$0xff]   ;;  %v3713_v18 = vld [vmem:[%s4867_s1 + $0x20] sm:$0xff]   ;;  %v3717_v22 = vld [vmem:[%s4867_s1 + $0x28] sm:$0xff]  }
   0x8   :  { %3218 = vmatpush3.bf16.msra.mxu0 %v3701_v6  ;;  %v3710_v15 = vld [vmem:[%s4867_s1 + $0x98] sm:$0xff]   ;;  %v3714_v19 = vld [vmem:[%s4867_s1 + $0xa0] sm:$0xff]   ;;  %v3718_v23 = vld [vmem:[%s4867_s1 + $0xa8] sm:$0xff]  }
   0x9   :  { %3258 = vmatpush3.bf16.msra.mxu1 %v3702_v7  ;;  %3219 = vmatprep.subr.bf16.mxu0 %v3703_v8  ;;  %v3719_v24 = vld [vmem:[%s4867_s1 + $0x70] sm:$0xff]   ;;  %v3723_v28 = vld [vmem:[%s4867_s1 + $0x78] sm:$0xff]   ;;  %v15_v32 = vld [vmem:[%s4868_s0] sm:$0xff] }
   0xa   :  { %3259 = vmatprep.subr.bf16.mxu1 %v3704_v9  ;;  %v3720_v25 = vld [vmem:[%s4867_s1 + $0xf0] sm:$0xff]   ;;  %v3724_v29 = vld [vmem:[%s4867_s1 + $0xf8] sm:$0xff]   ;;  %v27_v33 = vld [vmem:[%s4868_s0 + $0x60] sm:$0xff] }
   0xb   :  { %v3721_v26 = vld [vmem:[%s4867_s1 + $0x30] sm:$0xff]   ;;  %v3725_v30 = vld [vmem:[%s4867_s1 + $0x38] sm:$0xff]   ;;  %v16_v34 = vld [vmem:[%s4868_s0 + $0x8] sm:$0xff]  ;;  %v2927_v35 = vcombine.low %v15_v32, %v27_v33  ;;  %v2928_v36 = vcombine.high %v15_v32, %v27_v33 }
   0xc   :  { %3220 = vmatpush3.bf16.msra.mxu0 %v3705_v10  ;;  %v3722_v27 = vld [vmem:[%s4867_s1 + $0xb0] sm:$0xff]   ;;  %v3726_v31 = vld [vmem:[%s4867_s1 + $0xb8] sm:$0xff]   ;;  %v28_v37 = vld [vmem:[%s4868_s0 + $0x68] sm:$0xff] }
   0xd   :  { %3260 = vmatpush3.bf16.msra.mxu1 %v3706_v11  ;;  %3221 = vmatprep.subr.bf16.mxu0 %v3707_v12  ;;  %v2929_v38 = vcombine.low %v16_v34, %v28_v37  ;;  %v2930_v39 = vcombine.high %v16_v34, %v28_v37  ;;  %v3727_v40 = vld [vmem:[%s4867_s1 + $0x140] sm:$0xff]   ;;  %v3731_v44 = vld [vmem:[%s4867_s1 + $0x148] sm:$0xff]   ;;  %v3735_v56 = vld [vmem:[%s4867_s1 + $0x150] sm:$0xff]  }
   0xe   :  { %3261 = vmatprep.subr.bf16.mxu1 %v3708_v13  ;;  %2166 = vmatprep.mubr.bf16.mxu0 %v2928_v36  ;;  %v3728_v41 = vld [vmem:[%s4867_s1 + $0x1c0] sm:$0xff]   ;;  %v3732_v45 = vld [vmem:[%s4867_s1 + $0x1c8] sm:$0xff]   ;;  %v3736_v57 = vld [vmem:[%s4867_s1 + $0x1d0] sm:$0xff]  }
   0xf   :  { %2231 = vmatprep.mubr.bf16.mxu1 %v2930_v39  ;;  %v3729_v42 = vld [vmem:[%s4867_s1 + $0x100] sm:$0xff]   ;;  %v3733_v46 = vld [vmem:[%s4867_s1 + $0x108] sm:$0xff]   ;;  %v3737_v58 = vld [vmem:[%s4867_s1 + $0x110] sm:$0xff]  }
  0x10   :  { %3222 = vmatpush3.bf16.msra.mxu0 %v3709_v14  ;;  %v3730_v43 = vld [vmem:[%s4867_s1 + $0x180] sm:$0xff]   ;;  %v3734_v47 = vld [vmem:[%s4867_s1 + $0x188] sm:$0xff]   ;;  %v3738_v59 = vld [vmem:[%s4867_s1 + $0x190] sm:$0xff]  }
  0x11   :  { %3262 = vmatpush3.bf16.msra.mxu1 %v3710_v15  ;;  %3223 = vmatprep.subr.bf16.mxu0 %v3711_v16  ;;  %v39_v48 = vld [vmem:[%s4868_s0 + $0xc0] sm:$0xff]  ;;  %v40_v51 = vld [vmem:[%s4868_s0 + $0xc8] sm:$0xff]  ;;  %v3739_v60 = vld [vmem:[%s4867_s1 + $0x158] sm:$0xff]  }
  0x12   :  { %3263 = vmatprep.subr.bf16.mxu1 %v3712_v17  ;;  %v51_v49 = vld [vmem:[%s4868_s0 + $0x120] sm:$0xff]  ;;  %v52_v52 = vld [vmem:[%s4868_s0 + $0x128] sm:$0xff]  ;;  %v3740_v61 = vld [vmem:[%s4867_s1 + $0x1d8] sm:$0xff]  }
  0x13   :  { %v2952_v50 = vcombine.high %v39_v48, %v51_v49  ;;  %v2951_v53 = vcombine.low %v39_v48, %v51_v49  ;;  %v2954_v54 = vcombine.high %v40_v51, %v52_v52  ;;  %v2953_v55 = vcombine.low %v40_v51, %v52_v52  ;;  %v3741_v62 = vld [vmem:[%s4867_s1 + $0x118] sm:$0xff]   ;;  %v63_v0 = vld [vmem:[%s4868_s0 + $0x180] sm:$0xff]  ;;  %v64_v2 = vld [vmem:[%s4868_s0 + $0x188] sm:$0xff] }
  0x14   :  { %3224 = vmatpush3.bf16.msra.mxu0 %v3713_v18  ;;  %v3742_v63 = vld [vmem:[%s4867_s1 + $0x198] sm:$0xff]   ;;  %v75_v1 = vld [vmem:[%s4868_s0 + $0x1e0] sm:$0xff]  ;;  %v76_v3 = vld [vmem:[%s4868_s0 + $0x1e8] sm:$0xff] }
  0x15   :  { %3264 = vmatpush3.bf16.msra.mxu1 %v3714_v19  ;;  %3225 = vmatprep.subr.bf16.mxu0 %v3715_v20  ;;  %v2976_v4 = vcombine.high %v63_v0, %v75_v1  ;;  %v2978_v5 = vcombine.high %v64_v2, %v76_v3  ;;  %v2975_v6 = vcombine.low %v63_v0, %v75_v1  ;;  %v3743_v8 = vld [vmem:[%s4867_s1 + $0x160] sm:$0xff]   ;;  %v3747_v12 = vld [vmem:[%s4867_s1 + $0x168] sm:$0xff]   ;;  %v17_v32 = vld [vmem:[%s4868_s0 + $0x10] sm:$0xff] }
  0x16   :  { %3265 = vmatprep.subr.bf16.mxu1 %v3716_v21  ;;  %v2977_v7 = vcombine.low %v64_v2, %v76_v3  ;;  %v3744_v9 = vld [vmem:[%s4867_s1 + $0x1e0] sm:$0xff]   ;;  %v3748_v13 = vld [vmem:[%s4867_s1 + $0x1e8] sm:$0xff]   ;;  %v29_v33 = vld [vmem:[%s4868_s0 + $0x70] sm:$0xff] }
  0x17   :  { %v3745_v10 = vld [vmem:[%s4867_s1 + $0x120] sm:$0xff]   ;;  %v3749_v14 = vld [vmem:[%s4867_s1 + $0x128] sm:$0xff]   ;;  %v2931_v34 = vcombine.low %v17_v32, %v29_v33  ;;  %v18_v36 = vld [vmem:[%s4868_s0 + $0x18] sm:$0xff] }
  0x18   :  { %3226 = vmatpush3.bf16.msra.mxu0 %v3717_v22  ;;  %v3746_v11 = vld [vmem:[%s4867_s1 + $0x1a0] sm:$0xff]   ;;  %v3750_v15 = vld [vmem:[%s4867_s1 + $0x1a8] sm:$0xff]   ;;  %v30_v37 = vld [vmem:[%s4868_s0 + $0x78] sm:$0xff] }
  0x19   :  { %3266 = vmatpush3.bf16.msra.mxu1 %v3718_v23  ;;  %3227 = vmatprep.subr.bf16.mxu0 %v3719_v24  ;;  %v87_v16 = vld [vmem:[%s4868_s0 + $0x240] sm:$0xff]  ;;  %v88_v18 = vld [vmem:[%s4868_s0 + $0x248] sm:$0xff]  ;;  %v3751_v24 = vld [vmem:[%s4867_s1 + $0x170] sm:$0xff]   ;;  %v2934_v39 = vcombine.high %v18_v36, %v30_v37 }
  0x1a   :  { %3267 = vmatprep.subr.bf16.mxu1 %v3720_v25  ;;  %v99_v17 = vld [vmem:[%s4868_s0 + $0x2a0] sm:$0xff]  ;;  %v100_v20 = vld [vmem:[%s4868_s0 + $0x2a8] sm:$0xff]  ;;  %v3752_v25 = vld [vmem:[%s4867_s1 + $0x1f0] sm:$0xff]  }
  0x1b   :  { %v3000_v19 = vcombine.high %v87_v16, %v99_v17  ;;  %v2999_v21 = vcombine.low %v87_v16, %v99_v17  ;;  %v3002_v22 = vcombine.high %v88_v18, %v100_v20  ;;  %v3001_v23 = vcombine.low %v88_v18, %v100_v20  ;;  %v41_v48 = vld [vmem:[%s4868_s0 + $0xd0] sm:$0xff]  ;;  %v54_v51 = vld [vmem:[%s4868_s0 + $0x138] sm:$0xff] }
  0x1c   :  { %3228 = vmatpush3.bf16.msra.mxu0 %v3721_v26  ;;  %v3753_v26 = vld [vmem:[%s4867_s1 + $0x130] sm:$0xff]   ;;  %v66_v2 = vld [vmem:[%s4868_s0 + $0x198] sm:$0xff] }
  0x1d   :  { %3268 = vmatpush3.bf16.msra.mxu1 %v3722_v27  ;;  %3229 = vmatprep.subr.bf16.mxu0 %v3723_v28  ;;  %v3754_v27 = vld [vmem:[%s4867_s1 + $0x1b0] sm:$0xff]   ;;  %v3755_v28 = vld [vmem:[%s4867_s1 + $0x178] sm:$0xff]  }
  0x1e   :  { %3269 = vmatprep.subr.bf16.mxu1 %v3724_v29  ;;  %v3756_v29 = vld [vmem:[%s4867_s1 + $0x1f8] sm:$0xff]   ;;  %v53_v49 = vld [vmem:[%s4868_s0 + $0x130] sm:$0xff] }
  0x1f   :  { %v2956_v52 = vcombine.high %v41_v48, %v53_v49  ;;  %v65_v0 = vld [vmem:[%s4868_s0 + $0x190] sm:$0xff]  ;;  %v102_v20 = vld [vmem:[%s4868_s0 + $0x2b8] sm:$0xff] }
  0x20   :  { %3230 = vmatpush3.bf16.msra.mxu0 %v3725_v30  ;;  %v3757_v30 = vld [vmem:[%s4867_s1 + $0x138] sm:$0xff]   ;;  %v77_v1 = vld [vmem:[%s4868_s0 + $0x1f0] sm:$0xff] }
  0x21   :  { %3270 = vmatpush3.bf16.msra.mxu1 %v3726_v31  ;;  %3295 = vmatprep.subr.bf16.mxu0 %v3727_v40  ;;  %v3758_v31 = vld [vmem:[%s4867_s1 + $0x1b8] sm:$0xff]   ;;  %v3759_v40 = vld [vmem:[%s4867_s1 + $0x240] sm:$0xff]   ;;  %v2980_v3 = vcombine.high %v65_v0, %v77_v1  ;;  %v89_v16 = vld [vmem:[%s4868_s0 + $0x250] sm:$0xff] }
  0x22   :  { %3335 = vmatprep.subr.bf16.mxu1 %v3728_v41  ;;  %v3760_v41 = vld [vmem:[%s4867_s1 + $0x2c0] sm:$0xff]   ;;  %v101_v17 = vld [vmem:[%s4868_s0 + $0x2b0] sm:$0xff] }
  0x23   :  { %2167 = vmatmul.mubr.bf16.vlgmr.msra.gmra.mrb[0].mxu0 %v2927_v35  ;;  %v2932_v35 = vcombine.high %v17_v32, %v29_v33  ;;  %v3004_v18 = vcombine.high %v89_v16, %v101_v17  ;;  %v19_v32 = vld [vmem:[%s4868_s0 + $0x20] sm:$0xff] }
  0x24   :  { %2232 = vmatmul.mubr.bf16.vlgmr.msra.gmra.mrb[0].mxu1 %v2929_v38  ;;  %3296 = vmatpush3.bf16.msra.mxu0 %v3729_v42  ;;  %v2933_v38 = vcombine.low %v18_v36, %v30_v37  ;;  %v3761_v42 = vld [vmem:[%s4867_s1 + $0x200] sm:$0xff]  }
  0x25   :  { %3336 = vmatpush3.bf16.msra.mxu1 %v3730_v43  ;;  %3297 = vmatprep.subr.bf16.mxu0 %v3731_v44  ;;  %v3762_v43 = vld [vmem:[%s4867_s1 + $0x280] sm:$0xff]   ;;  %v3763_v44 = vld [vmem:[%s4867_s1 + $0x248] sm:$0xff]  }
  0x26   :  { %3337 = vmatprep.subr.bf16.mxu1 %v3732_v45  ;;  %2174 = vmatprep.mubr.bf16.mxu0 %v2952_v50  ;;  %v3764_v45 = vld [vmem:[%s4867_s1 + $0x2c8] sm:$0xff]   ;;  %v42_v50 = vld [vmem:[%s4868_s0 + $0xd8] sm:$0xff]  ;;  %v31_v33 = vld [vmem:[%s4868_s0 + $0x80] sm:$0xff] }
  0x27   :  { %2239 = vmatprep.mubr.bf16.mxu1 %v2954_v54  ;;  %v2955_v54 = vcombine.low %v41_v48, %v53_v49  ;;  %v2935_v36 = vcombine.low %v19_v32, %v31_v33  ;;  %v2936_v37 = vcombine.high %v19_v32, %v31_v33  ;;  %v43_v48 = vld [vmem:[%s4868_s0 + $0xe0] sm:$0xff]  ;;  %v21_v32 = vld [vmem:[%s4868_s0 + $0x30] sm:$0xff] }
  0x28   :  { %3298 = vmatpush3.bf16.msra.mxu0 %v3733_v46  ;;  %v3765_v46 = vld [vmem:[%s4867_s1 + $0x208] sm:$0xff]   ;;  %v55_v49 = vld [vmem:[%s4868_s0 + $0x140] sm:$0xff]  ;;  %v33_v33 = vld [vmem:[%s4868_s0 + $0x90] sm:$0xff] }
  0x29   :  { %3338 = vmatpush3.bf16.msra.mxu1 %v3734_v47  ;;  %3299 = vmatprep.subr.bf16.mxu0 %v3735_v56  ;;  %v3766_v47 = vld [vmem:[%s4867_s1 + $0x288] sm:$0xff]   ;;  %v3767_v56 = vld [vmem:[%s4867_s1 + $0x250] sm:$0xff]  }
  0x2a   :  { %3339 = vmatprep.subr.bf16.mxu1 %v3736_v57  ;;  %v3768_v57 = vld [vmem:[%s4867_s1 + $0x2d0] sm:$0xff]  }
  0x2b   :  { %2175 = vmatmul.mubr.bf16.gmra.mrb[4].mxu0 %v2951_v53  ;;  %v2958_v53 = vcombine.high %v42_v50, %v54_v51 }
  0x2c   :  { %2240 = vmatmul.mubr.bf16.gmra.mrb[4].mxu1 %v2953_v55  ;;  %3300 = vmatpush3.bf16.msra.mxu0 %v3737_v58  ;;  %v2957_v55 = vcombine.low %v42_v50, %v54_v51  ;;  %v3769_v58 = vld [vmem:[%s4867_s1 + $0x210] sm:$0xff]   ;;  %v44_v50 = vld [vmem:[%s4868_s0 + $0xe8] sm:$0xff]  ;;  %v2960_v51 = vcombine.high %v43_v48, %v55_v49 }
  0x2d   :  { %3340 = vmatpush3.bf16.msra.mxu1 %v3738_v59  ;;  %3301 = vmatprep.subr.bf16.mxu0 %v3739_v60  ;;  %v3770_v59 = vld [vmem:[%s4867_s1 + $0x290] sm:$0xff]   ;;  %v3771_v60 = vld [vmem:[%s4867_s1 + $0x258] sm:$0xff]  }
  0x2e   :  { %3341 = vmatprep.subr.bf16.mxu1 %v3740_v61  ;;  %2182 = vmatprep.mubr.bf16.mxu0 %v2976_v4  ;;  %v3772_v61 = vld [vmem:[%s4867_s1 + $0x2d8] sm:$0xff]  }
  0x2f   :  { %2247 = vmatprep.mubr.bf16.mxu1 %v2978_v5  ;;  %v78_v4 = vld [vmem:[%s4868_s0 + $0x1f8] sm:$0xff]  ;;  %v2979_v5 = vcombine.low %v65_v0, %v77_v1  ;;  %v67_v0 = vld [vmem:[%s4868_s0 + $0x1a0] sm:$0xff] }
  0x30   :  { %3302 = vmatpush3.bf16.msra.mxu0 %v3741_v62  ;;  %v3773_v62 = vld [vmem:[%s4867_s1 + $0x218] sm:$0xff]   ;;  %v79_v1 = vld [vmem:[%s4868_s0 + $0x200] sm:$0xff] }
  0x31   :  { %3342 = vmatpush3.bf16.msra.mxu1 %v3742_v63  ;;  %3303 = vmatprep.subr.bf16.mxu0 %v3743_v8  ;;  %v3774_v63 = vld [vmem:[%s4867_s1 + $0x298] sm:$0xff]   ;;  %v3775_v8 = vld [vmem:[%s4867_s1 + $0x260] sm:$0xff]  }
  0x32   :  { %3343 = vmatprep.subr.bf16.mxu1 %v3744_v9  ;;  %v3776_v9 = vld [vmem:[%s4867_s1 + $0x2e0] sm:$0xff]  }
  0x33   :  { %2183 = vmatmul.mubr.bf16.gmra.mrb[8].mxu0 %v2975_v6  ;;  %v2982_v6 = vcombine.high %v66_v2, %v78_v4 }
  0x34   :  { %2248 = vmatmul.mubr.bf16.gmra.mrb[8].mxu1 %v2977_v7  ;;  %3304 = vmatpush3.bf16.msra.mxu0 %v3745_v10  ;;  %v2981_v7 = vcombine.low %v66_v2, %v78_v4  ;;  %v3777_v10 = vld [vmem:[%s4867_s1 + $0x220] sm:$0xff]   ;;  %v2984_v2 = vcombine.high %v67_v0, %v79_v1  ;;  %v80_v4 = vld [vmem:[%s4868_s0 + $0x208] sm:$0xff] }
  0x35   :  { %3344 = vmatpush3.bf16.msra.mxu1 %v3746_v11  ;;  %3305 = vmatprep.subr.bf16.mxu0 %v3747_v12  ;;  %v3778_v11 = vld [vmem:[%s4867_s1 + $0x2a0] sm:$0xff]   ;;  %v3779_v12 = vld [vmem:[%s4867_s1 + $0x268] sm:$0xff]  }
  0x36   :  { %3345 = vmatprep.subr.bf16.mxu1 %v3748_v13  ;;  %2190 = vmatprep.mubr.bf16.mxu0 %v3000_v19  ;;  %v3780_v13 = vld [vmem:[%s4867_s1 + $0x2e8] sm:$0xff]   ;;  %v90_v19 = vld [vmem:[%s4868_s0 + $0x258] sm:$0xff] }
  0x37   :  { %2255 = vmatprep.mubr.bf16.mxu1 %v3002_v22  ;;  %v3006_v22 = vcombine.high %v90_v19, %v102_v20 }
  0x38   :  { %3306 = vmatpush3.bf16.msra.mxu0 %v3749_v14  ;;  %v3781_v14 = vld [vmem:[%s4867_s1 + $0x228] sm:$0xff]  }
  0x39   :  { %3346 = vmatpush3.bf16.msra.mxu1 %v3750_v15  ;;  %3307 = vmatprep.subr.bf16.mxu0 %v3751_v24  ;;  %v3782_v15 = vld [vmem:[%s4867_s1 + $0x2a8] sm:$0xff]   ;;  %v3783_v24 = vld [vmem:[%s4867_s1 + $0x270] sm:$0xff]  }
  0x3a   :  { %3347 = vmatprep.subr.bf16.mxu1 %v3752_v25  ;;  %v3784_v25 = vld [vmem:[%s4867_s1 + $0x2f0] sm:$0xff]  }
  0x3b   :  { %2191 = vmatmul.mubr.bf16.gmra.mrb[12].mxu0 %v2999_v21  ;;  %v3003_v21 = vcombine.low %v89_v16, %v101_v17  ;;  %v91_v16 = vld [vmem:[%s4868_s0 + $0x260] sm:$0xff] }
  0x3c   :  { %2256 = vmatmul.mubr.bf16.gmra.mrb[12].mxu1 %v3001_v23  ;;  %3308 = vmatpush3.bf16.msra.mxu0 %v3753_v26  ;;  %v3005_v23 = vcombine.low %v90_v19, %v102_v20  ;;  %v3785_v26 = vld [vmem:[%s4867_s1 + $0x230] sm:$0xff]   ;;  %v103_v17 = vld [vmem:[%s4868_s0 + $0x2c0] sm:$0xff]  ;;  %v104_v19 = vld [vmem:[%s4868_s0 + $0x2c8] sm:$0xff] }
  0x3d   :  { %3348 = vmatpush3.bf16.msra.mxu1 %v3754_v27  ;;  %3309 = vmatprep.subr.bf16.mxu0 %v3755_v28  ;;  %v3786_v27 = vld [vmem:[%s4867_s1 + $0x2b0] sm:$0xff]   ;;  %v3787_v28 = vld [vmem:[%s4867_s1 + $0x278] sm:$0xff]   ;;  %v3008_v20 = vcombine.high %v91_v16, %v103_v17 }
  0x3e   :  { %3349 = vmatprep.subr.bf16.mxu1 %v3756_v29  ;;  %2296 = vmatprep.mubr.bf16.mxu0 %v2932_v35  ;;  %v3788_v29 = vld [vmem:[%s4867_s1 + $0x2f8] sm:$0xff]   ;;  %v32_v35 = vld [vmem:[%s4868_s0 + $0x88] sm:$0xff] }
  0x3f   :  { %2361 = vmatprep.mubr.bf16.mxu1 %v2934_v39 }
  0x40   :  { %3310 = vmatpush3.bf16.msra.mxu0 %v3757_v30  ;;  %v3789_v30 = vld [vmem:[%s4867_s1 + $0x238] sm:$0xff]  }
  0x41   :  { %3350 = vmatpush3.bf16.msra.mxu1 %v3758_v31  ;;  %3375 = vmatprep.subr.bf16.mxu0 %v3759_v40  ;;  %v3790_v31 = vld [vmem:[%s4867_s1 + $0x2b8] sm:$0xff]   ;;  %v3791_v40 = vld [vmem:[%s4867_s1 + $0x340] sm:$0xff]  }
  0x42   :  { %3415 = vmatprep.subr.bf16.mxu1 %v3760_v41  ;;  %v3792_v41 = vld [vmem:[%s4867_s1 + $0x3c0] sm:$0xff]  }
  0x43   :  { %2297 = vmatmul.mubr.bf16.vlgmr.msra.gmra.mrb[16].mxu0 %v2931_v34  ;;  %v20_v34 = vld [vmem:[%s4868_s0 + $0x28] sm:$0xff] }
  0x44   :  { %2362 = vmatmul.mubr.bf16.vlgmr.msra.gmra.mrb[16].mxu1 %v2933_v38  ;;  %3376 = vmatpush3.bf16.msra.mxu0 %v3761_v42  ;;  %v2937_v38 = vcombine.low %v20_v34, %v32_v35  ;;  %v2938_v39 = vcombine.high %v20_v34, %v32_v35  ;;  %v3793_v42 = vld [vmem:[%s4867_s1 + $0x300] sm:$0xff]   ;;  %v22_v34 = vld [vmem:[%s4868_s0 + $0x38] sm:$0xff]  ;;  %v2939_v35 = vcombine.low %v21_v32, %v33_v33 }
  0x45   :  { %3416 = vmatpush3.bf16.msra.mxu1 %v3762_v43  ;;  %3377 = vmatprep.subr.bf16.mxu0 %v3763_v44  ;;  %v3794_v43 = vld [vmem:[%s4867_s1 + $0x380] sm:$0xff]   ;;  %v3795_v44 = vld [vmem:[%s4867_s1 + $0x348] sm:$0xff]  }
  0x46   :  { %3417 = vmatprep.subr.bf16.mxu1 %v3764_v45  ;;  %2304 = vmatprep.mubr.bf16.mxu0 %v2956_v52  ;;  %v3796_v45 = vld [vmem:[%s4867_s1 + $0x3c8] sm:$0xff]  }
  0x47   :  { %2369 = vmatprep.mubr.bf16.mxu1 %v2958_v53  ;;  %v56_v52 = vld [vmem:[%s4868_s0 + $0x148] sm:$0xff]  ;;  %v2959_v53 = vcombine.low %v43_v48, %v55_v49  ;;  %v45_v48 = vld [vmem:[%s4868_s0 + $0xf0] sm:$0xff] }
  0x48   :  { %3378 = vmatpush3.bf16.msra.mxu0 %v3765_v46  ;;  %v3797_v46 = vld [vmem:[%s4867_s1 + $0x308] sm:$0xff]   ;;  %v57_v49 = vld [vmem:[%s4868_s0 + $0x150] sm:$0xff] }
  0x49   :  { %3418 = vmatpush3.bf16.msra.mxu1 %v3766_v47  ;;  %3379 = vmatprep.subr.bf16.mxu0 %v3767_v56  ;;  %v3798_v47 = vld [vmem:[%s4867_s1 + $0x388] sm:$0xff]   ;;  %v3799_v56 = vld [vmem:[%s4867_s1 + $0x350] sm:$0xff]  }
  0x4a   :  { %3419 = vmatprep.subr.bf16.mxu1 %v3768_v57  ;;  %v3800_v57 = vld [vmem:[%s4867_s1 + $0x3d0] sm:$0xff]  }
  0x4b   :  { %2305 = vmatmul.mubr.bf16.gmra.mrb[20].mxu0 %v2955_v54  ;;  %v2962_v54 = vcombine.high %v44_v50, %v56_v52 }
  0x4c   :  { %2370 = vmatmul.mubr.bf16.gmra.mrb[20].mxu1 %v2957_v55  ;;  %3380 = vmatpush3.bf16.msra.mxu0 %v3769_v58  ;;  %v2961_v55 = vcombine.low %v44_v50, %v56_v52  ;;  %v3801_v58 = vld [vmem:[%s4867_s1 + $0x310] sm:$0xff]   ;;  %v2964_v50 = vcombine.high %v45_v48, %v57_v49  ;;  %v58_v52 = vld [vmem:[%s4868_s0 + $0x158] sm:$0xff] }
  0x4d   :  { %3420 = vmatpush3.bf16.msra.mxu1 %v3770_v59  ;;  %3381 = vmatprep.subr.bf16.mxu0 %v3771_v60  ;;  %v3802_v59 = vld [vmem:[%s4867_s1 + $0x390] sm:$0xff]   ;;  %v3803_v60 = vld [vmem:[%s4867_s1 + $0x358] sm:$0xff]  }
  0x4e   :  { %3421 = vmatprep.subr.bf16.mxu1 %v3772_v61  ;;  %2312 = vmatprep.mubr.bf16.mxu0 %v2980_v3  ;;  %v3804_v61 = vld [vmem:[%s4867_s1 + $0x3d8] sm:$0xff]   ;;  %v68_v3 = vld [vmem:[%s4868_s0 + $0x1a8] sm:$0xff] }
  0x4f   :  { %2377 = vmatprep.mubr.bf16.mxu1 %v2982_v6  ;;  %v2986_v6 = vcombine.high %v68_v3, %v80_v4 }
  0x50   :  { %3382 = vmatpush3.bf16.msra.mxu0 %v3773_v62  ;;  %v3805_v62 = vld [vmem:[%s4867_s1 + $0x318] sm:$0xff]  }
  0x51   :  { %3422 = vmatpush3.bf16.msra.mxu1 %v3774_v63  ;;  %3383 = vmatprep.subr.bf16.mxu0 %v3775_v8  ;;  %v3806_v63 = vld [vmem:[%s4867_s1 + $0x398] sm:$0xff]   ;;  %v3807_v8 = vld [vmem:[%s4867_s1 + $0x360] sm:$0xff]  }
  0x52   :  { %3423 = vmatprep.subr.bf16.mxu1 %v3776_v9  ;;  %v3808_v9 = vld [vmem:[%s4867_s1 + $0x3e0] sm:$0xff]  }
  0x53   :  { %2313 = vmatmul.mubr.bf16.gmra.mrb[24].mxu0 %v2979_v5  ;;  %v2983_v5 = vcombine.low %v67_v0, %v79_v1  ;;  %v69_v0 = vld [vmem:[%s4868_s0 + $0x1b0] sm:$0xff] }
  0x54   :  { %2378 = vmatmul.mubr.bf16.gmra.mrb[24].mxu1 %v2981_v7  ;;  %3384 = vmatpush3.bf16.msra.mxu0 %v3777_v10  ;;  %v2985_v7 = vcombine.low %v68_v3, %v80_v4  ;;  %v3809_v10 = vld [vmem:[%s4867_s1 + $0x320] sm:$0xff]   ;;  %v81_v1 = vld [vmem:[%s4868_s0 + $0x210] sm:$0xff]  ;;  %v82_v3 = vld [vmem:[%s4868_s0 + $0x218] sm:$0xff] }
  0x55   :  { %3424 = vmatpush3.bf16.msra.mxu1 %v3778_v11  ;;  %3385 = vmatprep.subr.bf16.mxu0 %v3779_v12  ;;  %v3810_v11 = vld [vmem:[%s4867_s1 + $0x3a0] sm:$0xff]   ;;  %v3811_v12 = vld [vmem:[%s4867_s1 + $0x368] sm:$0xff]   ;;  %v2988_v4 = vcombine.high %v69_v0, %v81_v1 }
  0x56   :  { %3425 = vmatprep.subr.bf16.mxu1 %v3780_v13  ;;  %2320 = vmatprep.mubr.bf16.mxu0 %v3004_v18  ;;  %v3812_v13 = vld [vmem:[%s4867_s1 + $0x3e8] sm:$0xff]  }
  0x57   :  { %2385 = vmatprep.mubr.bf16.mxu1 %v3006_v22  ;;  %v92_v18 = vld [vmem:[%s4868_s0 + $0x268] sm:$0xff]  ;;  %v3007_v22 = vcombine.low %v91_v16, %v103_v17  ;;  %v93_v16 = vld [vmem:[%s4868_s0 + $0x270] sm:$0xff] }
  0x58   :  { %3386 = vmatpush3.bf16.msra.mxu0 %v3781_v14  ;;  %v3813_v14 = vld [vmem:[%s4867_s1 + $0x328] sm:$0xff]   ;;  %v105_v17 = vld [vmem:[%s4868_s0 + $0x2d0] sm:$0xff] }
  0x59   :  { %3426 = vmatpush3.bf16.msra.mxu1 %v3782_v15  ;;  %3387 = vmatprep.subr.bf16.mxu0 %v3783_v24  ;;  %v3814_v15 = vld [vmem:[%s4867_s1 + $0x3a8] sm:$0xff]   ;;  %v3815_v24 = vld [vmem:[%s4867_s1 + $0x370] sm:$0xff]  }
  0x5a   :  { %3427 = vmatprep.subr.bf16.mxu1 %v3784_v25  ;;  %v3816_v25 = vld [vmem:[%s4867_s1 + $0x3f0] sm:$0xff]  }
  0x5b   :  { %2321 = vmatmul.mubr.bf16.gmra.mrb[28].mxu0 %v3003_v21  ;;  %v3010_v21 = vcombine.high %v92_v18, %v104_v19 }
  0x5c   :  { %2386 = vmatmul.mubr.bf16.gmra.mrb[28].mxu1 %v3005_v23  ;;  %3388 = vmatpush3.bf16.msra.mxu0 %v3785_v26  ;;  %v3009_v23 = vcombine.low %v92_v18, %v104_v19  ;;  %v3817_v26 = vld [vmem:[%s4867_s1 + $0x330] sm:$0xff]   ;;  %v94_v18 = vld [vmem:[%s4868_s0 + $0x278] sm:$0xff]  ;;  %v3012_v19 = vcombine.high %v93_v16, %v105_v17 }
  0x5d   :  { %3428 = vmatpush3.bf16.msra.mxu1 %v3786_v27  ;;  %3389 = vmatprep.subr.bf16.mxu0 %v3787_v28  ;;  %v3818_v27 = vld [vmem:[%s4867_s1 + $0x3b0] sm:$0xff]   ;;  %v3819_v28 = vld [vmem:[%s4867_s1 + $0x378] sm:$0xff]  }
  0x5e   :  { %3429 = vmatprep.subr.bf16.mxu1 %v3788_v29  ;;  %2426 = vmatprep.mubr.bf16.mxu0 %v2936_v37  ;;  %v3820_v29 = vld [vmem:[%s4867_s1 + $0x3f8] sm:$0xff]  }
  0x5f   :  { %2491 = vmatprep.mubr.bf16.mxu1 %v2938_v39  ;;  %v34_v37 = vld [vmem:[%s4868_s0 + $0x98] sm:$0xff] }
  0x60   :  { %3390 = vmatpush3.bf16.msra.mxu0 %v3789_v30  ;;  %v3821_v30 = vld [vmem:[%s4867_s1 + $0x338] sm:$0xff]   ;;  %v2942_v39 = vcombine.high %v22_v34, %v34_v37 }
  0x61   :  { %3430 = vmatpush3.bf16.msra.mxu1 %v3790_v31  ;;  %3455 = vmatprep.subr.bf16.mxu0 %v3791_v40  ;;  %v3822_v31 = vld [vmem:[%s4867_s1 + $0x3b8] sm:$0xff]   ;;  %v3823_v40 = vld [vmem:[%s4867_s1 + $0x440] sm:$0xff]  }
  0x62   :  { %3495 = vmatprep.subr.bf16.mxu1 %v3792_v41  ;;  %v3824_v41 = vld [vmem:[%s4867_s1 + $0x4c0] sm:$0xff]  }
  0x63   :  { %2427 = vmatmul.mubr.bf16.vlgmr.msra.gmra.mrb[32].mxu0 %v2935_v36  ;;  %v2940_v36 = vcombine.high %v21_v32, %v33_v33  ;;  %v23_v32 = vld [vmem:[%s4868_s0 + $0x40] sm:$0xff] }
  0x64   :  { %2492 = vmatmul.mubr.bf16.vlgmr.msra.gmra.mrb[32].mxu1 %v2937_v38  ;;  %3456 = vmatpush3.bf16.msra.mxu0 %v3793_v42  ;;  %v2941_v38 = vcombine.low %v22_v34, %v34_v37  ;;  %v3825_v42 = vld [vmem:[%s4867_s1 + $0x400] sm:$0xff]   ;;  %v36_v37 = vld [vmem:[%s4868_s0 + $0xa8] sm:$0xff] }
  0x65   :  { %3496 = vmatpush3.bf16.msra.mxu1 %v3794_v43  ;;  %3457 = vmatprep.subr.bf16.mxu0 %v3795_v44  ;;  %v3826_v43 = vld [vmem:[%s4867_s1 + $0x480] sm:$0xff]   ;;  %v3827_v44 = vld [vmem:[%s4867_s1 + $0x448] sm:$0xff]  }
  0x66   :  { %3497 = vmatprep.subr.bf16.mxu1 %v3796_v45  ;;  %2434 = vmatprep.mubr.bf16.mxu0 %v2960_v51  ;;  %v3828_v45 = vld [vmem:[%s4867_s1 + $0x4c8] sm:$0xff]   ;;  %v46_v51 = vld [vmem:[%s4868_s0 + $0xf8] sm:$0xff]  ;;  %v35_v33 = vld [vmem:[%s4868_s0 + $0xa0] sm:$0xff] }
  0x67   :  { %2499 = vmatprep.mubr.bf16.mxu1 %v2962_v54  ;;  %v2966_v54 = vcombine.high %v46_v51, %v58_v52  ;;  %v2943_v34 = vcombine.low %v23_v32, %v35_v33 }
  0x68   :  { %3458 = vmatpush3.bf16.msra.mxu0 %v3797_v46  ;;  %v3829_v46 = vld [vmem:[%s4867_s1 + $0x408] sm:$0xff]  }
  0x69   :  { %3498 = vmatpush3.bf16.msra.mxu1 %v3798_v47  ;;  %3459 = vmatprep.subr.bf16.mxu0 %v3799_v56  ;;  %v3830_v47 = vld [vmem:[%s4867_s1 + $0x488] sm:$0xff]   ;;  %v3831_v56 = vld [vmem:[%s4867_s1 + $0x450] sm:$0xff]  }
  0x6a   :  { %3499 = vmatprep.subr.bf16.mxu1 %v3800_v57  ;;  %v3832_v57 = vld [vmem:[%s4867_s1 + $0x4d0] sm:$0xff]  }
  0x6b   :  { %2435 = vmatmul.mubr.bf16.gmra.mrb[36].mxu0 %v2959_v53  ;;  %v2963_v53 = vcombine.low %v45_v48, %v57_v49  ;;  %v47_v48 = vld [vmem:[%s4868_s0 + $0x100] sm:$0xff] }
  0x6c   :  { %2500 = vmatmul.mubr.bf16.gmra.mrb[36].mxu1 %v2961_v55  ;;  %3460 = vmatpush3.bf16.msra.mxu0 %v3801_v58  ;;  %v2965_v55 = vcombine.low %v46_v51, %v58_v52  ;;  %v3833_v58 = vld [vmem:[%s4867_s1 + $0x410] sm:$0xff]   ;;  %v59_v49 = vld [vmem:[%s4868_s0 + $0x160] sm:$0xff]  ;;  %v60_v51 = vld [vmem:[%s4868_s0 + $0x168] sm:$0xff] }
  0x6d   :  { %3500 = vmatpush3.bf16.msra.mxu1 %v3802_v59  ;;  %3461 = vmatprep.subr.bf16.mxu0 %v3803_v60  ;;  %v3834_v59 = vld [vmem:[%s4867_s1 + $0x490] sm:$0xff]   ;;  %v3835_v60 = vld [vmem:[%s4867_s1 + $0x458] sm:$0xff]   ;;  %v2968_v52 = vcombine.high %v47_v48, %v59_v49 }
  0x6e   :  { %3501 = vmatprep.subr.bf16.mxu1 %v3804_v61  ;;  %2442 = vmatprep.mubr.bf16.mxu0 %v2984_v2  ;;  %v3836_v61 = vld [vmem:[%s4867_s1 + $0x4d8] sm:$0xff]  }
  0x6f   :  { %2507 = vmatprep.mubr.bf16.mxu1 %v2986_v6  ;;  %v70_v2 = vld [vmem:[%s4868_s0 + $0x1b8] sm:$0xff]  ;;  %v2987_v6 = vcombine.low %v69_v0, %v81_v1  ;;  %v71_v0 = vld [vmem:[%s4868_s0 + $0x1c0] sm:$0xff] }
  0x70   :  { %3462 = vmatpush3.bf16.msra.mxu0 %v3805_v62  ;;  %v3837_v62 = vld [vmem:[%s4867_s1 + $0x418] sm:$0xff]   ;;  %v83_v1 = vld [vmem:[%s4868_s0 + $0x220] sm:$0xff] }
  0x71   :  { %3502 = vmatpush3.bf16.msra.mxu1 %v3806_v63  ;;  %3463 = vmatprep.subr.bf16.mxu0 %v3807_v8  ;;  %v3838_v63 = vld [vmem:[%s4867_s1 + $0x498] sm:$0xff]   ;;  %v3839_v8 = vld [vmem:[%s4867_s1 + $0x460] sm:$0xff]  }
  0x72   :  { %3503 = vmatprep.subr.bf16.mxu1 %v3808_v9  ;;  %v3840_v9 = vld [vmem:[%s4867_s1 + $0x4e0] sm:$0xff]  }
  0x73   :  { %2443 = vmatmul.mubr.bf16.gmra.mrb[40].mxu0 %v2983_v5  ;;  %v2990_v5 = vcombine.high %v70_v2, %v82_v3 }
  0x74   :  { %2508 = vmatmul.mubr.bf16.gmra.mrb[40].mxu1 %v2985_v7  ;;  %3464 = vmatpush3.bf16.msra.mxu0 %v3809_v10  ;;  %v2989_v7 = vcombine.low %v70_v2, %v82_v3  ;;  %v3841_v10 = vld [vmem:[%s4867_s1 + $0x420] sm:$0xff]   ;;  %v72_v2 = vld [vmem:[%s4868_s0 + $0x1c8] sm:$0xff]  ;;  %v2992_v3 = vcombine.high %v71_v0, %v83_v1 }
  0x75   :  { %3504 = vmatpush3.bf16.msra.mxu1 %v3810_v11  ;;  %3465 = vmatprep.subr.bf16.mxu0 %v3811_v12  ;;  %v3842_v11 = vld [vmem:[%s4867_s1 + $0x4a0] sm:$0xff]   ;;  %v3843_v12 = vld [vmem:[%s4867_s1 + $0x468] sm:$0xff]  }
  0x76   :  { %3505 = vmatprep.subr.bf16.mxu1 %v3812_v13  ;;  %2450 = vmatprep.mubr.bf16.mxu0 %v3008_v20  ;;  %v3844_v13 = vld [vmem:[%s4867_s1 + $0x4e8] sm:$0xff]   ;;  %v106_v20 = vld [vmem:[%s4868_s0 + $0x2d8] sm:$0xff] }
  0x77   :  { %2515 = vmatprep.mubr.bf16.mxu1 %v3010_v21  ;;  %v3011_v21 = vcombine.low %v93_v16, %v105_v17  ;;  %v95_v16 = vld [vmem:[%s4868_s0 + $0x280] sm:$0xff] }
  0x78   :  { %3466 = vmatpush3.bf16.msra.mxu0 %v3813_v14  ;;  %v3845_v14 = vld [vmem:[%s4867_s1 + $0x428] sm:$0xff]   ;;  %v107_v17 = vld [vmem:[%s4868_s0 + $0x2e0] sm:$0xff] }
  0x79   :  { %3506 = vmatpush3.bf16.msra.mxu1 %v3814_v15  ;;  %3467 = vmatprep.subr.bf16.mxu0 %v3815_v24  ;;  %v3846_v15 = vld [vmem:[%s4867_s1 + $0x4a8] sm:$0xff]   ;;  %v3847_v24 = vld [vmem:[%s4867_s1 + $0x470] sm:$0xff]  }
  0x7a   :  { %3507 = vmatprep.subr.bf16.mxu1 %v3816_v25  ;;  %v3848_v25 = vld [vmem:[%s4867_s1 + $0x4f0] sm:$0xff]  }
  0x7b   :  { %2451 = vmatmul.mubr.bf16.gmra.mrb[44].mxu0 %v3007_v22  ;;  %v3014_v22 = vcombine.high %v94_v18, %v106_v20 }
  0x7c   :  { %2516 = vmatmul.mubr.bf16.gmra.mrb[44].mxu1 %v3009_v23  ;;  %3468 = vmatpush3.bf16.msra.mxu0 %v3817_v26  ;;  %v3013_v23 = vcombine.low %v94_v18, %v106_v20  ;;  %v3849_v26 = vld [vmem:[%s4867_s1 + $0x430] sm:$0xff]   ;;  %v3016_v18 = vcombine.high %v95_v16, %v107_v17  ;;  %v108_v20 = vld [vmem:[%s4868_s0 + $0x2e8] sm:$0xff] }
  0x7d   :  { %3508 = vmatpush3.bf16.msra.mxu1 %v3818_v27  ;;  %3469 = vmatprep.subr.bf16.mxu0 %v3819_v28  ;;  %v3850_v27 = vld [vmem:[%s4867_s1 + $0x4b0] sm:$0xff]   ;;  %v3851_v28 = vld [vmem:[%s4867_s1 + $0x478] sm:$0xff]  }
  0x7e   :  { %3509 = vmatprep.subr.bf16.mxu1 %v3820_v29  ;;  %2556 = vmatprep.mubr.bf16.mxu0 %v2940_v36  ;;  %v3852_v29 = vld [vmem:[%s4867_s1 + $0x4f8] sm:$0xff]   ;;  %v24_v36 = vld [vmem:[%s4868_s0 + $0x48] sm:$0xff] }
  0x7f   :  { %2621 = vmatprep.mubr.bf16.mxu1 %v2942_v39  ;;  %v2946_v39 = vcombine.high %v24_v36, %v36_v37 }
  0x80   :  { %3470 = vmatpush3.bf16.msra.mxu0 %v3821_v30  ;;  %v3853_v30 = vld [vmem:[%s4867_s1 + $0x438] sm:$0xff]  }
  0x81   :  { %3510 = vmatpush3.bf16.msra.mxu1 %v3822_v31  ;;  %3535 = vmatprep.subr.bf16.mxu0 %v3823_v40  ;;  %v3854_v31 = vld [vmem:[%s4867_s1 + $0x4b8] sm:$0xff]   ;;  %v3855_v40 = vld [vmem:[%s4867_s1 + $0x540] sm:$0xff]  }
  0x82   :  { %3575 = vmatprep.subr.bf16.mxu1 %v3824_v41  ;;  %v3856_v41 = vld [vmem:[%s4867_s1 + $0x5c0] sm:$0xff]  }
  0x83   :  { %2557 = vmatmul.mubr.bf16.vlgmr.msra.gmra.mrb[48].mxu0 %v2939_v35  ;;  %v2944_v35 = vcombine.high %v23_v32, %v35_v33  ;;  %v25_v32 = vld [vmem:[%s4868_s0 + $0x50] sm:$0xff] }
  0x84   :  { %2622 = vmatmul.mubr.bf16.vlgmr.msra.gmra.mrb[48].mxu1 %v2941_v38  ;;  %3536 = vmatpush3.bf16.msra.mxu0 %v3825_v42  ;;  %v2945_v38 = vcombine.low %v24_v36, %v36_v37  ;;  %v3857_v42 = vld [vmem:[%s4867_s1 + $0x500] sm:$0xff]   ;;  %v37_v33 = vld [vmem:[%s4868_s0 + $0xb0] sm:$0xff] }
  0x85   :  { %3576 = vmatpush3.bf16.msra.mxu1 %v3826_v43  ;;  %3537 = vmatprep.subr.bf16.mxu0 %v3827_v44  ;;  %v3858_v43 = vld [vmem:[%s4867_s1 + $0x580] sm:$0xff]   ;;  %v3859_v44 = vld [vmem:[%s4867_s1 + $0x548] sm:$0xff]   ;;  %v2947_v36 = vcombine.low %v25_v32, %v37_v33  ;;  %v2948_v37 = vcombine.high %v25_v32, %v37_v33 }
  0x86   :  { %3577 = vmatprep.subr.bf16.mxu1 %v3828_v45  ;;  %2564 = vmatprep.mubr.bf16.mxu0 %v2964_v50  ;;  %v3860_v45 = vld [vmem:[%s4867_s1 + $0x5c8] sm:$0xff]  }
  0x87   :  { %2629 = vmatprep.mubr.bf16.mxu1 %v2966_v54  ;;  %v48_v50 = vld [vmem:[%s4868_s0 + $0x108] sm:$0xff]  ;;  %v2967_v54 = vcombine.low %v47_v48, %v59_v49  ;;  %v74_v48 = vld [vmem:[%s4868_s0 + $0x1d8] sm:$0xff] }
  0x88   :  { %3538 = vmatpush3.bf16.msra.mxu0 %v3829_v46  ;;  %v3861_v46 = vld [vmem:[%s4867_s1 + $0x508] sm:$0xff]   ;;  %v86_v49 = vld [vmem:[%s4868_s0 + $0x238] sm:$0xff] }
  0x89   :  { %3578 = vmatpush3.bf16.msra.mxu1 %v3830_v47  ;;  %3539 = vmatprep.subr.bf16.mxu0 %v3831_v56  ;;  %v3862_v47 = vld [vmem:[%s4867_s1 + $0x588] sm:$0xff]   ;;  %v3863_v56 = vld [vmem:[%s4867_s1 + $0x550] sm:$0xff]  }
  0x8a   :  { %3579 = vmatprep.subr.bf16.mxu1 %v3832_v57  ;;  %v3864_v57 = vld [vmem:[%s4867_s1 + $0x5d0] sm:$0xff]  }
  0x8b   :  { %2565 = vmatmul.mubr.bf16.gmra.mrb[52].mxu0 %v2963_v53  ;;  %v2970_v53 = vcombine.high %v48_v50, %v60_v51 }
  0x8c   :  { %2630 = vmatmul.mubr.bf16.gmra.mrb[52].mxu1 %v2965_v55  ;;  %3540 = vmatpush3.bf16.msra.mxu0 %v3833_v58  ;;  %v2969_v55 = vcombine.low %v48_v50, %v60_v51  ;;  %v3865_v58 = vld [vmem:[%s4867_s1 + $0x510] sm:$0xff]  }
  0x8d   :  { %3580 = vmatpush3.bf16.msra.mxu1 %v3834_v59  ;;  %3541 = vmatprep.subr.bf16.mxu0 %v3835_v60  ;;  %v3866_v59 = vld [vmem:[%s4867_s1 + $0x590] sm:$0xff]   ;;  %v3867_v60 = vld [vmem:[%s4867_s1 + $0x558] sm:$0xff]  }
  0x8e   :  { %3581 = vmatprep.subr.bf16.mxu1 %v3836_v61  ;;  %2572 = vmatprep.mubr.bf16.mxu0 %v2988_v4  ;;  %v3868_v61 = vld [vmem:[%s4867_s1 + $0x5d8] sm:$0xff]   ;;  %v84_v4 = vld [vmem:[%s4868_s0 + $0x228] sm:$0xff] }
  0x8f   :  { %2637 = vmatprep.mubr.bf16.mxu1 %v2990_v5  ;;  %v2991_v5 = vcombine.low %v71_v0, %v83_v1 }
  0x90   :  { %3542 = vmatpush3.bf16.msra.mxu0 %v3837_v62  ;;  %v3869_v62 = vld [vmem:[%s4867_s1 + $0x518] sm:$0xff]  }
  0x91   :  { %3582 = vmatpush3.bf16.msra.mxu1 %v3838_v63  ;;  %3543 = vmatprep.subr.bf16.mxu0 %v3839_v8  ;;  %v3870_v63 = vld [vmem:[%s4867_s1 + $0x598] sm:$0xff]   ;;  %v3871_v8 = vld [vmem:[%s4867_s1 + $0x560] sm:$0xff]  }
  0x92   :  { %3583 = vmatprep.subr.bf16.mxu1 %v3840_v9  ;;  %v3872_v9 = vld [vmem:[%s4867_s1 + $0x5e0] sm:$0xff]  }
  0x93   :  { %2573 = vmatmul.mubr.bf16.gmra.mrb[56].mxu0 %v2987_v6  ;;  %v2994_v6 = vcombine.high %v72_v2, %v84_v4 }
  0x94   :  { %2638 = vmatmul.mubr.bf16.gmra.mrb[56].mxu1 %v2989_v7  ;;  %3544 = vmatpush3.bf16.msra.mxu0 %v3841_v10  ;;  %v2993_v7 = vcombine.low %v72_v2, %v84_v4  ;;  %v3873_v10 = vld [vmem:[%s4867_s1 + $0x520] sm:$0xff]  }
  0x95   :  { %3584 = vmatpush3.bf16.msra.mxu1 %v3842_v11  ;;  %3545 = vmatprep.subr.bf16.mxu0 %v3843_v12  ;;  %v3874_v11 = vld [vmem:[%s4867_s1 + $0x5a0] sm:$0xff]   ;;  %v3875_v12 = vld [vmem:[%s4867_s1 + $0x568] sm:$0xff]  }
  0x96   :  { %3585 = vmatprep.subr.bf16.mxu1 %v3844_v13  ;;  %2580 = vmatprep.mubr.bf16.mxu0 %v3012_v19  ;;  %v3876_v13 = vld [vmem:[%s4867_s1 + $0x5e8] sm:$0xff]   ;;  %v2926_v2 = vld [vmem:[%s4869_s2] ss:$0 sm:$0xff] }
  0x97   :  { %2645 = vmatprep.mubr.bf16.mxu1 %v3014_v22  ;;  %v96_v19 = vld [vmem:[%s4868_s0 + $0x288] sm:$0xff] }
  0x98   :  { %3546 = vmatpush3.bf16.msra.mxu0 %v3845_v14  ;;  %v3877_v14 = vld [vmem:[%s4867_s1 + $0x528] sm:$0xff]   ;;  %v3018_v22 = vcombine.high %v96_v19, %v108_v20 }
  0x99   :  { %3586 = vmatpush3.bf16.msra.mxu1 %v3846_v15  ;;  %3547 = vmatprep.subr.bf16.mxu0 %v3847_v24  ;;  %v3878_v15 = vld [vmem:[%s4867_s1 + $0x5a8] sm:$0xff]   ;;  %v3879_v24 = vld [vmem:[%s4867_s1 + $0x570] sm:$0xff]  }
  0x9a   :  { %3587 = vmatprep.subr.bf16.mxu1 %v3848_v25  ;;  %v3880_v25 = vld [vmem:[%s4867_s1 + $0x5f0] sm:$0xff]  }
  0x9b   :  { %2581 = vmatmul.mubr.bf16.gmra.mrb[60].mxu0 %v3011_v21  ;;  %v3015_v21 = vcombine.low %v95_v16, %v107_v17 }
  0x9c   :  { %2646 = vmatmul.mubr.bf16.gmra.mrb[60].mxu1 %v3013_v23  ;;  %3548 = vmatpush3.bf16.msra.mxu0 %v3849_v26  ;;  %v3017_v23 = vcombine.low %v96_v19, %v108_v20  ;;  %v3881_v26 = vld [vmem:[%s4867_s1 + $0x530] sm:$0xff]  }
  0x9d   :  { %3588 = vmatpush3.bf16.msra.mxu1 %v3850_v27  ;;  %3549 = vmatprep.subr.bf16.mxu0 %v3851_v28  ;;  %v3882_v27 = vld [vmem:[%s4867_s1 + $0x5b0] sm:$0xff]   ;;  %v3883_v28 = vld [vmem:[%s4867_s1 + $0x578] sm:$0xff]  }
  0x9e   :  { %3589 = vmatprep.subr.bf16.mxu1 %v3852_v29  ;;  %2686 = vmatprep.mubr.bf16.mxu0 %v2944_v35  ;;  %v3884_v29 = vld [vmem:[%s4867_s1 + $0x5f8] sm:$0xff]  }
  0x9f   :  { %2751 = vmatprep.mubr.bf16.mxu1 %v2946_v39  ;;  %v38_v35 = vld [vmem:[%s4868_s0 + $0xb8] sm:$0xff] }
  0xa0   :  { %3550 = vmatpush3.bf16.msra.mxu0 %v3853_v30  ;;  %v3885_v30 = vld [vmem:[%s4867_s1 + $0x538] sm:$0xff]  }
  0xa1   :  { %3590 = vmatpush3.bf16.msra.mxu1 %v3854_v31  ;;  %3615 = vmatprep.subr.bf16.mxu0 %v3855_v40  ;;  %v3886_v31 = vld [vmem:[%s4867_s1 + $0x5b8] sm:$0xff]   ;;  %v49_v40 = vld [vmem:[%s4868_s0 + $0x110] sm:$0xff] }
  0xa2   :  { %3655 = vmatprep.subr.bf16.mxu1 %v3856_v41  ;;  %v61_v41 = vld [vmem:[%s4868_s0 + $0x170] sm:$0xff] }
  0xa3   :  { %2687 = vmatmul.mubr.bf16.vlgmr.msra.gmra.mrb[64].mxu0 %v2943_v34  ;;  %v26_v34 = vld [vmem:[%s4868_s0 + $0x58] sm:$0xff]  ;;  %v2971_v50 = vcombine.low %v49_v40, %v61_v41 }
  0xa4   :  { %2752 = vmatmul.mubr.bf16.vlgmr.msra.gmra.mrb[64].mxu1 %v2945_v38  ;;  %3616 = vmatpush3.bf16.msra.mxu0 %v3857_v42  ;;  %v2949_v38 = vcombine.low %v26_v34, %v38_v35  ;;  %v2950_v39 = vcombine.high %v26_v34, %v38_v35  ;;  %v50_v42 = vld [vmem:[%s4868_s0 + $0x118] sm:$0xff] }
  0xa5   :  { %3656 = vmatpush3.bf16.msra.mxu1 %v3858_v43  ;;  %3617 = vmatprep.subr.bf16.mxu0 %v3859_v44  ;;  %v2972_v43 = vcombine.high %v49_v40, %v61_v41  ;;  %v62_v44 = vld [vmem:[%s4868_s0 + $0x178] sm:$0xff] }
  0xa6   :  { %3657 = vmatprep.subr.bf16.mxu1 %v3860_v45  ;;  %2694 = vmatprep.mubr.bf16.mxu0 %v2968_v52  ;;  %v2974_v45 = vcombine.high %v50_v42, %v62_v44  ;;  %v2973_v51 = vcombine.low %v50_v42, %v62_v44 }
  0xa7   :  { %2759 = vmatprep.mubr.bf16.mxu1 %v2970_v53  ;;  %v2998_v53 = vcombine.high %v74_v48, %v86_v49 }
  0xa8   :  { %3618 = vmatpush3.bf16.msra.mxu0 %v3861_v46  ;;  %v73_v46 = vld [vmem:[%s4868_s0 + $0x1d0] sm:$0xff] }
  0xa9   :  { %3658 = vmatpush3.bf16.msra.mxu1 %v3862_v47  ;;  %3619 = vmatprep.subr.bf16.mxu0 %v3863_v56  ;;  %v85_v47 = vld [vmem:[%s4868_s0 + $0x230] sm:$0xff]  ;;  %v98_v56 = vld [vmem:[%s4868_s0 + $0x298] sm:$0xff] }
  0xaa   :  { %3659 = vmatprep.subr.bf16.mxu1 %v3864_v57  ;;  %v2996_v52 = vcombine.high %v73_v46, %v85_v47  ;;  %v110_v57 = vld [vmem:[%s4868_s0 + $0x2f8] sm:$0xff] }
  0xab   :  { %2695 = vmatmul.mubr.bf16.gmra.mrb[68].mxu0 %v2967_v54  ;;  %v97_v54 = vld [vmem:[%s4868_s0 + $0x290] sm:$0xff] }
  0xac   :  { %2760 = vmatmul.mubr.bf16.gmra.mrb[68].mxu1 %v2969_v55  ;;  %3620 = vmatpush3.bf16.msra.mxu0 %v3865_v58  ;;  %v109_v55 = vld [vmem:[%s4868_s0 + $0x2f0] sm:$0xff]  ;;  %v2995_v58 = vcombine.low %v73_v46, %v85_v47 }
  0xad   :  { %3660 = vmatpush3.bf16.msra.mxu1 %v3866_v59  ;;  %3621 = vmatprep.subr.bf16.mxu0 %v3867_v60  ;;  %v2997_v59 = vcombine.low %v74_v48, %v86_v49  ;;  %v3020_v60 = vcombine.high %v97_v54, %v109_v55 }
  0xae   :  { %3661 = vmatprep.subr.bf16.mxu1 %v3868_v61  ;;  %2702 = vmatprep.mubr.bf16.mxu0 %v2992_v3  ;;  %v3022_v61 = vcombine.high %v98_v56, %v110_v57 }
  0xaf   :  { %2767 = vmatprep.mubr.bf16.mxu1 %v2994_v6 }
  0xb0   :  { %3622 = vmatpush3.bf16.msra.mxu0 %v3869_v62  ;;  %v3019_v62 = vcombine.low %v97_v54, %v109_v55 }
  0xb1   :  { %3662 = vmatpush3.bf16.msra.mxu1 %v3870_v63  ;;  %3623 = vmatprep.subr.bf16.mxu0 %v3871_v8  ;;  %v3021_v63 = vcombine.low %v98_v56, %v110_v57 }
  0xb2   :  { %3663 = vmatprep.subr.bf16.mxu1 %v3872_v9 }
  0xb3   :  { %2703 = vmatmul.mubr.bf16.gmra.mrb[72].mxu0 %v2991_v5 }
  0xb4   :  { %2768 = vmatmul.mubr.bf16.gmra.mrb[72].mxu1 %v2993_v7  ;;  %3624 = vmatpush3.bf16.msra.mxu0 %v3873_v10 }
  0xb5   :  { %3664 = vmatpush3.bf16.msra.mxu1 %v3874_v11  ;;  %3625 = vmatprep.subr.bf16.mxu0 %v3875_v12 }
  0xb6   :  { %3665 = vmatprep.subr.bf16.mxu1 %v3876_v13  ;;  %2710 = vmatprep.mubr.bf16.mxu0 %v3016_v18 }
  0xb7   :  { %2775 = vmatprep.mubr.bf16.mxu1 %v3018_v22 }
  0xb8   :  { %3626 = vmatpush3.bf16.msra.mxu0 %v3877_v14 }
  0xb9   :  { %3666 = vmatpush3.bf16.msra.mxu1 %v3878_v15  ;;  %3627 = vmatprep.subr.bf16.mxu0 %v3879_v24 }
  0xba   :  { %3667 = vmatprep.subr.bf16.mxu1 %v3880_v25 }
  0xbb   :  { %2711 = vmatmul.mubr.bf16.gmra.mrb[76].mxu0 %v3015_v21 }
  0xbc   :  { %2776 = vmatmul.mubr.bf16.gmra.mrb[76].mxu1 %v3017_v23  ;;  %3628 = vmatpush3.bf16.msra.mxu0 %v3881_v26 }
  0xbd   :  { %3668 = vmatpush3.bf16.msra.mxu1 %v3882_v27  ;;  %3629 = vmatprep.subr.bf16.mxu0 %v3883_v28 }
  0xbe   :  { %3669 = vmatprep.subr.bf16.mxu1 %v3884_v29  ;;  %2816 = vmatprep.mubr.bf16.mxu0 %v2948_v37 }
  0xbf   :  { %2881 = vmatprep.mubr.bf16.mxu1 %v2950_v39 }
  0xc0   :  { %3630 = vmatpush3.bf16.msra.mxu0 %v3885_v30 }
  0xc1   :  { %3670 = vmatpush3.bf16.msra.mxu1 %v3886_v31 }
  0xc3   :  { %2817 = vmatmul.mubr.bf16.vlgmr.msra.gmra.mrb[80].mxu0 %v2947_v36 }
  0xc4   :  { %2882 = vmatmul.mubr.bf16.vlgmr.msra.gmra.mrb[80].mxu1 %v2949_v38  ;;  %2824 = vmatprep.mubr.bf16.mxu0 %v2972_v43 }
  0xc5   :  { %2889 = vmatprep.mubr.bf16.mxu1 %v2974_v45 }
  0xcb   :  { %2825 = vmatmul.mubr.bf16.gmra.mrb[84].mxu0 %v2971_v50 }
  0xcc   :  { %2890 = vmatmul.mubr.bf16.gmra.mrb[84].mxu1 %v2973_v51  ;;  %2832 = vmatprep.mubr.bf16.mxu0 %v2996_v52 }
  0xcd   :  { %2897 = vmatprep.mubr.bf16.mxu1 %v2998_v53 }
  0xd3   :  { %2833 = vmatmul.mubr.bf16.gmra.mrb[88].mxu0 %v2995_v58 }
  0xd4   :  { %2898 = vmatmul.mubr.bf16.gmra.mrb[88].mxu1 %v2997_v59  ;;  %2840 = vmatprep.mubr.bf16.mxu0 %v3020_v60 }
  0xd5   :  { %2905 = vmatprep.mubr.bf16.mxu1 %v3022_v61 }
  0xdb   :  { %2841 = vmatmul.mubr.bf16.gmra.mrb[92].mxu0 %v3019_v62 }
  0xdc   :  { %2906 = vmatmul.mubr.bf16.gmra.mrb[92].mxu1 %v3021_v63 }
  0xf6   :  { %v3231_v0 = vpop.f32.mrb[0].mxu0 }
  0xf7   :  { %v3271_v1 = vpop.f32.mrb[0].mxu1  ;;  %v3232_v3 = vpop.f32.mrb[1].mxu0 }
  0xf8   :  { %v3233_v4 = vadd.f32 %v3232_v3, %v3231_v0  ;;  %v3272_v5 = vpop.f32.mrb[1].mxu1  ;;  %v3234_v6 = vpop.f32.mrb[2].mxu0 }
  0xf9   :  { %v3273_v7 = vadd.f32 %v3272_v5, %v3271_v1  ;;  %v3274_v8 = vpop.f32.mrb[2].mxu1  ;;  %v3235_v9 = vpop.f32.mrb[3].mxu0 }
  0xfa   :  { %v2169_v10 = vadd.f32 %v3233_v4, %v2926_v2  ;;  %v3236_v11 = vadd.f32 %v3235_v9, %v3234_v6  ;;  %v3275_v12 = vpop.f32.mrb[3].mxu1 }
  0xfb   :  { %v3276_v13 = vadd.f32 %v3275_v12, %v3274_v8 }
  0xfc   :  { %v2234_v14 = vadd.f32 %v3273_v7, %v2169_v10  ;;  %v2172_v15 = vadd.f32 %v3236_v11, %v2926_v2 }
  0xfe   :  { %v4774_v16 = vadd.f32 %v3276_v13, %v2172_v15  ;;  %v3237_v17 = vpop.f32.mrb[4].mxu0 }
  0xff   :  { %v3277_v18 = vpop.f32.mrb[4].mxu1  ;;  %v3238_v19 = vpop.f32.mrb[5].mxu0 }
 0x100   :  { %v3239_v20 = vadd.f32 %v3238_v19, %v3237_v17  ;;  %v3278_v21 = vpop.f32.mrb[5].mxu1  ;;  %v3240_v22 = vpop.f32.mrb[6].mxu0 }
 0x101   :  { %v3279_v23 = vadd.f32 %v3278_v21, %v3277_v18  ;;  %v3280_v24 = vpop.f32.mrb[6].mxu1  ;;  %v3241_v25 = vpop.f32.mrb[7].mxu0 }
 0x102   :  { %v2177_v26 = vadd.f32 %v3239_v20, %v2926_v2  ;;  %v3242_v27 = vadd.f32 %v3241_v25, %v3240_v22  ;;  %v3281_v28 = vpop.f32.mrb[7].mxu1 }
 0x103   :  { %v3282_v29 = vadd.f32 %v3281_v28, %v3280_v24 }
 0x104   :  { %v2242_v30 = vadd.f32 %v3279_v23, %v2177_v26  ;;  %v2180_v31 = vadd.f32 %v3242_v27, %v2926_v2 }
 0x106   :  { %v4776_v32 = vadd.f32 %v3282_v29, %v2180_v31  ;;  %v3243_v33 = vpop.f32.mrb[8].mxu0 }
 0x107   :  { %v3283_v34 = vpop.f32.mrb[8].mxu1  ;;  %v3244_v35 = vpop.f32.mrb[9].mxu0 }
 0x108   :  { %v3284_v36 = vpop.f32.mrb[9].mxu1  ;;  %v3245_v37 = vadd.f32 %v3244_v35, %v3243_v33  ;;  %v3246_v39 = vpop.f32.mrb[10].mxu0 }
 0x109   :  { %v3285_v38 = vadd.f32 %v3284_v36, %v3283_v34  ;;  %v3286_v40 = vpop.f32.mrb[10].mxu1  ;;  %v3247_v41 = vpop.f32.mrb[11].mxu0 }
 0x10a   :  { %v3287_v42 = vpop.f32.mrb[11].mxu1  ;;  %v2185_v43 = vadd.f32 %v3245_v37, %v2926_v2  ;;  %v3248_v44 = vadd.f32 %v3247_v41, %v3246_v39 }
 0x10b   :  { %v3288_v45 = vadd.f32 %v3287_v42, %v3286_v40 }
 0x10c   :  { %v2250_v46 = vadd.f32 %v3285_v38, %v2185_v43  ;;  %v2188_v47 = vadd.f32 %v3248_v44, %v2926_v2 }
 0x10e   :  { %v4778_v48 = vadd.f32 %v3288_v45, %v2188_v47  ;;  %v3249_v49 = vpop.f32.mrb[12].mxu0 }
 0x10f   :  { %v3289_v50 = vpop.f32.mrb[12].mxu1  ;;  %v3250_v51 = vpop.f32.mrb[13].mxu0 }
 0x110   :  { %v3251_v52 = vadd.f32 %v3250_v51, %v3249_v49  ;;  %v3290_v53 = vpop.f32.mrb[13].mxu1  ;;  %v3252_v54 = vpop.f32.mrb[14].mxu0 }
 0x111   :  { %v3291_v55 = vadd.f32 %v3290_v53, %v3289_v50  ;;  %v3292_v56 = vpop.f32.mrb[14].mxu1  ;;  %v3253_v57 = vpop.f32.mrb[15].mxu0 }
 0x112   :  { %v2193_v58 = vadd.f32 %v3251_v52, %v2926_v2  ;;  %v3254_v59 = vadd.f32 %v3253_v57, %v3252_v54  ;;  %v3293_v60 = vpop.f32.mrb[15].mxu1 }
 0x113   :  { %v3294_v61 = vadd.f32 %v3293_v60, %v3292_v56 }
 0x114   :  { %v2258_v62 = vadd.f32 %v3291_v55, %v2193_v58  ;;  %v2196_v63 = vadd.f32 %v3254_v59, %v2926_v2 }
 0x116   :  { %v4780_v0 = vadd.f32 %v3294_v61, %v2196_v63  ;;  %v3311_v1 = vpop.f32.mrb[16].mxu0 }
 0x117   :  { %v3351_v3 = vpop.f32.mrb[16].mxu1  ;;  %v3312_v4 = vpop.f32.mrb[17].mxu0 }
 0x118   :  { %v3313_v5 = vadd.f32 %v3312_v4, %v3311_v1  ;;  %v3352_v6 = vpop.f32.mrb[17].mxu1  ;;  %v3314_v7 = vpop.f32.mrb[18].mxu0 }
 0x119   :  { %v3353_v8 = vadd.f32 %v3352_v6, %v3351_v3  ;;  %v3354_v9 = vpop.f32.mrb[18].mxu1  ;;  %v3315_v10 = vpop.f32.mrb[19].mxu0 }
 0x11a   :  { %v2299_v11 = vadd.f32 %v3313_v5, %v2234_v14  ;;  %v3316_v12 = vadd.f32 %v3315_v10, %v3314_v7  ;;  %v3355_v13 = vpop.f32.mrb[19].mxu1 }
 0x11b   :  { %v3356_v15 = vadd.f32 %v3355_v13, %v3354_v9 }
 0x11c   :  { %v2364_v17 = vadd.f32 %v3353_v8, %v2299_v11  ;;  %v2302_v18 = vadd.f32 %v3316_v12, %v4774_v16 }
 0x11e   :  { %v4783_v19 = vadd.f32 %v3356_v15, %v2302_v18  ;;  %v3317_v2 = vpop.f32.mrb[20].mxu0 }
 0x11f   :  { %v3357_v20 = vpop.f32.mrb[20].mxu1  ;;  %v3318_v21 = vpop.f32.mrb[21].mxu0 }
 0x120   :  { %v3358_v22 = vpop.f32.mrb[21].mxu1  ;;  %v3319_v23 = vadd.f32 %v3318_v21, %v3317_v2  ;;  %v3320_v25 = vpop.f32.mrb[22].mxu0 }
 0x121   :  { %v3359_v24 = vadd.f32 %v3358_v22, %v3357_v20  ;;  %v3360_v26 = vpop.f32.mrb[22].mxu1  ;;  %v3321_v27 = vpop.f32.mrb[23].mxu0 }
 0x122   :  { %v3361_v28 = vpop.f32.mrb[23].mxu1  ;;  %v2307_v29 = vadd.f32 %v3319_v23, %v2242_v30  ;;  %v3322_v14 = vadd.f32 %v3321_v27, %v3320_v25 }
 0x123   :  { %v3362_v31 = vadd.f32 %v3361_v28, %v3360_v26 }
 0x124   :  { %v2372_v33 = vadd.f32 %v3359_v24, %v2307_v29  ;;  %v2310_v34 = vadd.f32 %v3322_v14, %v4776_v32 }
 0x126   :  { %v4786_v35 = vadd.f32 %v3362_v31, %v2310_v34  ;;  %v3323_v16 = vpop.f32.mrb[24].mxu0 }
 0x127   :  { %v3363_v36 = vpop.f32.mrb[24].mxu1  ;;  %v3324_v37 = vpop.f32.mrb[25].mxu0 }
 0x128   :  { %v3325_v38 = vadd.f32 %v3324_v37, %v3323_v16  ;;  %v3364_v39 = vpop.f32.mrb[25].mxu1  ;;  %v3326_v40 = vpop.f32.mrb[26].mxu0 }
 0x129   :  { %v3365_v41 = vadd.f32 %v3364_v39, %v3363_v36  ;;  %v3366_v42 = vpop.f32.mrb[26].mxu1  ;;  %v3327_v43 = vpop.f32.mrb[27].mxu0 }
 0x12a   :  { %v2315_v44 = vadd.f32 %v3325_v38, %v2250_v46  ;;  %v3328_v45 = vadd.f32 %v3327_v43, %v3326_v40  ;;  %v3367_v47 = vpop.f32.mrb[27].mxu1 }
 0x12b   :  { %v3368_v30 = vadd.f32 %v3367_v47, %v3366_v42 }
 0x12c   :  { %v2380_v49 = vadd.f32 %v3365_v41, %v2315_v44  ;;  %v2318_v50 = vadd.f32 %v3328_v45, %v4778_v48 }
 0x12e   :  { %v4789_v51 = vadd.f32 %v3368_v30, %v2318_v50  ;;  %v3329_v32 = vpop.f32.mrb[28].mxu0 }
 0x12f   :  { %v3369_v52 = vpop.f32.mrb[28].mxu1  ;;  %v3330_v53 = vpop.f32.mrb[29].mxu0 }
 0x130   :  { %v3331_v54 = vadd.f32 %v3330_v53, %v3329_v32  ;;  %v3370_v55 = vpop.f32.mrb[29].mxu1  ;;  %v3332_v56 = vpop.f32.mrb[30].mxu0 }
 0x131   :  { %v3371_v57 = vadd.f32 %v3370_v55, %v3369_v52  ;;  %v3372_v58 = vpop.f32.mrb[30].mxu1  ;;  %v3333_v59 = vpop.f32.mrb[31].mxu0 }
 0x132   :  { %v2323_v60 = vadd.f32 %v3331_v54, %v2258_v62  ;;  %v3334_v61 = vadd.f32 %v3333_v59, %v3332_v56  ;;  %v3373_v46 = vpop.f32.mrb[31].mxu1 }
 0x133   :  { %v3374_v63 = vadd.f32 %v3373_v46, %v3372_v58 }
 0x134   :  { %v2388_v1 = vadd.f32 %v3371_v57, %v2323_v60  ;;  %v2326_v3 = vadd.f32 %v3334_v61, %v4780_v0 }
 0x136   :  { %v4792_v4 = vadd.f32 %v3374_v63, %v2326_v3  ;;  %v3391_v48 = vpop.f32.mrb[32].mxu0 }
 0x137   :  { %v3431_v5 = vpop.f32.mrb[32].mxu1  ;;  %v3392_v6 = vpop.f32.mrb[33].mxu0 }
 0x138   :  { %v3432_v7 = vpop.f32.mrb[33].mxu1  ;;  %v3393_v8 = vadd.f32 %v3392_v6, %v3391_v48  ;;  %v3394_v10 = vpop.f32.mrb[34].mxu0 }
 0x139   :  { %v3433_v9 = vadd.f32 %v3432_v7, %v3431_v5  ;;  %v3434_v11 = vpop.f32.mrb[34].mxu1  ;;  %v3395_v12 = vpop.f32.mrb[35].mxu0 }
 0x13a   :  { %v3435_v13 = vpop.f32.mrb[35].mxu1  ;;  %v2429_v15 = vadd.f32 %v3393_v8, %v2364_v17  ;;  %v3396_v62 = vadd.f32 %v3395_v12, %v3394_v10 }
 0x13b   :  { %v3436_v18 = vadd.f32 %v3435_v13, %v3434_v11 }
 0x13c   :  { %v2494_v2 = vadd.f32 %v3433_v9, %v2429_v15  ;;  %v2432_v20 = vadd.f32 %v3396_v62, %v4783_v19 }
 0x13e   :  { %v4795_v21 = vadd.f32 %v3436_v18, %v2432_v20  ;;  %v3397_v0 = vpop.f32.mrb[36].mxu0 }
 0x13f   :  { %v3437_v22 = vpop.f32.mrb[36].mxu1  ;;  %v3398_v23 = vpop.f32.mrb[37].mxu0 }
 0x140   :  { %v3399_v24 = vadd.f32 %v3398_v23, %v3397_v0  ;;  %v3438_v25 = vpop.f32.mrb[37].mxu1  ;;  %v3400_v26 = vpop.f32.mrb[38].mxu0 }
 0x141   :  { %v3439_v27 = vadd.f32 %v3438_v25, %v3437_v22  ;;  %v3440_v28 = vpop.f32.mrb[38].mxu1  ;;  %v3401_v29 = vpop.f32.mrb[39].mxu0 }
 0x142   :  { %v2437_v14 = vadd.f32 %v3399_v24, %v2372_v33  ;;  %v3402_v31 = vadd.f32 %v3401_v29, %v3400_v26  ;;  %v3441_v34 = vpop.f32.mrb[39].mxu1 }
 0x143   :  { %v3442_v17 = vadd.f32 %v3441_v34, %v3440_v28 }
 0x144   :  { %v2502_v16 = vadd.f32 %v3439_v27, %v2437_v14  ;;  %v2440_v36 = vadd.f32 %v3402_v31, %v4786_v35 }
 0x146   :  { %v4798_v37 = vadd.f32 %v3442_v17, %v2440_v36  ;;  %v3403_v19 = vpop.f32.mrb[40].mxu0 }
 0x147   :  { %v3443_v38 = vpop.f32.mrb[40].mxu1  ;;  %v3404_v39 = vpop.f32.mrb[41].mxu0 }
 0x148   :  { %v3405_v40 = vadd.f32 %v3404_v39, %v3403_v19  ;;  %v3444_v41 = vpop.f32.mrb[41].mxu1  ;;  %v3406_v42 = vpop.f32.mrb[42].mxu0 }
 0x149   :  { %v3445_v43 = vadd.f32 %v3444_v41, %v3443_v38  ;;  %v3446_v44 = vpop.f32.mrb[42].mxu1  ;;  %v3407_v45 = vpop.f32.mrb[43].mxu0 }
 0x14a   :  { %v2445_v47 = vadd.f32 %v3405_v40, %v2380_v49  ;;  %v3408_v30 = vadd.f32 %v3407_v45, %v3406_v42  ;;  %v3447_v33 = vpop.f32.mrb[43].mxu1 }
 0x14b   :  { %v3448_v50 = vadd.f32 %v3447_v33, %v3446_v44 }
 0x14c   :  { %v2510_v32 = vadd.f32 %v3445_v43, %v2445_v47  ;;  %v2448_v52 = vadd.f32 %v3408_v30, %v4789_v51 }
 0x14e   :  { %v4801_v53 = vadd.f32 %v3448_v50, %v2448_v52  ;;  %v3409_v35 = vpop.f32.mrb[44].mxu0 }
 0x14f   :  { %v3449_v54 = vpop.f32.mrb[44].mxu1  ;;  %v3410_v55 = vpop.f32.mrb[45].mxu0 }
 0x150   :  { %v3450_v56 = vpop.f32.mrb[45].mxu1  ;;  %v3411_v57 = vadd.f32 %v3410_v55, %v3409_v35  ;;  %v3412_v59 = vpop.f32.mrb[46].mxu0 }
 0x151   :  { %v3451_v58 = vadd.f32 %v3450_v56, %v3449_v54  ;;  %v3452_v60 = vpop.f32.mrb[46].mxu1  ;;  %v3413_v61 = vpop.f32.mrb[47].mxu0 }
 0x152   :  { %v3453_v46 = vpop.f32.mrb[47].mxu1  ;;  %v2453_v63 = vadd.f32 %v3411_v57, %v2388_v1  ;;  %v3414_v49 = vadd.f32 %v3413_v61, %v3412_v59 }
 0x153   :  { %v3454_v3 = vadd.f32 %v3453_v46, %v3452_v60 }
 0x154   :  { %v2518_v48 = vadd.f32 %v3451_v58, %v2453_v63  ;;  %v2456_v5 = vadd.f32 %v3414_v49, %v4792_v4 }
 0x156   :  { %v4804_v6 = vadd.f32 %v3454_v3, %v2456_v5  ;;  %v3471_v51 = vpop.f32.mrb[48].mxu0 }
 0x157   :  { %v3511_v7 = vpop.f32.mrb[48].mxu1  ;;  %v3472_v8 = vpop.f32.mrb[49].mxu0 }
 0x158   :  { %v3473_v9 = vadd.f32 %v3472_v8, %v3471_v51  ;;  %v3512_v10 = vpop.f32.mrb[49].mxu1  ;;  %v3474_v11 = vpop.f32.mrb[50].mxu0 }
 0x159   :  { %v3513_v12 = vadd.f32 %v3512_v10, %v3511_v7  ;;  %v3514_v13 = vpop.f32.mrb[50].mxu1  ;;  %v3475_v15 = vpop.f32.mrb[51].mxu0 }
 0x15a   :  { %v2559_v62 = vadd.f32 %v3473_v9, %v2494_v2  ;;  %v3476_v18 = vadd.f32 %v3475_v15, %v3474_v11  ;;  %v3515_v20 = vpop.f32.mrb[51].mxu1 }
 0x15b   :  { %v3516_v1 = vadd.f32 %v3515_v20, %v3514_v13 }
 0x15c   :  { %v2624_v0 = vadd.f32 %v3513_v12, %v2559_v62  ;;  %v2562_v22 = vadd.f32 %v3476_v18, %v4795_v21 }
 0x15e   :  { %v4807_v23 = vadd.f32 %v3516_v1, %v2562_v22  ;;  %v3477_v4 = vpop.f32.mrb[52].mxu0 }
 0x15f   :  { %v3517_v24 = vpop.f32.mrb[52].mxu1  ;;  %v3478_v25 = vpop.f32.mrb[53].mxu0 }
 0x160   :  { %v3479_v26 = vadd.f32 %v3478_v25, %v3477_v4  ;;  %v3518_v27 = vpop.f32.mrb[53].mxu1  ;;  %v3480_v28 = vpop.f32.mrb[54].mxu0 }
 0x161   :  { %v3519_v29 = vadd.f32 %v3518_v27, %v3517_v24  ;;  %v3520_v14 = vpop.f32.mrb[54].mxu1  ;;  %v3481_v31 = vpop.f32.mrb[55].mxu0 }
 0x162   :  { %v2567_v34 = vadd.f32 %v3479_v26, %v2502_v16  ;;  %v3482_v17 = vadd.f32 %v3481_v31, %v3480_v28  ;;  %v3521_v2 = vpop.f32.mrb[55].mxu1 }
 0x163   :  { %v3522_v36 = vadd.f32 %v3521_v2, %v3520_v14 }
 0x164   :  { %v2632_v19 = vadd.f32 %v3519_v29, %v2567_v34  ;;  %v2570_v38 = vadd.f32 %v3482_v17, %v4798_v37 }
 0x166   :  { %v4810_v39 = vadd.f32 %v3522_v36, %v2570_v38  ;;  %v3483_v21 = vpop.f32.mrb[56].mxu0 }
 0x167   :  { %v3523_v40 = vpop.f32.mrb[56].mxu1  ;;  %v3484_v41 = vpop.f32.mrb[57].mxu0 }
 0x168   :  { %v3524_v42 = vpop.f32.mrb[57].mxu1  ;;  %v3485_v43 = vadd.f32 %v3484_v41, %v3483_v21  ;;  %v3486_v45 = vpop.f32.mrb[58].mxu0 }
 0x169   :  { %v3525_v44 = vadd.f32 %v3524_v42, %v3523_v40  ;;  %v3526_v47 = vpop.f32.mrb[58].mxu1  ;;  %v3487_v30 = vpop.f32.mrb[59].mxu0 }
 0x16a   :  { %v3527_v33 = vpop.f32.mrb[59].mxu1  ;;  %v2575_v50 = vadd.f32 %v3485_v43, %v2510_v32  ;;  %v3488_v16 = vadd.f32 %v3487_v30, %v3486_v45 }
 0x16b   :  { %v3528_v52 = vadd.f32 %v3527_v33, %v3526_v47 }
 0x16c   :  { %v2640_v35 = vadd.f32 %v3525_v44, %v2575_v50  ;;  %v2578_v54 = vadd.f32 %v3488_v16, %v4801_v53 }
 0x16e   :  { %v4813_v55 = vadd.f32 %v3528_v52, %v2578_v54  ;;  %v3489_v37 = vpop.f32.mrb[60].mxu0 }
 0x16f   :  { %v3529_v56 = vpop.f32.mrb[60].mxu1  ;;  %v3490_v57 = vpop.f32.mrb[61].mxu0 }
 0x170   :  { %v3491_v58 = vadd.f32 %v3490_v57, %v3489_v37  ;;  %v3530_v59 = vpop.f32.mrb[61].mxu1  ;;  %v3492_v60 = vpop.f32.mrb[62].mxu0 }
 0x171   :  { %v3531_v61 = vadd.f32 %v3530_v59, %v3529_v56  ;;  %v3532_v46 = vpop.f32.mrb[62].mxu1  ;;  %v3493_v63 = vpop.f32.mrb[63].mxu0 }
 0x172   :  { %v2583_v49 = vadd.f32 %v3491_v58, %v2518_v48  ;;  %v3494_v3 = vadd.f32 %v3493_v63, %v3492_v60  ;;  %v3533_v5 = vpop.f32.mrb[63].mxu1 }
 0x173   :  { %v3534_v32 = vadd.f32 %v3533_v5, %v3532_v46 }
 0x174   :  { %v2648_v51 = vadd.f32 %v3531_v61, %v2583_v49  ;;  %v2586_v7 = vadd.f32 %v3494_v3, %v4804_v6 }
 0x176   :  { %v4816_v8 = vadd.f32 %v3534_v32, %v2586_v7  ;;  %v3551_v53 = vpop.f32.mrb[64].mxu0 }
 0x177   :  { %v3591_v9 = vpop.f32.mrb[64].mxu1  ;;  %v3552_v10 = vpop.f32.mrb[65].mxu0 }
 0x178   :  { %v3553_v11 = vadd.f32 %v3552_v10, %v3551_v53  ;;  %v3592_v12 = vpop.f32.mrb[65].mxu1  ;;  %v3554_v13 = vpop.f32.mrb[66].mxu0 }
 0x179   :  { %v3593_v15 = vadd.f32 %v3592_v12, %v3591_v9  ;;  %v3594_v62 = vpop.f32.mrb[66].mxu1  ;;  %v3555_v18 = vpop.f32.mrb[67].mxu0 }
 0x17a   :  { %v2689_v20 = vadd.f32 %v3553_v11, %v2624_v0  ;;  %v3556_v1 = vadd.f32 %v3555_v18, %v3554_v13  ;;  %v3595_v48 = vpop.f32.mrb[67].mxu1 }
 0x17b   :  { %v3596_v22 = vadd.f32 %v3595_v48, %v3594_v62 }
 0x17c   :  { %v2754_v4 = vadd.f32 %v3593_v15, %v2689_v20  ;;  %v2692_v24 = vadd.f32 %v3556_v1, %v4807_v23 }
 0x17e   :  { %v4819_v25 = vadd.f32 %v3596_v22, %v2692_v24  ;;  %v3557_v6 = vpop.f32.mrb[68].mxu0 }
 0x17f   :  { %v3597_v26 = vpop.f32.mrb[68].mxu1  ;;  %v3558_v27 = vpop.f32.mrb[69].mxu0 }
 0x180   :  { %v3598_v28 = vpop.f32.mrb[69].mxu1  ;;  %v3559_v29 = vadd.f32 %v3558_v27, %v3557_v6  ;;  %v3560_v31 = vpop.f32.mrb[70].mxu0 }
 0x181   :  { %v3599_v14 = vadd.f32 %v3598_v28, %v3597_v26  ;;  %v3600_v34 = vpop.f32.mrb[70].mxu1  ;;  %v3561_v17 = vpop.f32.mrb[71].mxu0 }
 0x182   :  { %v3601_v2 = vpop.f32.mrb[71].mxu1  ;;  %v2697_v36 = vadd.f32 %v3559_v29, %v2632_v19  ;;  %v3562_v0 = vadd.f32 %v3561_v17, %v3560_v31 }
 0x183   :  { %v3602_v38 = vadd.f32 %v3601_v2, %v3600_v34 }
 0x184   :  { %v4821_v21 = vadd.f32 %v3599_v14, %v2697_v36  ;;  %v2700_v40 = vadd.f32 %v3562_v0, %v4810_v39 }
 0x186   :  { %v4824_v23 = vadd.f32 %v3602_v38, %v2700_v40  ;;  %v3563_v41 = vpop.f32.mrb[72].mxu0 }
 0x187   :  { %v3603_v42 = vpop.f32.mrb[72].mxu1  ;;  %v3564_v43 = vpop.f32.mrb[73].mxu0 }
 0x188   :  { %v3565_v44 = vadd.f32 %v3564_v43, %v3563_v41  ;;  %v3604_v45 = vpop.f32.mrb[73].mxu1  ;;  %v3566_v47 = vpop.f32.mrb[74].mxu0 }
 0x189   :  { %v3605_v30 = vadd.f32 %v3604_v45, %v3603_v42  ;;  %v3606_v33 = vpop.f32.mrb[74].mxu1  ;;  %v3567_v50 = vpop.f32.mrb[75].mxu0 }
 0x18a   :  { %v2705_v16 = vadd.f32 %v3565_v44, %v2640_v35  ;;  %v3568_v52 = vadd.f32 %v3567_v50, %v3566_v47  ;;  %v3607_v19 = vpop.f32.mrb[75].mxu1 }
 0x18b   :  { %v3608_v54 = vadd.f32 %v3607_v19, %v3606_v33 }
 0x18c   :  { %v4826_v37 = vadd.f32 %v3605_v30, %v2705_v16  ;;  %v2708_v56 = vadd.f32 %v3568_v52, %v4813_v55 }
 0x18e   :  { %v4829_v39 = vadd.f32 %v3608_v54, %v2708_v56  ;;  %v3569_v57 = vpop.f32.mrb[76].mxu0 }
 0x18f   :  { %v3609_v58 = vpop.f32.mrb[76].mxu1  ;;  %v3570_v59 = vpop.f32.mrb[77].mxu0 }
 0x190   :  { %v3571_v60 = vadd.f32 %v3570_v59, %v3569_v57  ;;  %v3610_v61 = vpop.f32.mrb[77].mxu1  ;;  %v3572_v46 = vpop.f32.mrb[78].mxu0 }
 0x191   :  { %v3611_v63 = vadd.f32 %v3610_v61, %v3609_v58  ;;  %v3612_v49 = vpop.f32.mrb[78].mxu1  ;;  %v3573_v3 = vpop.f32.mrb[79].mxu0 }
 0x192   :  { %v2713_v5 = vadd.f32 %v3571_v60, %v2648_v51  ;;  %v3574_v35 = vadd.f32 %v3573_v3, %v3572_v46  ;;  %v3613_v32 = vpop.f32.mrb[79].mxu1 }
 0x193   :  { %v3614_v7 = vadd.f32 %v3613_v32, %v3612_v49 }
 0x194   :  { %v4831_v53 = vadd.f32 %v3611_v63, %v2713_v5  ;;  %v2716_v9 = vadd.f32 %v3574_v35, %v4816_v8 }
 0x196   :  { %v4834_v55 = vadd.f32 %v3614_v7, %v2716_v9  ;;  %v3631_v10 = vpop.f32.mrb[80].mxu0 }
 0x197   :  { %v3671_v11 = vpop.f32.mrb[80].mxu1  ;;  %v3632_v12 = vpop.f32.mrb[81].mxu0 }
 0x198   :  { %v3672_v13 = vpop.f32.mrb[81].mxu1  ;;  %v3633_v15 = vadd.f32 %v3632_v12, %v3631_v10  ;;  %v3634_v18 = vpop.f32.mrb[82].mxu0 }
 0x199   :  { %v3673_v62 = vadd.f32 %v3672_v13, %v3671_v11  ;;  %v3674_v20 = vpop.f32.mrb[82].mxu1  ;;  %v3635_v1 = vpop.f32.mrb[83].mxu0 }
 0x19a   :  { %v3675_v48 = vpop.f32.mrb[83].mxu1  ;;  %v2819_v51 = vadd.f32 %v3633_v15, %v2754_v4  ;;  %v3636_v22 = vadd.f32 %v3635_v1, %v3634_v18 }
 0x19b   :  { %v3676_v24 = vadd.f32 %v3675_v48, %v3674_v20 }
 0x19c   :  { %v2884_v6 = vadd.f32 %v3673_v62, %v2819_v51  ;;  %v2822_v26 = vadd.f32 %v3636_v22, %v4819_v25 }
 0x19e   :  { %2914 = vst [vmem:[%s4870_s3] sm:$0xff] %v2884_v6  ;;  %v2887_v8 = vadd.f32 %v3676_v24, %v2822_v26  ;;  %v3637_v27 = vpop.f32.mrb[84].mxu0 }
 0x19f   :  { %v3677_v28 = vpop.f32.mrb[84].mxu1  ;;  %v3638_v29 = vpop.f32.mrb[85].mxu0 }
 0x1a0   :  { %v3678_v14 = vpop.f32.mrb[85].mxu1  ;;  %2915 = vst [vmem:[%s4870_s3 + $0x8] sm:$0xff] %v2887_v8  ;;  %v3639_v31 = vadd.f32 %v3638_v29, %v3637_v27  ;;  %v3640_v34 = vpop.f32.mrb[86].mxu0 }
 0x1a1   :  { %v3679_v4 = vadd.f32 %v3678_v14, %v3677_v28  ;;  %v3680_v17 = vpop.f32.mrb[86].mxu1  ;;  %v3641_v2 = vpop.f32.mrb[87].mxu0 }
 0x1a2   :  { %v3681_v36 = vpop.f32.mrb[87].mxu1  ;;  %v2827_v25 = vadd.f32 %v3639_v31, %v4821_v21  ;;  %v3642_v0 = vadd.f32 %v3641_v2, %v3640_v34 }
 0x1a3   :  { %v3682_v38 = vadd.f32 %v3681_v36, %v3680_v17 }
 0x1a4   :  { %v2892_v40 = vadd.f32 %v3679_v4, %v2827_v25  ;;  %v2830_v41 = vadd.f32 %v3642_v0, %v4824_v23 }
 0x1a6   :  { %2916 = vst [vmem:[%s4870_s3 + $0x10] sm:$0xff] %v2892_v40  ;;  %v2895_v42 = vadd.f32 %v3682_v38, %v2830_v41  ;;  %v3643_v43 = vpop.f32.mrb[88].mxu0 }
 0x1a7   :  { %v3683_v44 = vpop.f32.mrb[88].mxu1  ;;  %v3644_v45 = vpop.f32.mrb[89].mxu0 }
 0x1a8   :  { %v3684_v47 = vpop.f32.mrb[89].mxu1  ;;  %2917 = vst [vmem:[%s4870_s3 + $0x18] sm:$0xff] %v2895_v42  ;;  %v3645_v30 = vadd.f32 %v3644_v45, %v3643_v43  ;;  %v3646_v33 = vpop.f32.mrb[90].mxu0 }
 0x1a9   :  { %v3685_v21 = vadd.f32 %v3684_v47, %v3683_v44  ;;  %v3686_v50 = vpop.f32.mrb[90].mxu1  ;;  %v3647_v16 = vpop.f32.mrb[91].mxu0 }
 0x1aa   :  { %v3687_v52 = vpop.f32.mrb[91].mxu1  ;;  %v2835_v23 = vadd.f32 %v3645_v30, %v4826_v37  ;;  %v3648_v19 = vadd.f32 %v3647_v16, %v3646_v33 }
 0x1ab   :  { %v3688_v54 = vadd.f32 %v3687_v52, %v3686_v50 }
 0x1ac   :  { %v2900_v56 = vadd.f32 %v3685_v21, %v2835_v23  ;;  %v2838_v57 = vadd.f32 %v3648_v19, %v4829_v39 }
 0x1ae   :  { %2918 = vst [vmem:[%s4870_s3 + $0x20] sm:$0xff] %v2900_v56  ;;  %v2903_v58 = vadd.f32 %v3688_v54, %v2838_v57  ;;  %v3649_v59 = vpop.f32.mrb[92].mxu0 }
 0x1af   :  { %v3689_v60 = vpop.f32.mrb[92].mxu1  ;;  %v3650_v61 = vpop.f32.mrb[93].mxu0 }
 0x1b0   :  { %v3690_v46 = vpop.f32.mrb[93].mxu1  ;;  %2919 = vst [vmem:[%s4870_s3 + $0x28] sm:$0xff] %v2903_v58  ;;  %v3651_v63 = vadd.f32 %v3650_v61, %v3649_v59  ;;  %v3652_v49 = vpop.f32.mrb[94].mxu0 }
 0x1b1   :  { %v3691_v37 = vadd.f32 %v3690_v46, %v3689_v60  ;;  %v3692_v3 = vpop.f32.mrb[94].mxu1  ;;  %v3653_v5 = vpop.f32.mrb[95].mxu0 }
 0x1b2   :  { %v3693_v35 = vpop.f32.mrb[95].mxu1  ;;  %v2843_v39 = vadd.f32 %v3651_v63, %v4831_v53  ;;  %v3654_v32 = vadd.f32 %v3653_v5, %v3652_v49 }
 0x1b3   :  { %v3694_v7 = vadd.f32 %v3693_v35, %v3692_v3 }
 0x1b4   :  { %v2908_v9 = vadd.f32 %v3691_v37, %v2843_v39  ;;  %v2846_v10 = vadd.f32 %v3654_v32, %v4834_v55 }
 0x1b6   :  { %2920 = vst [vmem:[%s4870_s3 + $0x30] sm:$0xff] %v2908_v9  ;;  %v2911_v11 = vadd.f32 %v3694_v7, %v2846_v10 }
 0x1b8   :  { %2921 = vst [vmem:[%s4870_s3 + $0x38] sm:$0xff] %v2911_v11 }

</bundles_post_ra>
